<compile_context>
chip_gen: v7x
topology: tpu7x:2x2x1
jax: 0.10.0
libtpu: 0.0.40
codegen_flags: <defaults>
</compile_context>

<pallas_src>
import math
from functools import partial

import jax
import jax.numpy as jnp
from jax import lax
from jax.experimental import pallas as pl
from jax.experimental.pallas import tpu as pltpu

NUM_HEADS = 4
LN_EPS = 1e-6          # LayerNorm(c_in, eps=1e-06)


def _layernorm(v, gamma, beta):
    mu = jnp.mean(v, axis=-1, keepdims=True)
    var = jnp.mean((v - mu) ** 2, axis=-1, keepdims=True)
    return (v - mu) * lax.rsqrt(var + LN_EPS) * gamma + beta


def _erf(x):
    # Abramowitz & Stegun 7.1.26 rational approximation, |error| <= 1.5e-7.
    # Uses only exp/abs/mul/add -> safe elementwise lowering on all TPU generations.
    a1, a2, a3, a4, a5 = 0.254829592, -0.284496736, 1.421413741, -1.453152027, 1.061405429
    p = 0.3275911
    sgn = jnp.where(x >= 0.0, 1.0, -1.0)
    ax = jnp.abs(x)
    t = 1.0 / (1.0 + p * ax)
    poly = ((((a5 * t + a4) * t + a3) * t + a2) * t + a1) * t
    return sgn * (1.0 - poly * jnp.exp(-ax * ax))


def _gelu_exact(x):
    # torch.nn.functional.gelu default (exact, erf-based).
    return 0.5 * x * (1.0 + _erf(x * (1.0 / math.sqrt(2.0))))


def encoder_kernel(x_ref, pvec_ref, wqkv_ref, wo_ref, w1_ref, w2_ref, o_ref,
                   *, seq, heads):
    # x_ref block: (T, C) tokens-by-channels slab, T = batch_block * seq.
    x = x_ref[...].astype(jnp.float32)
    T, C = x.shape
    bt = T // seq
    dh = C // heads
    inv_sqrt_d = 1.0 / math.sqrt(dh)

    # Packed parameter slab (one DMA): rows are
    # [ln1_g, ln1_b, bq, bk, bv, bo, ln2_g, ln2_b, b1, b2, enc_g, enc_b]
    pv = pvec_ref[...].astype(jnp.float32)
    ln1_g, ln1_b = pv[0:1], pv[1:2]
    bq, bk, bv_, bo = pv[2:3], pv[3:4], pv[4:5], pv[5:6]
    ln2_g, ln2_b = pv[6:7], pv[7:8]
    b1, b2 = pv[8:9], pv[9:10]
    enc_g, enc_b = pv[10:11], pv[11:12]

    # ---------------- attention branch ----------------
    xn = _layernorm(x, ln1_g, ln1_b)

    # Fused QKV projection: single (T, C) @ (C, 3C) MXU matmul (f32 acc).
    # (For large C, cast xn / wqkv to bf16 here and keep preferred_element_type=f32.)
    qkv = jnp.dot(xn, wqkv_ref[...], preferred_element_type=jnp.float32)

    q3 = (qkv[:, :C] + bq).reshape(bt, seq, C)          # leading-dim-only reshapes
    k3 = (qkv[:, C:2 * C] + bk).reshape(bt, seq, C)     # (minor dim unchanged)
    v3 = (qkv[:, 2 * C:3 * C] + bv_).reshape(bt, seq, C)

    # Head handling via channel masks: no narrow lane slicing, no head-axis reshapes.
    ch = lax.broadcasted_iota(jnp.int32, (1, 1, C), 2)

    ctx = jnp.zeros((bt, seq, C), jnp.float32)
    for h in range(heads):                              # heads = 4, statically unrolled
        lo = h * dh
        msk = ((ch >= lo) & (ch < lo + dh)).astype(jnp.float32)
        # (Q*mask_h)·K over all C  ==  Q·K over head-h channels only.
        s = jnp.einsum("bqc,bkc->bqk", q3 * msk, k3,
                       preferred_element_type=jnp.float32) * inv_sqrt_d
        s = s - jnp.max(s, axis=-1, keepdims=True)
        p = jnp.exp(s)
        p = p / jnp.sum(p, axis=-1, keepdims=True)      # exact division (tight parity)
        # Heads write disjoint column ranges -> summation reproduces the head concat.
        ctx = ctx + jnp.einsum("bqk,bkc->bqc", p, v3 * msk,
                               preferred_element_type=jnp.float32)

    # Single full-width output projection (was 4 K=dh accumulation matmuls).
    attn = jnp.dot(ctx.reshape(T, C), wo_ref[...],
                   preferred_element_type=jnp.float32) + bo
    x1 = attn + x

    # ---------------- MLP branch ----------------
    xn2 = _layernorm(x1, ln2_g, ln2_b)
    y = jnp.dot(xn2, w1_ref[...], preferred_element_type=jnp.float32) + b1
    y = _gelu_exact(y)
    # TODO(synk): Dropout(0.1) omitted (identity at inference).
    y = jnp.dot(y, w2_ref[...], preferred_element_type=jnp.float32) + b2
    out = y + x1

    # Encoder's trailing LayerNorm fused into the same kernel (saves a separate XLA op).
    out = _layernorm(out, enc_g, enc_b)
    o_ref[...] = out.astype(o_ref.dtype)


def _choose_batch_block(B, S, C, *, block_budget_bytes=1_572_864, min_rows_per_step=256):
    """Rows-per-step policy:
       * single grid step when the whole slab fits the ~1.5 MiB activation budget and
         there is not enough work (>= 512 token rows) to split across v7x TensorCores;
       * otherwise the largest divisor of B under the budget (>= 2 steps when possible).
       The 1.5 MiB x-block keeps (double-buffered in/out + ~10x intermediates) well under
       the explicit 32 MiB vmem limit on v5e/v6e/v7x."""
    total_rows = B * S
    if total_rows * 4 * C <= block_budget_bytes and total_rows < 2 * min_rows_per_step:
        return B
    cap_rows = max(S, block_budget_bytes // (4 * C))
    bt_max = max(1, min(B, cap_rows // S))
    if total_rows >= 2 * min_rows_per_step:
        bt_max = min(bt_max, max(1, B // 2))
    for bt in range(bt_max, 0, -1):
        # (8,128) rule: a partial block's sublane extent must be a multiple of 8.
        if B % bt == 0 and (bt == B or (bt * S) % 8 == 0):
            return bt
    return B


def encoder_forward(x, params, batch_block=None):
    """x: (B, S, C) tokens; params from init_params (matmul weights stored (in, out))."""
    B, S, C = x.shape
    bt = _choose_batch_block(B, S, C) if batch_block is None else batch_block
    assert B % bt == 0, "batch_block must divide B"
    T = bt * S

    # Fuse Q/K/V weights into one lane-dense (C, 3C) projection on the host.
    wqkv = jnp.concatenate([params["wq"], params["wk"], params["wv"]], axis=1)
    # All small vectors packed into one (12, C) slab -> one DMA.
    pvec = jnp.stack([params["ln1_g"], params["ln1_b"],
                      params["bq"], params["bk"], params["bv"], params["bo"],
                      params["ln2_g"], params["ln2_b"],
                      params["b1"], params["b2"],
                      params["enc_g"], params["enc_b"]], axis=0)

    x2 = x.reshape(B * S, C)
    x_spec = pl.BlockSpec((T, C), lambda i: (i, 0))

    def full_spec(shape):
        return pl.BlockSpec(shape, lambda i: (0, 0))

    out2 = pl.pallas_call(
        partial(encoder_kernel, seq=S, heads=NUM_HEADS),
        out_shape=jax.ShapeDtypeStruct((B * S, C), x.dtype),
        grid=(B // bt,),
        in_specs=[x_spec,
                  full_spec((12, C)),
                  full_spec((C, 3 * C)),
                  full_spec((C, C)),
                  full_spec((C, C)),
                  full_spec((C, C))],
        out_specs=x_spec,
        compiler_params=pltpu.CompilerParams(
            dimension_semantics=("parallel",),
            vmem_limit_bytes=32 * 1024 * 1024),
    )(x2, pvec, wqkv, params["wo"], params["w1"], params["w2"])

    return out2.reshape(B, S, C)


def transformer_forward(x5, params, batch_block=None):
    """Full Transformer stage: rearrange 'b c n h w -> (b h w) n c', Encoder, rearrange back."""
    b, c, n, h, w = x5.shape
    tok = jnp.transpose(x5, (0, 3, 4, 2, 1)).reshape(b * h * w, n, c)
    out_tok = encoder_forward(tok, params, batch_block)
    return jnp.transpose(out_tok.reshape(b, h, w, n, c), (0, 4, 3, 1, 2))


def init_params(key, c_in):
    """Deterministic init.  Matmul weights stored as (in, out) = torch weight transposed."""
    ks = jax.random.split(key, 12)

    def lin_w(k):
        limit = math.sqrt(6.0 / (c_in + c_in))          # xavier-uniform-ish
        return jax.random.uniform(k, (c_in, c_in), jnp.float32, -limit, limit)

    def lin_b(k, std=0.02):
        return jax.random.normal(k, (c_in,), jnp.float32) * std

    return {
        "ln1_g": jnp.ones((c_in,), jnp.float32), "ln1_b": jnp.zeros((c_in,), jnp.float32),
        "ln2_g": jnp.ones((c_in,), jnp.float32), "ln2_b": jnp.zeros((c_in,), jnp.float32),
        "enc_g": jnp.ones((c_in,), jnp.float32), "enc_b": jnp.zeros((c_in,), jnp.float32),
        "wq": lin_w(ks[0]), "bq": lin_b(ks[1]),
        "wk": lin_w(ks[2]), "bk": lin_b(ks[3]),
        "wv": lin_w(ks[4]), "bv": lin_b(ks[5]),
        "wo": lin_w(ks[6]), "bo": lin_b(ks[7]),
        "w1": lin_w(ks[8]), "b1": lin_b(ks[9], 1e-6),
        "w2": lin_w(ks[10]), "b2": lin_b(ks[11], 1e-6),
    }


def transformer_reference(x5, p):
    """Pure-JAX reference (per-head math exactly as the PyTorch module; highest precision)."""
    b, c, n, hh, ww = x5.shape
    hi = lax.Precision.HIGHEST
    head = c // NUM_HEADS
    tok = jnp.transpose(x5, (0, 3, 4, 2, 1)).reshape(b * hh * ww, n, c)

    def ln(v, g, bb):
        mu = jnp.mean(v, -1, keepdims=True)
        var = jnp.mean((v - mu) ** 2, -1, keepdims=True)
        return (v - mu) / jnp.sqrt(var + LN_EPS) * g + bb

    res = tok
    xn = ln(tok, p["ln1_g"], p["ln1_b"])
    q = jnp.einsum("bsc,cd->bsd", xn, p["wq"], precision=hi) + p["bq"]
    k = jnp.einsum("bsc,cd->bsd", xn, p["wk"], precision=hi) + p["bk"]
    v = jnp.einsum("bsc,cd->bsd", xn, p["wv"], precision=hi) + p["bv"]
    B, S, _ = q.shape
    qh = q.reshape(B, S, NUM_HEADS, head).transpose(0, 2, 1, 3)
    kh = k.reshape(B, S, NUM_HEADS, head).transpose(0, 2, 1, 3)
    vh = v.reshape(B, S, NUM_HEADS, head).transpose(0, 2, 1, 3)
    scores = jnp.einsum("bhqd,bhkd->bhqk", qh, kh, precision=hi) / math.sqrt(head)
    probs = jax.nn.softmax(scores, axis=-1)
    ctx = jnp.einsum("bhqk,bhkd->bhqd", probs, vh,
                     precision=hi).transpose(0, 2, 1, 3).reshape(B, S, c)
    attn = jnp.einsum("bsc,cd->bsd", ctx, p["wo"], precision=hi) + p["bo"]
    x1 = attn + res
    xn2 = ln(x1, p["ln2_g"], p["ln2_b"])
    y = jax.nn.gelu(jnp.einsum("bsc,cd->bsd", xn2, p["w1"], precision=hi) + p["b1"],
                    approximate=False)
    y = jnp.einsum("bsc,cd->bsd", y, p["w2"], precision=hi) + p["b2"]
    out_tok = ln(y + x1, p["enc_g"], p["enc_b"])
    return jnp.transpose(out_tok.reshape(b, hh, ww, n, c), (0, 4, 3, 1, 2))


if __name__ == "__main__":
    key = jax.random.PRNGKey(0)
    k1, k2, k3, k4 = jax.random.split(key, 4)

    # Transformer(32) stage (after the first Conv3d+LeakyReLU of LightExtractor):
    # (b, c, n, h, w) = (2, 32, 8, 4, 4)  ->  tokens B = b*h*w = 32, seq = 8, C = 32.
    x32 = jax.random.normal(k1, (2, 32, 8, 4, 4), jnp.float32)
    p32 = init_params(k2, 32)
    out32 = jax.block_until_ready(transformer_forward(x32, p32))
    ref32 = transformer_reference(x32, p32)
    assert out32.shape == x32.shape
    assert jnp.allclose(out32, ref32, atol=1e-4, rtol=1e-4), "C=32 mismatch vs reference"

    # Transformer(64) stage: (2, 64, 8, 2, 2)  ->  tokens 8, seq 8, C = 64.
    x64 = jax.random.normal(k3, (2, 64, 8, 2, 2), jnp.float32)
    p64 = init_params(k4, 64)
    out64 = jax.block_until_ready(transformer_forward(x64, p64))
    ref64 = transformer_reference(x64, p64)
    assert out64.shape == x64.shape
    assert jnp.allclose(out64, ref64, atol=1e-4, rtol=1e-4), "C=64 mismatch vs reference"

    print("KERNEL_OK")
</pallas_src>

<mosaic_0001>
module attributes {stable_mosaic.version = 11 : i64} {
  func.func @encoder_kernel(%arg0: i32, %arg1: memref<256x32xf32, #tpu.memory_space<vmem>>, %arg2: memref<12x32xf32, #tpu.memory_space<vmem>>, %arg3: memref<32x96xf32, #tpu.memory_space<vmem>>, %arg4: memref<32x32xf32, #tpu.memory_space<vmem>>, %arg5: memref<32x32xf32, #tpu.memory_space<vmem>>, %arg6: memref<32x32xf32, #tpu.memory_space<vmem>>, %arg7: memref<256x32xf32, #tpu.memory_space<vmem>>) attributes {dimension_semantics = [#tpu.dimension_semantics<parallel>], iteration_bounds = array<i64: 1>, scalar_prefetch = 0 : i64, scratch_operands = 0 : i64, tpu.core_type = #tpu.core_type<tc>, window_params = [{transform_indices = @transform_0, window_bounds = array<i64: 256, 32>}, {pipeline_mode = #tpu.pipeline_mode<synchronous>, transform_indices = @transform_1, window_bounds = array<i64: 12, 32>}, {pipeline_mode = #tpu.pipeline_mode<synchronous>, transform_indices = @transform_2, window_bounds = array<i64: 32, 96>}, {pipeline_mode = #tpu.pipeline_mode<synchronous>, transform_indices = @transform_3, window_bounds = array<i64: 32, 32>}, {pipeline_mode = #tpu.pipeline_mode<synchronous>, transform_indices = @transform_4, window_bounds = array<i64: 32, 32>}, {pipeline_mode = #tpu.pipeline_mode<synchronous>, transform_indices = @transform_5, window_bounds = array<i64: 32, 32>}, {transform_indices = @transform_6, window_bounds = array<i64: 256, 32>}]} {
    %c0 = arith.constant 0 : index
    %c0_0 = arith.constant 0 : index
    %0 = vector.load %arg1[%c0, %c0_0] : memref<256x32xf32, #tpu.memory_space<vmem>>, vector<256x32xf32>
    %c0_1 = arith.constant 0 : index
    %c0_2 = arith.constant 0 : index
    %1 = vector.load %arg2[%c0_1, %c0_2] : memref<12x32xf32, #tpu.memory_space<vmem>>, vector<12x32xf32>
    %2 = vector.extract_strided_slice %1 {offsets = [0, 0], sizes = [1, 32], strides = [1, 1]} : vector<12x32xf32> to vector<1x32xf32>
    %3 = vector.extract_strided_slice %1 {offsets = [1, 0], sizes = [1, 32], strides = [1, 1]} : vector<12x32xf32> to vector<1x32xf32>
    %4 = vector.extract_strided_slice %1 {offsets = [2, 0], sizes = [1, 32], strides = [1, 1]} : vector<12x32xf32> to vector<1x32xf32>
    %5 = vector.extract_strided_slice %1 {offsets = [3, 0], sizes = [1, 32], strides = [1, 1]} : vector<12x32xf32> to vector<1x32xf32>
    %6 = vector.extract_strided_slice %1 {offsets = [4, 0], sizes = [1, 32], strides = [1, 1]} : vector<12x32xf32> to vector<1x32xf32>
    %7 = vector.extract_strided_slice %1 {offsets = [5, 0], sizes = [1, 32], strides = [1, 1]} : vector<12x32xf32> to vector<1x32xf32>
    %8 = vector.extract_strided_slice %1 {offsets = [6, 0], sizes = [1, 32], strides = [1, 1]} : vector<12x32xf32> to vector<1x32xf32>
    %9 = vector.extract_strided_slice %1 {offsets = [7, 0], sizes = [1, 32], strides = [1, 1]} : vector<12x32xf32> to vector<1x32xf32>
    %10 = vector.extract_strided_slice %1 {offsets = [8, 0], sizes = [1, 32], strides = [1, 1]} : vector<12x32xf32> to vector<1x32xf32>
    %11 = vector.extract_strided_slice %1 {offsets = [9, 0], sizes = [1, 32], strides = [1, 1]} : vector<12x32xf32> to vector<1x32xf32>
    %12 = vector.extract_strided_slice %1 {offsets = [10, 0], sizes = [1, 32], strides = [1, 1]} : vector<12x32xf32> to vector<1x32xf32>
    %13 = vector.extract_strided_slice %1 {offsets = [11, 0], sizes = [1, 32], strides = [1, 1]} : vector<12x32xf32> to vector<1x32xf32>
    %cst = arith.constant dense<0.000000e+00> : vector<256xf32>
    %14 = vector.multi_reduction <add>, %0, %cst [1] : vector<256x32xf32> to vector<256xf32>
    %15 = vector.shape_cast %14 : vector<256xf32> to vector<256x1xf32>
    %cst_3 = arith.constant 3.200000e+01 : f32
    %16 = vector.broadcast %cst_3 : f32 to vector<256x1xf32>
    %17 = arith.divf %15, %16 : vector<256x1xf32>
    %18 = vector.broadcast %17 : vector<256x1xf32> to vector<256x32xf32>
    %19 = arith.subf %0, %18 : vector<256x32xf32>
    %20 = arith.mulf %19, %19 : vector<256x32xf32>
    %cst_4 = arith.constant dense<0.000000e+00> : vector<256xf32>
    %21 = vector.multi_reduction <add>, %20, %cst_4 [1] : vector<256x32xf32> to vector<256xf32>
    %22 = vector.shape_cast %21 : vector<256xf32> to vector<256x1xf32>
    %cst_5 = arith.constant 3.200000e+01 : f32
    %23 = vector.broadcast %cst_5 : f32 to vector<256x1xf32>
    %24 = arith.divf %22, %23 : vector<256x1xf32>
    %25 = vector.broadcast %17 : vector<256x1xf32> to vector<256x32xf32>
    %26 = arith.subf %0, %25 : vector<256x32xf32>
    %cst_6 = arith.constant 9.99999997E-7 : f32
    %27 = vector.broadcast %cst_6 : f32 to vector<256x1xf32>
    %28 = arith.addf %24, %27 : vector<256x1xf32>
    %29 = math.rsqrt %28 : vector<256x1xf32>
    %30 = vector.broadcast %29 : vector<256x1xf32> to vector<256x32xf32>
    %31 = arith.mulf %26, %30 : vector<256x32xf32>
    %32 = vector.broadcast %2 : vector<1x32xf32> to vector<256x32xf32>
    %33 = arith.mulf %31, %32 : vector<256x32xf32>
    %34 = vector.broadcast %3 : vector<1x32xf32> to vector<256x32xf32>
    %35 = arith.addf %33, %34 : vector<256x32xf32>
    %c0_7 = arith.constant 0 : index
    %c0_8 = arith.constant 0 : index
    %36 = vector.load %arg3[%c0_7, %c0_8] : memref<32x96xf32, #tpu.memory_space<vmem>>, vector<32x96xf32>
    %cst_9 = arith.constant dense<0.000000e+00> : vector<256x96xf32>
    %37 = tpu.matmul %35, %36, %cst_9 {dimension_numbers = #tpu.dot_dimension_numbers<[1], [0], [0], [1], [0, 0, 1, 1], [], []>} : vector<256x32xf32>, vector<32x96xf32>, vector<256x96xf32> -> vector<256x96xf32>
    %38 = vector.extract_strided_slice %37 {offsets = [0, 0], sizes = [256, 32], strides = [1, 1]} : vector<256x96xf32> to vector<256x32xf32>
    %39 = vector.broadcast %4 : vector<1x32xf32> to vector<256x32xf32>
    %40 = arith.addf %38, %39 : vector<256x32xf32>
    %41 = vector.shape_cast %40 : vector<256x32xf32> to vector<32x8x32xf32>
    %42 = vector.extract_strided_slice %37 {offsets = [0, 32], sizes = [256, 32], strides = [1, 1]} : vector<256x96xf32> to vector<256x32xf32>
    %43 = vector.broadcast %5 : vector<1x32xf32> to vector<256x32xf32>
    %44 = arith.addf %42, %43 : vector<256x32xf32>
    %45 = vector.shape_cast %44 : vector<256x32xf32> to vector<32x8x32xf32>
    %46 = vector.extract_strided_slice %37 {offsets = [0, 64], sizes = [256, 32], strides = [1, 1]} : vector<256x96xf32> to vector<256x32xf32>
    %47 = vector.broadcast %6 : vector<1x32xf32> to vector<256x32xf32>
    %48 = arith.addf %46, %47 : vector<256x32xf32>
    %49 = vector.shape_cast %48 : vector<256x32xf32> to vector<32x8x32xf32>
    %50 = tpu.iota {dimensions = array<i32: 2>} : vector<1x1x32xi32>
    %cst_10 = arith.constant 0.000000e+00 : f32
    %51 = vector.broadcast %cst_10 : f32 to vector<32x8x32xf32>
    %c0_i32 = arith.constant 0 : i32
    %52 = vector.broadcast %c0_i32 : i32 to vector<1x1x32xi32>
    %53 = arith.cmpi sge, %50, %52 : vector<1x1x32xi32>
    %c8_i32 = arith.constant 8 : i32
    %54 = vector.broadcast %c8_i32 : i32 to vector<1x1x32xi32>
    %55 = arith.cmpi slt, %50, %54 : vector<1x1x32xi32>
    %56 = arith.andi %53, %55 : vector<1x1x32xi1>
    %57 = arith.extui %56 : vector<1x1x32xi1> to vector<1x1x32xi32>
    %58 = arith.sitofp %57 : vector<1x1x32xi32> to vector<1x1x32xf32>
    %59 = vector.broadcast %58 : vector<1x1x32xf32> to vector<32x8x32xf32>
    %60 = arith.mulf %41, %59 : vector<32x8x32xf32>
    "tpu.trace_start"() <{level = 10 : i32, message = "bqc,bkc->bqk"}> : () -> ()
    %cst_11 = arith.constant dense<0.000000e+00> : vector<32x8x8xf32>
    %61 = tpu.matmul %60, %45, %cst_11 {dimension_numbers = #tpu.dot_dimension_numbers<[2], [2], [1], [1], [0, 0, 0, 1, 1, 1], [0], [0]>} : vector<32x8x32xf32>, vector<32x8x32xf32>, vector<32x8x8xf32> -> vector<32x8x8xf32>
    "tpu.trace_stop"() : () -> ()
    %cst_12 = arith.constant 0.353553385 : f32
    %62 = vector.broadcast %cst_12 : f32 to vector<32x8x8xf32>
    %63 = arith.mulf %61, %62 : vector<32x8x8xf32>
    %cst_13 = arith.constant dense<0xFF800000> : vector<32x8xf32>
    %64 = vector.multi_reduction <maximumf>, %63, %cst_13 [2] : vector<32x8x8xf32> to vector<32x8xf32>
    %65 = vector.shape_cast %64 : vector<32x8xf32> to vector<32x8x1xf32>
    %66 = vector.broadcast %65 : vector<32x8x1xf32> to vector<32x8x8xf32>
    %67 = arith.subf %63, %66 : vector<32x8x8xf32>
    %68 = math.exp %67 : vector<32x8x8xf32>
    %cst_14 = arith.constant dense<0.000000e+00> : vector<32x8xf32>
    %69 = vector.multi_reduction <add>, %68, %cst_14 [2] : vector<32x8x8xf32> to vector<32x8xf32>
    %70 = vector.shape_cast %69 : vector<32x8xf32> to vector<32x8x1xf32>
    %71 = vector.broadcast %70 : vector<32x8x1xf32> to vector<32x8x8xf32>
    %72 = arith.divf %68, %71 : vector<32x8x8xf32>
    %73 = vector.broadcast %58 : vector<1x1x32xf32> to vector<32x8x32xf32>
    %74 = arith.mulf %49, %73 : vector<32x8x32xf32>
    "tpu.trace_start"() <{level = 10 : i32, message = "bqk,bkc->bqc"}> : () -> ()
    %cst_15 = arith.constant dense<0.000000e+00> : vector<32x8x32xf32>
    %75 = tpu.matmul %72, %74, %cst_15 {dimension_numbers = #tpu.dot_dimension_numbers<[2], [1], [1], [2], [0, 0, 0, 1, 1, 2], [0], [0]>} : vector<32x8x8xf32>, vector<32x8x32xf32>, vector<32x8x32xf32> -> vector<32x8x32xf32>
    "tpu.trace_stop"() : () -> ()
    %76 = arith.addf %51, %75 : vector<32x8x32xf32>
    %c8_i32_16 = arith.constant 8 : i32
    %77 = vector.broadcast %c8_i32_16 : i32 to vector<1x1x32xi32>
    %78 = arith.cmpi sge, %50, %77 : vector<1x1x32xi32>
    %c16_i32 = arith.constant 16 : i32
    %79 = vector.broadcast %c16_i32 : i32 to vector<1x1x32xi32>
    %80 = arith.cmpi slt, %50, %79 : vector<1x1x32xi32>
    %81 = arith.andi %78, %80 : vector<1x1x32xi1>
    %82 = arith.extui %81 : vector<1x1x32xi1> to vector<1x1x32xi32>
    %83 = arith.sitofp %82 : vector<1x1x32xi32> to vector<1x1x32xf32>
    %84 = vector.broadcast %83 : vector<1x1x32xf32> to vector<32x8x32xf32>
    %85 = arith.mulf %41, %84 : vector<32x8x32xf32>
    "tpu.trace_start"() <{level = 10 : i32, message = "bqc,bkc->bqk"}> : () -> ()
    %cst_17 = arith.constant dense<0.000000e+00> : vector<32x8x8xf32>
    %86 = tpu.matmul %85, %45, %cst_17 {dimension_numbers = #tpu.dot_dimension_numbers<[2], [2], [1], [1], [0, 0, 0, 1, 1, 1], [0], [0]>} : vector<32x8x32xf32>, vector<32x8x32xf32>, vector<32x8x8xf32> -> vector<32x8x8xf32>
    "tpu.trace_stop"() : () -> ()
    %cst_18 = arith.constant 0.353553385 : f32
    %87 = vector.broadcast %cst_18 : f32 to vector<32x8x8xf32>
    %88 = arith.mulf %86, %87 : vector<32x8x8xf32>
    %cst_19 = arith.constant dense<0xFF800000> : vector<32x8xf32>
    %89 = vector.multi_reduction <maximumf>, %88, %cst_19 [2] : vector<32x8x8xf32> to vector<32x8xf32>
    %90 = vector.shape_cast %89 : vector<32x8xf32> to vector<32x8x1xf32>
    %91 = vector.broadcast %90 : vector<32x8x1xf32> to vector<32x8x8xf32>
    %92 = arith.subf %88, %91 : vector<32x8x8xf32>
    %93 = math.exp %92 : vector<32x8x8xf32>
    %cst_20 = arith.constant dense<0.000000e+00> : vector<32x8xf32>
    %94 = vector.multi_reduction <add>, %93, %cst_20 [2] : vector<32x8x8xf32> to vector<32x8xf32>
    %95 = vector.shape_cast %94 : vector<32x8xf32> to vector<32x8x1xf32>
    %96 = vector.broadcast %95 : vector<32x8x1xf32> to vector<32x8x8xf32>
    %97 = arith.divf %93, %96 : vector<32x8x8xf32>
    %98 = vector.broadcast %83 : vector<1x1x32xf32> to vector<32x8x32xf32>
    %99 = arith.mulf %49, %98 : vector<32x8x32xf32>
    "tpu.trace_start"() <{level = 10 : i32, message = "bqk,bkc->bqc"}> : () -> ()
    %cst_21 = arith.constant dense<0.000000e+00> : vector<32x8x32xf32>
    %100 = tpu.matmul %97, %99, %cst_21 {dimension_numbers = #tpu.dot_dimension_numbers<[2], [1], [1], [2], [0, 0, 0, 1, 1, 2], [0], [0]>} : vector<32x8x8xf32>, vector<32x8x32xf32>, vector<32x8x32xf32> -> vector<32x8x32xf32>
    "tpu.trace_stop"() : () -> ()
    %101 = arith.addf %76, %100 : vector<32x8x32xf32>
    %c16_i32_22 = arith.constant 16 : i32
    %102 = vector.broadcast %c16_i32_22 : i32 to vector<1x1x32xi32>
    %103 = arith.cmpi sge, %50, %102 : vector<1x1x32xi32>
    %c24_i32 = arith.constant 24 : i32
    %104 = vector.broadcast %c24_i32 : i32 to vector<1x1x32xi32>
    %105 = arith.cmpi slt, %50, %104 : vector<1x1x32xi32>
    %106 = arith.andi %103, %105 : vector<1x1x32xi1>
    %107 = arith.extui %106 : vector<1x1x32xi1> to vector<1x1x32xi32>
    %108 = arith.sitofp %107 : vector<1x1x32xi32> to vector<1x1x32xf32>
    %109 = vector.broadcast %108 : vector<1x1x32xf32> to vector<32x8x32xf32>
    %110 = arith.mulf %41, %109 : vector<32x8x32xf32>
    "tpu.trace_start"() <{level = 10 : i32, message = "bqc,bkc->bqk"}> : () -> ()
    %cst_23 = arith.constant dense<0.000000e+00> : vector<32x8x8xf32>
    %111 = tpu.matmul %110, %45, %cst_23 {dimension_numbers = #tpu.dot_dimension_numbers<[2], [2], [1], [1], [0, 0, 0, 1, 1, 1], [0], [0]>} : vector<32x8x32xf32>, vector<32x8x32xf32>, vector<32x8x8xf32> -> vector<32x8x8xf32>
    "tpu.trace_stop"() : () -> ()
    %cst_24 = arith.constant 0.353553385 : f32
    %112 = vector.broadcast %cst_24 : f32 to vector<32x8x8xf32>
    %113 = arith.mulf %111, %112 : vector<32x8x8xf32>
    %cst_25 = arith.constant dense<0xFF800000> : vector<32x8xf32>
    %114 = vector.multi_reduction <maximumf>, %113, %cst_25 [2] : vector<32x8x8xf32> to vector<32x8xf32>
    %115 = vector.shape_cast %114 : vector<32x8xf32> to vector<32x8x1xf32>
    %116 = vector.broadcast %115 : vector<32x8x1xf32> to vector<32x8x8xf32>
    %117 = arith.subf %113, %116 : vector<32x8x8xf32>
    %118 = math.exp %117 : vector<32x8x8xf32>
    %cst_26 = arith.constant dense<0.000000e+00> : vector<32x8xf32>
    %119 = vector.multi_reduction <add>, %118, %cst_26 [2] : vector<32x8x8xf32> to vector<32x8xf32>
    %120 = vector.shape_cast %119 : vector<32x8xf32> to vector<32x8x1xf32>
    %121 = vector.broadcast %120 : vector<32x8x1xf32> to vector<32x8x8xf32>
    %122 = arith.divf %118, %121 : vector<32x8x8xf32>
    %123 = vector.broadcast %108 : vector<1x1x32xf32> to vector<32x8x32xf32>
    %124 = arith.mulf %49, %123 : vector<32x8x32xf32>
    "tpu.trace_start"() <{level = 10 : i32, message = "bqk,bkc->bqc"}> : () -> ()
    %cst_27 = arith.constant dense<0.000000e+00> : vector<32x8x32xf32>
    %125 = tpu.matmul %122, %124, %cst_27 {dimension_numbers = #tpu.dot_dimension_numbers<[2], [1], [1], [2], [0, 0, 0, 1, 1, 2], [0], [0]>} : vector<32x8x8xf32>, vector<32x8x32xf32>, vector<32x8x32xf32> -> vector<32x8x32xf32>
    "tpu.trace_stop"() : () -> ()
    %126 = arith.addf %101, %125 : vector<32x8x32xf32>
    %c24_i32_28 = arith.constant 24 : i32
    %127 = vector.broadcast %c24_i32_28 : i32 to vector<1x1x32xi32>
    %128 = arith.cmpi sge, %50, %127 : vector<1x1x32xi32>
    %c32_i32 = arith.constant 32 : i32
    %129 = vector.broadcast %c32_i32 : i32 to vector<1x1x32xi32>
    %130 = arith.cmpi slt, %50, %129 : vector<1x1x32xi32>
    %131 = arith.andi %128, %130 : vector<1x1x32xi1>
    %132 = arith.extui %131 : vector<1x1x32xi1> to vector<1x1x32xi32>
    %133 = arith.sitofp %132 : vector<1x1x32xi32> to vector<1x1x32xf32>
    %134 = vector.broadcast %133 : vector<1x1x32xf32> to vector<32x8x32xf32>
    %135 = arith.mulf %41, %134 : vector<32x8x32xf32>
    "tpu.trace_start"() <{level = 10 : i32, message = "bqc,bkc->bqk"}> : () -> ()
    %cst_29 = arith.constant dense<0.000000e+00> : vector<32x8x8xf32>
    %136 = tpu.matmul %135, %45, %cst_29 {dimension_numbers = #tpu.dot_dimension_numbers<[2], [2], [1], [1], [0, 0, 0, 1, 1, 1], [0], [0]>} : vector<32x8x32xf32>, vector<32x8x32xf32>, vector<32x8x8xf32> -> vector<32x8x8xf32>
    "tpu.trace_stop"() : () -> ()
    %cst_30 = arith.constant 0.353553385 : f32
    %137 = vector.broadcast %cst_30 : f32 to vector<32x8x8xf32>
    %138 = arith.mulf %136, %137 : vector<32x8x8xf32>
    %cst_31 = arith.constant dense<0xFF800000> : vector<32x8xf32>
    %139 = vector.multi_reduction <maximumf>, %138, %cst_31 [2] : vector<32x8x8xf32> to vector<32x8xf32>
    %140 = vector.shape_cast %139 : vector<32x8xf32> to vector<32x8x1xf32>
    %141 = vector.broadcast %140 : vector<32x8x1xf32> to vector<32x8x8xf32>
    %142 = arith.subf %138, %141 : vector<32x8x8xf32>
    %143 = math.exp %142 : vector<32x8x8xf32>
    %cst_32 = arith.constant dense<0.000000e+00> : vector<32x8xf32>
    %144 = vector.multi_reduction <add>, %143, %cst_32 [2] : vector<32x8x8xf32> to vector<32x8xf32>
    %145 = vector.shape_cast %144 : vector<32x8xf32> to vector<32x8x1xf32>
    %146 = vector.broadcast %145 : vector<32x8x1xf32> to vector<32x8x8xf32>
    %147 = arith.divf %143, %146 : vector<32x8x8xf32>
    %148 = vector.broadcast %133 : vector<1x1x32xf32> to vector<32x8x32xf32>
    %149 = arith.mulf %49, %148 : vector<32x8x32xf32>
    "tpu.trace_start"() <{level = 10 : i32, message = "bqk,bkc->bqc"}> : () -> ()
    %cst_33 = arith.constant dense<0.000000e+00> : vector<32x8x32xf32>
    %150 = tpu.matmul %147, %149, %cst_33 {dimension_numbers = #tpu.dot_dimension_numbers<[2], [1], [1], [2], [0, 0, 0, 1, 1, 2], [0], [0]>} : vector<32x8x8xf32>, vector<32x8x32xf32>, vector<32x8x32xf32> -> vector<32x8x32xf32>
    "tpu.trace_stop"() : () -> ()
    %151 = arith.addf %126, %150 : vector<32x8x32xf32>
    %152 = vector.shape_cast %151 : vector<32x8x32xf32> to vector<256x32xf32>
    %c0_34 = arith.constant 0 : index
    %c0_35 = arith.constant 0 : index
    %153 = vector.load %arg4[%c0_34, %c0_35] : memref<32x32xf32, #tpu.memory_space<vmem>>, vector<32x32xf32>
    %cst_36 = arith.constant dense<0.000000e+00> : vector<256x32xf32>
    %154 = tpu.matmul %152, %153, %cst_36 {dimension_numbers = #tpu.dot_dimension_numbers<[1], [0], [0], [1], [0, 0, 1, 1], [], []>} : vector<256x32xf32>, vector<32x32xf32>, vector<256x32xf32> -> vector<256x32xf32>
    %155 = vector.broadcast %7 : vector<1x32xf32> to vector<256x32xf32>
    %156 = arith.addf %154, %155 : vector<256x32xf32>
    %157 = arith.addf %156, %0 : vector<256x32xf32>
    %cst_37 = arith.constant dense<0.000000e+00> : vector<256xf32>
    %158 = vector.multi_reduction <add>, %157, %cst_37 [1] : vector<256x32xf32> to vector<256xf32>
    %159 = vector.shape_cast %158 : vector<256xf32> to vector<256x1xf32>
    %cst_38 = arith.constant 3.200000e+01 : f32
    %160 = vector.broadcast %cst_38 : f32 to vector<256x1xf32>
    %161 = arith.divf %159, %160 : vector<256x1xf32>
    %162 = vector.broadcast %161 : vector<256x1xf32> to vector<256x32xf32>
    %163 = arith.subf %157, %162 : vector<256x32xf32>
    %164 = arith.mulf %163, %163 : vector<256x32xf32>
    %cst_39 = arith.constant dense<0.000000e+00> : vector<256xf32>
    %165 = vector.multi_reduction <add>, %164, %cst_39 [1] : vector<256x32xf32> to vector<256xf32>
    %166 = vector.shape_cast %165 : vector<256xf32> to vector<256x1xf32>
    %cst_40 = arith.constant 3.200000e+01 : f32
    %167 = vector.broadcast %cst_40 : f32 to vector<256x1xf32>
    %168 = arith.divf %166, %167 : vector<256x1xf32>
    %169 = vector.broadcast %161 : vector<256x1xf32> to vector<256x32xf32>
    %170 = arith.subf %157, %169 : vector<256x32xf32>
    %cst_41 = arith.constant 9.99999997E-7 : f32
    %171 = vector.broadcast %cst_41 : f32 to vector<256x1xf32>
    %172 = arith.addf %168, %171 : vector<256x1xf32>
    %173 = math.rsqrt %172 : vector<256x1xf32>
    %174 = vector.broadcast %173 : vector<256x1xf32> to vector<256x32xf32>
    %175 = arith.mulf %170, %174 : vector<256x32xf32>
    %176 = vector.broadcast %8 : vector<1x32xf32> to vector<256x32xf32>
    %177 = arith.mulf %175, %176 : vector<256x32xf32>
    %178 = vector.broadcast %9 : vector<1x32xf32> to vector<256x32xf32>
    %179 = arith.addf %177, %178 : vector<256x32xf32>
    %c0_42 = arith.constant 0 : index
    %c0_43 = arith.constant 0 : index
    %180 = vector.load %arg5[%c0_42, %c0_43] : memref<32x32xf32, #tpu.memory_space<vmem>>, vector<32x32xf32>
    %cst_44 = arith.constant dense<0.000000e+00> : vector<256x32xf32>
    %181 = tpu.matmul %179, %180, %cst_44 {dimension_numbers = #tpu.dot_dimension_numbers<[1], [0], [0], [1], [0, 0, 1, 1], [], []>} : vector<256x32xf32>, vector<32x32xf32>, vector<256x32xf32> -> vector<256x32xf32>
    %182 = vector.broadcast %10 : vector<1x32xf32> to vector<256x32xf32>
    %183 = arith.addf %181, %182 : vector<256x32xf32>
    %cst_45 = arith.constant 5.000000e-01 : f32
    %184 = vector.broadcast %cst_45 : f32 to vector<256x32xf32>
    %185 = arith.mulf %184, %183 : vector<256x32xf32>
    %cst_46 = arith.constant 0.707106769 : f32
    %186 = vector.broadcast %cst_46 : f32 to vector<256x32xf32>
    %187 = arith.mulf %183, %186 : vector<256x32xf32>
    %cst_47 = arith.constant 0.000000e+00 : f32
    %188 = vector.broadcast %cst_47 : f32 to vector<256x32xf32>
    %189 = arith.cmpf oge, %187, %188 : vector<256x32xf32>
    %cst_48 = arith.constant 1.000000e+00 : f32
    %cst_49 = arith.constant -1.000000e+00 : f32
    %190 = vector.broadcast %cst_48 : f32 to vector<256x32xf32>
    %191 = vector.broadcast %cst_49 : f32 to vector<256x32xf32>
    %192 = arith.select %189, %190, %191 : vector<256x32xi1>, vector<256x32xf32>
    %193 = math.absf %187 : vector<256x32xf32>
    %cst_50 = arith.constant 0.327591091 : f32
    %194 = vector.broadcast %cst_50 : f32 to vector<256x32xf32>
    %195 = arith.mulf %194, %193 : vector<256x32xf32>
    %cst_51 = arith.constant 1.000000e+00 : f32
    %196 = vector.broadcast %cst_51 : f32 to vector<256x32xf32>
    %197 = arith.addf %196, %195 : vector<256x32xf32>
    %cst_52 = arith.constant 1.000000e+00 : f32
    %198 = vector.broadcast %cst_52 : f32 to vector<256x32xf32>
    %199 = arith.divf %198, %197 : vector<256x32xf32>
    %cst_53 = arith.constant 1.06140542 : f32
    %200 = vector.broadcast %cst_53 : f32 to vector<256x32xf32>
    %201 = arith.mulf %200, %199 : vector<256x32xf32>
    %cst_54 = arith.constant -1.45315206 : f32
    %202 = vector.broadcast %cst_54 : f32 to vector<256x32xf32>
    %203 = arith.addf %201, %202 : vector<256x32xf32>
    %204 = arith.mulf %203, %199 : vector<256x32xf32>
    %cst_55 = arith.constant 1.42141378 : f32
    %205 = vector.broadcast %cst_55 : f32 to vector<256x32xf32>
    %206 = arith.addf %204, %205 : vector<256x32xf32>
    %207 = arith.mulf %206, %199 : vector<256x32xf32>
    %cst_56 = arith.constant -0.284496725 : f32
    %208 = vector.broadcast %cst_56 : f32 to vector<256x32xf32>
    %209 = arith.addf %207, %208 : vector<256x32xf32>
    %210 = arith.mulf %209, %199 : vector<256x32xf32>
    %cst_57 = arith.constant 0.254829586 : f32
    %211 = vector.broadcast %cst_57 : f32 to vector<256x32xf32>
    %212 = arith.addf %210, %211 : vector<256x32xf32>
    %213 = arith.mulf %212, %199 : vector<256x32xf32>
    %cst_58 = arith.constant 0.000000e+00 : f32
    %214 = vector.broadcast %cst_58 : f32 to vector<256x32xf32>
    %215 = arith.subf %214, %193 : vector<256x32xf32>
    %216 = arith.mulf %215, %193 : vector<256x32xf32>
    %217 = math.exp %216 : vector<256x32xf32>
    %218 = arith.mulf %213, %217 : vector<256x32xf32>
    %cst_59 = arith.constant 1.000000e+00 : f32
    %219 = vector.broadcast %cst_59 : f32 to vector<256x32xf32>
    %220 = arith.subf %219, %218 : vector<256x32xf32>
    %221 = arith.mulf %192, %220 : vector<256x32xf32>
    %cst_60 = arith.constant 1.000000e+00 : f32
    %222 = vector.broadcast %cst_60 : f32 to vector<256x32xf32>
    %223 = arith.addf %222, %221 : vector<256x32xf32>
    %224 = arith.mulf %185, %223 : vector<256x32xf32>
    %c0_61 = arith.constant 0 : index
    %c0_62 = arith.constant 0 : index
    %225 = vector.load %arg6[%c0_61, %c0_62] : memref<32x32xf32, #tpu.memory_space<vmem>>, vector<32x32xf32>
    %cst_63 = arith.constant dense<0.000000e+00> : vector<256x32xf32>
    %226 = tpu.matmul %224, %225, %cst_63 {dimension_numbers = #tpu.dot_dimension_numbers<[1], [0], [0], [1], [0, 0, 1, 1], [], []>} : vector<256x32xf32>, vector<32x32xf32>, vector<256x32xf32> -> vector<256x32xf32>
    %227 = vector.broadcast %11 : vector<1x32xf32> to vector<256x32xf32>
    %228 = arith.addf %226, %227 : vector<256x32xf32>
    %229 = arith.addf %228, %157 : vector<256x32xf32>
    %cst_64 = arith.constant dense<0.000000e+00> : vector<256xf32>
    %230 = vector.multi_reduction <add>, %229, %cst_64 [1] : vector<256x32xf32> to vector<256xf32>
    %231 = vector.shape_cast %230 : vector<256xf32> to vector<256x1xf32>
    %cst_65 = arith.constant 3.200000e+01 : f32
    %232 = vector.broadcast %cst_65 : f32 to vector<256x1xf32>
    %233 = arith.divf %231, %232 : vector<256x1xf32>
    %234 = vector.broadcast %233 : vector<256x1xf32> to vector<256x32xf32>
    %235 = arith.subf %229, %234 : vector<256x32xf32>
    %236 = arith.mulf %235, %235 : vector<256x32xf32>
    %cst_66 = arith.constant dense<0.000000e+00> : vector<256xf32>
    %237 = vector.multi_reduction <add>, %236, %cst_66 [1] : vector<256x32xf32> to vector<256xf32>
    %238 = vector.shape_cast %237 : vector<256xf32> to vector<256x1xf32>
    %cst_67 = arith.constant 3.200000e+01 : f32
    %239 = vector.broadcast %cst_67 : f32 to vector<256x1xf32>
    %240 = arith.divf %238, %239 : vector<256x1xf32>
    %241 = vector.broadcast %233 : vector<256x1xf32> to vector<256x32xf32>
    %242 = arith.subf %229, %241 : vector<256x32xf32>
    %cst_68 = arith.constant 9.99999997E-7 : f32
    %243 = vector.broadcast %cst_68 : f32 to vector<256x1xf32>
    %244 = arith.addf %240, %243 : vector<256x1xf32>
    %245 = math.rsqrt %244 : vector<256x1xf32>
    %246 = vector.broadcast %245 : vector<256x1xf32> to vector<256x32xf32>
    %247 = arith.mulf %242, %246 : vector<256x32xf32>
    %248 = vector.broadcast %12 : vector<1x32xf32> to vector<256x32xf32>
    %249 = arith.mulf %247, %248 : vector<256x32xf32>
    %250 = vector.broadcast %13 : vector<1x32xf32> to vector<256x32xf32>
    %251 = arith.addf %249, %250 : vector<256x32xf32>
    %c0_69 = arith.constant 0 : index
    %c0_70 = arith.constant 0 : index
    %252 = vector.load %arg7[%c0_69, %c0_70] : memref<256x32xf32, #tpu.memory_space<vmem>>, vector<256x32xf32>
    tpu.vector_store %arg7[%c0_69, %c0_70], %251 {strides = array<i32>} : memref<256x32xf32, #tpu.memory_space<vmem>>, vector<256x32xf32>,
    return
  }
  func.func @transform_0(%arg0: i32) -> (i32, i32) {
    %c0_i32 = arith.constant 0 : i32
    %c0_i32_0 = arith.constant 0 : i32
    return %arg0, %c0_i32 : i32, i32
  }
  func.func @transform_1(%arg0: i32) -> (i32, i32) {
    %c0_i32 = arith.constant 0 : i32
    %c0_i32_0 = arith.constant 0 : i32
    %c0_i32_1 = arith.constant 0 : i32
    return %c0_i32, %c0_i32_0 : i32, i32
  }
  func.func @transform_2(%arg0: i32) -> (i32, i32) {
    %c0_i32 = arith.constant 0 : i32
    %c0_i32_0 = arith.constant 0 : i32
    %c0_i32_1 = arith.constant 0 : i32
    return %c0_i32, %c0_i32_0 : i32, i32
  }
  func.func @transform_3(%arg0: i32) -> (i32, i32) {
    %c0_i32 = arith.constant 0 : i32
    %c0_i32_0 = arith.constant 0 : i32
    %c0_i32_1 = arith.constant 0 : i32
    return %c0_i32, %c0_i32_0 : i32, i32
  }
  func.func @transform_4(%arg0: i32) -> (i32, i32) {
    %c0_i32 = arith.constant 0 : i32
    %c0_i32_0 = arith.constant 0 : i32
    %c0_i32_1 = arith.constant 0 : i32
    return %c0_i32, %c0_i32_0 : i32, i32
  }
  func.func @transform_5(%arg0: i32) -> (i32, i32) {
    %c0_i32 = arith.constant 0 : i32
    %c0_i32_0 = arith.constant 0 : i32
    %c0_i32_1 = arith.constant 0 : i32
    return %c0_i32, %c0_i32_0 : i32, i32
  }
  func.func @transform_6(%arg0: i32) -> (i32, i32) {
    %c0_i32 = arith.constant 0 : i32
    %c0_i32_0 = arith.constant 0 : i32
    return %arg0, %c0_i32 : i32, i32
  }
}

</mosaic_0001>

<bundles_post_ra>
// kernel: tpu_custom_call.1
= control target key start
LH: loop header
LB: loop body
LE: loop exit
PB: predicated region body
PF: predicated region fallthrough
CT: control target
= control target key end

     0   :  { %vm57_vm0 = vcmask 261120   ;;  %v35893_v3 = vmov 0.0   ;;  %v475_v13 = vlaneseq  ;;  %s28950_s15 = smov 32   ;;  %s28951_s16 = smov 64   ;;  %vm28952_vm5 = vmmov 0   ;;  %s35886_s0 = inlined_call_operand.vmem [shape: f32[256,32], index: 0, kind: input, shape index: {}]   ;;  %s35887_s1 = inlined_call_operand.vmem [shape: f32[12,32], index: 1, kind: input, shape index: {}]   ;;  %s35888_s2 = inlined_call_operand.vmem [shape: f32[32,96], index: 2, kind: input, shape index: {}]   ;;  %s35889_s3 = inlined_call_operand.vmem [shape: f32[32,32], index: 3, kind: input, shape index: {}]   ;;  %s35890_s4 = inlined_call_operand.vmem [shape: f32[32,32], index: 4, kind: input, shape index: {}]   ;;  %s35891_s5 = inlined_call_operand.vmem [shape: f32[32,32], index: 5, kind: input, shape index: {}]   ;;  %s35892_s6 = inlined_call_operand.vmem [shape: f32[256,32], index: 6, kind: output, shape index: {}]  }
   0x1   :  { %v28993_v0 = vld [vmem:[%s35886_s0 + $0x10] sm:$0xff]  ;;  %v28998_v1 = vld [vmem:[%s35886_s0] sm:$0xff]  ;;  %v29003_v2 = vld [vmem:[%s35886_s0 + $0x18] sm:$0xff]  ;;  %26398 = vmatprep.subr.mxu1 %v35893_v3  ;;  %vm3555_vm6 = vcmask 64512  }
   0x2   :  { %v64_v4 = vsel %vm57_vm0, %v28993_v0, 0.0  ;;  %v58_v5 = vsel %vm57_vm0, %v28998_v1, 0.0  ;;  %v29013_v6 = vld [vmem:[%s35886_s0 + $0x8] sm:$0xff]  ;;  %v67_v7 = vsel %vm57_vm0, %v29003_v2, 0.0  ;;  %v29027_v10 = vld [vmem:[%s35886_s0 + $0x20] sm:$0xff]  ;;  %v29036_v14 = vld [vmem:[%s35886_s0 + $0x38] sm:$0xff] }
   0x3   :  { %65 = vadd.xlane.f32.xlu1 %v64_v4  ;;  %59 = vadd.xlane.f32.xlu0 %v58_v5  ;;  %v61_v8 = vsel %vm57_vm0, %v29013_v6, 0.0  ;;  %v29022_v9 = vld [vmem:[%s35886_s0 + $0x28] sm:$0xff]  ;;  %v70_v12 = vsel %vm57_vm0, %v29027_v10, 0.0  ;;  %v29041_v15 = vld [vmem:[%s35886_s0 + $0x30] sm:$0xff]  ;;  %v79_v16 = vsel %vm57_vm0, %v29036_v14, 0.0  ;;  %v29053_v19 = vshrl.u32 %v475_v13, 7 }
   0x4   :  { %v73_v11 = vsel %vm57_vm0, %v29022_v9, 0.0  ;;  %v29048_v17 = vld [vmem:[%s35886_s0 + $0x48] sm:$0xff]  ;;  %v76_v18 = vsel %vm57_vm0, %v29041_v15, 0.0  ;;  %v29058_v20 = vld [vmem:[%s35886_s0 + $0x40] sm:$0xff]  ;;  %v29068_v25 = vld [vmem:[%s35886_s0 + $0x58] sm:$0xff] }
   0x5   :  { %v477_v21 = vsub.s32 0, %v29053_v19  ;;  %v513_v22 = vsub.s32 1, %v29053_v19  ;;  %v874_v23 = vsub.s32 2, %v29053_v19  ;;  %v85_v24 = vsel %vm57_vm0, %v29048_v17, 0.0  ;;  %v29073_v26 = vld [vmem:[%s35887_s1] sm:$0xff]  ;;  %v29092_v32 = vld [vmem:[%s35886_s0 + $0x50] sm:$0xff] }
   0x6   :  { %v82_v27 = vsel %vm57_vm0, %v29058_v20, 0.0  ;;  %v56_v28 = vld [vmem:[%s35887_s1 + $0x8] sm:$0xf]  ;;  %v91_v33 = vsel %vm57_vm0, %v29068_v25, 0.0  ;;  %v22249_v34 = vsub.s32 5, %v29053_v19  ;;  %v23022_v35 = vsub.s32 6, %v29053_v19 }
   0x7   :  { %68 = vadd.xlane.f32.xlu1 %v67_v7  ;;  %62 = vadd.xlane.f32.xlu0 %v61_v8  ;;  %v29081_v29 = vrot.slane %v29073_v26, %v477_v21  ;;  %v29084_v30 = vrot.slane %v29073_v26, %v513_v22  ;;  %v29087_v31 = vrot.slane %v29073_v26, %v874_v23  ;;  %v23058_v36 = vsub.s32 7, %v29053_v19  ;;  %v29120_v45 = vld [vmem:[%s35886_s0 + $0x68] sm:$0xff]  ;;  %v29125_v46 = vld [vmem:[%s35886_s0 + $0x60] sm:$0xff]  ;;  %v29138_v50 = vld [vmem:[%s35886_s0 + $0x78] sm:$0xff] }
   0x8   :  { %v910_v37 = vsub.s32 3, %v29053_v19  ;;  %v29100_v38 = vrot.slane %v56_v28, %v477_v21  ;;  %v29102_v39 = vrot.slane %v56_v28, %v513_v22  ;;  %v29104_v40 = vrot.slane %v56_v28, %v874_v23  ;;  %v29143_v51 = vld [vmem:[%s35886_s0 + $0x70] sm:$0xff]  ;;  %v29152_v54 = vld [vmem:[%s35886_s0 + $0x88] sm:$0xff]  ;;  %v29157_v55 = vld [vmem:[%s35886_s0 + $0x80] sm:$0xff] }
   0x9   :  { %v88_v41 = vsel %vm57_vm0, %v29092_v32, 0.0  ;;  %v29109_v42 = vrot.slane %v29073_v26, %v22249_v34  ;;  %v29112_v43 = vrot.slane %v29073_v26, %v23022_v35  ;;  %v29115_v44 = vrot.slane %v29073_v26, %v23058_v36  ;;  %v29166_v58 = vld [vmem:[%s35886_s0 + $0x98] sm:$0xff]  ;;  %v29171_v59 = vld [vmem:[%s35886_s0 + $0x90] sm:$0xff]  ;;  %v29180_v62 = vld [vmem:[%s35886_s0 + $0xa8] sm:$0xff] }
   0xa   :  { %36178 = vst [vmem:[#allocation2_spill] sm:$0xff] %v29100_v38  ;;  %36179 = vst [vmem:[#allocation3_spill] sm:$0xff] %v29102_v39  ;;  %v29129_v47 = vrot.slane %v56_v28, %v910_v37  ;;  %v97_v48 = vsel %vm57_vm0, %v29120_v45, 0.0  ;;  %v94_v49 = vsel %vm57_vm0, %v29125_v46, 0.0  ;;  %v103_v52 = vsel %vm57_vm0, %v29138_v50, 0.0  ;;  %v29185_v63 = vld [vmem:[%s35886_s0 + $0xa0] sm:$0xff] }
   0xb   :  { %74 = vadd.xlane.f32.xlu1 %v73_v11  ;;  %71 = vadd.xlane.f32.xlu0 %v70_v12  ;;  %36180 = vst [vmem:[#allocation4_spill] sm:$0xff] %v29104_v40  ;;  %36181 = vst [vmem:[#allocation5_spill] sm:$0xff] %v29109_v42  ;;  %v100_v53 = vsel %vm57_vm0, %v29143_v51, 0.0  ;;  %v109_v56 = vsel %vm57_vm0, %v29152_v54, 0.0  ;;  %v106_v57 = vsel %vm57_vm0, %v29157_v55, 0.0  ;;  %v115_v60 = vsel %vm57_vm0, %v29166_v58, 0.0 }
   0xc   :  { %36182 = vst [vmem:[#allocation6_spill] sm:$0xff] %v29112_v43  ;;  %36183 = vst [vmem:[#allocation7_spill] sm:$0xff] %v29115_v44  ;;  %v112_v61 = vsel %vm57_vm0, %v29171_v59, 0.0  ;;  %v121_v4 = vsel %vm57_vm0, %v29180_v62, 0.0  ;;  %v118_v5 = vsel %vm57_vm0, %v29185_v63, 0.0  ;;  %v29194_v7 = vld [vmem:[%s35886_s0 + $0xb8] sm:$0xff] }
   0xd   :  { %36184 = vst [vmem:[#allocation8_spill] sm:$0xff] %v29129_v47  ;;  %v29199_v8 = vld [vmem:[%s35886_s0 + $0xb0] sm:$0xff]  ;;  %v127_v11 = vsel %vm57_vm0, %v29194_v7, 0.0  ;;  %v29222_v23 = vld [vmem:[%s35886_s0 + $0xc8] sm:$0xff]  ;;  %v29243_v35 = vld [vmem:[%s35886_s0 + $0xe0] sm:$0xff] }
   0xe   :  { %v124_v12 = vsel %vm57_vm0, %v29199_v8, 0.0  ;;  %v142_v36 = vsel %vm57_vm0, %v29243_v35, 0.0 }
   0xf   :  { %80 = vadd.xlane.f32.xlu1 %v79_v16  ;;  %77 = vadd.xlane.f32.xlu0 %v76_v18  ;;  %v29208_v16 = vld [vmem:[%s35886_s0 + $0xc0] sm:$0xff]  ;;  %v29213_v18 = vld [vmem:[%s35886_s0 + $0xd0] sm:$0xff] }
  0x10   :  { %v130_v21 = vsel %vm57_vm0, %v29208_v16, 0.0  ;;  %v136_v22 = vsel %vm57_vm0, %v29213_v18, 0.0 }
  0x13   :  { %86 = vadd.xlane.f32.xlu1 %v85_v24  ;;  %83 = vadd.xlane.f32.xlu0 %v82_v27  ;;  %v29227_v24 = vld [vmem:[%s35886_s0 + $0xf0] sm:$0xff]  ;;  %v133_v27 = vsel %vm57_vm0, %v29222_v23, 0.0 }
  0x14   :  { %v148_v28 = vsel %vm57_vm0, %v29227_v24, 0.0 }
  0x17   :  { %92 = vadd.xlane.f32.xlu1 %v91_v33  ;;  %89 = vadd.xlane.f32.xlu0 %v88_v41  ;;  %v29236_v33 = vld [vmem:[%s35886_s0 + $0xd8] sm:$0xff]  ;;  %v29250_v41 = vld [vmem:[%s35886_s0 + $0xe8] sm:$0xff] }
  0x18   :  { %v139_v34 = vsel %vm57_vm0, %v29236_v33, 0.0 }
  0x1b   :  { %98 = vadd.xlane.f32.xlu1 %v97_v48  ;;  %95 = vadd.xlane.f32.xlu0 %v94_v49  ;;  %v145_v48 = vsel %vm57_vm0, %v29250_v41, 0.0  ;;  %v29257_v49 = vld [vmem:[%s35886_s0 + $0xf8] sm:$0xff] }
  0x1f   :  { %104 = vadd.xlane.f32.xlu1 %v103_v52  ;;  %101 = vadd.xlane.f32.xlu0 %v100_v53  ;;  %v151_v52 = vsel %vm57_vm0, %v29257_v49, 0.0  ;;  %v911_v53 = vrot.slane %v29073_v26, %v910_v37 }
  0x23   :  { %110 = vadd.xlane.f32.xlu1 %v109_v56  ;;  %107 = vadd.xlane.f32.xlu0 %v106_v57  ;;  %v950_v56 = vsub.s32 4, %v29053_v19 }
  0x25   :  { %v951_v57 = vrot.slane %v29073_v26, %v950_v56 }
  0x27   :  { %116 = vadd.xlane.f32.xlu1 %v115_v60  ;;  %113 = vadd.xlane.f32.xlu0 %v112_v61 }
  0x2b   :  { %122 = vadd.xlane.f32.xlu1 %v121_v4  ;;  %119 = vadd.xlane.f32.xlu0 %v118_v5 }
  0x2f   :  { %128 = vadd.xlane.f32.xlu1 %v127_v11  ;;  %125 = vadd.xlane.f32.xlu0 %v124_v12 }
  0x33   :  { %131 = vadd.xlane.f32.xlu1 %v130_v21  ;;  %137 = vadd.xlane.f32.xlu0 %v136_v22 }
  0x37   :  { %134 = vadd.xlane.f32.xlu1 %v133_v27  ;;  %149 = vadd.xlane.f32.xlu0 %v148_v28 }
  0x3b   :  { %140 = vadd.xlane.f32.xlu1 %v139_v34 }
  0x3f   :  { %143 = vadd.xlane.f32.xlu1 %v142_v36 }
  0x43   :  { %146 = vadd.xlane.f32.xlu1 %v145_v48 }
  0x47   :  { %152 = vadd.xlane.f32.xlu1 %v151_v52 }
  0x4d   :  { %913 = vrot.lane.b32.xlu0 %v911_v53, %s28950_s15 }
  0x58   :  { %953 = vrot.lane.b32.xlu1 %v951_v57, %s28951_s16 }
  0x90   :  { %v66_v60 = vpop.xlane.xlu1 %65  ;;  %v60_v61 = vpop.xlane.xlu0 %59 }
  0x91   :  { %v157_v4 = vmul.f32 0.03125, %v66_v60  ;;  %v155_v5 = vmul.f32 0.03125, %v60_v61 }
  0x93   :  { %v29268_v11 = vsub.f32 %v28998_v1, %v155_v5  ;;  %v29271_v12 = vsub.f32 %v28993_v0, %v157_v4 }
  0x94   :  { %v69_v37 = vpop.xlane.xlu1 %68  ;;  %v63_v21 = vpop.xlane.xlu0 %62 }
  0x95   :  { %v158_v22 = vmul.f32 0.03125, %v69_v37  ;;  %v156_v27 = vmul.f32 0.03125, %v63_v21  ;;  %v219_v19 = vmul.f32 %v29268_v11, %v29268_v11  ;;  %v221_v1 = vmul.f32 %v29271_v12, %v29271_v12 }
  0x97   :  { %v29276_v26 = vsub.f32 %v29013_v6, %v156_v27  ;;  %v251_v28 = vsel %vm57_vm0, %v219_v19, 0.0  ;;  %v29282_v0 = vsub.f32 %v29003_v2, %v158_v22  ;;  %v257_v60 = vsel %vm57_vm0, %v221_v1, 0.0 }
  0x98   :  { %v75_v34 = vpop.xlane.xlu1 %74  ;;  %252 = vadd.xlane.f32.xlu0 %v251_v28  ;;  %v72_v36 = vpop.xlane.xlu0 %71 }
  0x99   :  { %v160_v48 = vmul.f32 0.03125, %v75_v34  ;;  %v220_v52 = vmul.f32 %v29276_v26, %v29276_v26  ;;  %v159_v53 = vmul.f32 0.03125, %v72_v36  ;;  %v222_v37 = vmul.f32 %v29282_v0, %v29282_v0 }
  0x9b   :  { %v29287_v56 = vsub.f32 %v29022_v9, %v160_v48  ;;  %v254_v6 = vsel %vm57_vm0, %v220_v52, 0.0  ;;  %v29292_v61 = vsub.f32 %v29027_v10, %v159_v53  ;;  %v260_v36 = vsel %vm57_vm0, %v222_v37, 0.0 }
  0x9c   :  { %v81_v57 = vpop.xlane.xlu1 %80  ;;  %255 = vadd.xlane.f32.xlu0 %v254_v6  ;;  %v78_v4 = vpop.xlane.xlu0 %77 }
  0x9d   :  { %v162_v2 = vmul.f32 0.03125, %v81_v57  ;;  %v224_v5 = vmul.f32 %v29287_v56, %v29287_v56  ;;  %v161_v21 = vmul.f32 0.03125, %v78_v4  ;;  %v223_v19 = vmul.f32 %v29292_v61, %v29292_v61 }
  0x9f   :  { %v29299_v9 = vsub.f32 %v29036_v14, %v162_v2  ;;  %v266_v22 = vsel %vm57_vm0, %v224_v5, 0.0  ;;  %v29303_v10 = vsub.f32 %v29041_v15, %v161_v21  ;;  %v263_v15 = vsel %vm57_vm0, %v223_v19, 0.0 }
  0xa0   :  { %267 = vadd.xlane.f32.xlu1 %v266_v22  ;;  %v87_v27 = vpop.xlane.xlu1 %86  ;;  %258 = vadd.xlane.f32.xlu0 %v257_v60  ;;  %v84_v28 = vpop.xlane.xlu0 %83 }
  0xa1   :  { %v164_v34 = vmul.f32 0.03125, %v87_v27  ;;  %v226_v1 = vmul.f32 %v29299_v9, %v29299_v9  ;;  %v163_v14 = vmul.f32 0.03125, %v84_v28  ;;  %v225_v6 = vmul.f32 %v29303_v10, %v29303_v10 }
  0xa3   :  { %v29311_v48 = vsub.f32 %v29048_v17, %v164_v34  ;;  %v272_v52 = vsel %vm57_vm0, %v226_v1, 0.0  ;;  %v29320_v2 = vsub.f32 %v29058_v20, %v163_v14  ;;  %v269_v22 = vsel %vm57_vm0, %v225_v6, 0.0 }
  0xa4   :  { %273 = vadd.xlane.f32.xlu1 %v272_v52  ;;  %v93_v53 = vpop.xlane.xlu1 %92  ;;  %261 = vadd.xlane.f32.xlu0 %v260_v36  ;;  %v90_v57 = vpop.xlane.xlu0 %89 }
  0xa5   :  { %v166_v60 = vmul.f32 0.03125, %v93_v53  ;;  %v228_v4 = vmul.f32 %v29311_v48, %v29311_v48  ;;  %v165_v17 = vmul.f32 0.03125, %v90_v57  ;;  %v227_v34 = vmul.f32 %v29320_v2, %v29320_v2 }
  0xa7   :  { %v29323_v5 = vsub.f32 %v29068_v25, %v166_v60  ;;  %v278_v37 = vsel %vm57_vm0, %v228_v4, 0.0  ;;  %v29328_v27 = vsub.f32 %v29092_v32, %v165_v17  ;;  %v275_v57 = vsel %vm57_vm0, %v227_v34, 0.0 }
  0xa8   :  { %279 = vadd.xlane.f32.xlu1 %v278_v37  ;;  %v99_v21 = vpop.xlane.xlu1 %98  ;;  %264 = vadd.xlane.f32.xlu0 %v263_v15  ;;  %v96_v19 = vpop.xlane.xlu0 %95 }
  0xa9   :  { %v168_v28 = vmul.f32 0.03125, %v99_v21  ;;  %v230_v20 = vmul.f32 %v29323_v5, %v29323_v5  ;;  %v167_v25 = vmul.f32 0.03125, %v96_v19  ;;  %v229_v52 = vmul.f32 %v29328_v27, %v29328_v27 }
  0xab   :  { %v29335_v1 = vsub.f32 %v29120_v45, %v168_v28  ;;  %v284_v36 = vsel %vm57_vm0, %v230_v20, 0.0  ;;  %v29339_v32 = vsub.f32 %v29125_v46, %v167_v25  ;;  %v281_v46 = vsel %vm57_vm0, %v229_v52, 0.0 }
  0xac   :  { %285 = vadd.xlane.f32.xlu1 %v284_v36  ;;  %v105_v14 = vpop.xlane.xlu1 %104  ;;  %270 = vadd.xlane.f32.xlu0 %v269_v22  ;;  %v102_v53 = vpop.xlane.xlu0 %101 }
  0xad   :  { %v170_v15 = vmul.f32 0.03125, %v105_v14  ;;  %v232_v6 = vmul.f32 %v29335_v1, %v29335_v1  ;;  %v169_v45 = vmul.f32 0.03125, %v102_v53  ;;  %v231_v37 = vmul.f32 %v29339_v32, %v29339_v32 }
  0xaf   :  { %v29347_v60 = vsub.f32 %v29138_v50, %v170_v15  ;;  %v290_v4 = vsel %vm57_vm0, %v232_v6, 0.0  ;;  %v29356_v28 = vsub.f32 %v29143_v51, %v169_v45  ;;  %v287_v36 = vsel %vm57_vm0, %v231_v37, 0.0  ;;  %v547_v6 = vld [vmem:[%s35888_s2] sm:$0xff] }
  0xb0   :  { %291 = vadd.xlane.f32.xlu1 %v290_v4  ;;  %v111_v17 = vpop.xlane.xlu1 %110  ;;  %276 = vadd.xlane.f32.xlu0 %v275_v57  ;;  %v108_v21 = vpop.xlane.xlu0 %107  ;;  %v548_v57 = vld [vmem:[%s35888_s2 + $0x8] sm:$0xff] }
  0xb1   :  { %v172_v22 = vmul.f32 0.03125, %v111_v17  ;;  %v234_v19 = vmul.f32 %v29347_v60, %v29347_v60  ;;  %v171_v50 = vmul.f32 0.03125, %v108_v21  ;;  %v233_v15 = vmul.f32 %v29356_v28, %v29356_v28 }
  0xb2   :  { %v27846_v45 = vpack.c.bf16 %v548_v57, %v547_v6 }
  0xb3   :  { %v29359_v20 = vsub.f32 %v29152_v54, %v172_v22  ;;  %v296_v34 = vsel %vm57_vm0, %v234_v19, 0.0  ;;  %v29364_v14 = vsub.f32 %v29157_v55, %v171_v50  ;;  %v293_v50 = vsel %vm57_vm0, %v233_v15, 0.0 }
  0xb4   :  { %297 = vadd.xlane.f32.xlu1 %v296_v34  ;;  %v117_v25 = vpop.xlane.xlu1 %116  ;;  %282 = vadd.xlane.f32.xlu0 %v281_v46  ;;  %v114_v52 = vpop.xlane.xlu0 %113  ;;  %v549_v34 = vld [vmem:[%s35888_s2 + $0x10] sm:$0xff] }
  0xb5   :  { %v174_v53 = vmul.f32 0.03125, %v117_v25  ;;  %v236_v51 = vmul.f32 %v29359_v20, %v29359_v20  ;;  %v173_v54 = vmul.f32 0.03125, %v114_v52  ;;  %v235_v37 = vmul.f32 %v29364_v14, %v29364_v14  ;;  %27847 = vmatprep.subr.bf16.mxu0 %v27846_v45 }
  0xb6   :  { %27849 = vmatpush3.bf16.msra.mxu0 %v27846_v45 }
  0xb7   :  { %v29377_v55 = vsub.f32 %v29166_v58, %v174_v53  ;;  %v302_v4 = vsel %vm57_vm0, %v236_v51, 0.0  ;;  %v29381_v46 = vsub.f32 %v29171_v59, %v173_v54  ;;  %v550_v59 = vld [vmem:[%s35888_s2 + $0x18] sm:$0xff]  ;;  %v299_v51 = vsel %vm57_vm0, %v235_v37, 0.0  ;;  %s28953_s2 = smov 96  }
  0xb8   :  { %303 = vadd.xlane.f32.xlu1 %v302_v4  ;;  %v123_v17 = vpop.xlane.xlu1 %122  ;;  %288 = vadd.xlane.f32.xlu0 %v287_v36  ;;  %v120_v21 = vpop.xlane.xlu0 %119  ;;  %v27850_v25 = vpack.c.bf16 %v550_v59, %v549_v34 }
  0xb9   :  { %v176_v22 = vmul.f32 0.03125, %v123_v17  ;;  %v238_v19 = vmul.f32 %v29377_v55, %v29377_v55  ;;  %v175_v58 = vmul.f32 0.03125, %v120_v21  ;;  %v237_v15 = vmul.f32 %v29381_v46, %v29381_v46 }
  0xba   :  { %27851 = vmatprep.subr.bf16.mxu0 %v27850_v25 }
  0xbb   :  { %v29395_v36 = vsub.f32 %v29180_v62, %v176_v22  ;;  %v308_v52 = vsel %vm57_vm0, %v238_v19, 0.0  ;;  %v29404_v45 = vsub.f32 %v29185_v63, %v175_v58  ;;  %27853 = vmatpush3.bf16.msra.mxu0 %v27850_v25  ;;  %v305_v21 = vsel %vm57_vm0, %v237_v15, 0.0 }
  0xbc   :  { %309 = vadd.xlane.f32.xlu1 %v308_v52  ;;  %v129_v53 = vpop.xlane.xlu1 %128  ;;  %294 = vadd.xlane.f32.xlu0 %v293_v50  ;;  %v126_v54 = vpop.xlane.xlu0 %125 }
  0xbd   :  { %v178_v6 = vmul.f32 0.03125, %v129_v53  ;;  %v240_v57 = vmul.f32 %v29395_v36, %v29395_v36  ;;  %v177_v62 = vmul.f32 0.03125, %v126_v54  ;;  %26483 = vmatprep.subr.mxu0 %v35893_v3 }
  0xbf   :  { %v29407_v4 = vsub.f32 %v29194_v7, %v178_v6  ;;  %v314_v17 = vsel %vm57_vm0, %v240_v57, 0.0  ;;  %v29415_v19 = vsub.f32 %v29199_v8, %v177_v62  ;;  %v239_v7 = vmul.f32 %v29404_v45, %v29404_v45 }
  0xc0   :  { %315 = vadd.xlane.f32.xlu1 %v314_v17  ;;  %v132_v37 = vpop.xlane.xlu1 %131  ;;  %300 = vadd.xlane.f32.xlu0 %v299_v51  ;;  %v138_v50 = vpop.xlane.xlu0 %137 }
  0xc1   :  { %v179_v22 = vmul.f32 0.03125, %v132_v37  ;;  %v242_v63 = vmul.f32 %v29407_v4, %v29407_v4  ;;  %v181_v59 = vmul.f32 0.03125, %v138_v50  ;;  %v311_v53 = vsel %vm57_vm0, %v239_v7, 0.0 }
  0xc2   :  { %v241_v8 = vmul.f32 %v29415_v19, %v29415_v19 }
  0xc3   :  { %v320_v58 = vsel %vm57_vm0, %v242_v63, 0.0  ;;  %v29421_v25 = vsub.f32 %v29208_v16, %v179_v22  ;;  %v29430_v54 = vsub.f32 %v29213_v18, %v181_v59 }
  0xc4   :  { %321 = vadd.xlane.f32.xlu1 %v320_v58  ;;  %v135_v34 = vpop.xlane.xlu1 %134  ;;  %306 = vadd.xlane.f32.xlu0 %v305_v21  ;;  %v317_v16 = vsel %vm57_vm0, %v241_v8, 0.0  ;;  %v150_v17 = vpop.xlane.xlu0 %149 }
  0xc5   :  { %v180_v52 = vmul.f32 0.03125, %v135_v34  ;;  %v243_v62 = vmul.f32 %v29421_v25, %v29421_v25  ;;  %v245_v18 = vmul.f32 %v29430_v54, %v29430_v54  ;;  %v185_v50 = vmul.f32 0.03125, %v150_v17 }
  0xc7   :  { %v29427_v51 = vsub.f32 %v29222_v23, %v180_v52  ;;  %v323_v7 = vsel %vm57_vm0, %v243_v62, 0.0  ;;  %v329_v52 = vsel %vm57_vm0, %v245_v18, 0.0  ;;  %v29473_v18 = vand.u32 127, %v475_v13 }
  0xc8   :  { %v141_v15 = vpop.xlane.xlu1 %140  ;;  %312 = vadd.xlane.f32.xlu0 %v311_v53  ;;  %v29452_v53 = vsub.f32 %v29227_v24, %v185_v50  ;;  %v29487_v13 = vpop.permute.xlu0 %913 }
  0xc9   :  { %v182_v6 = vmul.f32 0.03125, %v141_v15  ;;  %v244_v57 = vmul.f32 %v29427_v51, %v29427_v51  ;;  %36185 = vst [vmem:[#allocation9_spill] sm:$0xff] %v29473_v18  ;;  %vm3944_vm1 = vcmp.ge.s32.totalorder %v29473_v18, 8  ;;  %vm3945_vm2 = vcmp.lt.s32.totalorder %v29473_v18, 16 }
  0xca   :  { %v249_v62 = vmul.f32 %v29452_v53, %v29452_v53  ;;  %vm991_vm3 = vcmp.lt.s32.totalorder %v29473_v18, 8  ;;  %vm3946_vm4 = vmand %vm3944_vm1, %vm3945_vm2 }
  0xcb   :  { %v29438_v37 = vsub.f32 %v29236_v33, %v182_v6  ;;  %v326_v23 = vsel %vm57_vm0, %v244_v57, 0.0 }
  0xcc   :  { %327 = vadd.xlane.f32.xlu1 %v326_v23  ;;  %v144_v21 = vpop.xlane.xlu1 %143  ;;  %318 = vadd.xlane.f32.xlu0 %v317_v16  ;;  %v341_v23 = vsel %vm57_vm0, %v249_v62, 0.0 }
  0xcd   :  { %v183_v22 = vmul.f32 0.03125, %v144_v21  ;;  %v246_v63 = vmul.f32 %v29438_v37, %v29438_v37 }
  0xcf   :  { %v29447_v58 = vsub.f32 %v29243_v35, %v183_v22  ;;  %v332_v33 = vsel %vm57_vm0, %v246_v63, 0.0  ;;  %v29482_v22 = vsel %vm3946_vm4, 1.0, %v35893_v3 }
  0xd0   :  { %333 = vadd.xlane.f32.xlu1 %v332_v33  ;;  %v147_v34 = vpop.xlane.xlu1 %146  ;;  %324 = vadd.xlane.f32.xlu0 %v323_v7 }
  0xd1   :  { %v184_v59 = vmul.f32 0.03125, %v147_v34  ;;  %v247_v8 = vmul.f32 %v29447_v58, %v29447_v58 }
  0xd3   :  { %v29457_v15 = vsub.f32 %v29250_v41, %v184_v59  ;;  %v335_v16 = vsel %vm57_vm0, %v247_v8, 0.0 }
  0xd4   :  { %v153_v6 = vpop.xlane.xlu1 %152  ;;  %330 = vadd.xlane.f32.xlu0 %v329_v52 }
  0xd5   :  { %v186_v35 = vmul.f32 0.03125, %v153_v6  ;;  %v248_v57 = vmul.f32 %v29457_v15, %v29457_v15 }
  0xd7   :  { %v29465_v24 = vsub.f32 %v29257_v49, %v186_v35  ;;  %v338_v17 = vsel %vm57_vm0, %v248_v57, 0.0  ;;  %v29479_v49 = vsel %vm991_vm3, 1.0, %v35893_v3 }
  0xd8   :  { %339 = vadd.xlane.f32.xlu1 %v338_v17  ;;  %336 = vadd.xlane.f32.xlu0 %v335_v16  ;;  %v28080_v63 = vpack.i.bf16 %v29479_v49, %v29482_v22  ;;  %v29489_v34 = vpop.permute.xlu1 %953 }
  0xd9   :  { %v250_v41 = vmul.f32 %v29465_v24, %v29465_v24  ;;  %36186 = vst [vmem:[#allocation10_spill] sm:$0xff] %v29489_v34 }
  0xdb   :  { %v344_v21 = vsel %vm57_vm0, %v250_v41, 0.0 }
  0xdc   :  { %345 = vadd.xlane.f32.xlu1 %v344_v21  ;;  %342 = vadd.xlane.f32.xlu0 %v341_v23 }
  0xf2   :  { %28081 = vrot.lane.b32.xlu0 %v28080_v63, %s28951_s16 }
 0x125   :  { %v253_v7 = vpop.xlane.xlu0 %252 }
 0x126   :  { %v347_v50 = vmul.f32 0.03125, %v253_v7 }
 0x128   :  { %v379_v33 = vadd.f32 1e-06, %v347_v50 }
 0x129   :  { %v256_v59 = vpop.xlane.xlu0 %255 }
 0x12a   :  { %28085 = vrsqrt.f32 %v379_v33  ;;  %v348_v52 = vmul.f32 0.03125, %v256_v59 }
 0x12c   :  { %v380_v8 = vadd.f32 1e-06, %v348_v52 }
 0x12d   :  { %v268_v6 = vpop.xlane.xlu1 %267  ;;  %v259_v35 = vpop.xlane.xlu0 %258 }
 0x12e   :  { %28087 = vrsqrt.f32 %v380_v8  ;;  %v352_v57 = vmul.f32 0.03125, %v268_v6  ;;  %v349_v16 = vmul.f32 0.03125, %v259_v35 }
 0x130   :  { %v381_v62 = vadd.f32 1e-06, %v349_v16  ;;  %v384_v23 = vadd.f32 1e-06, %v352_v57 }
 0x131   :  { %v274_v17 = vpop.xlane.xlu1 %273  ;;  %v262_v41 = vpop.xlane.xlu0 %261 }
 0x132   :  { %v354_v21 = vmul.f32 0.03125, %v274_v17  ;;  %v350_v63 = vmul.f32 0.03125, %v262_v41  ;;  %28089 = vrsqrt.f32 %v381_v62 }
 0x133   :  { %28091 = vrsqrt.f32 %v384_v23 }
 0x134   :  { %v28086_v7 = vpop.eup %28085  ;;  %v382_v50 = vadd.f32 1e-06, %v350_v63  ;;  %v386_v59 = vadd.f32 1e-06, %v354_v21 }
 0x135   :  { %v280_v3 = vpop.xlane.xlu1 %279  ;;  %v265_v47 = vpop.xlane.xlu0 %264  ;;  %v443_v33 = vmul.f32 %v28086_v7, %v29268_v11 }
 0x136   :  { %v356_v52 = vmul.f32 0.03125, %v280_v3  ;;  %v351_v40 = vmul.f32 0.03125, %v265_v47  ;;  %28093 = vrsqrt.f32 %v382_v50 }
 0x137   :  { %v479_v8 = vmul.f32 %v29081_v29, %v443_v33  ;;  %28095 = vrsqrt.f32 %v386_v59 }
 0x138   :  { %v28088_v6 = vpop.eup %28087  ;;  %v383_v35 = vadd.f32 1e-06, %v351_v40  ;;  %v388_v41 = vadd.f32 1e-06, %v356_v52 }
 0x139   :  { %v286_v16 = vpop.xlane.xlu1 %285  ;;  %v271_v57 = vpop.xlane.xlu0 %270  ;;  %v515_v17 = vadd.f32 %v29084_v30, %v479_v8  ;;  %v444_v62 = vmul.f32 %v28088_v6, %v29276_v26 }
 0x13a   :  { %v358_v63 = vmul.f32 0.03125, %v286_v16  ;;  %v353_v39 = vmul.f32 0.03125, %v271_v57  ;;  %28097 = vrsqrt.f32 %v383_v35 }
 0x13b   :  { %26350 = vmatprep.mubr.msk.f32.mxu0 %vm57_vm0, %v515_v17  ;;  %v480_v3 = vmul.f32 %v29081_v29, %v444_v62  ;;  %28099 = vrsqrt.f32 %v388_v41 }
 0x13c   :  { %v385_v47 = vadd.f32 1e-06, %v353_v39  ;;  %v28090_v11 = vpop.eup %28089  ;;  %v390_v23 = vadd.f32 1e-06, %v358_v63 }
 0x13d   :  { %v292_v21 = vpop.xlane.xlu1 %291  ;;  %v277_v40 = vpop.xlane.xlu0 %276  ;;  %v516_v7 = vadd.f32 %v29084_v30, %v480_v3  ;;  %v445_v26 = vmul.f32 %v28090_v11, %v29271_v12 }
 0x13e   :  { %v360_v50 = vmul.f32 0.03125, %v292_v21  ;;  %v355_v33 = vmul.f32 0.03125, %v277_v40  ;;  %28101 = vrsqrt.f32 %v385_v47  ;;  %v28092_v59 = vpop.eup %28091 }
 0x13f   :  { %26351 = vmatmul.mubr.msk.f32.vlgmr.msra.gmra.mrb[0].mxu0 %vm57_vm0, %v516_v7  ;;  %v481_v8 = vmul.f32 %v29081_v29, %v445_v26  ;;  %28103 = vrsqrt.f32 %v390_v23  ;;  %v448_v12 = vmul.f32 %v28092_v59, %v29287_v56 }
 0x140   :  { %v387_v52 = vadd.f32 1e-06, %v355_v33  ;;  %v28094_v6 = vpop.eup %28093  ;;  %v392_v16 = vadd.f32 1e-06, %v360_v50 }
 0x141   :  { %v298_v39 = vpop.xlane.xlu1 %297  ;;  %v283_v35 = vpop.xlane.xlu0 %282  ;;  %v517_v62 = vadd.f32 %v29084_v30, %v481_v8  ;;  %v446_v41 = vmul.f32 %v28094_v6, %v29282_v0  ;;  %v484_v56 = vmul.f32 %v29081_v29, %v448_v12 }
 0x142   :  { %v362_v57 = vmul.f32 0.03125, %v298_v39  ;;  %v357_v17 = vmul.f32 0.03125, %v283_v35  ;;  %28105 = vrsqrt.f32 %v387_v52  ;;  %v28096_v63 = vpop.eup %28095 }
 0x143   :  { %26353 = vmatprep.mubr.msk.f32.mxu0 %vm57_vm0, %v517_v62  ;;  %v482_v40 = vmul.f32 %v29081_v29, %v446_v41  ;;  %28107 = vrsqrt.f32 %v392_v16  ;;  %v450_v26 = vmul.f32 %v28096_v63, %v29299_v9  ;;  %v520_v41 = vadd.f32 %v29084_v30, %v484_v56 }
 0x144   :  { %v389_v3 = vadd.f32 1e-06, %v357_v17  ;;  %v28098_v47 = vpop.eup %28097  ;;  %v394_v11 = vadd.f32 1e-06, %v362_v57 }
 0x145   :  { %v304_v21 = vpop.xlane.xlu1 %303  ;;  %v289_v23 = vpop.xlane.xlu0 %288  ;;  %v447_v33 = vmul.f32 %v28098_v47, %v29292_v61  ;;  %v518_v0 = vadd.f32 %v29084_v30, %v482_v40  ;;  %v486_v12 = vmul.f32 %v29081_v29, %v450_v26 }
 0x146   :  { %v364_v7 = vmul.f32 0.03125, %v304_v21  ;;  %v359_v50 = vmul.f32 0.03125, %v289_v23  ;;  %28109 = vrsqrt.f32 %v389_v3  ;;  %v28100_v59 = vpop.eup %28099 }
 0x147   :  { %v483_v8 = vmul.f32 %v29081_v29, %v447_v33  ;;  %28111 = vrsqrt.f32 %v394_v11  ;;  %26354 = vmatmul.mubr.msk.f32.gmra.mrb[2].mxu0 %vm57_vm0, %v518_v0  ;;  %v452_v3 = vmul.f32 %v28100_v59, %v29311_v48  ;;  %v522_v0 = vadd.f32 %v29084_v30, %v486_v12 }
 0x148   :  { %v391_v52 = vadd.f32 1e-06, %v359_v50  ;;  %v28102_v6 = vpop.eup %28101  ;;  %v396_v16 = vadd.f32 1e-06, %v364_v7 }
 0x149   :  { %v310_v39 = vpop.xlane.xlu1 %309  ;;  %v295_v35 = vpop.xlane.xlu0 %294  ;;  %v519_v17 = vadd.f32 %v29084_v30, %v483_v8  ;;  %v449_v9 = vmul.f32 %v28102_v6, %v29303_v10  ;;  %v488_v59 = vmul.f32 %v29081_v29, %v452_v3 }
 0x14a   :  { %v366_v57 = vmul.f32 0.03125, %v310_v39  ;;  %v361_v61 = vmul.f32 0.03125, %v295_v35  ;;  %v28104_v62 = vpop.eup %28103  ;;  %28113 = vrsqrt.f32 %v391_v52 }
 0x14b   :  { %26356 = vmatprep.mubr.msk.f32.mxu0 %vm57_vm0, %v519_v17  ;;  %v485_v40 = vmul.f32 %v29081_v29, %v449_v9  ;;  %28115 = vrsqrt.f32 %v396_v16  ;;  %v454_v52 = vmul.f32 %v28104_v62, %v29323_v5  ;;  %v524_v5 = vadd.f32 %v29084_v30, %v488_v59 }
 0x14c   :  { %v393_v63 = vadd.f32 1e-06, %v361_v61  ;;  %v28106_v47 = vpop.eup %28105  ;;  %v398_v11 = vadd.f32 1e-06, %v366_v57  ;;  %26357 = vmatmul.mubr.msk.f32.gmra.mrb[4].mxu0 %vm57_vm0, %v520_v41 }
 0x14d   :  { %v316_v21 = vpop.xlane.xlu1 %315  ;;  %v301_v23 = vpop.xlane.xlu0 %300  ;;  %v451_v10 = vmul.f32 %v28106_v47, %v29320_v2  ;;  %v521_v33 = vadd.f32 %v29084_v30, %v485_v40  ;;  %v490_v62 = vmul.f32 %v29081_v29, %v454_v52 }
 0x14e   :  { %v368_v7 = vmul.f32 0.03125, %v316_v21  ;;  %v363_v50 = vmul.f32 0.03125, %v301_v23  ;;  %28117 = vrsqrt.f32 %v393_v63  ;;  %v28108_v56 = vpop.eup %28107 }
 0x14f   :  { %v487_v26 = vmul.f32 %v29081_v29, %v451_v10  ;;  %28119 = vrsqrt.f32 %v398_v11  ;;  %26359 = vmatprep.mubr.msk.f32.mxu0 %vm57_vm0, %v521_v33  ;;  %v456_v9 = vmul.f32 %v28108_v56, %v29335_v1  ;;  %v526_v1 = vadd.f32 %v29084_v30, %v490_v62 }
 0x150   :  { %v395_v48 = vadd.f32 1e-06, %v363_v50  ;;  %v28110_v8 = vpop.eup %28109  ;;  %v400_v2 = vadd.f32 1e-06, %v368_v7  ;;  %26360 = vmatmul.mubr.msk.f32.gmra.mrb[6].mxu0 %vm57_vm0, %v522_v0 }
 0x151   :  { %v322_v6 = vpop.xlane.xlu1 %321  ;;  %v307_v39 = vpop.xlane.xlu0 %306  ;;  %v523_v57 = vadd.f32 %v29084_v30, %v487_v26  ;;  %v453_v17 = vmul.f32 %v28110_v8, %v29328_v27  ;;  %v492_v10 = vmul.f32 %v29081_v29, %v456_v9 }
 0x152   :  { %v370_v35 = vmul.f32 0.03125, %v322_v6  ;;  %v365_v16 = vmul.f32 0.03125, %v307_v39  ;;  %v28112_v61 = vpop.eup %28111  ;;  %28121 = vrsqrt.f32 %v395_v48 }
 0x153   :  { %26362 = vmatprep.mubr.msk.f32.mxu0 %vm57_vm0, %v523_v57  ;;  %v489_v47 = vmul.f32 %v29081_v29, %v453_v17  ;;  %28123 = vrsqrt.f32 %v400_v2  ;;  %v458_v23 = vmul.f32 %v28112_v61, %v29347_v60  ;;  %v528_v2 = vadd.f32 %v29084_v30, %v492_v10 }
 0x154   :  { %v397_v41 = vadd.f32 1e-06, %v365_v16  ;;  %v28114_v12 = vpop.eup %28113  ;;  %v402_v63 = vadd.f32 1e-06, %v370_v35  ;;  %26363 = vmatmul.mubr.msk.f32.gmra.mrb[8].mxu0 %vm57_vm0, %v524_v5 }
 0x155   :  { %v313_v3 = vpop.xlane.xlu0 %312  ;;  %v455_v27 = vmul.f32 %v28114_v12, %v29339_v32  ;;  %v525_v21 = vadd.f32 %v29084_v30, %v489_v47  ;;  %v28116_v40 = vpop.eup %28115  ;;  %v494_v52 = vmul.f32 %v29081_v29, %v458_v23 }
 0x156   :  { %v367_v11 = vmul.f32 0.03125, %v313_v3  ;;  %28125 = vrsqrt.f32 %v397_v41  ;;  %v460_v8 = vmul.f32 %v28116_v40, %v29359_v20 }
 0x157   :  { %v491_v50 = vmul.f32 %v29081_v29, %v455_v27  ;;  %28127 = vrsqrt.f32 %v402_v63  ;;  %26365 = vmatprep.mubr.msk.f32.mxu0 %vm57_vm0, %v525_v21  ;;  %v530_v5 = vadd.f32 %v29084_v30, %v494_v52 }
 0x158   :  { %v399_v7 = vadd.f32 1e-06, %v367_v11  ;;  %v28118_v33 = vpop.eup %28117  ;;  %26366 = vmatmul.mubr.msk.f32.gmra.mrb[10].mxu0 %vm57_vm0, %v526_v1  ;;  %v496_v62 = vmul.f32 %v29081_v29, %v460_v8 }
 0x159   :  { %v328_v0 = vpop.xlane.xlu1 %327  ;;  %v319_v56 = vpop.xlane.xlu0 %318  ;;  %v527_v60 = vadd.f32 %v29084_v30, %v491_v50  ;;  %v457_v59 = vmul.f32 %v28118_v33, %v29356_v28 }
 0x15a   :  { %28129 = vrsqrt.f32 %v399_v7  ;;  %v372_v32 = vmul.f32 0.03125, %v328_v0  ;;  %v369_v48 = vmul.f32 0.03125, %v319_v56  ;;  %v28120_v26 = vpop.eup %28119 }
 0x15b   :  { %26368 = vmatprep.mubr.msk.f32.mxu0 %vm57_vm0, %v527_v60  ;;  %v493_v61 = vmul.f32 %v29081_v29, %v457_v59  ;;  %v462_v47 = vmul.f32 %v28120_v26, %v29377_v55  ;;  %v532_v55 = vadd.f32 %v29084_v30, %v496_v62 }
 0x15c   :  { %v404_v6 = vadd.f32 1e-06, %v372_v32  ;;  %v401_v39 = vadd.f32 1e-06, %v369_v48  ;;  %v28122_v35 = vpop.eup %28121  ;;  %26369 = vmatmul.mubr.msk.f32.gmra.mrb[12].mxu0 %vm57_vm0, %v528_v2 }
 0x15d   :  { %v334_v16 = vpop.xlane.xlu1 %333  ;;  %v325_v57 = vpop.xlane.xlu0 %324  ;;  %v459_v41 = vmul.f32 %v28122_v35, %v29364_v14  ;;  %v529_v20 = vadd.f32 %v29084_v30, %v493_v61  ;;  %v498_v33 = vmul.f32 %v29081_v29, %v462_v47 }
 0x15e   :  { %28131 = vrsqrt.f32 %v404_v6  ;;  %v374_v17 = vmul.f32 0.03125, %v334_v16  ;;  %v371_v28 = vmul.f32 0.03125, %v325_v57  ;;  %v28124_v9 = vpop.eup %28123 }
 0x15f   :  { %28133 = vrsqrt.f32 %v401_v39  ;;  %v495_v3 = vmul.f32 %v29081_v29, %v459_v41  ;;  %26371 = vmatprep.mubr.msk.f32.mxu0 %vm57_vm0, %v529_v20  ;;  %v464_v7 = vmul.f32 %v28124_v9, %v29395_v36 }
 0x160   :  { %v406_v12 = vadd.f32 1e-06, %v374_v17  ;;  %v403_v63 = vadd.f32 1e-06, %v371_v28  ;;  %v28126_v11 = vpop.eup %28125  ;;  %26372 = vmatmul.mubr.msk.f32.gmra.mrb[14].mxu0 %vm57_vm0, %v530_v5 }
 0x161   :  { %v331_v27 = vpop.xlane.xlu0 %330  ;;  %v531_v21 = vadd.f32 %v29084_v30, %v495_v3  ;;  %v461_v23 = vmul.f32 %v28126_v11, %v29381_v46  ;;  %v28128_v40 = vpop.eup %28127  ;;  %v500_v26 = vmul.f32 %v29081_v29, %v464_v7 }
 0x162   :  { %28135 = vrsqrt.f32 %v406_v12  ;;  %v373_v14 = vmul.f32 0.03125, %v331_v27  ;;  %v466_v59 = vmul.f32 %v28128_v40, %v29407_v4 }
 0x163   :  { %28137 = vrsqrt.f32 %v403_v63  ;;  %26374 = vmatprep.mubr.msk.f32.mxu0 %vm57_vm0, %v531_v21  ;;  %v497_v10 = vmul.f32 %v29081_v29, %v461_v23  ;;  %v536_v4 = vadd.f32 %v29084_v30, %v500_v26  ;;  %v36187_v26 = vmov 0.0  }
 0x164   :  { %v28130_v1 = vpop.eup %28129  ;;  %v405_v50 = vadd.f32 1e-06, %v373_v14  ;;  %26375 = vmatmul.mubr.msk.f32.gmra.mrb[16].mxu0 %vm57_vm0, %v532_v55  ;;  %v502_v28 = vmul.f32 %v29081_v29, %v466_v59  ;;  %26400 = vmatprep.mubr.msk.f32.mxu1 %vm28952_vm5, %v36187_v26 }
 0x165   :  { %v340_v0 = vpop.xlane.xlu1 %339  ;;  %v337_v56 = vpop.xlane.xlu0 %336  ;;  %v463_v32 = vmul.f32 %v28130_v1, %v29404_v45  ;;  %v533_v36 = vadd.f32 %v29084_v30, %v497_v10  ;;  %v534_v45 = vadd.f32 %v29084_v30, %v498_v33 }
 0x166   :  { %28139 = vrsqrt.f32 %v405_v50  ;;  %v376_v46 = vmul.f32 0.03125, %v340_v0  ;;  %v375_v48 = vmul.f32 0.03125, %v337_v56  ;;  %v538_v47 = vadd.f32 %v29084_v30, %v502_v28 }
 0x167   :  { %v499_v60 = vmul.f32 %v29081_v29, %v463_v32  ;;  %26377 = vmatprep.mubr.msk.f32.mxu0 %vm57_vm0, %v533_v36 }
 0x168   :  { %v28132_v52 = vpop.eup %28131  ;;  %v408_v8 = vadd.f32 1e-06, %v376_v46  ;;  %v407_v6 = vadd.f32 1e-06, %v375_v48  ;;  %26378 = vmatmul.mubr.msk.f32.gmra.mrb[18].mxu0 %vm57_vm0, %v534_v45 }
 0x169   :  { %v28134_v39 = vpop.eup %28133  ;;  %v346_v2 = vpop.xlane.xlu1 %345  ;;  %v535_v16 = vadd.f32 %v29084_v30, %v499_v60  ;;  %v468_v9 = vmul.f32 %v28132_v52, %v29427_v51 }
 0x16a   :  { %v343_v35 = vpop.xlane.xlu0 %342  ;;  %28141 = vrsqrt.f32 %v408_v8  ;;  %v378_v57 = vmul.f32 0.03125, %v346_v2  ;;  %v465_v17 = vmul.f32 %v28134_v39, %v29415_v19 }
 0x16b   :  { %v377_v61 = vmul.f32 0.03125, %v343_v35  ;;  %28143 = vrsqrt.f32 %v407_v6  ;;  %26380 = vmatprep.mubr.msk.f32.mxu0 %vm57_vm0, %v535_v16  ;;  %v504_v27 = vmul.f32 %v29081_v29, %v468_v9 }
 0x16c   :  { %v28136_v41 = vpop.eup %28135  ;;  %v410_v20 = vadd.f32 1e-06, %v378_v57  ;;  %v501_v62 = vmul.f32 %v29081_v29, %v465_v17  ;;  %26381 = vmatmul.mubr.msk.f32.gmra.mrb[20].mxu0 %vm57_vm0, %v536_v4 }
 0x16d   :  { %v409_v5 = vadd.f32 1e-06, %v377_v61  ;;  %v28138_v12 = vpop.eup %28137  ;;  %v470_v51 = vmul.f32 %v28136_v41, %v29438_v37  ;;  %v540_v40 = vadd.f32 %v29084_v30, %v504_v27 }
 0x16e   :  { %28145 = vrsqrt.f32 %v410_v20  ;;  %v537_v19 = vadd.f32 %v29084_v30, %v501_v62  ;;  %v467_v63 = vmul.f32 %v28138_v12, %v29421_v25 }
 0x16f   :  { %28147 = vrsqrt.f32 %v409_v5  ;;  %v506_v7 = vmul.f32 %v29081_v29, %v470_v51 }
 0x170   :  { %v28140_v3 = vpop.eup %28139  ;;  %26383 = vmatprep.mubr.msk.f32.mxu0 %vm57_vm0, %v537_v19  ;;  %v503_v11 = vmul.f32 %v29081_v29, %v467_v63 }
 0x171   :  { %v469_v14 = vmul.f32 %v28140_v3, %v29430_v54  ;;  %26384 = vmatmul.mubr.msk.f32.gmra.mrb[22].mxu0 %vm57_vm0, %v538_v47  ;;  %v542_v33 = vadd.f32 %v29084_v30, %v506_v7 }
 0x172   :  { %v539_v21 = vadd.f32 %v29084_v30, %v503_v11 }
 0x173   :  { %v505_v25 = vmul.f32 %v29081_v29, %v469_v14 }
 0x174   :  { %v28142_v23 = vpop.eup %28141  ;;  %26386 = vmatprep.mubr.msk.f32.mxu0 %vm57_vm0, %v539_v21 }
 0x175   :  { %v28144_v1 = vpop.eup %28143  ;;  %v541_v50 = vadd.f32 %v29084_v30, %v505_v25  ;;  %v472_v37 = vmul.f32 %v28142_v23, %v29457_v15  ;;  %26387 = vmatmul.mubr.msk.f32.gmra.mrb[24].mxu0 %vm57_vm0, %v540_v40 }
 0x176   :  { %v471_v54 = vmul.f32 %v28144_v1, %v29447_v58 }
 0x177   :  { %26389 = vmatprep.mubr.msk.f32.mxu0 %vm57_vm0, %v541_v50  ;;  %v508_v55 = vmul.f32 %v29081_v29, %v472_v37 }
 0x178   :  { %v28146_v10 = vpop.eup %28145  ;;  %v507_v0 = vmul.f32 %v29081_v29, %v471_v54 }
 0x179   :  { %v28148_v56 = vpop.eup %28147  ;;  %v474_v32 = vmul.f32 %v28146_v10, %v29465_v24  ;;  %26390 = vmatmul.mubr.msk.f32.gmra.mrb[26].mxu0 %vm57_vm0, %v542_v33  ;;  %v544_v46 = vadd.f32 %v29084_v30, %v508_v55 }
 0x17a   :  { %v543_v15 = vadd.f32 %v29084_v30, %v507_v0  ;;  %v473_v58 = vmul.f32 %v28148_v56, %v29452_v53  ;;  %v29623_v53 = vpop.permute.xlu0 %28081 }
 0x17b   :  { %v510_v48 = vmul.f32 %v29081_v29, %v474_v32  ;;  %36188 = vst [vmem:[#allocation11_spill] sm:$0xff] %v29623_v53  ;;  %v29628_v59 = vunpack.i.l.bf16 %v29623_v53 }
 0x17c   :  { %26392 = vmatprep.mubr.msk.f32.mxu0 %vm57_vm0, %v543_v15  ;;  %v509_v36 = vmul.f32 %v29081_v29, %v473_v58 }
 0x17d   :  { %26393 = vmatmul.mubr.msk.f32.gmra.mrb[28].mxu0 %vm57_vm0, %v544_v46  ;;  %v546_v24 = vadd.f32 %v29084_v30, %v510_v48  ;;  %36189 = vst [vmem:[#allocation12_spill] sm:$0xff] %v29628_v59 }
 0x17e   :  { %v545_v60 = vadd.f32 %v29084_v30, %v509_v36 }
 0x180   :  { %26395 = vmatprep.mubr.msk.f32.mxu0 %vm57_vm0, %v545_v60 }
 0x181   :  { %26396 = vmatmul.mubr.msk.f32.gmra.mrb[30].mxu0 %vm57_vm0, %v546_v24 }
 0x182   :  { %26485 = vmatprep.mubr.msk.f32.mxu0 %vm28952_vm5, %v36187_v26 }
 0x212   :  { %v29625_v29 = vpop.f32.mrb[0].mxu0 }
 0x213   :  { %v917_v30 = vadd.f32 %v29625_v29, %v29487_v13  ;;  %v29634_v52 = vadd.f32 %v29625_v29, %v29489_v34  ;;  %v29636_v8 = vpop.f32.mrb[1].mxu0 }
 0x214   :  { %v916_v45 = vadd.f32 %v29487_v13, %v29636_v8  ;;  %v29645_v39 = vadd.f32 %v29489_v34, %v29636_v8 }
 0x215   :  { %36190 = vst [vmem:[#allocation13_spill] sm:$0xff] %v29634_v52  ;;  %1106 = vrot.lane.b32.xlu1 %v917_v30, %s28953_s2  ;;  %v6706_v6 = vmul.f32 %v29628_v59, %v29634_v52 }
 0x216   :  { %36191 = vst [vmem:[#allocation14_spill] sm:$0xff] %v29645_v39  ;;  %v6705_v2 = vmul.f32 %v29628_v59, %v29645_v39 }
 0x217   :  { %6815 = vrot.lane.b32.xlu0 %v6706_v6, %s28951_s16 }
 0x219   :  { %1028 = vrot.lane.b32.xlu1 %v916_v45, %s28953_s2 }
 0x21a   :  { %v29651_v35 = vpop.f32.mrb[2].mxu0 }
 0x21b   :  { %v919_v16 = vadd.f32 %v29651_v35, %v29487_v13  ;;  %v29657_v57 = vadd.f32 %v29651_v35, %v29489_v34  ;;  %v29659_v61 = vpop.f32.mrb[3].mxu0 }
 0x21c   :  { %v918_v17 = vadd.f32 %v29487_v13, %v29659_v61  ;;  %v29666_v4 = vadd.f32 %v29489_v34, %v29659_v61 }
 0x21d   :  { %36192 = vst [vmem:[#allocation15_spill] sm:$0xff] %v29657_v57  ;;  %6738 = vrot.lane.b32.xlu1 %v6705_v2, %s28951_s16  ;;  %1262 = vrot.lane.b32.xlu0 %v919_v16, %s28953_s2  ;;  %v6708_v20 = vmul.f32 %v29628_v59, %v29657_v57 }
 0x21e   :  { %36193 = vst [vmem:[#allocation16_spill] sm:$0xff] %v29666_v4  ;;  %v6707_v5 = vmul.f32 %v29628_v59, %v29666_v4 }
 0x21f   :  { %v29669_v28 = vpop.f32.mrb[4].mxu0 }
 0x220   :  { %v29671_v41 = vpop.f32.mrb[5].mxu0  ;;  %v921_v62 = vadd.f32 %v29669_v28, %v29487_v13  ;;  %v29683_v9 = vadd.f32 %v29669_v28, %v29489_v34 }
 0x221   :  { %1184 = vrot.lane.b32.xlu1 %v918_v17, %s28953_s2  ;;  %6969 = vrot.lane.b32.xlu0 %v6708_v20, %s28951_s16  ;;  %v920_v63 = vadd.f32 %v29487_v13, %v29671_v41  ;;  %v29694_v3 = vadd.f32 %v29489_v34, %v29671_v41 }
 0x222   :  { %36194 = vst [vmem:[#allocation17_spill] sm:$0xff] %v29683_v9  ;;  %v6710_v11 = vmul.f32 %v29628_v59, %v29683_v9 }
 0x223   :  { %v29685_v12 = vpop.f32.mrb[6].mxu0  ;;  %36195 = vst [vmem:[#allocation18_spill] sm:$0xff] %v29694_v3  ;;  %v6709_v51 = vmul.f32 %v29628_v59, %v29694_v3 }
 0x224   :  { %v29688_v19 = vpop.f32.mrb[7].mxu0  ;;  %v923_v14 = vadd.f32 %v29685_v12, %v29487_v13  ;;  %v29720_v40 = vadd.f32 %v29685_v12, %v29489_v34 }
 0x225   :  { %6892 = vrot.lane.b32.xlu1 %v6707_v5, %s28951_s16  ;;  %1418 = vrot.lane.b32.xlu0 %v921_v62, %s28953_s2  ;;  %v29711_v21 = vadd.f32 %v29489_v34, %v29688_v19  ;;  %v922_v7 = vadd.f32 %v29487_v13, %v29688_v19 }
 0x226   :  { %36197 = vst [vmem:[#allocation20_spill] sm:$0xff] %v29720_v40  ;;  %v6712_v54 = vmul.f32 %v29628_v59, %v29720_v40 }
 0x227   :  { %v29697_v47 = vpop.f32.mrb[8].mxu0  ;;  %36196 = vst [vmem:[#allocation19_spill] sm:$0xff] %v29711_v21  ;;  %v6711_v50 = vmul.f32 %v29628_v59, %v29711_v21 }
 0x228   :  { %v29702_v27 = vpop.f32.mrb[9].mxu0  ;;  %v925_v55 = vadd.f32 %v29697_v47, %v29487_v13  ;;  %v29748_v56 = vadd.f32 %v29697_v47, %v29489_v34  ;;  %v30124_v9 = vadd.f32 %v29697_v47, %v29087_v31 }
 0x229   :  { %1340 = vrot.lane.b32.xlu1 %v920_v63, %s28953_s2  ;;  %7123 = vrot.lane.b32.xlu0 %v6710_v11, %s28951_s16  ;;  %v29739_v10 = vadd.f32 %v29489_v34, %v29702_v27  ;;  %v924_v32 = vadd.f32 %v29487_v13, %v29702_v27  ;;  %v30110_v40 = vadd.f32 %v29087_v31, %v29702_v27 }
 0x22a   :  { %36199 = vst [vmem:[#allocation22_spill] sm:$0xff] %v29748_v56  ;;  %v6714_v48 = vmul.f32 %v29628_v59, %v29748_v56  ;;  %v30092_v56 = vadd.f32 %v29685_v12, %v29087_v31  ;;  %36248 = vst [vmem:[#allocation71_spill] sm:$0xff] %v30124_v9  ;;  %v1004_v47 = vmul.f32 %v29479_v49, %v30124_v9 }
 0x22b   :  { %v29713_v25 = vpop.f32.mrb[10].mxu0  ;;  %36198 = vst [vmem:[#allocation21_spill] sm:$0xff] %v29739_v10  ;;  %v6713_v46 = vmul.f32 %v29628_v59, %v29739_v10  ;;  %36245 = vst [vmem:[#allocation68_spill] sm:$0xff] %v30110_v40  ;;  %v1003_v27 = vmul.f32 %v29479_v49, %v30110_v40 }
 0x22c   :  { %v29716_v23 = vpop.f32.mrb[11].mxu0  ;;  %v927_v36 = vadd.f32 %v29713_v25, %v29487_v13  ;;  %v29776_v6 = vadd.f32 %v29713_v25, %v29489_v34  ;;  %36242 = vst [vmem:[#allocation65_spill] sm:$0xff] %v30092_v56  ;;  %v1002_v12 = vmul.f32 %v29479_v49, %v30092_v56  ;;  %v30156_v52 = vadd.f32 %v29713_v25, %v29087_v31 }
 0x22d   :  { %7046 = vrot.lane.b32.xlu1 %v6709_v51, %s28951_s16  ;;  %1574 = vrot.lane.b32.xlu0 %v923_v14, %s28953_s2  ;;  %v29767_v60 = vadd.f32 %v29489_v34, %v29716_v23  ;;  %v926_v45 = vadd.f32 %v29487_v13, %v29716_v23  ;;  %v30142_v57 = vadd.f32 %v29087_v31, %v29716_v23 }
 0x22e   :  { %36201 = vst [vmem:[#allocation24_spill] sm:$0xff] %v29776_v6  ;;  %v6716_v20 = vmul.f32 %v29628_v59, %v29776_v6  ;;  %v30078_v6 = vadd.f32 %v29087_v31, %v29688_v19  ;;  %36254 = vst [vmem:[#allocation77_spill] sm:$0xff] %v30156_v52  ;;  %v1006_v25 = vmul.f32 %v29479_v49, %v30156_v52 }
 0x22f   :  { %v29725_v1 = vpop.f32.mrb[12].mxu0  ;;  %36200 = vst [vmem:[#allocation23_spill] sm:$0xff] %v29767_v60  ;;  %v6715_v16 = vmul.f32 %v29628_v59, %v29767_v60  ;;  %36251 = vst [vmem:[#allocation74_spill] sm:$0xff] %v30142_v57  ;;  %v1005_v23 = vmul.f32 %v29479_v49, %v30142_v57 }
 0x230   :  { %v29730_v37 = vpop.f32.mrb[13].mxu0  ;;  %v929_v5 = vadd.f32 %v29725_v1, %v29487_v13  ;;  %v29804_v51 = vadd.f32 %v29725_v1, %v29489_v34  ;;  %36239 = vst [vmem:[#allocation62_spill] sm:$0xff] %v30078_v6  ;;  %v1001_v19 = vmul.f32 %v29479_v49, %v30078_v6 }
 0x231   :  { %1496 = vrot.lane.b32.xlu1 %v922_v7, %s28953_s2  ;;  %7200 = vrot.lane.b32.xlu0 %v6711_v50, %s28951_s16  ;;  %v29795_v62 = vadd.f32 %v29489_v34, %v29730_v37  ;;  %v928_v14 = vadd.f32 %v29487_v13, %v29730_v37  ;;  %v30174_v53 = vadd.f32 %v29087_v31, %v29730_v37 }
 0x232   :  { %36203 = vst [vmem:[#allocation26_spill] sm:$0xff] %v29804_v51 }
 0x233   :  { %v29741_v33 = vpop.f32.mrb[14].mxu0  ;;  %36202 = vst [vmem:[#allocation25_spill] sm:$0xff] %v29795_v62  ;;  %v6717_v50 = vmul.f32 %v29628_v59, %v29795_v62  ;;  %36257 = vst [vmem:[#allocation80_spill] sm:$0xff] %v30174_v53  ;;  %v1007_v37 = vmul.f32 %v29479_v49, %v30174_v53 }
 0x234   :  { %v29744_v0 = vpop.f32.mrb[15].mxu0 }
 0x235   :  { %7277 = vrot.lane.b32.xlu1 %v6712_v54, %s28951_s16  ;;  %1730 = vrot.lane.b32.xlu0 %v925_v55, %s28953_s2  ;;  %v6718_v55 = vmul.f32 %v29628_v59, %v29804_v51  ;;  %v30060_v51 = vadd.f32 %v29669_v28, %v29087_v31 }
 0x237   :  { %v29753_v15 = vpop.f32.mrb[16].mxu0  ;;  %36236 = vst [vmem:[#allocation59_spill] sm:$0xff] %v30060_v51  ;;  %v1000_v28 = vmul.f32 %v29479_v49, %v30060_v51 }
 0x238   :  { %v29758_v58 = vpop.f32.mrb[17].mxu0 }
 0x239   :  { %1652 = vrot.lane.b32.xlu1 %v924_v32, %s28953_s2  ;;  %7354 = vrot.lane.b32.xlu0 %v6713_v46, %s28951_s16  ;;  %v931_v32 = vadd.f32 %v29741_v33, %v29487_v13  ;;  %v29823_v46 = vadd.f32 %v29489_v34, %v29744_v0 }
 0x23b   :  { %v29769_v24 = vpop.f32.mrb[18].mxu0  ;;  %36204 = vst [vmem:[#allocation27_spill] sm:$0xff] %v29823_v46 }
 0x23c   :  { %v29772_v30 = vpop.f32.mrb[19].mxu0  ;;  %v935_v42 = vadd.f32 %v29769_v24, %v29487_v13 }
 0x23d   :  { %7431 = vrot.lane.b32.xlu1 %v6714_v48, %s28951_s16  ;;  %1886 = vrot.lane.b32.xlu0 %v927_v36, %s28953_s2  ;;  %v29875_v18 = vadd.f32 %v29489_v34, %v29772_v30 }
 0x23f   :  { %v29781_v2 = vpop.f32.mrb[20].mxu0  ;;  %36211 = vst [vmem:[#allocation34_spill] sm:$0xff] %v29875_v18 }
 0x240   :  { %v29786_v17 = vpop.f32.mrb[21].mxu0 }
 0x241   :  { %1808 = vrot.lane.b32.xlu1 %v926_v45, %s28953_s2  ;;  %7508 = vrot.lane.b32.xlu0 %v6715_v16, %s28951_s16  ;;  %v29832_v45 = vadd.f32 %v29741_v33, %v29489_v34  ;;  %v930_v16 = vadd.f32 %v29487_v13, %v29744_v0 }
 0x243   :  { %36205 = vst [vmem:[#allocation28_spill] sm:$0xff] %v29832_v45 }
 0x244   :  { %v29797_v63 = vpop.f32.mrb[22].mxu0 }
 0x245   :  { %7585 = vrot.lane.b32.xlu1 %v6716_v20, %s28951_s16  ;;  %v29800_v11 = vpop.f32.mrb[23].mxu0  ;;  %2042 = vrot.lane.b32.xlu0 %v929_v5, %s28953_s2  ;;  %v6719_v5 = vmul.f32 %v29628_v59, %v29823_v46 }
 0x248   :  { %v29809_v7 = vpop.f32.mrb[24].mxu0 }
 0x249   :  { %1964 = vrot.lane.b32.xlu1 %v928_v14, %s28953_s2  ;;  %v29814_v54 = vpop.f32.mrb[25].mxu0  ;;  %7662 = vrot.lane.b32.xlu0 %v6717_v50, %s28951_s16  ;;  %v6720_v50 = vmul.f32 %v29628_v59, %v29832_v45  ;;  %v30046_v45 = vadd.f32 %v29087_v31, %v29671_v41 }
 0x24b   :  { %36233 = vst [vmem:[#allocation56_spill] sm:$0xff] %v30046_v45  ;;  %v999_v41 = vmul.f32 %v29479_v49, %v30046_v45 }
 0x24c   :  { %v29825_v48 = vpop.f32.mrb[26].mxu0 }
 0x24d   :  { %7739 = vrot.lane.b32.xlu1 %v6718_v55, %s28951_s16  ;;  %v29828_v36 = vpop.f32.mrb[27].mxu0  ;;  %2198 = vrot.lane.b32.xlu0 %v931_v32, %s28953_s2  ;;  %v933_v55 = vadd.f32 %v29753_v15, %v29487_v13  ;;  %v29851_v32 = vadd.f32 %v29489_v34, %v29758_v58 }
 0x24f   :  { %36208 = vst [vmem:[#allocation31_spill] sm:$0xff] %v29851_v32  ;;  %v6721_v43 = vmul.f32 %v29628_v59, %v29851_v32 }
 0x250   :  { %v29837_v20 = vpop.f32.mrb[28].mxu0 }
 0x251   :  { %36206 = vst [vmem:[#allocation29_spill] sm:$0xff] %v29837_v20  ;;  %2120 = vrot.lane.b32.xlu1 %v930_v16, %s28953_s2  ;;  %v29842_v14 = vpop.f32.mrb[29].mxu0  ;;  %7816 = vrot.lane.b32.xlu0 %v6719_v5, %s28951_s16  ;;  %v29860_v16 = vadd.f32 %v29753_v15, %v29489_v34  ;;  %v932_v5 = vadd.f32 %v29487_v13, %v29758_v58 }
 0x252   :  { %36207 = vst [vmem:[#allocation30_spill] sm:$0xff] %v29842_v14 }
 0x253   :  { %36210 = vst [vmem:[#allocation33_spill] sm:$0xff] %v29860_v16 }
 0x254   :  { %v29853_v38 = vpop.f32.mrb[30].mxu0 }
 0x255   :  { %36209 = vst [vmem:[#allocation32_spill] sm:$0xff] %v29853_v38  ;;  %7893 = vrot.lane.b32.xlu1 %v6720_v50, %s28951_s16  ;;  %v29856_v44 = vpop.f32.mrb[31].mxu0  ;;  %2354 = vrot.lane.b32.xlu0 %v933_v55, %s28953_s2  ;;  %v6722_v50 = vmul.f32 %v29628_v59, %v29860_v16  ;;  %v29880_v55 = vadd.f32 %v29769_v24, %v29489_v34 }
 0x256   :  { %v29895_v16 = vadd.f32 %v29489_v34, %v29786_v17 }
 0x257   :  { %36212 = vst [vmem:[#allocation35_spill] sm:$0xff] %v29880_v55  ;;  %v6724_v32 = vmul.f32 %v29628_v59, %v29880_v55 }
 0x258   :  { %36213 = vst [vmem:[#allocation36_spill] sm:$0xff] %v29895_v16 }
 0x259   :  { %2276 = vrot.lane.b32.xlu1 %v932_v5, %s28953_s2  ;;  %7970 = vrot.lane.b32.xlu0 %v6721_v43, %s28951_s16  ;;  %v934_v5 = vadd.f32 %v29487_v13, %v29772_v30  ;;  %v6723_v43 = vmul.f32 %v29628_v59, %v29875_v18  ;;  %v29915_v18 = vadd.f32 %v29489_v34, %v29800_v11 }
 0x25b   :  { %36215 = vst [vmem:[#allocation38_spill] sm:$0xff] %v29915_v18 }
 0x25d   :  { %8047 = vrot.lane.b32.xlu1 %v6722_v50, %s28951_s16  ;;  %2510 = vrot.lane.b32.xlu0 %v935_v42, %s28953_s2  ;;  %v937_v50 = vadd.f32 %v29781_v2, %v29487_v13  ;;  %v29900_v42 = vadd.f32 %v29781_v2, %v29489_v34 }
 0x25f   :  { %36214 = vst [vmem:[#allocation37_spill] sm:$0xff] %v29900_v42  ;;  %v6726_v55 = vmul.f32 %v29628_v59, %v29900_v42 }
 0x261   :  { %2432 = vrot.lane.b32.xlu1 %v934_v5, %s28953_s2  ;;  %8124 = vrot.lane.b32.xlu0 %v6723_v43, %s28951_s16  ;;  %v936_v5 = vadd.f32 %v29487_v13, %v29786_v17  ;;  %v6725_v43 = vmul.f32 %v29628_v59, %v29895_v16  ;;  %v29935_v16 = vadd.f32 %v29489_v34, %v29814_v54 }
 0x263   :  { %36217 = vst [vmem:[#allocation40_spill] sm:$0xff] %v29935_v16 }
 0x265   :  { %8201 = vrot.lane.b32.xlu1 %v6724_v32, %s28951_s16  ;;  %2666 = vrot.lane.b32.xlu0 %v937_v50, %s28953_s2  ;;  %v939_v32 = vadd.f32 %v29797_v63, %v29487_v13  ;;  %v29920_v50 = vadd.f32 %v29797_v63, %v29489_v34 }
 0x267   :  { %36216 = vst [vmem:[#allocation39_spill] sm:$0xff] %v29920_v50  ;;  %v6728_v42 = vmul.f32 %v29628_v59, %v29920_v50 }
 0x269   :  { %2588 = vrot.lane.b32.xlu1 %v936_v5, %s28953_s2  ;;  %8278 = vrot.lane.b32.xlu0 %v6725_v43, %s28951_s16  ;;  %v938_v5 = vadd.f32 %v29487_v13, %v29800_v11  ;;  %v6727_v43 = vmul.f32 %v29628_v59, %v29915_v18  ;;  %v29955_v18 = vadd.f32 %v29489_v34, %v29828_v36 }
 0x26b   :  { %36219 = vst [vmem:[#allocation42_spill] sm:$0xff] %v29955_v18 }
 0x26d   :  { %8355 = vrot.lane.b32.xlu1 %v6726_v55, %s28951_s16  ;;  %2822 = vrot.lane.b32.xlu0 %v939_v32, %s28953_s2  ;;  %v941_v55 = vadd.f32 %v29809_v7, %v29487_v13  ;;  %v29940_v32 = vadd.f32 %v29809_v7, %v29489_v34 }
 0x26f   :  { %36218 = vst [vmem:[#allocation41_spill] sm:$0xff] %v29940_v32  ;;  %v6730_v50 = vmul.f32 %v29628_v59, %v29940_v32 }
 0x271   :  { %2744 = vrot.lane.b32.xlu1 %v938_v5, %s28953_s2  ;;  %8432 = vrot.lane.b32.xlu0 %v6727_v43, %s28951_s16  ;;  %v940_v5 = vadd.f32 %v29487_v13, %v29814_v54  ;;  %v6729_v43 = vmul.f32 %v29628_v59, %v29935_v16  ;;  %v944_v16 = vadd.f32 %v29487_v13, %v29842_v14 }
 0x275   :  { %8509 = vrot.lane.b32.xlu1 %v6728_v42, %s28951_s16  ;;  %2978 = vrot.lane.b32.xlu0 %v941_v55, %s28953_s2  ;;  %v943_v42 = vadd.f32 %v29825_v48, %v29487_v13  ;;  %v29960_v55 = vadd.f32 %v29825_v48, %v29489_v34 }
 0x277   :  { %36220 = vst [vmem:[#allocation43_spill] sm:$0xff] %v29960_v55  ;;  %v6732_v32 = vmul.f32 %v29628_v59, %v29960_v55  ;;  %v946_v55 = vadd.f32 %v29487_v13, %v29856_v44 }
 0x279   :  { %2900 = vrot.lane.b32.xlu1 %v940_v5, %s28953_s2  ;;  %8586 = vrot.lane.b32.xlu0 %v6729_v43, %s28951_s16  ;;  %v942_v5 = vadd.f32 %v29487_v13, %v29828_v36  ;;  %v6731_v43 = vmul.f32 %v29628_v59, %v29955_v18  ;;  %v30028_v18 = vadd.f32 %v29651_v35, %v29087_v31 }
 0x27b   :  { %36230 = vst [vmem:[#allocation53_spill] sm:$0xff] %v30028_v18  ;;  %v998_v35 = vmul.f32 %v29479_v49, %v30028_v18 }
 0x27d   :  { %8663 = vrot.lane.b32.xlu1 %v6730_v50, %s28951_s16  ;;  %3134 = vrot.lane.b32.xlu0 %v943_v42, %s28953_s2  ;;  %v945_v50 = vadd.f32 %v29837_v20, %v29487_v13 }
 0x281   :  { %3056 = vrot.lane.b32.xlu1 %v942_v5, %s28953_s2  ;;  %8740 = vrot.lane.b32.xlu0 %v6731_v43, %s28951_s16  ;;  %v29981_v5 = vadd.f32 %v29087_v31, %v29636_v8  ;;  %v947_v43 = vadd.f32 %v29853_v38, %v29487_v13 }
 0x283   :  { %36222 = vst [vmem:[#allocation45_spill] sm:$0xff] %v29981_v5 }
 0x285   :  { %8817 = vrot.lane.b32.xlu1 %v6732_v32, %s28951_s16  ;;  %3290 = vrot.lane.b32.xlu0 %v945_v50, %s28953_s2  ;;  %v29995_v50 = vadd.f32 %v29625_v29, %v29087_v31 }
 0x287   :  { %v29977_v42 = vpop.permute.xlu1 %1106  ;;  %36224 = vst [vmem:[#allocation47_spill] sm:$0xff] %v29995_v50  ;;  %v996_v29 = vmul.f32 %v29479_v49, %v29995_v50 }
 0x288   :  { %36221 = vst [vmem:[#allocation44_spill] sm:$0xff] %v29977_v42 }
 0x289   :  { %3212 = vrot.lane.b32.xlu1 %v944_v16, %s28953_s2  ;;  %3446 = vrot.lane.b32.xlu0 %v947_v43, %s28953_s2  ;;  %v29997_v8 = vpop.permute.xlu0 %6815  ;;  %v995_v16 = vmul.f32 %v29479_v49, %v29981_v5 }
 0x28a   :  { %36225 = vst [vmem:[#allocation48_spill] sm:$0xff] %v29997_v8 }
 0x28b   :  { %v29989_v32 = vpop.permute.xlu1 %1028 }
 0x28c   :  { %36223 = vst [vmem:[#allocation46_spill] sm:$0xff] %v29989_v32  ;;  %26399 = vmatpush3.xpose.msk.msra.mxu1 %vm57_vm0, %v29989_v32 }
 0x28d   :  { %3368 = vrot.lane.b32.xlu1 %v946_v55, %s28953_s2  ;;  %26403 = vmatprep.subr.mxu1 %v36187_v26  ;;  %v30014_v55 = vadd.f32 %v29087_v31, %v29659_v61 }
 0x28f   :  { %26401 = vmatmul.mubr.msk.f32.vlgmr.msra.gmra.mrb[0].mxu1 %vm57_vm0, %v995_v16  ;;  %v30004_v13 = vpop.permute.xlu1 %6738  ;;  %36227 = vst [vmem:[#allocation50_spill] sm:$0xff] %v30014_v55  ;;  %v30016_v43 = vpop.permute.xlu0 %1262  ;;  %v997_v61 = vmul.f32 %v29479_v49, %v30014_v55 }
 0x290   :  { %36226 = vst [vmem:[#allocation49_spill] sm:$0xff] %v30004_v13  ;;  %26404 = vmatpush3.xpose.msk.msra.mxu1 %vm57_vm0, %v29977_v42  ;;  %26405 = vmatprep.mubr.msk.f32.mxu1 %vm28952_vm5, %v36187_v26  ;;  %36228 = vst [vmem:[#allocation51_spill] sm:$0xff] %v30016_v43 }
 0x291   :  { %26408 = vmatprep.subr.mxu1 %v36187_v26 }
 0x293   :  { %26406 = vmatmul.mubr.msk.f32.vlgmr.msra.gmra.mrb[2].mxu1 %vm57_vm0, %v996_v29  ;;  %v30020_v16 = vpop.permute.xlu1 %1184  ;;  %v30032_v46 = vpop.permute.xlu0 %6969 }
 0x294   :  { %36229 = vst [vmem:[#allocation52_spill] sm:$0xff] %v30020_v16  ;;  %26409 = vmatpush3.xpose.msk.msra.mxu1 %vm57_vm0, %v30020_v16  ;;  %26410 = vmatprep.mubr.msk.f32.mxu1 %vm28952_vm5, %v36187_v26  ;;  %36231 = vst [vmem:[#allocation54_spill] sm:$0xff] %v30032_v46 }
 0x295   :  { %26413 = vmatprep.subr.mxu1 %v36187_v26 }
 0x297   :  { %26411 = vmatmul.mubr.msk.f32.vlgmr.msra.gmra.mrb[4].mxu1 %vm57_vm0, %v997_v61  ;;  %v30036_v29 = vpop.permute.xlu1 %6892  ;;  %v30048_v62 = vpop.permute.xlu0 %1418 }
 0x298   :  { %36232 = vst [vmem:[#allocation55_spill] sm:$0xff] %v30036_v29  ;;  %26414 = vmatpush3.xpose.msk.msra.mxu1 %vm57_vm0, %v30016_v43  ;;  %26415 = vmatprep.mubr.msk.f32.mxu1 %vm28952_vm5, %v36187_v26  ;;  %36234 = vst [vmem:[#allocation57_spill] sm:$0xff] %v30048_v62  ;;  %v30206_v29 = vadd.f32 %v29087_v31, %v29744_v0 }
 0x299   :  { %26418 = vmatprep.subr.mxu1 %v36187_v26 }
 0x29a   :  { %36263 = vst [vmem:[#allocation86_spill] sm:$0xff] %v30206_v29  ;;  %v1009_v0 = vmul.f32 %v29479_v49, %v30206_v29 }
 0x29b   :  { %26416 = vmatmul.mubr.msk.f32.vlgmr.msra.gmra.mrb[6].mxu1 %vm57_vm0, %v998_v35  ;;  %v30052_v61 = vpop.permute.xlu1 %1340  ;;  %v30064_v60 = vpop.permute.xlu0 %7123 }
 0x29c   :  { %36235 = vst [vmem:[#allocation58_spill] sm:$0xff] %v30052_v61  ;;  %26419 = vmatpush3.xpose.msk.msra.mxu1 %vm57_vm0, %v30052_v61  ;;  %26420 = vmatprep.mubr.msk.f32.mxu1 %vm28952_vm5, %v36187_v26  ;;  %36237 = vst [vmem:[#allocation60_spill] sm:$0xff] %v30064_v60 }
 0x29d   :  { %26423 = vmatprep.subr.mxu1 %v36187_v26 }
 0x29f   :  { %26421 = vmatmul.mubr.msk.f32.vlgmr.msra.gmra.mrb[8].mxu1 %vm57_vm0, %v999_v41  ;;  %v30068_v35 = vpop.permute.xlu1 %7046  ;;  %v30080_v10 = vpop.permute.xlu0 %1574 }
 0x2a0   :  { %36238 = vst [vmem:[#allocation61_spill] sm:$0xff] %v30068_v35  ;;  %26424 = vmatpush3.xpose.msk.msra.mxu1 %vm57_vm0, %v30048_v62  ;;  %26425 = vmatprep.mubr.msk.f32.mxu1 %vm28952_vm5, %v36187_v26  ;;  %36240 = vst [vmem:[#allocation63_spill] sm:$0xff] %v30080_v10 }
 0x2a1   :  { %26428 = vmatprep.subr.mxu1 %v36187_v26 }
 0x2a3   :  { %26426 = vmatmul.mubr.msk.f32.vlgmr.msra.gmra.mrb[10].mxu1 %vm57_vm0, %v1000_v28  ;;  %v30084_v41 = vpop.permute.xlu1 %1496  ;;  %v30096_v21 = vpop.permute.xlu0 %7200 }
 0x2a4   :  { %36241 = vst [vmem:[#allocation64_spill] sm:$0xff] %v30084_v41  ;;  %26429 = vmatpush3.xpose.msk.msra.mxu1 %vm57_vm0, %v30084_v41  ;;  %26430 = vmatprep.mubr.msk.f32.mxu1 %vm28952_vm5, %v36187_v26  ;;  %36243 = vst [vmem:[#allocation66_spill] sm:$0xff] %v30096_v21  ;;  %v30188_v21 = vadd.f32 %v29725_v1, %v29087_v31 }
 0x2a5   :  { %26433 = vmatprep.subr.mxu1 %v36187_v26 }
 0x2a6   :  { %36260 = vst [vmem:[#allocation83_spill] sm:$0xff] %v30188_v21  ;;  %v1008_v1 = vmul.f32 %v29479_v49, %v30188_v21 }
 0x2a7   :  { %26431 = vmatmul.mubr.msk.f32.vlgmr.msra.gmra.mrb[12].mxu1 %vm57_vm0, %v1001_v19  ;;  %v30100_v28 = vpop.permute.xlu1 %7277  ;;  %v30112_v3 = vpop.permute.xlu0 %1730 }
 0x2a8   :  { %36244 = vst [vmem:[#allocation67_spill] sm:$0xff] %v30100_v28  ;;  %26434 = vmatpush3.xpose.msk.msra.mxu1 %vm57_vm0, %v30080_v10  ;;  %26435 = vmatprep.mubr.msk.f32.mxu1 %vm28952_vm5, %v36187_v26  ;;  %36246 = vst [vmem:[#allocation69_spill] sm:$0xff] %v30112_v3 }
 0x2a9   :  { %26438 = vmatprep.subr.mxu1 %v36187_v26 }
 0x2ab   :  { %26436 = vmatmul.mubr.msk.f32.vlgmr.msra.gmra.mrb[14].mxu1 %vm57_vm0, %v1002_v12  ;;  %v30116_v19 = vpop.permute.xlu1 %1652  ;;  %v30128_v4 = vpop.permute.xlu0 %7354 }
 0x2ac   :  { %36247 = vst [vmem:[#allocation70_spill] sm:$0xff] %v30116_v19  ;;  %26439 = vmatpush3.xpose.msk.msra.mxu1 %vm57_vm0, %v30116_v19  ;;  %26440 = vmatprep.mubr.msk.f32.mxu1 %vm28952_vm5, %v36187_v26  ;;  %36249 = vst [vmem:[#allocation72_spill] sm:$0xff] %v30128_v4 }
 0x2ad   :  { %26443 = vmatprep.subr.mxu1 %v36187_v26 }
 0x2af   :  { %26441 = vmatmul.mubr.msk.f32.vlgmr.msra.gmra.mrb[16].mxu1 %vm57_vm0, %v1003_v27  ;;  %v30132_v12 = vpop.permute.xlu1 %7431  ;;  %v30144_v39 = vpop.permute.xlu0 %1886 }
 0x2b0   :  { %36250 = vst [vmem:[#allocation73_spill] sm:$0xff] %v30132_v12  ;;  %26444 = vmatpush3.xpose.msk.msra.mxu1 %vm57_vm0, %v30112_v3  ;;  %26445 = vmatprep.mubr.msk.f32.mxu1 %vm28952_vm5, %v36187_v26  ;;  %36252 = vst [vmem:[#allocation75_spill] sm:$0xff] %v30144_v39 }
 0x2b1   :  { %26448 = vmatprep.subr.mxu1 %v36187_v26 }
 0x2b3   :  { %26446 = vmatmul.mubr.msk.f32.vlgmr.msra.gmra.mrb[18].mxu1 %vm57_vm0, %v1004_v47  ;;  %v30148_v27 = vpop.permute.xlu1 %1808  ;;  %v30160_v4 = vpop.permute.xlu0 %7508 }
 0x2b4   :  { %36253 = vst [vmem:[#allocation76_spill] sm:$0xff] %v30148_v27  ;;  %26449 = vmatpush3.xpose.msk.msra.mxu1 %vm57_vm0, %v30148_v27  ;;  %26450 = vmatprep.mubr.msk.f32.mxu1 %vm28952_vm5, %v36187_v26  ;;  %36255 = vst [vmem:[#allocation78_spill] sm:$0xff] %v30160_v4 }
 0x2b5   :  { %26453 = vmatprep.subr.mxu1 %v36187_v26 }
 0x2b7   :  { %26451 = vmatmul.mubr.msk.f32.vlgmr.msra.gmra.mrb[20].mxu1 %vm57_vm0, %v1005_v23  ;;  %v30164_v47 = vpop.permute.xlu1 %7585  ;;  %v30176_v4 = vpop.permute.xlu0 %2042 }
 0x2b8   :  { %36256 = vst [vmem:[#allocation79_spill] sm:$0xff] %v30164_v47  ;;  %26454 = vmatpush3.xpose.msk.msra.mxu1 %vm57_vm0, %v30144_v39  ;;  %26455 = vmatprep.mubr.msk.f32.mxu1 %vm28952_vm5, %v36187_v26  ;;  %36258 = vst [vmem:[#allocation81_spill] sm:$0xff] %v30176_v4 }
 0x2b9   :  { %26458 = vmatprep.subr.mxu1 %v36187_v26 }
 0x2bb   :  { %26456 = vmatmul.mubr.msk.f32.vlgmr.msra.gmra.mrb[22].mxu1 %vm57_vm0, %v1006_v25  ;;  %v30180_v23 = vpop.permute.xlu1 %1964  ;;  %v30192_v35 = vpop.permute.xlu0 %7662 }
 0x2bc   :  { %36259 = vst [vmem:[#allocation82_spill] sm:$0xff] %v30180_v23  ;;  %26459 = vmatpush3.xpose.msk.msra.mxu1 %vm57_vm0, %v30180_v23  ;;  %26460 = vmatprep.mubr.msk.f32.mxu1 %vm28952_vm5, %v36187_v26  ;;  %36261 = vst [vmem:[#allocation84_spill] sm:$0xff] %v30192_v35 }
 0x2bd   :  { %26463 = vmatprep.subr.mxu1 %v36187_v26 }
 0x2bf   :  { %26461 = vmatmul.mubr.msk.f32.vlgmr.msra.gmra.mrb[24].mxu1 %vm57_vm0, %v1007_v37  ;;  %v30196_v25 = vpop.permute.xlu1 %7739  ;;  %v30208_v35 = vpop.permute.xlu0 %2198 }
 0x2c0   :  { %36262 = vst [vmem:[#allocation85_spill] sm:$0xff] %v30196_v25  ;;  %26464 = vmatpush3.xpose.msk.msra.mxu1 %vm57_vm0, %v30176_v4  ;;  %26465 = vmatprep.mubr.msk.f32.mxu1 %vm28952_vm5, %v36187_v26  ;;  %36264 = vst [vmem:[#allocation87_spill] sm:$0xff] %v30208_v35  ;;  %v30220_v25 = vadd.f32 %v29741_v33, %v29087_v31 }
 0x2c1   :  { %26468 = vmatprep.subr.mxu1 %v36187_v26 }
 0x2c2   :  { %36266 = vst [vmem:[#allocation89_spill] sm:$0xff] %v30220_v25  ;;  %v1010_v33 = vmul.f32 %v29479_v49, %v30220_v25 }
 0x2c3   :  { %26466 = vmatmul.mubr.msk.f32.vlgmr.msra.gmra.mrb[26].mxu1 %vm57_vm0, %v1008_v1  ;;  %v30212_v37 = vpop.permute.xlu1 %2120  ;;  %v30224_v47 = vpop.permute.xlu0 %7816  ;;  %v30229_v1 = vadd.f32 %v29753_v15, %v29087_v31 }
 0x2c4   :  { %36265 = vst [vmem:[#allocation88_spill] sm:$0xff] %v30212_v37  ;;  %26469 = vmatpush3.xpose.msk.msra.mxu1 %vm57_vm0, %v30212_v37  ;;  %26470 = vmatprep.mubr.msk.f32.mxu1 %vm28952_vm5, %v36187_v26  ;;  %36267 = vst [vmem:[#allocation90_spill] sm:$0xff] %v30224_v47  ;;  %v30242_v47 = vadd.f32 %v29087_v31, %v29758_v58 }
 0x2c5   :  { %26473 = vmatprep.subr.mxu1 %v36187_v26  ;;  %36268 = vst [vmem:[#allocation91_spill] sm:$0xff] %v30229_v1  ;;  %v1012_v15 = vmul.f32 %v29479_v49, %v30229_v1 }
 0x2c6   :  { %36270 = vst [vmem:[#allocation93_spill] sm:$0xff] %v30242_v47  ;;  %v1011_v58 = vmul.f32 %v29479_v49, %v30242_v47 }
 0x2c7   :  { %26471 = vmatmul.mubr.msk.f32.vlgmr.msra.gmra.mrb[28].mxu1 %vm57_vm0, %v1009_v0  ;;  %v30232_v12 = vpop.permute.xlu1 %7893  ;;  %v30244_v28 = vpop.permute.xlu0 %2354 }
 0x2c8   :  { %36269 = vst [vmem:[#allocation92_spill] sm:$0xff] %v30232_v12  ;;  %26474 = vmatpush3.xpose.msk.msra.mxu1 %vm57_vm0, %v30208_v35  ;;  %26475 = vmatprep.mubr.msk.f32.mxu1 %vm28952_vm5, %v36187_v26  ;;  %36271 = vst [vmem:[#allocation94_spill] sm:$0xff] %v30244_v28 }
 0x2c9   :  { %26478 = vmatprep.subr.mxu1 %v36187_v26  ;;  %26484 = vmatpush3.xpose.msk.msra.mxu0 %vm57_vm0, %v30244_v28 }
 0x2ca   :  { %26493 = vmatprep.subr.mxu0 %v36187_v26 }
 0x2cb   :  { %26476 = vmatmul.mubr.msk.f32.vlgmr.msra.gmra.mrb[30].mxu1 %vm57_vm0, %v1010_v33  ;;  %v30252_v0 = vpop.permute.xlu1 %2276  ;;  %v30262_v12 = vpop.permute.xlu0 %7970  ;;  %v30269_v33 = vadd.f32 %v29769_v24, %v29087_v31 }
 0x2cc   :  { %36272 = vst [vmem:[#allocation95_spill] sm:$0xff] %v30252_v0  ;;  %26479 = vmatpush3.xpose.msk.msra.mxu1 %vm57_vm0, %v30252_v0  ;;  %26480 = vmatprep.mubr.msk.f32.mxu1 %vm28952_vm5, %v36187_v26  ;;  %36273 = vst [vmem:[#allocation96_spill] sm:$0xff] %v30262_v12 }
 0x2cd   :  { %26486 = vmatmul.mubr.msk.f32.vlgmr.msra.gmra.mrb[32].mxu0 %vm57_vm0, %v1012_v15  ;;  %26488 = vmatprep.subr.mxu1 %v36187_v26  ;;  %36274 = vst [vmem:[#allocation97_spill] sm:$0xff] %v30269_v33  ;;  %v30278_v15 = vadd.f32 %v29087_v31, %v29772_v30  ;;  %v1014_v24 = vmul.f32 %v29479_v49, %v30269_v33 }
 0x2ce   :  { %26495 = vmatprep.mubr.msk.f32.mxu0 %vm28952_vm5, %v36187_v26 }
 0x2cf   :  { %26481 = vmatmul.mubr.msk.f32.vlgmr.msra.gmra.mrb[32].mxu1 %vm57_vm0, %v1011_v58  ;;  %v30272_v60 = vpop.permute.xlu1 %8047  ;;  %36276 = vst [vmem:[#allocation99_spill] sm:$0xff] %v30278_v15  ;;  %v30280_v12 = vpop.permute.xlu0 %2510  ;;  %v1013_v58 = vmul.f32 %v29479_v49, %v30278_v15 }
 0x2d0   :  { %36275 = vst [vmem:[#allocation98_spill] sm:$0xff] %v30272_v60  ;;  %26490 = vmatprep.mubr.msk.f32.mxu1 %vm28952_vm5, %v36187_v26  ;;  %36277 = vst [vmem:[#allocation100_spill] sm:$0xff] %v30280_v12  ;;  %26494 = vmatpush3.xpose.msk.msra.mxu0 %vm57_vm0, %v30280_v12  ;;  %v30301_v60 = vadd.f32 %v29781_v2, %v29087_v31 }
 0x2d1   :  { %26503 = vmatprep.subr.mxu0 %v36187_v26 }
 0x2d2   :  { %36280 = vst [vmem:[#allocation103_spill] sm:$0xff] %v30301_v60  ;;  %v1016_v2 = vmul.f32 %v29479_v49, %v30301_v60 }
 0x2d3   :  { %v30286_v46 = vpop.permute.xlu1 %2432  ;;  %26496 = vmatmul.mubr.msk.f32.vlgmr.msra.gmra.mrb[34].mxu0 %vm57_vm0, %v1014_v24  ;;  %v30294_v30 = vpop.permute.xlu0 %8124  ;;  %v30310_v24 = vadd.f32 %v29087_v31, %v29786_v17 }
 0x2d4   :  { %36278 = vst [vmem:[#allocation101_spill] sm:$0xff] %v30286_v46  ;;  %26489 = vmatpush3.xpose.msk.msra.mxu1 %vm57_vm0, %v30286_v46  ;;  %36279 = vst [vmem:[#allocation102_spill] sm:$0xff] %v30294_v30  ;;  %26505 = vmatprep.mubr.msk.f32.mxu0 %vm28952_vm5, %v36187_v26 }
 0x2d5   :  { %26498 = vmatprep.subr.mxu1 %v36187_v26  ;;  %36282 = vst [vmem:[#allocation105_spill] sm:$0xff] %v30310_v24 }
 0x2d7   :  { %26491 = vmatmul.mubr.msk.f32.vlgmr.msra.gmra.mrb[34].mxu1 %vm57_vm0, %v1013_v58  ;;  %v30304_v59 = vpop.permute.xlu1 %8201  ;;  %v30312_v30 = vpop.permute.xlu0 %2666  ;;  %v1015_v58 = vmul.f32 %v29479_v49, %v30310_v24 }
 0x2d8   :  { %36281 = vst [vmem:[#allocation104_spill] sm:$0xff] %v30304_v59  ;;  %26500 = vmatprep.mubr.msk.f32.mxu1 %vm28952_vm5, %v36187_v26  ;;  %36283 = vst [vmem:[#allocation106_spill] sm:$0xff] %v30312_v30  ;;  %26504 = vmatpush3.xpose.msk.msra.mxu0 %vm57_vm0, %v30312_v30  ;;  %v30333_v59 = vadd.f32 %v29797_v63, %v29087_v31 }
 0x2d9   :  { %26513 = vmatprep.subr.mxu0 %v36187_v26 }
 0x2da   :  { %36286 = vst [vmem:[#allocation109_spill] sm:$0xff] %v30333_v59  ;;  %v1018_v63 = vmul.f32 %v29479_v49, %v30333_v59 }
 0x2db   :  { %v30318_v34 = vpop.permute.xlu1 %2588  ;;  %26506 = vmatmul.mubr.msk.f32.vlgmr.msra.gmra.mrb[36].mxu0 %vm57_vm0, %v1016_v2  ;;  %v30326_v17 = vpop.permute.xlu0 %8278  ;;  %v30342_v2 = vadd.f32 %v29087_v31, %v29800_v11 }
 0x2dc   :  { %36284 = vst [vmem:[#allocation107_spill] sm:$0xff] %v30318_v34  ;;  %26499 = vmatpush3.xpose.msk.msra.mxu1 %vm57_vm0, %v30318_v34  ;;  %36285 = vst [vmem:[#allocation108_spill] sm:$0xff] %v30326_v17  ;;  %26515 = vmatprep.mubr.msk.f32.mxu0 %vm28952_vm5, %v36187_v26 }
 0x2dd   :  { %26508 = vmatprep.subr.mxu1 %v36187_v26  ;;  %36288 = vst [vmem:[#allocation111_spill] sm:$0xff] %v30342_v2 }
 0x2df   :  { %26501 = vmatmul.mubr.msk.f32.vlgmr.msra.gmra.mrb[36].mxu1 %vm57_vm0, %v1015_v58  ;;  %v30336_v13 = vpop.permute.xlu1 %8355  ;;  %v30344_v17 = vpop.permute.xlu0 %2822  ;;  %v1017_v58 = vmul.f32 %v29479_v49, %v30342_v2 }
 0x2e0   :  { %36287 = vst [vmem:[#allocation110_spill] sm:$0xff] %v30336_v13  ;;  %26510 = vmatprep.mubr.msk.f32.mxu1 %vm28952_vm5, %v36187_v26  ;;  %36289 = vst [vmem:[#allocation112_spill] sm:$0xff] %v30344_v17  ;;  %26514 = vmatpush3.xpose.msk.msra.mxu0 %vm57_vm0, %v30344_v17  ;;  %v30365_v13 = vadd.f32 %v29809_v7, %v29087_v31 }
 0x2e1   :  { %26523 = vmatprep.subr.mxu0 %v36187_v26 }
 0x2e2   :  { %36292 = vst [vmem:[#allocation115_spill] sm:$0xff] %v30365_v13  ;;  %v1020_v7 = vmul.f32 %v29479_v49, %v30365_v13 }
 0x2e3   :  { %v30350_v8 = vpop.permute.xlu1 %2744  ;;  %26516 = vmatmul.mubr.msk.f32.vlgmr.msra.gmra.mrb[38].mxu0 %vm57_vm0, %v1018_v63  ;;  %v30358_v11 = vpop.permute.xlu0 %8432  ;;  %v30374_v63 = vadd.f32 %v29087_v31, %v29814_v54 }
 0x2e4   :  { %36290 = vst [vmem:[#allocation113_spill] sm:$0xff] %v30350_v8  ;;  %26509 = vmatpush3.xpose.msk.msra.mxu1 %vm57_vm0, %v30350_v8  ;;  %36291 = vst [vmem:[#allocation114_spill] sm:$0xff] %v30358_v11  ;;  %26525 = vmatprep.mubr.msk.f32.mxu0 %vm28952_vm5, %v36187_v26 }
 0x2e5   :  { %26518 = vmatprep.subr.mxu1 %v36187_v26  ;;  %36294 = vst [vmem:[#allocation117_spill] sm:$0xff] %v30374_v63 }
 0x2e7   :  { %26511 = vmatmul.mubr.msk.f32.vlgmr.msra.gmra.mrb[38].mxu1 %vm57_vm0, %v1017_v58  ;;  %v30368_v59 = vpop.permute.xlu1 %8509  ;;  %v30376_v11 = vpop.permute.xlu0 %2978  ;;  %v1019_v58 = vmul.f32 %v29479_v49, %v30374_v63 }
 0x2e8   :  { %36293 = vst [vmem:[#allocation116_spill] sm:$0xff] %v30368_v59  ;;  %26520 = vmatprep.mubr.msk.f32.mxu1 %vm28952_vm5, %v36187_v26  ;;  %36295 = vst [vmem:[#allocation118_spill] sm:$0xff] %v30376_v11  ;;  %26524 = vmatpush3.xpose.msk.msra.mxu0 %vm57_vm0, %v30376_v11  ;;  %v30397_v59 = vadd.f32 %v29825_v48, %v29087_v31 }
 0x2e9   :  { %26533 = vmatprep.subr.mxu0 %v36187_v26 }
 0x2ea   :  { %36298 = vst [vmem:[#allocation121_spill] sm:$0xff] %v30397_v59  ;;  %v1022_v48 = vmul.f32 %v29479_v49, %v30397_v59 }
 0x2eb   :  { %v30382_v2 = vpop.permute.xlu1 %2900  ;;  %26526 = vmatmul.mubr.msk.f32.vlgmr.msra.gmra.mrb[40].mxu0 %vm57_vm0, %v1020_v7  ;;  %v30390_v54 = vpop.permute.xlu0 %8586  ;;  %v30406_v7 = vadd.f32 %v29087_v31, %v29828_v36 }
 0x2ec   :  { %36296 = vst [vmem:[#allocation119_spill] sm:$0xff] %v30382_v2  ;;  %26519 = vmatpush3.xpose.msk.msra.mxu1 %vm57_vm0, %v30382_v2  ;;  %36297 = vst [vmem:[#allocation120_spill] sm:$0xff] %v30390_v54  ;;  %26535 = vmatprep.mubr.msk.f32.mxu0 %vm28952_vm5, %v36187_v26 }
 0x2ed   :  { %26528 = vmatprep.subr.mxu1 %v36187_v26  ;;  %36300 = vst [vmem:[#allocation123_spill] sm:$0xff] %v30406_v7 }
 0x2ef   :  { %26521 = vmatmul.mubr.msk.f32.vlgmr.msra.gmra.mrb[40].mxu1 %vm57_vm0, %v1019_v58  ;;  %v30400_v13 = vpop.permute.xlu1 %8663  ;;  %v30408_v54 = vpop.permute.xlu0 %3134  ;;  %v1021_v58 = vmul.f32 %v29479_v49, %v30406_v7 }
 0x2f0   :  { %36299 = vst [vmem:[#allocation122_spill] sm:$0xff] %v30400_v13  ;;  %26530 = vmatprep.mubr.msk.f32.mxu1 %vm28952_vm5, %v36187_v26  ;;  %36301 = vst [vmem:[#allocation124_spill] sm:$0xff] %v30408_v54  ;;  %26534 = vmatpush3.xpose.msk.msra.mxu0 %vm57_vm0, %v30408_v54  ;;  %v30429_v13 = vadd.f32 %v29837_v20, %v29087_v31 }
 0x2f1   :  { %26543 = vmatprep.subr.mxu0 %v36187_v26 }
 0x2f2   :  { %36304 = vst [vmem:[#allocation127_spill] sm:$0xff] %v30429_v13  ;;  %v1024_v20 = vmul.f32 %v29479_v49, %v30429_v13 }
 0x2f3   :  { %v30414_v63 = vpop.permute.xlu1 %3056  ;;  %26536 = vmatmul.mubr.msk.f32.vlgmr.msra.gmra.mrb[42].mxu0 %vm57_vm0, %v1022_v48  ;;  %v30422_v36 = vpop.permute.xlu0 %8740  ;;  %v30438_v48 = vadd.f32 %v29087_v31, %v29842_v14 }
 0x2f4   :  { %36302 = vst [vmem:[#allocation125_spill] sm:$0xff] %v30414_v63  ;;  %26529 = vmatpush3.xpose.msk.msra.mxu1 %vm57_vm0, %v30414_v63  ;;  %36303 = vst [vmem:[#allocation126_spill] sm:$0xff] %v30422_v36  ;;  %26545 = vmatprep.mubr.msk.f32.mxu0 %vm28952_vm5, %v36187_v26 }
 0x2f5   :  { %26538 = vmatprep.subr.mxu1 %v36187_v26  ;;  %36306 = vst [vmem:[#allocation129_spill] sm:$0xff] %v30438_v48  ;;  %v1023_v14 = vmul.f32 %v29479_v49, %v30438_v48 }
 0x2f7   :  { %26531 = vmatmul.mubr.msk.f32.vlgmr.msra.gmra.mrb[42].mxu1 %vm57_vm0, %v1021_v58  ;;  %v30432_v59 = vpop.permute.xlu1 %8817  ;;  %v30440_v36 = vpop.permute.xlu0 %3290  ;;  %v30448_v58 = vadd.f32 %v29853_v38, %v29087_v31 }
 0x2f8   :  { %36305 = vst [vmem:[#allocation128_spill] sm:$0xff] %v30432_v59  ;;  %26540 = vmatprep.mubr.msk.f32.mxu1 %vm28952_vm5, %v36187_v26  ;;  %36307 = vst [vmem:[#allocation130_spill] sm:$0xff] %v30440_v36  ;;  %26544 = vmatpush3.xpose.msk.msra.mxu0 %vm57_vm0, %v30440_v36  ;;  %v30459_v36 = vadd.f32 %v29087_v31, %v29856_v44 }
 0x2f9   :  { %36308 = vst [vmem:[#allocation131_spill] sm:$0xff] %v30448_v58  ;;  %26553 = vmatprep.subr.mxu0 %v36187_v26  ;;  %v1026_v38 = vmul.f32 %v29479_v49, %v30448_v58 }
 0x2fa   :  { %36310 = vst [vmem:[#allocation133_spill] sm:$0xff] %v30459_v36 }
 0x2fb   :  { %v30451_v59 = vpop.permute.xlu1 %3212  ;;  %26546 = vmatmul.mubr.msk.f32.vlgmr.msra.gmra.mrb[44].mxu0 %vm57_vm0, %v1024_v20  ;;  %v30462_v13 = vpop.permute.xlu0 %3446  ;;  %v1025_v20 = vmul.f32 %v29479_v49, %v30459_v36  ;;  %v3952_v49 = vmul.f32 %v29482_v22, %v30028_v18 }
 0x2fc   :  { %36309 = vst [vmem:[#allocation132_spill] sm:$0xff] %v30451_v59  ;;  %26539 = vmatpush3.xpose.msk.msra.mxu1 %vm57_vm0, %v30451_v59  ;;  %36311 = vst [vmem:[#allocation134_spill] sm:$0xff] %v30462_v13  ;;  %26554 = vmatpush3.xpose.msk.msra.mxu0 %vm57_vm0, %v30462_v13 }
 0x2fd   :  { %26548 = vmatprep.subr.mxu1 %v36187_v26  ;;  %26555 = vmatprep.mubr.msk.f32.mxu0 %vm28952_vm5, %v36187_v26 }
 0x2fe   :  { %26563 = vmatprep.subr.mxu0 %v36187_v26 }
 0x2ff   :  { %26541 = vmatmul.mubr.msk.f32.vlgmr.msra.gmra.mrb[44].mxu1 %vm57_vm0, %v1023_v14  ;;  %v30473_v31 = vpop.permute.xlu1 %3368  ;;  %26556 = vmatmul.mubr.msk.f32.vlgmr.msra.gmra.mrb[46].mxu0 %vm57_vm0, %v1026_v38  ;;  %v3950_v14 = vmul.f32 %v29482_v22, %v29995_v50  ;;  %v3949_v38 = vmul.f32 %v29482_v22, %v29981_v5 }
 0x300   :  { %36312 = vst [vmem:[#allocation135_spill] sm:$0xff] %v30473_v31  ;;  %26549 = vmatpush3.xpose.msk.msra.mxu1 %vm57_vm0, %v30473_v31  ;;  %26550 = vmatprep.mubr.msk.f32.mxu1 %vm28952_vm5, %v36187_v26 }
 0x301   :  { %26558 = vmatprep.subr.mxu1 %v36187_v26  ;;  %26564 = vmatpush3.xpose.msk.msra.mxu0 %vm57_vm0, %v29977_v42 }
 0x302   :  { %26565 = vmatprep.mubr.msk.f32.mxu0 %vm28952_vm5, %v36187_v26  ;;  %26573 = vmatprep.subr.mxu0 %v36187_v26 }
 0x303   :  { %26551 = vmatmul.mubr.msk.f32.vlgmr.msra.gmra.mrb[46].mxu1 %vm57_vm0, %v1025_v20  ;;  %v3951_v20 = vmul.f32 %v29482_v22, %v30014_v55 }
 0x304   :  { %26559 = vmatpush3.xpose.msk.msra.mxu1 %vm57_vm0, %v29989_v32  ;;  %26560 = vmatprep.mubr.msk.f32.mxu1 %vm28952_vm5, %v36187_v26 }
 0x305   :  { %26566 = vmatmul.mubr.msk.f32.vlgmr.msra.gmra.mrb[48].mxu0 %vm57_vm0, %v3950_v14  ;;  %26568 = vmatprep.subr.mxu1 %v36187_v26  ;;  %v3954_v14 = vmul.f32 %v29482_v22, %v30060_v51 }
 0x306   :  { %26574 = vmatpush3.xpose.msk.msra.mxu0 %vm57_vm0, %v30016_v43  ;;  %26575 = vmatprep.mubr.msk.f32.mxu0 %vm28952_vm5, %v36187_v26 }
 0x307   :  { %26561 = vmatmul.mubr.msk.f32.vlgmr.msra.gmra.mrb[48].mxu1 %vm57_vm0, %v3949_v38  ;;  %26583 = vmatprep.subr.mxu0 %v36187_v26  ;;  %v3953_v38 = vmul.f32 %v29482_v22, %v30046_v45 }
 0x308   :  { %26569 = vmatpush3.xpose.msk.msra.mxu1 %vm57_vm0, %v30020_v16  ;;  %26570 = vmatprep.mubr.msk.f32.mxu1 %vm28952_vm5, %v36187_v26 }
 0x309   :  { %26576 = vmatmul.mubr.msk.f32.vlgmr.msra.gmra.mrb[50].mxu0 %vm57_vm0, %v3952_v49  ;;  %26578 = vmatprep.subr.mxu1 %v36187_v26  ;;  %v3956_v49 = vmul.f32 %v29482_v22, %v30092_v56 }
 0x30a   :  { %26584 = vmatpush3.xpose.msk.msra.mxu0 %vm57_vm0, %v30048_v62  ;;  %26585 = vmatprep.mubr.msk.f32.mxu0 %vm28952_vm5, %v36187_v26 }
 0x30b   :  { %26571 = vmatmul.mubr.msk.f32.vlgmr.msra.gmra.mrb[50].mxu1 %vm57_vm0, %v3951_v20  ;;  %26593 = vmatprep.subr.mxu0 %v36187_v26  ;;  %v3955_v20 = vmul.f32 %v29482_v22, %v30078_v6 }
 0x30c   :  { %26579 = vmatpush3.xpose.msk.msra.mxu1 %vm57_vm0, %v30052_v61  ;;  %26580 = vmatprep.mubr.msk.f32.mxu1 %vm28952_vm5, %v36187_v26 }
 0x30d   :  { %26586 = vmatmul.mubr.msk.f32.vlgmr.msra.gmra.mrb[52].mxu0 %vm57_vm0, %v3954_v14  ;;  %26588 = vmatprep.subr.mxu1 %v36187_v26  ;;  %v3958_v14 = vmul.f32 %v29482_v22, %v30124_v9 }
 0x30e   :  { %26594 = vmatpush3.xpose.msk.msra.mxu0 %vm57_vm0, %v30080_v10  ;;  %26595 = vmatprep.mubr.msk.f32.mxu0 %vm28952_vm5, %v36187_v26 }
 0x30f   :  { %26581 = vmatmul.mubr.msk.f32.vlgmr.msra.gmra.mrb[52].mxu1 %vm57_vm0, %v3953_v38  ;;  %26603 = vmatprep.subr.mxu0 %v36187_v26  ;;  %v3957_v38 = vmul.f32 %v29482_v22, %v30110_v40 }
 0x310   :  { %26589 = vmatpush3.xpose.msk.msra.mxu1 %vm57_vm0, %v30084_v41  ;;  %26590 = vmatprep.mubr.msk.f32.mxu1 %vm28952_vm5, %v36187_v26 }
 0x311   :  { %26596 = vmatmul.mubr.msk.f32.vlgmr.msra.gmra.mrb[54].mxu0 %vm57_vm0, %v3956_v49  ;;  %26598 = vmatprep.subr.mxu1 %v36187_v26  ;;  %v3960_v49 = vmul.f32 %v29482_v22, %v30156_v52 }
 0x312   :  { %26604 = vmatpush3.xpose.msk.msra.mxu0 %vm57_vm0, %v30112_v3  ;;  %26605 = vmatprep.mubr.msk.f32.mxu0 %vm28952_vm5, %v36187_v26 }
 0x313   :  { %26591 = vmatmul.mubr.msk.f32.vlgmr.msra.gmra.mrb[54].mxu1 %vm57_vm0, %v3955_v20  ;;  %26613 = vmatprep.subr.mxu0 %v36187_v26  ;;  %v3959_v20 = vmul.f32 %v29482_v22, %v30142_v57 }
 0x314   :  { %26599 = vmatpush3.xpose.msk.msra.mxu1 %vm57_vm0, %v30116_v19  ;;  %26600 = vmatprep.mubr.msk.f32.mxu1 %vm28952_vm5, %v36187_v26 }
 0x315   :  { %26606 = vmatmul.mubr.msk.f32.vlgmr.msra.gmra.mrb[56].mxu0 %vm57_vm0, %v3958_v14  ;;  %26608 = vmatprep.subr.mxu1 %v36187_v26  ;;  %v3962_v14 = vmul.f32 %v29482_v22, %v30188_v21 }
 0x316   :  { %26614 = vmatpush3.xpose.msk.msra.mxu0 %vm57_vm0, %v30144_v39  ;;  %26615 = vmatprep.mubr.msk.f32.mxu0 %vm28952_vm5, %v36187_v26 }
 0x317   :  { %26601 = vmatmul.mubr.msk.f32.vlgmr.msra.gmra.mrb[56].mxu1 %vm57_vm0, %v3957_v38  ;;  %26623 = vmatprep.subr.mxu0 %v36187_v26  ;;  %v3961_v38 = vmul.f32 %v29482_v22, %v30174_v53 }
 0x318   :  { %26609 = vmatpush3.xpose.msk.msra.mxu1 %vm57_vm0, %v30148_v27  ;;  %26610 = vmatprep.mubr.msk.f32.mxu1 %vm28952_vm5, %v36187_v26 }
 0x319   :  { %26616 = vmatmul.mubr.msk.f32.vlgmr.msra.gmra.mrb[58].mxu0 %vm57_vm0, %v3960_v49  ;;  %26618 = vmatprep.subr.mxu1 %v36187_v26  ;;  %v3964_v49 = vmul.f32 %v29482_v22, %v30220_v25 }
 0x31a   :  { %26624 = vmatpush3.xpose.msk.msra.mxu0 %vm57_vm0, %v30176_v4  ;;  %26625 = vmatprep.mubr.msk.f32.mxu0 %vm28952_vm5, %v36187_v26 }
 0x31b   :  { %26611 = vmatmul.mubr.msk.f32.vlgmr.msra.gmra.mrb[58].mxu1 %vm57_vm0, %v3959_v20  ;;  %26633 = vmatprep.subr.mxu0 %v36187_v26  ;;  %v3963_v20 = vmul.f32 %v29482_v22, %v30206_v29 }
 0x31c   :  { %26619 = vmatpush3.xpose.msk.msra.mxu1 %vm57_vm0, %v30180_v23  ;;  %26620 = vmatprep.mubr.msk.f32.mxu1 %vm28952_vm5, %v36187_v26 }
 0x31d   :  { %26626 = vmatmul.mubr.msk.f32.vlgmr.msra.gmra.mrb[60].mxu0 %vm57_vm0, %v3962_v14  ;;  %26628 = vmatprep.subr.mxu1 %v36187_v26  ;;  %v3966_v14 = vmul.f32 %v29482_v22, %v30229_v1 }
 0x31e   :  { %26634 = vmatpush3.xpose.msk.msra.mxu0 %vm57_vm0, %v30208_v35  ;;  %26635 = vmatprep.mubr.msk.f32.mxu0 %vm28952_vm5, %v36187_v26 }
 0x31f   :  { %26621 = vmatmul.mubr.msk.f32.vlgmr.msra.gmra.mrb[60].mxu1 %vm57_vm0, %v3961_v38  ;;  %26643 = vmatprep.subr.mxu0 %v36187_v26  ;;  %v3965_v38 = vmul.f32 %v29482_v22, %v30242_v47 }
 0x320   :  { %26629 = vmatpush3.xpose.msk.msra.mxu1 %vm57_vm0, %v30212_v37  ;;  %26630 = vmatprep.mubr.msk.f32.mxu1 %vm28952_vm5, %v36187_v26 }
 0x321   :  { %26636 = vmatmul.mubr.msk.f32.vlgmr.msra.gmra.mrb[62].mxu0 %vm57_vm0, %v3964_v49  ;;  %26638 = vmatprep.subr.mxu1 %v36187_v26  ;;  %v3968_v49 = vmul.f32 %v29482_v22, %v30269_v33 }
 0x322   :  { %26644 = vmatpush3.xpose.msk.msra.mxu0 %vm57_vm0, %v30244_v28  ;;  %26645 = vmatprep.mubr.msk.f32.mxu0 %vm28952_vm5, %v36187_v26 }
 0x323   :  { %26631 = vmatmul.mubr.msk.f32.vlgmr.msra.gmra.mrb[62].mxu1 %vm57_vm0, %v3963_v20  ;;  %26653 = vmatprep.subr.mxu0 %v36187_v26  ;;  %v3967_v20 = vmul.f32 %v29482_v22, %v30278_v15 }
 0x324   :  { %26639 = vmatpush3.xpose.msk.msra.mxu1 %vm57_vm0, %v30252_v0  ;;  %26640 = vmatprep.mubr.msk.f32.mxu1 %vm28952_vm5, %v36187_v26 }
 0x325   :  { %26646 = vmatmul.mubr.msk.f32.vlgmr.msra.gmra.mrb[64].mxu0 %vm57_vm0, %v3966_v14  ;;  %26648 = vmatprep.subr.mxu1 %v36187_v26  ;;  %v3970_v14 = vmul.f32 %v29482_v22, %v30301_v60 }
 0x326   :  { %26654 = vmatpush3.xpose.msk.msra.mxu0 %vm57_vm0, %v30280_v12  ;;  %26655 = vmatprep.mubr.msk.f32.mxu0 %vm28952_vm5, %v36187_v26 }
 0x327   :  { %26641 = vmatmul.mubr.msk.f32.vlgmr.msra.gmra.mrb[64].mxu1 %vm57_vm0, %v3965_v38  ;;  %26663 = vmatprep.subr.mxu0 %v36187_v26  ;;  %v3969_v38 = vmul.f32 %v29482_v22, %v30310_v24 }
 0x328   :  { %26649 = vmatpush3.xpose.msk.msra.mxu1 %vm57_vm0, %v30286_v46  ;;  %26650 = vmatprep.mubr.msk.f32.mxu1 %vm28952_vm5, %v36187_v26 }
 0x329   :  { %26656 = vmatmul.mubr.msk.f32.vlgmr.msra.gmra.mrb[66].mxu0 %vm57_vm0, %v3968_v49  ;;  %26658 = vmatprep.subr.mxu1 %v36187_v26  ;;  %v36313_v49 = vld [vmem:[#allocation109_spill] sm:$0xff] }
 0x32a   :  { %26664 = vmatpush3.xpose.msk.msra.mxu0 %vm57_vm0, %v30312_v30  ;;  %26665 = vmatprep.mubr.msk.f32.mxu0 %vm28952_vm5, %v36187_v26 }
 0x32b   :  { %26651 = vmatmul.mubr.msk.f32.vlgmr.msra.gmra.mrb[66].mxu1 %vm57_vm0, %v3967_v20  ;;  %26673 = vmatprep.subr.mxu0 %v36187_v26  ;;  %v3972_v20 = vmul.f32 %v29482_v22, %v36313_v49 }
 0x32c   :  { %26659 = vmatpush3.xpose.msk.msra.mxu1 %vm57_vm0, %v30318_v34  ;;  %26660 = vmatprep.mubr.msk.f32.mxu1 %vm28952_vm5, %v36187_v26 }
 0x32d   :  { %26666 = vmatmul.mubr.msk.f32.vlgmr.msra.gmra.mrb[68].mxu0 %vm57_vm0, %v3970_v14  ;;  %26668 = vmatprep.subr.mxu1 %v36187_v26  ;;  %v36314_v14 = vld [vmem:[#allocation111_spill] sm:$0xff] }
 0x32e   :  { %26674 = vmatpush3.xpose.msk.msra.mxu0 %vm57_vm0, %v30344_v17  ;;  %26675 = vmatprep.mubr.msk.f32.mxu0 %vm28952_vm5, %v36187_v26  ;;  %v3971_v60 = vmul.f32 %v29482_v22, %v36314_v14 }
 0x32f   :  { %26661 = vmatmul.mubr.msk.f32.vlgmr.msra.gmra.mrb[68].mxu1 %vm57_vm0, %v3969_v38  ;;  %26683 = vmatprep.subr.mxu0 %v36187_v26  ;;  %v36315_v38 = vld [vmem:[#allocation115_spill] sm:$0xff] }
 0x330   :  { %26669 = vmatpush3.xpose.msk.msra.mxu1 %vm57_vm0, %v30350_v8  ;;  %26670 = vmatprep.mubr.msk.f32.mxu1 %vm28952_vm5, %v36187_v26  ;;  %v3974_v49 = vmul.f32 %v29482_v22, %v36315_v38 }
 0x331   :  { %26676 = vmatmul.mubr.msk.f32.vlgmr.msra.gmra.mrb[70].mxu0 %vm57_vm0, %v3972_v20  ;;  %26678 = vmatprep.subr.mxu1 %v36187_v26  ;;  %v36316_v20 = vld [vmem:[#allocation117_spill] sm:$0xff] }
 0x332   :  { %26684 = vmatpush3.xpose.msk.msra.mxu0 %vm57_vm0, %v30376_v11  ;;  %26685 = vmatprep.mubr.msk.f32.mxu0 %vm28952_vm5, %v36187_v26  ;;  %v3973_v17 = vmul.f32 %v29482_v22, %v36316_v20 }
 0x333   :  { %26671 = vmatmul.mubr.msk.f32.vlgmr.msra.gmra.mrb[70].mxu1 %vm57_vm0, %v3971_v60  ;;  %26693 = vmatprep.subr.mxu0 %v36187_v26  ;;  %v36317_v60 = vld [vmem:[#allocation121_spill] sm:$0xff] }
 0x334   :  { %26679 = vmatpush3.xpose.msk.msra.mxu1 %vm57_vm0, %v30382_v2  ;;  %26680 = vmatprep.mubr.msk.f32.mxu1 %vm28952_vm5, %v36187_v26  ;;  %v3976_v38 = vmul.f32 %v29482_v22, %v36317_v60 }
 0x335   :  { %26686 = vmatmul.mubr.msk.f32.vlgmr.msra.gmra.mrb[72].mxu0 %vm57_vm0, %v3974_v49  ;;  %26688 = vmatprep.subr.mxu1 %v36187_v26  ;;  %v3975_v49 = vmul.f32 %v29482_v22, %v30406_v7 }
 0x336   :  { %26694 = vmatpush3.xpose.msk.msra.mxu0 %vm57_vm0, %v30408_v54  ;;  %26695 = vmatprep.mubr.msk.f32.mxu0 %vm28952_vm5, %v36187_v26  ;;  %v36318_v54 = vld [vmem:[#allocation130_spill] sm:$0xff] }
 0x337   :  { %26681 = vmatmul.mubr.msk.f32.vlgmr.msra.gmra.mrb[72].mxu1 %vm57_vm0, %v3973_v17  ;;  %26703 = vmatprep.subr.mxu0 %v36187_v26  ;;  %v36319_v17 = vld [vmem:[#allocation127_spill] sm:$0xff] }
 0x338   :  { %26689 = vmatpush3.xpose.msk.msra.mxu1 %vm57_vm0, %v30414_v63  ;;  %26690 = vmatprep.mubr.msk.f32.mxu1 %vm28952_vm5, %v36187_v26  ;;  %v3978_v60 = vmul.f32 %v29482_v22, %v36319_v17 }
 0x339   :  { %26696 = vmatmul.mubr.msk.f32.vlgmr.msra.gmra.mrb[74].mxu0 %vm57_vm0, %v3976_v38  ;;  %26698 = vmatprep.subr.mxu1 %v36187_v26  ;;  %v3977_v38 = vmul.f32 %v29482_v22, %v30438_v48 }
 0x33a   :  { %26704 = vmatpush3.xpose.msk.msra.mxu0 %vm57_vm0, %v36318_v54  ;;  %26705 = vmatprep.mubr.msk.f32.mxu0 %vm28952_vm5, %v36187_v26 }
 0x33b   :  { %26691 = vmatmul.mubr.msk.f32.vlgmr.msra.gmra.mrb[74].mxu1 %vm57_vm0, %v3975_v49  ;;  %26713 = vmatprep.subr.mxu0 %v36187_v26  ;;  %v3980_v49 = vmul.f32 %v29482_v22, %v30448_v58 }
 0x33c   :  { %26699 = vmatpush3.xpose.msk.msra.mxu1 %vm57_vm0, %v30451_v59  ;;  %26700 = vmatprep.mubr.msk.f32.mxu1 %vm28952_vm5, %v36187_v26 }
 0x33d   :  { %26706 = vmatmul.mubr.msk.f32.vlgmr.msra.gmra.mrb[76].mxu0 %vm57_vm0, %v3978_v60  ;;  %26708 = vmatprep.subr.mxu1 %v36187_v26  ;;  %v3979_v60 = vmul.f32 %v29482_v22, %v30459_v36 }
 0x33e   :  { %26714 = vmatpush3.xpose.msk.msra.mxu0 %vm57_vm0, %v30462_v13  ;;  %26715 = vmatprep.mubr.msk.f32.mxu0 %vm28952_vm5, %v36187_v26  ;;  %v36320_v13 = vld [vmem:[#allocation48_spill] sm:$0xff] }
 0x33f   :  { %26701 = vmatmul.mubr.msk.f32.vlgmr.msra.gmra.mrb[76].mxu1 %vm57_vm0, %v3977_v38  ;;  %26723 = vmatprep.subr.mxu0 %v36187_v26  ;;  %v36321_v38 = vld [vmem:[#allocation49_spill] sm:$0xff] }
 0x340   :  { %26709 = vmatpush3.xpose.msk.msra.mxu1 %vm57_vm0, %v30473_v31  ;;  %26710 = vmatprep.mubr.msk.f32.mxu1 %vm28952_vm5, %v36187_v26 }
 0x341   :  { %26716 = vmatmul.mubr.msk.f32.vlgmr.msra.gmra.mrb[78].mxu0 %vm57_vm0, %v3980_v49  ;;  %26718 = vmatprep.subr.mxu1 %v36187_v26 }
 0x342   :  { %26724 = vmatpush3.msra.mxu0 %v36320_v13  ;;  %26725 = vmatprep.mubr.msk.f32.mxu0 %vm28952_vm5, %v36187_v26 }
 0x343   :  { %26711 = vmatmul.mubr.msk.f32.vlgmr.msra.gmra.mrb[78].mxu1 %vm57_vm0, %v3979_v60  ;;  %26733 = vmatprep.subr.mxu0 %v36187_v26 }
 0x344   :  { %26719 = vmatpush3.msra.mxu1 %v36321_v38  ;;  %26720 = vmatprep.mubr.msk.f32.mxu1 %vm28952_vm5, %v36187_v26 }
 0x345   :  { %26728 = vmatprep.subr.mxu1 %v36187_v26 }
 0x362   :  { %v1101_v22 = vpop.f32.mrb[0].mxu1 }
 0x363   :  { %v30748_v49 = vmul.f32 0.35355338, %v1101_v22  ;;  %v26402_v58 = vpop.f32.mrb[1].mxu1 }
 0x365   :  { %v3556_v13 = vsel %vm3555_vm6, %v30748_v49, -inf }
 0x366   :  { %v1179_v36 = vpop.f32.mrb[2].mxu1  ;;  %3557 = vmax.xlane.f32.xlu1 %v3556_v13 }
 0x367   :  { %v30752_v60 = vmul.f32 0.35355338, %v1179_v36  ;;  %v26407_v31 = vpop.f32.mrb[3].mxu1 }
 0x369   :  { %v3559_v38 = vsel %vm3555_vm6, %v30752_v60, -inf }
 0x36a   :  { %3560 = vmax.xlane.f32.xlu0 %v3559_v38  ;;  %v1257_v17 = vpop.f32.mrb[4].mxu1 }
 0x36b   :  { %v30756_v54 = vmul.f32 0.35355338, %v1257_v17  ;;  %v26412_v48 = vpop.f32.mrb[5].mxu1 }
 0x36d   :  { %v3562_v22 = vsel %vm3555_vm6, %v30756_v54, -inf }
 0x36e   :  { %3563 = vmax.xlane.f32.xlu1 %v3562_v22  ;;  %v1335_v58 = vpop.f32.mrb[6].mxu1 }
 0x36f   :  { %v30760_v59 = vmul.f32 0.35355338, %v1335_v58  ;;  %v26417_v7 = vpop.f32.mrb[7].mxu1 }
 0x371   :  { %v3565_v36 = vsel %vm3555_vm6, %v30760_v59, -inf }
 0x372   :  { %3566 = vmax.xlane.f32.xlu0 %v3565_v36  ;;  %v1413_v31 = vpop.f32.mrb[8].mxu1 }
 0x373   :  { %v30764_v13 = vmul.f32 0.35355338, %v1413_v31  ;;  %v26422_v38 = vpop.f32.mrb[9].mxu1 }
 0x375   :  { %v3568_v17 = vsel %vm3555_vm6, %v30764_v13, -inf }
 0x376   :  { %3569 = vmax.xlane.f32.xlu1 %v3568_v17  ;;  %v1491_v48 = vpop.f32.mrb[10].mxu1 }
 0x377   :  { %v30768_v63 = vmul.f32 0.35355338, %v1491_v48  ;;  %v26427_v22 = vpop.f32.mrb[11].mxu1 }
 0x379   :  { %v3571_v58 = vsel %vm3555_vm6, %v30768_v63, -inf }
 0x37a   :  { %3572 = vmax.xlane.f32.xlu0 %v3571_v58  ;;  %v1569_v7 = vpop.f32.mrb[12].mxu1 }
 0x37b   :  { %v30772_v11 = vmul.f32 0.35355338, %v1569_v7  ;;  %v26432_v36 = vpop.f32.mrb[13].mxu1 }
 0x37d   :  { %v3574_v31 = vsel %vm3555_vm6, %v30772_v11, -inf }
 0x37e   :  { %3575 = vmax.xlane.f32.xlu1 %v3574_v31  ;;  %v1647_v38 = vpop.f32.mrb[14].mxu1 }
 0x37f   :  { %v30776_v20 = vmul.f32 0.35355338, %v1647_v38  ;;  %v26437_v17 = vpop.f32.mrb[15].mxu1 }
 0x381   :  { %v3577_v48 = vsel %vm3555_vm6, %v30776_v20, -inf }
 0x382   :  { %3578 = vmax.xlane.f32.xlu0 %v3577_v48  ;;  %v1725_v22 = vpop.f32.mrb[16].mxu1 }
 0x383   :  { %v26442_v2 = vpop.f32.mrb[17].mxu1 }
 0x386   :  { %v1803_v14 = vpop.f32.mrb[18].mxu1 }
 0x387   :  { %v30780_v58 = vmul.f32 0.35355338, %v1803_v14  ;;  %v26447_v7 = vpop.f32.mrb[19].mxu1 }
 0x389   :  { %v3583_v36 = vsel %vm3555_vm6, %v30780_v58, -inf }
 0x38a   :  { %3584 = vmax.xlane.f32.xlu0 %v3583_v36  ;;  %v1881_v8 = vpop.f32.mrb[20].mxu1 }
 0x38b   :  { %v26452_v31 = vpop.f32.mrb[21].mxu1  ;;  %v30810_v0 = vmul.f32 0.35355338, %v1881_v8 }
 0x38e   :  { %v1959_v30 = vpop.f32.mrb[22].mxu1 }
 0x38f   :  { %v30784_v38 = vmul.f32 0.35355338, %v1959_v30  ;;  %v26457_v17 = vpop.f32.mrb[23].mxu1 }
 0x390   :  { %v30794_v17 = vmul.f32 0.35355338, %v1725_v22 }
 0x391   :  { %v3589_v24 = vsel %vm3555_vm6, %v30784_v38, -inf }
 0x392   :  { %3590 = vmax.xlane.f32.xlu0 %v3589_v24  ;;  %v2037_v48 = vpop.f32.mrb[24].mxu1 }
 0x393   :  { %v26462_v2 = vpop.f32.mrb[25].mxu1  ;;  %v30826_v37 = vmul.f32 0.35355338, %v2037_v48 }
 0x394   :  { %v3580_v2 = vsel %vm3555_vm6, %v30794_v17, -inf }
 0x396   :  { %v2115_v34 = vpop.f32.mrb[26].mxu1 }
 0x397   :  { %v26467_v14 = vpop.f32.mrb[27].mxu1 }
 0x39a   :  { %v2193_v33 = vpop.f32.mrb[28].mxu1 }
 0x39b   :  { %v26472_v7 = vpop.f32.mrb[29].mxu1 }
 0x39e   :  { %v30788_v12 = vpop.f32.mrb[30].mxu1 }
 0x39f   :  { %v26477_v15 = vpop.f32.mrb[31].mxu1 }
 0x3a0   :  { %v2427_v36 = vpop.f32.mrb[32].mxu0 }
 0x3a1   :  { %v30790_v46 = vmul.f32 0.35355338, %v2427_v36  ;;  %v26487_v31 = vpop.f32.mrb[33].mxu0 }
 0x3a2   :  { %v30792_v30 = vpop.f32.mrb[32].mxu1 }
 0x3a3   :  { %36322 = vst [vmem:[#allocation48_spill] sm:$0xff] %v30790_v46  ;;  %v3607_v24 = vsel %vm3555_vm6, %v30790_v46, -inf  ;;  %v26482_v1 = vpop.f32.mrb[33].mxu1 }
 0x3a4   :  { %3608 = vmax.xlane.f32.xlu1 %v3607_v24 }
 0x3a6   :  { %v2583_v14 = vpop.f32.mrb[34].mxu0 }
 0x3a7   :  { %v30800_v7 = vmul.f32 0.35355338, %v2583_v14  ;;  %v26497_v15 = vpop.f32.mrb[35].mxu0 }
 0x3a8   :  { %3581 = vmax.xlane.f32.xlu1 %v3580_v2  ;;  %v3586_v15 = vsel %vm3555_vm6, %v30810_v0, -inf }
 0x3a9   :  { %36323 = vst [vmem:[#allocation49_spill] sm:$0xff] %v30800_v7  ;;  %v3613_v31 = vsel %vm3555_vm6, %v30800_v7, -inf }
 0x3aa   :  { %v30802_v36 = vpop.f32.mrb[34].mxu1 }
 0x3ab   :  { %v26492_v22 = vpop.f32.mrb[35].mxu1 }
 0x3ac   :  { %3614 = vmax.xlane.f32.xlu1 %v3613_v31 }
 0x3ae   :  { %v2739_v28 = vpop.f32.mrb[36].mxu0 }
 0x3af   :  { %v30806_v47 = vmul.f32 0.35355338, %v2739_v28  ;;  %v26507_v1 = vpop.f32.mrb[37].mxu0 }
 0x3b1   :  { %36324 = vst [vmem:[#allocation136_spill] sm:$0xff] %v30806_v47  ;;  %v3619_v2 = vsel %vm3555_vm6, %v30806_v47, -inf }
 0x3b2   :  { %v30808_v24 = vpop.f32.mrb[36].mxu1  ;;  %3620 = vmax.xlane.f32.xlu1 %v3619_v2 }
 0x3b3   :  { %v26502_v14 = vpop.f32.mrb[37].mxu1 }
 0x3b6   :  { %v2895_v25 = vpop.f32.mrb[38].mxu0  ;;  %3587 = vmax.xlane.f32.xlu1 %v3586_v15 }
 0x3b7   :  { %v30816_v22 = vmul.f32 0.35355338, %v2895_v25  ;;  %v26517_v31 = vpop.f32.mrb[39].mxu0 }
 0x3b8   :  { %v3592_v31 = vsel %vm3555_vm6, %v30826_v37, -inf }
 0x3b9   :  { %36325 = vst [vmem:[#allocation137_spill] sm:$0xff] %v30816_v22  ;;  %v3625_v1 = vsel %vm3555_vm6, %v30816_v22, -inf }
 0x3ba   :  { %v30818_v28 = vpop.f32.mrb[38].mxu1  ;;  %3626 = vmax.xlane.f32.xlu1 %v3625_v1 }
 0x3bb   :  { %v26512_v8 = vpop.f32.mrb[39].mxu1 }
 0x3be   :  { %v3051_v35 = vpop.f32.mrb[40].mxu0 }
 0x3bf   :  { %v30822_v29 = vmul.f32 0.35355338, %v3051_v35  ;;  %v26527_v14 = vpop.f32.mrb[41].mxu0 }
 0x3c0   :  { %v30836_v14 = vmul.f32 0.35355338, %v2115_v34 }
 0x3c1   :  { %36326 = vst [vmem:[#allocation138_spill] sm:$0xff] %v30822_v29  ;;  %v3631_v25 = vsel %vm3555_vm6, %v30822_v29, -inf }
 0x3c2   :  { %v30824_v2 = vpop.f32.mrb[40].mxu1  ;;  %3632 = vmax.xlane.f32.xlu1 %v3631_v25  ;;  %v3595_v25 = vsel %vm3555_vm6, %v30836_v14, -inf }
 0x3c3   :  { %v26522_v15 = vpop.f32.mrb[41].mxu1 }
 0x3c6   :  { %v3207_v21 = vpop.f32.mrb[42].mxu0  ;;  %3593 = vmax.xlane.f32.xlu1 %v3592_v31 }
 0x3c7   :  { %v30832_v8 = vmul.f32 0.35355338, %v3207_v21  ;;  %v26537_v1 = vpop.f32.mrb[43].mxu0 }
 0x3c8   :  { %v30846_v1 = vmul.f32 0.35355338, %v2193_v33 }
 0x3c9   :  { %36327 = vst [vmem:[#allocation139_spill] sm:$0xff] %v30832_v8  ;;  %v3637_v48 = vsel %vm3555_vm6, %v30832_v8, -inf }
 0x3ca   :  { %v30834_v35 = vpop.f32.mrb[42].mxu1  ;;  %3638 = vmax.xlane.f32.xlu1 %v3637_v48 }
 0x3cb   :  { %v26532_v4 = vpop.f32.mrb[43].mxu1 }
 0x3ce   :  { %v3363_v15 = vpop.f32.mrb[44].mxu0  ;;  %3596 = vmax.xlane.f32.xlu1 %v3595_v25  ;;  %v3598_v25 = vsel %vm3555_vm6, %v30846_v1, -inf }
 0x3cf   :  { %v30842_v53 = vmul.f32 0.35355338, %v3363_v15  ;;  %v26547_v31 = vpop.f32.mrb[45].mxu0 }
 0x3d1   :  { %36328 = vst [vmem:[#allocation140_spill] sm:$0xff] %v30842_v53  ;;  %v3643_v34 = vsel %vm3555_vm6, %v30842_v53, -inf }
 0x3d2   :  { %v30844_v21 = vpop.f32.mrb[44].mxu1  ;;  %v3519_v52 = vpop.f32.mrb[46].mxu0  ;;  %3644 = vmax.xlane.f32.xlu1 %v3643_v34 }
 0x3d3   :  { %v26542_v23 = vpop.f32.mrb[45].mxu1  ;;  %v26557_v4 = vpop.f32.mrb[47].mxu0  ;;  %v30852_v39 = vmul.f32 0.35355338, %v3519_v52 }
 0x3d4   :  { %v30861_v23 = vmul.f32 0.35355338, %v30788_v12 }
 0x3d5   :  { %36329 = vst [vmem:[#allocation141_spill] sm:$0xff] %v30852_v39  ;;  %v3649_v52 = vsel %vm3555_vm6, %v30852_v39, -inf }
 0x3d6   :  { %v30850_v48 = vpop.f32.mrb[46].mxu1  ;;  %3599 = vmax.xlane.f32.xlu1 %v3598_v25  ;;  %v3601_v3 = vsel %vm3555_vm6, %v30861_v23, -inf }
 0x3d7   :  { %v26552_v15 = vpop.f32.mrb[47].mxu1 }
 0x3d8   :  { %v4123_v31 = vpop.f32.mrb[48].mxu0 }
 0x3d9   :  { %v30856_v57 = vmul.f32 0.35355338, %v4123_v31  ;;  %v26567_v33 = vpop.f32.mrb[49].mxu0 }
 0x3da   :  { %v30858_v27 = vpop.f32.mrb[48].mxu1  ;;  %3650 = vmax.xlane.f32.xlu1 %v3649_v52  ;;  %v30872_v33 = vmul.f32 0.35355338, %v30792_v30 }
 0x3db   :  { %v6352_v34 = vsel %vm3555_vm6, %v30856_v57, -inf  ;;  %v26562_v4 = vpop.f32.mrb[49].mxu1 }
 0x3dc   :  { %v4269_v9 = vpop.f32.mrb[50].mxu0  ;;  %6353 = vmax.xlane.f32.xlu0 %v6352_v34  ;;  %36330 = vst [vmem:[#allocation142_spill] sm:$0xff] %v30872_v33  ;;  %v30883_v4 = vmul.f32 0.35355338, %v30802_v36 }
 0x3dd   :  { %v30867_v15 = vmul.f32 0.35355338, %v4269_v9  ;;  %v26577_v25 = vpop.f32.mrb[51].mxu0 }
 0x3de   :  { %v30869_v31 = vpop.f32.mrb[50].mxu1  ;;  %3602 = vmax.xlane.f32.xlu1 %v3601_v3  ;;  %36331 = vst [vmem:[#allocation143_spill] sm:$0xff] %v30883_v4  ;;  %v3604_v25 = vsel %vm3555_vm6, %v30872_v33, -inf }
 0x3df   :  { %v6358_v12 = vsel %vm3555_vm6, %v30867_v15, -inf  ;;  %v26572_v40 = vpop.f32.mrb[51].mxu1 }
 0x3e0   :  { %v4415_v19 = vpop.f32.mrb[52].mxu0  ;;  %6359 = vmax.xlane.f32.xlu0 %v6358_v12  ;;  %v30894_v12 = vmul.f32 0.35355338, %v30808_v24 }
 0x3e1   :  { %v30878_v34 = vmul.f32 0.35355338, %v4415_v19  ;;  %v26587_v9 = vpop.f32.mrb[53].mxu0 }
 0x3e2   :  { %v30880_v52 = vpop.f32.mrb[52].mxu1  ;;  %3605 = vmax.xlane.f32.xlu1 %v3604_v25  ;;  %36332 = vst [vmem:[#allocation144_spill] sm:$0xff] %v30894_v12  ;;  %v3610_v9 = vsel %vm3555_vm6, %v30883_v4, -inf  ;;  %v30905_v25 = vmul.f32 0.35355338, %v30818_v28 }
 0x3e3   :  { %v6364_v30 = vsel %vm3555_vm6, %v30878_v34, -inf  ;;  %v26582_v56 = vpop.f32.mrb[53].mxu1 }
 0x3e4   :  { %v4561_v10 = vpop.f32.mrb[54].mxu0  ;;  %6365 = vmax.xlane.f32.xlu0 %v6364_v30  ;;  %36333 = vst [vmem:[#allocation145_spill] sm:$0xff] %v30905_v25 }
 0x3e5   :  { %v30889_v40 = vmul.f32 0.35355338, %v4561_v10  ;;  %v26597_v3 = vpop.f32.mrb[55].mxu0 }
 0x3e6   :  { %v30891_v19 = vpop.f32.mrb[54].mxu1  ;;  %3611 = vmax.xlane.f32.xlu1 %v3610_v9  ;;  %v3616_v3 = vsel %vm3555_vm6, %v30894_v12, -inf  ;;  %v30916_v9 = vmul.f32 0.35355338, %v30824_v2 }
 0x3e7   :  { %v6370_v36 = vsel %vm3555_vm6, %v30889_v40, -inf  ;;  %v26592_v6 = vpop.f32.mrb[55].mxu1 }
 0x3e8   :  { %v4707_v41 = vpop.f32.mrb[56].mxu0  ;;  %6371 = vmax.xlane.f32.xlu0 %v6370_v36  ;;  %36334 = vst [vmem:[#allocation146_spill] sm:$0xff] %v30916_v9 }
 0x3e9   :  { %v30900_v56 = vmul.f32 0.35355338, %v4707_v41  ;;  %v26607_v10 = vpop.f32.mrb[57].mxu0 }
 0x3ea   :  { %v30902_v30 = vpop.f32.mrb[56].mxu1  ;;  %3617 = vmax.xlane.f32.xlu1 %v3616_v3  ;;  %v3622_v10 = vsel %vm3555_vm6, %v30905_v25, -inf  ;;  %v30927_v3 = vmul.f32 0.35355338, %v30834_v35 }
 0x3eb   :  { %v6376_v24 = vsel %vm3555_vm6, %v30900_v56, -inf  ;;  %v26602_v51 = vpop.f32.mrb[57].mxu1 }
 0x3ec   :  { %v4853_v62 = vpop.f32.mrb[58].mxu0  ;;  %6377 = vmax.xlane.f32.xlu0 %v6376_v24  ;;  %36335 = vst [vmem:[#allocation147_spill] sm:$0xff] %v30927_v3 }
 0x3ed   :  { %v30911_v6 = vmul.f32 0.35355338, %v4853_v62  ;;  %v26617_v41 = vpop.f32.mrb[59].mxu0 }
 0x3ee   :  { %v30913_v36 = vpop.f32.mrb[58].mxu1  ;;  %3623 = vmax.xlane.f32.xlu1 %v3622_v10  ;;  %v3628_v41 = vsel %vm3555_vm6, %v30916_v9, -inf  ;;  %v30938_v10 = vmul.f32 0.35355338, %v30844_v21 }
 0x3ef   :  { %v6382_v28 = vsel %vm3555_vm6, %v30911_v6, -inf  ;;  %v26612_v45 = vpop.f32.mrb[59].mxu1 }
 0x3f0   :  { %v4999_v61 = vpop.f32.mrb[60].mxu0  ;;  %6383 = vmax.xlane.f32.xlu0 %v6382_v28  ;;  %36336 = vst [vmem:[#allocation148_spill] sm:$0xff] %v30938_v10 }
 0x3f1   :  { %v30922_v51 = vmul.f32 0.35355338, %v4999_v61  ;;  %v26627_v62 = vpop.f32.mrb[61].mxu0 }
 0x3f2   :  { %v30924_v24 = vpop.f32.mrb[60].mxu1  ;;  %3629 = vmax.xlane.f32.xlu1 %v3628_v41  ;;  %v3634_v62 = vsel %vm3555_vm6, %v30927_v3, -inf }
 0x3f3   :  { %v6388_v2 = vsel %vm3555_vm6, %v30922_v51, -inf  ;;  %v26622_v18 = vpop.f32.mrb[61].mxu1 }
 0x3f4   :  { %v5145_v43 = vpop.f32.mrb[62].mxu0  ;;  %6389 = vmax.xlane.f32.xlu0 %v6388_v2  ;;  %v30947_v2 = vmul.f32 0.35355338, %v30850_v48 }
 0x3f5   :  { %v30933_v45 = vmul.f32 0.35355338, %v5145_v43  ;;  %v26637_v61 = vpop.f32.mrb[63].mxu0 }
 0x3f6   :  { %v30935_v28 = vpop.f32.mrb[62].mxu1  ;;  %3635 = vmax.xlane.f32.xlu1 %v3634_v62  ;;  %36337 = vst [vmem:[#allocation149_spill] sm:$0xff] %v30947_v2  ;;  %v3640_v61 = vsel %vm3555_vm6, %v30938_v10, -inf  ;;  %v30962_v62 = vmul.f32 0.35355338, %v30858_v27 }
 0x3f7   :  { %v6394_v35 = vsel %vm3555_vm6, %v30933_v45, -inf  ;;  %v26632_v55 = vpop.f32.mrb[63].mxu1 }
 0x3f8   :  { %v5291_v16 = vpop.f32.mrb[64].mxu0  ;;  %6395 = vmax.xlane.f32.xlu0 %v6394_v35  ;;  %v3646_v35 = vsel %vm3555_vm6, %v30947_v2, -inf  ;;  %v6349_v27 = vsel %vm3555_vm6, %v30962_v62, -inf }
 0x3f9   :  { %v30944_v18 = vmul.f32 0.35355338, %v5291_v16  ;;  %v26647_v43 = vpop.f32.mrb[65].mxu0 }
 0x3fa   :  { %v30949_v41 = vpop.f32.mrb[64].mxu1  ;;  %3641 = vmax.xlane.f32.xlu1 %v3640_v61  ;;  %v30965_v43 = vmul.f32 0.35355338, %v30869_v31  ;;  %v30970_v61 = vmul.f32 0.35355338, %v30880_v52 }
 0x3fb   :  { %v6400_v21 = vsel %vm3555_vm6, %v30944_v18, -inf  ;;  %v26642_v50 = vpop.f32.mrb[65].mxu1 }
 0x3fc   :  { %v5437_v42 = vpop.f32.mrb[66].mxu0  ;;  %6401 = vmax.xlane.f32.xlu0 %v6400_v21  ;;  %v6355_v31 = vsel %vm3555_vm6, %v30965_v43, -inf }
 0x3fd   :  { %v30955_v55 = vmul.f32 0.35355338, %v5437_v42  ;;  %v26657_v16 = vpop.f32.mrb[67].mxu0 }
 0x3fe   :  { %v30959_v48 = vpop.f32.mrb[66].mxu1  ;;  %3647 = vmax.xlane.f32.xlu1 %v3646_v35  ;;  %v6361_v35 = vsel %vm3555_vm6, %v30970_v61, -inf }
 0x3ff   :  { %v6406_v50 = vsel %vm3555_vm6, %v30955_v55, -inf  ;;  %v26652_v5 = vpop.f32.mrb[67].mxu1 }
 0x400   :  { %v5583_v21 = vpop.f32.mrb[68].mxu0  ;;  %6407 = vmax.xlane.f32.xlu0 %v6406_v50  ;;  %v30985_v50 = vmul.f32 0.35355338, %v30891_v19 }
 0x401   :  { %v26667_v42 = vpop.f32.mrb[69].mxu0  ;;  %v30974_v32 = vmul.f32 0.35355338, %v5583_v21  ;;  %v3561_v21 = vpop.xlane.xlu0 %3560 }
 0x402   :  { %v30972_v16 = vpop.f32.mrb[68].mxu1  ;;  %6350 = vmax.xlane.f32.xlu1 %v6349_v27 }
 0x403   :  { %v26662_v39 = vpop.f32.mrb[69].mxu1  ;;  %v6412_v53 = vsel %vm3555_vm6, %v30974_v32, -inf }
 0x404   :  { %v5729_v2 = vpop.f32.mrb[70].mxu0  ;;  %6356 = vmax.xlane.f32.xlu0 %v6355_v31  ;;  %v30992_v31 = vmul.f32 0.35355338, %v30902_v30 }
 0x405   :  { %v26677_v5 = vpop.f32.mrb[71].mxu0  ;;  %v30987_v42 = vmul.f32 0.35355338, %v5729_v2  ;;  %v3567_v19 = vpop.xlane.xlu0 %3566 }
 0x406   :  { %v30982_v52 = vpop.f32.mrb[70].mxu1  ;;  %6362 = vmax.xlane.f32.xlu1 %v6361_v35  ;;  %v3653_v5 = vsub.f32 %v30752_v60, %v3561_v21  ;;  %v6373_v60 = vsel %vm3555_vm6, %v30992_v31, -inf }
 0x407   :  { %v26672_v10 = vpop.f32.mrb[71].mxu1  ;;  %v6418_v2 = vsel %vm3555_vm6, %v30987_v42, -inf }
 0x408   :  { %v5875_v39 = vpop.f32.mrb[72].mxu0  ;;  %6413 = vmax.xlane.f32.xlu0 %v6412_v53  ;;  %v6367_v10 = vsel %vm3555_vm6, %v30985_v50, -inf  ;;  %v3686_v30 = vmul.f32 1.442695, %v3653_v5 }
 0x409   :  { %v26687_v27 = vpop.f32.mrb[73].mxu0  ;;  %v30997_v3 = vmul.f32 0.35355338, %v5875_v39  ;;  %v31007_v39 = vmul.f32 0.35355338, %v30913_v36  ;;  %v3573_v9 = vpop.xlane.xlu0 %3572 }
 0x40a   :  { %v30995_v8 = vpop.f32.mrb[72].mxu1  ;;  %6368 = vmax.xlane.f32.xlu1 %v6367_v10  ;;  %v3655_v27 = vsub.f32 %v30760_v59, %v3567_v19  ;;  %v31014_v59 = vmul.f32 0.35355338, %v30924_v24  ;;  %28149 = vpow2.f32 %v3686_v30  ;;  %v3657_v10 = vsub.f32 %v30768_v63, %v3573_v9 }
 0x40b   :  { %v26682_v29 = vpop.f32.mrb[73].mxu1 }
 0x40c   :  { %v6021_v53 = vpop.f32.mrb[74].mxu0  ;;  %6419 = vmax.xlane.f32.xlu0 %v6418_v2  ;;  %v6424_v29 = vsel %vm3555_vm6, %v30997_v3, -inf  ;;  %v3690_v19 = vmul.f32 1.442695, %v3655_v27  ;;  %v3694_v30 = vmul.f32 1.442695, %v3657_v10 }
 0x40d   :  { %v26697_v35 = vpop.f32.mrb[75].mxu0  ;;  %v31009_v22 = vmul.f32 0.35355338, %v6021_v53  ;;  %v6385_v9 = vsel %vm3555_vm6, %v31014_v59, -inf }
 0x40e   :  { %v5948_v21 = vpop.f32.mrb[74].mxu1  ;;  %6374 = vmax.xlane.f32.xlu1 %v6373_v60  ;;  %28151 = vpow2.f32 %v3690_v19  ;;  %v31035_v19 = vmul.f32 0.35355338, %v30935_v28 }
 0x40f   :  { %v26692_v25 = vpop.f32.mrb[75].mxu1  ;;  %v3579_v53 = vpop.xlane.xlu0 %3578  ;;  %v6430_v47 = vsel %vm3555_vm6, %v31009_v22, -inf  ;;  %28153 = vpow2.f32 %v3694_v30 }
 0x410   :  { %v6167_v2 = vpop.f32.mrb[76].mxu0  ;;  %6425 = vmax.xlane.f32.xlu0 %v6424_v29  ;;  %v6379_v25 = vsel %vm3555_vm6, %v31007_v39, -inf  ;;  %v3659_v63 = vsub.f32 %v30776_v20, %v3579_v53  ;;  %v31044_v53 = vmul.f32 0.35355338, %v30949_v41 }
 0x411   :  { %v26707_v5 = vpop.f32.mrb[77].mxu0  ;;  %v31019_v35 = vmul.f32 0.35355338, %v6167_v2  ;;  %v31028_v2 = vmul.f32 0.35355338, %v5948_v21 }
 0x412   :  { %v31017_v36 = vpop.f32.mrb[76].mxu1  ;;  %6380 = vmax.xlane.f32.xlu1 %v6379_v25  ;;  %v6397_v30 = vsel %vm3555_vm6, %v31044_v53, -inf }
 0x413   :  { %v26702_v60 = vpop.f32.mrb[77].mxu1  ;;  %v6436_v12 = vsel %vm3555_vm6, %v31019_v35, -inf  ;;  %v6427_v21 = vsel %vm3555_vm6, %v31028_v2, -inf }
 0x414   :  { %v6313_v29 = vpop.f32.mrb[78].mxu0  ;;  %6431 = vmax.xlane.f32.xlu0 %v6430_v47  ;;  %v3698_v47 = vmul.f32 1.442695, %v3659_v63  ;;  %v31041_v10 = vpop.eup %28149 }
 0x415   :  { %v26717_v24 = vpop.f32.mrb[79].mxu0  ;;  %v31030_v5 = vmul.f32 0.35355338, %v6313_v29  ;;  %36338 = vst [vmem:[#allocation150_spill] sm:$0xff] %v31041_v10  ;;  %v3751_v28 = vsel %vm3555_vm6, %v31041_v10, 0.0  ;;  %v3558_v29 = vpop.xlane.xlu1 %3557 }
 0x416   :  { %v6240_v27 = vpop.f32.mrb[78].mxu1  ;;  %6386 = vmax.xlane.f32.xlu1 %v6385_v9  ;;  %28155 = vpow2.f32 %v3698_v47  ;;  %v31053_v24 = vmul.f32 0.35355338, %v30959_v48 }
 0x417   :  { %v26712_v60 = vpop.f32.mrb[79].mxu1  ;;  %v6442_v20 = vsel %vm3555_vm6, %v31030_v5, -inf }
 0x418   :  { %6437 = vmax.xlane.f32.xlu0 %v6436_v12  ;;  %v6391_v12 = vsel %vm3555_vm6, %v31035_v19, -inf  ;;  %v31050_v25 = vpop.eup %28151  ;;  %v31062_v60 = vmul.f32 0.35355338, %v30972_v16  ;;  %v6403_v47 = vsel %vm3555_vm6, %v31053_v24, -inf }
 0x419   :  { %36339 = vst [vmem:[#allocation151_spill] sm:$0xff] %v31050_v25  ;;  %v3757_v41 = vsel %vm3555_vm6, %v31050_v25, 0.0  ;;  %v31059_v63 = vpop.eup %28153  ;;  %v3564_v9 = vpop.xlane.xlu1 %3563 }
 0x41a   :  { %6443 = vmax.xlane.f32.xlu1 %v6442_v20  ;;  %36340 = vst [vmem:[#allocation152_spill] sm:$0xff] %v31059_v63  ;;  %v3763_v48 = vsel %vm3555_vm6, %v31059_v63, 0.0  ;;  %v6409_v16 = vsel %vm3555_vm6, %v31062_v60, -inf  ;;  %v3654_v25 = vsub.f32 %v30756_v54, %v3564_v9  ;;  %v31093_v9 = vmul.f32 0.35355338, %v6240_v27 }
 0x41c   :  { %6428 = vmax.xlane.f32.xlu0 %v6427_v21 }
 0x41d   :  { %v3570_v21 = vpop.xlane.xlu1 %3569 }
 0x41e   :  { %6392 = vmax.xlane.f32.xlu1 %v6391_v12  ;;  %v3652_v12 = vsub.f32 %v30748_v49, %v3558_v29  ;;  %v3688_v29 = vmul.f32 1.442695, %v3654_v25 }
 0x420   :  { %3752 = vadd.xlane.f32.xlu0 %v3751_v28  ;;  %v31068_v20 = vpop.eup %28155  ;;  %v31072_v28 = vmul.f32 0.35355338, %v30982_v52  ;;  %v3684_v63 = vmul.f32 1.442695, %v3652_v12 }
 0x421   :  { %36341 = vst [vmem:[#allocation153_spill] sm:$0xff] %v31068_v20 }
 0x422   :  { %6398 = vmax.xlane.f32.xlu1 %v6397_v30  ;;  %v3769_v30 = vsel %vm3555_vm6, %v31068_v20, 0.0  ;;  %v6415_v49 = vsel %vm3555_vm6, %v31072_v28, -inf  ;;  %28157 = vpow2.f32 %v3684_v63  ;;  %v31133_v20 = vpop.xlane.xlu0 %3584 }
 0x423   :  { %28159 = vpow2.f32 %v3688_v29 }
 0x424   :  { %3758 = vadd.xlane.f32.xlu0 %v3757_v41  ;;  %v3576_v41 = vpop.xlane.xlu1 %3575 }
 0x426   :  { %6404 = vmax.xlane.f32.xlu1 %v6403_v47  ;;  %v31080_v47 = vmul.f32 0.35355338, %v30995_v8  ;;  %v3658_v8 = vsub.f32 %v30772_v11, %v3576_v41 }
 0x428   :  { %3764 = vadd.xlane.f32.xlu0 %v3763_v48  ;;  %v3656_v48 = vsub.f32 %v30764_v13, %v3570_v21  ;;  %v6421_v12 = vsel %vm3555_vm6, %v31080_v47, -inf  ;;  %v3696_v13 = vmul.f32 1.442695, %v3658_v8 }
 0x42a   :  { %6410 = vmax.xlane.f32.xlu1 %v6409_v16  ;;  %v31088_v16 = vmul.f32 0.35355338, %v31017_v36  ;;  %v3692_v54 = vmul.f32 1.442695, %v3656_v48  ;;  %v6439_v36 = vsel %vm3555_vm6, %v31093_v9, -inf }
 0x42c   :  { %3770 = vadd.xlane.f32.xlu0 %v3769_v30  ;;  %v6433_v25 = vsel %vm3555_vm6, %v31088_v16, -inf  ;;  %28161 = vpow2.f32 %v3692_v54  ;;  %v31101_v63 = vpop.eup %28157 }
 0x42d   :  { %36343 = vst [vmem:[#allocation155_spill] sm:$0xff] %v31101_v63  ;;  %28163 = vpow2.f32 %v3696_v13  ;;  %v3748_v11 = vsel %vm3555_vm6, %v31101_v63, 0.0  ;;  %v31107_v27 = vpop.eup %28159 }
 0x42e   :  { %6416 = vmax.xlane.f32.xlu1 %v6415_v49  ;;  %36345 = vst [vmem:[#allocation157_spill] sm:$0xff] %v31107_v27  ;;  %v3754_v49 = vsel %vm3555_vm6, %v31107_v27, 0.0  ;;  %v31137_v27 = vpop.xlane.xlu0 %3590 }
 0x431   :  { %v31084_v52 = vpop.xlane.xlu1 %3608 }
 0x432   :  { %36342 = vst [vmem:[#allocation154_spill] sm:$0xff] %v31084_v52  ;;  %6422 = vmax.xlane.f32.xlu1 %v6421_v12 }
 0x435   :  { %v31095_v30 = vpop.xlane.xlu1 %3581 }
 0x436   :  { %6434 = vmax.xlane.f32.xlu1 %v6433_v25  ;;  %v31113_v29 = vpop.eup %28161 }
 0x437   :  { %36347 = vst [vmem:[#allocation159_spill] sm:$0xff] %v31113_v29  ;;  %v3760_v12 = vsel %vm3555_vm6, %v31113_v29, 0.0  ;;  %v31119_v54 = vpop.eup %28163 }
 0x438   :  { %36348 = vst [vmem:[#allocation160_spill] sm:$0xff] %v31119_v54  ;;  %v3766_v8 = vsel %vm3555_vm6, %v31119_v54, 0.0 }
 0x439   :  { %v31103_v21 = vpop.xlane.xlu1 %3614 }
 0x43a   :  { %6440 = vmax.xlane.f32.xlu1 %v6439_v36  ;;  %36344 = vst [vmem:[#allocation156_spill] sm:$0xff] %v31103_v21 }
 0x43e   :  { %3749 = vadd.xlane.f32.xlu1 %v3748_v11 }
 0x43f   :  { %v31109_v41 = vpop.xlane.xlu1 %3620 }
 0x440   :  { %36346 = vst [vmem:[#allocation158_spill] sm:$0xff] %v31109_v41 }
 0x442   :  { %3755 = vadd.xlane.f32.xlu1 %v3754_v49 }
 0x443   :  { %v31115_v48 = vpop.xlane.xlu1 %3587 }
 0x446   :  { %3761 = vadd.xlane.f32.xlu1 %v3760_v12 }
 0x447   :  { %v31123_v25 = vpop.xlane.xlu1 %3626 }
 0x448   :  { %36349 = vst [vmem:[#allocation161_spill] sm:$0xff] %v31123_v25 }
 0x44a   :  { %3767 = vadd.xlane.f32.xlu1 %v3766_v8 }
 0x44f   :  { %v31125_v13 = vpop.xlane.xlu1 %3632 }
 0x450   :  { %36350 = vst [vmem:[#allocation162_spill] sm:$0xff] %v31125_v13 }
 0x453   :  { %v31127_v36 = vpop.xlane.xlu1 %3593 }
 0x457   :  { %v31129_v11 = vpop.xlane.xlu1 %3638 }
 0x458   :  { %36351 = vst [vmem:[#allocation163_spill] sm:$0xff] %v31129_v11 }
 0x45b   :  { %v31131_v49 = vpop.xlane.xlu1 %3596 }
 0x45f   :  { %v31135_v29 = vpop.xlane.xlu1 %3644 }
 0x460   :  { %36352 = vst [vmem:[#allocation164_spill] sm:$0xff] %v31135_v29 }
 0x463   :  { %v31139_v12 = vpop.xlane.xlu1 %3599 }
 0x467   :  { %v31141_v8 = vpop.xlane.xlu1 %3650 }
 0x468   :  { %36353 = vst [vmem:[#allocation165_spill] sm:$0xff] %v31141_v8 }
 0x469   :  { %v6354_v54 = vpop.xlane.xlu0 %6353 }
 0x46a   :  { %v6446_v25 = vsub.f32 %v30856_v57, %v6354_v54 }
 0x46b   :  { %v31144_v63 = vpop.xlane.xlu1 %3602 }
 0x46c   :  { %v6479_v13 = vmul.f32 1.442695, %v6446_v25 }
 0x46d   :  { %v6360_v41 = vpop.xlane.xlu0 %6359 }
 0x46e   :  { %28165 = vpow2.f32 %v6479_v13  ;;  %v6448_v11 = vsub.f32 %v30867_v15, %v6360_v41 }
 0x46f   :  { %v31147_v21 = vpop.xlane.xlu1 %3605 }
 0x470   :  { %v6483_v10 = vmul.f32 1.442695, %v6448_v11  ;;  %36354 = vst [vmem:[#allocation166_spill] sm:$0xff] %v31147_v21 }
 0x471   :  { %v6366_v7 = vpop.xlane.xlu0 %6365 }
 0x472   :  { %28167 = vpow2.f32 %v6483_v10  ;;  %v6450_v29 = vsub.f32 %v30878_v34, %v6366_v7 }
 0x473   :  { %v31150_v52 = vpop.xlane.xlu1 %3611 }
 0x474   :  { %v6487_v4 = vmul.f32 1.442695, %v6450_v29  ;;  %36355 = vst [vmem:[#allocation167_spill] sm:$0xff] %v31150_v52 }
 0x475   :  { %v6372_v46 = vpop.xlane.xlu0 %6371 }
 0x476   :  { %28169 = vpow2.f32 %v6487_v4  ;;  %v6452_v57 = vsub.f32 %v30889_v40, %v6372_v46 }
 0x477   :  { %v31155_v8 = vpop.xlane.xlu1 %3617 }
 0x478   :  { %v31153_v54 = vpop.eup %28165  ;;  %v6491_v25 = vmul.f32 1.442695, %v6452_v57  ;;  %36356 = vst [vmem:[#allocation168_spill] sm:$0xff] %v31155_v8 }
 0x479   :  { %v6378_v13 = vpop.xlane.xlu0 %6377  ;;  %v6544_v15 = vsel %vm3555_vm6, %v31153_v54, 0.0 }
 0x47a   :  { %28171 = vpow2.f32 %v6491_v25  ;;  %v6454_v10 = vsub.f32 %v30900_v56, %v6378_v13  ;;  %6545 = vadd.xlane.f32.xlu0 %v6544_v15 }
 0x47b   :  { %v31162_v4 = vpop.xlane.xlu1 %3623 }
 0x47c   :  { %v31160_v7 = vpop.eup %28167  ;;  %v6495_v34 = vmul.f32 1.442695, %v6454_v10  ;;  %36357 = vst [vmem:[#allocation169_spill] sm:$0xff] %v31162_v4 }
 0x47d   :  { %v6384_v41 = vpop.xlane.xlu0 %6383  ;;  %v6550_v46 = vsel %vm3555_vm6, %v31160_v7, 0.0 }
 0x47e   :  { %28173 = vpow2.f32 %v6495_v34  ;;  %v6456_v40 = vsub.f32 %v30911_v6, %v6384_v41  ;;  %6551 = vadd.xlane.f32.xlu0 %v6550_v46 }
 0x47f   :  { %v31169_v25 = vpop.xlane.xlu1 %3629 }
 0x480   :  { %v31167_v29 = vpop.eup %28169  ;;  %v6499_v11 = vmul.f32 1.442695, %v6456_v40  ;;  %36358 = vst [vmem:[#allocation170_spill] sm:$0xff] %v31169_v25 }
 0x481   :  { %v6390_v57 = vpop.xlane.xlu0 %6389  ;;  %v6556_v56 = vsel %vm3555_vm6, %v31167_v29, 0.0 }
 0x482   :  { %28175 = vpow2.f32 %v6499_v11  ;;  %v6458_v13 = vsub.f32 %v30922_v51, %v6390_v57  ;;  %6557 = vadd.xlane.f32.xlu0 %v6556_v56 }
 0x483   :  { %v31176_v4 = vpop.xlane.xlu1 %3635 }
 0x484   :  { %v31174_v15 = vpop.eup %28171  ;;  %v6503_v10 = vmul.f32 1.442695, %v6458_v13  ;;  %36359 = vst [vmem:[#allocation171_spill] sm:$0xff] %v31176_v4 }
 0x485   :  { %v6396_v34 = vpop.xlane.xlu0 %6395  ;;  %v6562_v6 = vsel %vm3555_vm6, %v31174_v15, 0.0 }
 0x486   :  { %28177 = vpow2.f32 %v6503_v10  ;;  %v6460_v41 = vsub.f32 %v30933_v45, %v6396_v34  ;;  %6563 = vadd.xlane.f32.xlu0 %v6562_v6 }
 0x487   :  { %v31183_v25 = vpop.xlane.xlu1 %3641 }
 0x488   :  { %v31181_v46 = vpop.eup %28173  ;;  %v6507_v40 = vmul.f32 1.442695, %v6460_v41  ;;  %36360 = vst [vmem:[#allocation172_spill] sm:$0xff] %v31183_v25 }
 0x489   :  { %v6402_v11 = vpop.xlane.xlu0 %6401  ;;  %v6568_v51 = vsel %vm3555_vm6, %v31181_v46, 0.0 }
 0x48a   :  { %28179 = vpow2.f32 %v6507_v40  ;;  %v6462_v57 = vsub.f32 %v30944_v18, %v6402_v11  ;;  %6569 = vadd.xlane.f32.xlu0 %v6568_v51 }
 0x48b   :  { %v31190_v4 = vpop.xlane.xlu1 %3647 }
 0x48c   :  { %v31188_v56 = vpop.eup %28175  ;;  %v6511_v13 = vmul.f32 1.442695, %v6462_v57  ;;  %36361 = vst [vmem:[#allocation173_spill] sm:$0xff] %v31190_v4 }
 0x48d   :  { %v6408_v10 = vpop.xlane.xlu0 %6407  ;;  %v6574_v45 = vsel %vm3555_vm6, %v31188_v56, 0.0 }
 0x48e   :  { %28181 = vpow2.f32 %v6511_v13  ;;  %6575 = vadd.xlane.f32.xlu0 %v6574_v45  ;;  %v6464_v6 = vsub.f32 %v30955_v55, %v6408_v10 }
 0x48f   :  { %v6351_v40 = vpop.xlane.xlu1 %6350 }
 0x490   :  { %v31194_v34 = vpop.eup %28177  ;;  %v6445_v11 = vsub.f32 %v30962_v62, %v6351_v40  ;;  %v6515_v4 = vmul.f32 1.442695, %v6464_v6 }
 0x491   :  { %v6357_v41 = vpop.xlane.xlu0 %6356  ;;  %v6580_v18 = vsel %vm3555_vm6, %v31194_v34, 0.0 }
 0x492   :  { %6581 = vadd.xlane.f32.xlu0 %v6580_v18  ;;  %v6477_v57 = vmul.f32 1.442695, %v6445_v11  ;;  %v6447_v25 = vsub.f32 %v30965_v43, %v6357_v41 }
 0x493   :  { %v6363_v13 = vpop.xlane.xlu1 %6362 }
 0x494   :  { %v31200_v51 = vpop.eup %28179  ;;  %28183 = vpow2.f32 %v6477_v57  ;;  %v6481_v10 = vmul.f32 1.442695, %v6447_v25  ;;  %v6449_v6 = vsub.f32 %v30970_v61, %v6363_v13 }
 0x495   :  { %v6586_v45 = vsel %vm3555_vm6, %v31200_v51, 0.0  ;;  %v6414_v8 = vpop.xlane.xlu0 %6413  ;;  %28185 = vpow2.f32 %v6515_v4 }
 0x496   :  { %6587 = vadd.xlane.f32.xlu0 %v6586_v45  ;;  %v6466_v62 = vsub.f32 %v30974_v32, %v6414_v8  ;;  %28187 = vpow2.f32 %v6481_v10  ;;  %v6485_v57 = vmul.f32 1.442695, %v6449_v6 }
 0x497   :  { %v6369_v40 = vpop.xlane.xlu1 %6368 }
 0x498   :  { %v31205_v55 = vpop.eup %28181  ;;  %v6519_v43 = vmul.f32 1.442695, %v6466_v62  ;;  %v6451_v10 = vsub.f32 %v30985_v50, %v6369_v40 }
 0x499   :  { %v6592_v18 = vsel %vm3555_vm6, %v31205_v55, 0.0  ;;  %v6420_v11 = vpop.xlane.xlu0 %6419 }
 0x49a   :  { %6593 = vadd.xlane.f32.xlu0 %v6592_v18  ;;  %28189 = vpow2.f32 %v6519_v43  ;;  %v6468_v4 = vsub.f32 %v30987_v42, %v6420_v11  ;;  %v6489_v42 = vmul.f32 1.442695, %v6451_v10 }
 0x49b   :  { %v6375_v41 = vpop.xlane.xlu1 %6374  ;;  %28191 = vpow2.f32 %v6485_v57 }
 0x49c   :  { %v6523_v45 = vmul.f32 1.442695, %v6468_v4  ;;  %v6453_v40 = vsub.f32 %v30992_v31, %v6375_v41 }
 0x49d   :  { %v6426_v13 = vpop.xlane.xlu0 %6425 }
 0x49e   :  { %v31211_v52 = vpop.eup %28183  ;;  %28193 = vpow2.f32 %v6523_v45  ;;  %v6470_v43 = vsub.f32 %v30997_v3, %v6426_v13  ;;  %v6493_v3 = vmul.f32 1.442695, %v6453_v40 }
 0x49f   :  { %v6381_v25 = vpop.xlane.xlu1 %6380  ;;  %v6541_v32 = vsel %vm3555_vm6, %v31211_v52, 0.0  ;;  %v31216_v8 = vpop.eup %28185  ;;  %28195 = vpow2.f32 %v6489_v42 }
 0x4a0   :  { %6542 = vadd.xlane.f32.xlu0 %v6541_v32  ;;  %v6598_v62 = vsel %vm3555_vm6, %v31216_v8, 0.0  ;;  %v31221_v18 = vpop.eup %28187  ;;  %v6527_v50 = vmul.f32 1.442695, %v6470_v43  ;;  %v6455_v41 = vsub.f32 %v31007_v39, %v6381_v25 }
 0x4a1   :  { %v6547_v11 = vsel %vm3555_vm6, %v31221_v18, 0.0  ;;  %v6432_v32 = vpop.xlane.xlu0 %6431 }
 0x4a2   :  { %28197 = vpow2.f32 %v6527_v50  ;;  %v6472_v13 = vsub.f32 %v31009_v22, %v6432_v32  ;;  %v6497_v32 = vmul.f32 1.442695, %v6455_v41 }
 0x4a3   :  { %v6387_v61 = vpop.xlane.xlu1 %6386  ;;  %28199 = vpow2.f32 %v6493_v3 }
 0x4a4   :  { %6599 = vadd.xlane.f32.xlu0 %v6598_v62  ;;  %v31228_v57 = vpop.eup %28189  ;;  %v6531_v31 = vmul.f32 1.442695, %v6472_v13 }
 0x4a5   :  { %v6604_v45 = vsel %vm3555_vm6, %v31228_v57, 0.0  ;;  %v31235_v10 = vpop.eup %28191  ;;  %v6438_v33 = vpop.xlane.xlu0 %6437 }
 0x4a6   :  { %v6553_v42 = vsel %vm3555_vm6, %v31235_v10, 0.0  ;;  %28201 = vpow2.f32 %v6531_v31  ;;  %v6474_v21 = vsub.f32 %v31019_v35, %v6438_v33 }
 0x4a7   :  { %v31224_v6 = vpop.xlane.xlu1 %6443 }
 0x4a8   :  { %6548 = vadd.xlane.f32.xlu0 %v6547_v11  ;;  %v31242_v43 = vpop.eup %28193  ;;  %v6535_v13 = vmul.f32 1.442695, %v6474_v21  ;;  %v6476_v21 = vsub.f32 %v31030_v5, %v31224_v6 }
 0x4a9   :  { %v6610_v50 = vsel %vm3555_vm6, %v31242_v43, 0.0  ;;  %v31248_v22 = vpop.eup %28195 }
 0x4aa   :  { %v6559_v39 = vsel %vm3555_vm6, %v31248_v22, 0.0 }
 0x4ab   :  { %v31231_v4 = vpop.xlane.xlu1 %6392 }
 0x4ac   :  { %6605 = vadd.xlane.f32.xlu0 %v6604_v45  ;;  %v31254_v25 = vpop.eup %28197 }
 0x4ad   :  { %v6616_v35 = vsel %vm3555_vm6, %v31254_v25, 0.0 }
 0x4af   :  { %v31238_v62 = vpop.xlane.xlu1 %6398 }
 0x4b0   :  { %6554 = vadd.xlane.f32.xlu0 %v6553_v42 }
 0x4b3   :  { %v6405_v11 = vpop.xlane.xlu1 %6404 }
 0x4b4   :  { %v6463_v45 = vsub.f32 %v31053_v24, %v6405_v11  ;;  %6611 = vadd.xlane.f32.xlu0 %v6610_v50  ;;  %v6457_v11 = vsub.f32 %v31014_v59, %v6387_v61 }
 0x4b6   :  { %v6513_v40 = vmul.f32 1.442695, %v6463_v45  ;;  %v6429_v45 = vpop.xlane.xlu0 %6428 }
 0x4b7   :  { %v6411_v42 = vpop.xlane.xlu1 %6410  ;;  %v6471_v41 = vsub.f32 %v31028_v2, %v6429_v45 }
 0x4b8   :  { %28203 = vpow2.f32 %v6513_v40  ;;  %v6465_v3 = vsub.f32 %v31062_v60, %v6411_v42  ;;  %6560 = vadd.xlane.f32.xlu0 %v6559_v39  ;;  %v31260_v60 = vpop.eup %28199  ;;  %v6501_v40 = vmul.f32 1.442695, %v6457_v11  ;;  %v6539_v39 = vmul.f32 1.442695, %v6476_v21 }
 0x4b9   :  { %28205 = vpow2.f32 %v6497_v32  ;;  %v31268_v32 = vpop.eup %28201  ;;  %v3660_v21 = vsub.f32 %v30794_v17, %v31095_v30 }
 0x4ba   :  { %v6517_v24 = vmul.f32 1.442695, %v6465_v3  ;;  %v6529_v3 = vmul.f32 1.442695, %v6471_v41 }
 0x4bb   :  { %v6417_v31 = vpop.xlane.xlu1 %6416  ;;  %v3700_v17 = vmul.f32 1.442695, %v3660_v21 }
 0x4bc   :  { %28207 = vpow2.f32 %v6517_v24  ;;  %v6467_v33 = vsub.f32 %v31072_v28, %v6417_v31  ;;  %6617 = vadd.xlane.f32.xlu0 %v6616_v35  ;;  %v6565_v28 = vsel %vm3555_vm6, %v31260_v60, 0.0  ;;  %v6459_v24 = vsub.f32 %v31035_v19, %v31231_v4 }
 0x4bd   :  { %28209 = vpow2.f32 %v6535_v13  ;;  %v6622_v13 = vsel %vm3555_vm6, %v31268_v32, 0.0  ;;  %v6461_v4 = vsub.f32 %v31044_v53, %v31238_v62  ;;  %v3661_v62 = vsub.f32 %v30780_v58, %v31133_v20 }
 0x4be   :  { %v6521_v50 = vmul.f32 1.442695, %v6467_v33  ;;  %v6505_v19 = vmul.f32 1.442695, %v6459_v24 }
 0x4bf   :  { %v6423_v59 = vpop.xlane.xlu1 %6422  ;;  %v3702_v30 = vmul.f32 1.442695, %v3661_v62  ;;  %v36362_v62 = vld [vmem:[#allocation10_spill] sm:$0xff] }
 0x4c0   :  { %28211 = vpow2.f32 %v6521_v50  ;;  %v6469_v61 = vsub.f32 %v31080_v47, %v6423_v59  ;;  %6566 = vadd.xlane.f32.xlu0 %v6565_v28  ;;  %v6509_v59 = vmul.f32 1.442695, %v6461_v4 }
 0x4c1   :  { %28213 = vpow2.f32 %v6501_v40 }
 0x4c2   :  { %v31270_v42 = vpop.eup %28203  ;;  %v6525_v2 = vmul.f32 1.442695, %v6469_v61 }
 0x4c3   :  { %v6435_v5 = vpop.xlane.xlu1 %6434  ;;  %v6595_v6 = vsel %vm3555_vm6, %v31270_v42, 0.0  ;;  %v31279_v11 = vpop.eup %28205 }
 0x4c4   :  { %28215 = vpow2.f32 %v6525_v2  ;;  %v6473_v47 = vsub.f32 %v31088_v16, %v6435_v5  ;;  %6596 = vadd.xlane.f32.xlu1 %v6595_v6  ;;  %6623 = vadd.xlane.f32.xlu0 %v6622_v13  ;;  %v6571_v41 = vsel %vm3555_vm6, %v31279_v11, 0.0 }
 0x4c5   :  { %28217 = vpow2.f32 %v6529_v3 }
 0x4c6   :  { %v31281_v45 = vpop.eup %28207  ;;  %v6533_v31 = vmul.f32 1.442695, %v6473_v47  ;;  %28219 = vpow2.f32 %v6539_v39 }
 0x4c7   :  { %v6441_v33 = vpop.xlane.xlu1 %6440  ;;  %v6601_v16 = vsel %vm3555_vm6, %v31281_v45, 0.0  ;;  %v31290_v50 = vpop.eup %28209 }
 0x4c8   :  { %v6475_v35 = vsub.f32 %v31093_v9, %v6441_v33  ;;  %6602 = vadd.xlane.f32.xlu1 %v6601_v16  ;;  %6572 = vadd.xlane.f32.xlu0 %v6571_v41  ;;  %28221 = vpow2.f32 %v6533_v31  ;;  %v6628_v61 = vsel %vm3555_vm6, %v31290_v50, 0.0 }
 0x4c9   :  { %28223 = vpow2.f32 %v6505_v19 }
 0x4ca   :  { %v31292_v40 = vpop.eup %28211  ;;  %v6537_v53 = vmul.f32 1.442695, %v6475_v35 }
 0x4cb   :  { %v6607_v9 = vsel %vm3555_vm6, %v31292_v40, 0.0  ;;  %v31302_v28 = vpop.eup %28213 }
 0x4cc   :  { %6608 = vadd.xlane.f32.xlu1 %v6607_v9  ;;  %6629 = vadd.xlane.f32.xlu0 %v6628_v61  ;;  %28225 = vpow2.f32 %v6537_v53  ;;  %v6577_v2 = vsel %vm3555_vm6, %v31302_v28, 0.0  ;;  %v31346_v61 = vpop.xlane.xlu0 %3752 }
 0x4cd   :  { %28227 = vpow2.f32 %v6509_v59  ;;  %v36363_v59 = vld [vmem:[#allocation29_spill] sm:$0xff] }
 0x4ce   :  { %v31304_v3 = vpop.eup %28215  ;;  %28229 = vpow2.f32 %v3700_v17  ;;  %v31344_v9 = vadd.f32 %v36363_v59, %v36362_v62  ;;  %v36365_v17 = vld [vmem:[#allocation12_spill] sm:$0xff] }
 0x4cf   :  { %v6613_v58 = vsel %vm3555_vm6, %v31304_v3, 0.0  ;;  %v31308_v20 = vpop.eup %28217  ;;  %28231 = vpow2.f32 %v3702_v30 }
 0x4d0   :  { %6614 = vadd.xlane.f32.xlu1 %v6613_v58  ;;  %v31312_v39 = vpop.eup %28219  ;;  %6578 = vadd.xlane.f32.xlu0 %v6577_v2  ;;  %v6619_v24 = vsel %vm3555_vm6, %v31308_v20, 0.0  ;;  %36364 = vst [vmem:[#allocation10_spill] sm:$0xff] %v31344_v9  ;;  %v6734_v30 = vmul.f32 %v36365_v17, %v31344_v9  ;;  %v36366_v58 = vld [vmem:[#allocation30_spill] sm:$0xff] }
 0x4d1   :  { %v6634_v6 = vsel %vm3555_vm6, %v31312_v39, 0.0  ;;  %v31352_v2 = vadd.f32 %v36362_v62, %v36366_v58 }
 0x4d2   :  { %v31316_v5 = vpop.eup %28221 }
 0x4d3   :  { %v31320_v47 = vpop.eup %28223  ;;  %v6625_v13 = vsel %vm3555_vm6, %v31316_v5, 0.0  ;;  %36367 = vst [vmem:[#allocation29_spill] sm:$0xff] %v31352_v2 }
 0x4d4   :  { %6620 = vadd.xlane.f32.xlu1 %v6619_v24  ;;  %6635 = vadd.xlane.f32.xlu0 %v6634_v6  ;;  %v6583_v19 = vsel %vm3555_vm6, %v31320_v47, 0.0  ;;  %v31355_v24 = vpop.xlane.xlu0 %3758  ;;  %v6733_v6 = vmul.f32 %v36365_v17, %v31352_v2 }
 0x4d6   :  { %v31324_v31 = vpop.eup %28225 }
 0x4d7   :  { %v31328_v4 = vpop.eup %28227  ;;  %v6631_v33 = vsel %vm3555_vm6, %v31324_v31, 0.0 }
 0x4d8   :  { %6626 = vadd.xlane.f32.xlu1 %v6625_v13  ;;  %6584 = vadd.xlane.f32.xlu0 %v6583_v19  ;;  %v31332_v16 = vpop.eup %28229  ;;  %v6589_v35 = vsel %vm3555_vm6, %v31328_v4, 0.0  ;;  %v31360_v13 = vpop.xlane.xlu0 %3764  ;;  %v3662_v19 = vsub.f32 %v30810_v0, %v31115_v48 }
 0x4d9   :  { %v31336_v41 = vpop.eup %28231  ;;  %v3772_v21 = vsel %vm3555_vm6, %v31332_v16, 0.0 }
 0x4da   :  { %v3775_v53 = vsel %vm3555_vm6, %v31336_v41, 0.0 }
 0x4dc   :  { %6632 = vadd.xlane.f32.xlu1 %v6631_v33  ;;  %6590 = vadd.xlane.f32.xlu0 %v6589_v35  ;;  %v3663_v33 = vsub.f32 %v30784_v38, %v31137_v27  ;;  %v31366_v35 = vpop.xlane.xlu0 %3770  ;;  %v36368_v27 = vld [vmem:[#allocation54_spill] sm:$0xff] }
 0x4e0   :  { %3773 = vadd.xlane.f32.xlu1 %v3772_v21  ;;  %3776 = vadd.xlane.f32.xlu0 %v3775_v53  ;;  %v3704_v21 = vmul.f32 1.442695, %v3662_v19  ;;  %v3706_v53 = vmul.f32 1.442695, %v3663_v33 }
 0x4f1   :  { %8971 = vrot.lane.b32.xlu1 %v6734_v30, %s28951_s16 }
 0x4f6   :  { %8894 = vrot.lane.b32.xlu0 %v6733_v6, %s28951_s16 }
 0x507   :  { %v6546_v59 = vpop.xlane.xlu0 %6545 }
 0x508   :  { %28233 = vrcp.f32 %v6546_v59 }
 0x509   :  { %28235 = vpow2.f32 %v3704_v21 }
 0x50a   :  { %28237 = vpow2.f32 %v3706_v53  ;;  %v36369_v53 = vld [vmem:[#allocation60_spill] sm:$0xff] }
 0x50b   :  { %v6552_v30 = vpop.xlane.xlu0 %6551 }
 0x50c   :  { %28239 = vrcp.f32 %v6552_v30 }
 0x50f   :  { %v6558_v58 = vpop.xlane.xlu0 %6557 }
 0x510   :  { %28241 = vrcp.f32 %v6558_v58 }
 0x512   :  { %v28234_v6 = vpop.eup %28233 }
 0x513   :  { %v31368_v9 = vpop.eup %28235  ;;  %v6564_v2 = vpop.xlane.xlu0 %6563  ;;  %v6640_v0 = vmul.f32 %v28234_v6, %v31153_v54 }
 0x514   :  { %v31371_v48 = vpop.eup %28237  ;;  %28243 = vrcp.f32 %v6564_v2  ;;  %v3778_v19 = vsel %vm3555_vm6, %v31368_v9, 0.0 }
 0x515   :  { %26726 = vmatmul.mubr.msk.f32.vlgmr.msra.gmra.mrb[80].mxu0 %vm3555_vm6, %v6640_v0  ;;  %v3781_v21 = vsel %vm3555_vm6, %v31371_v48, 0.0  ;;  %3779 = vadd.xlane.f32.xlu1 %v3778_v19  ;;  %v36373_v19 = vld [vmem:[#allocation73_spill] sm:$0xff] }
 0x516   :  { %v28240_v38 = vpop.eup %28239  ;;  %26734 = vmatpush3.msra.mxu0 %v36368_v27  ;;  %26735 = vmatprep.mubr.msk.f32.mxu0 %vm28952_vm5, %v36187_v26 }
 0x517   :  { %v6570_v33 = vpop.xlane.xlu0 %6569  ;;  %26743 = vmatprep.subr.mxu0 %v36187_v26  ;;  %v6644_v54 = vmul.f32 %v28240_v38, %v31160_v7  ;;  %3782 = vadd.xlane.f32.xlu0 %v3781_v21  ;;  %v36370_v7 = vld [vmem:[#allocation67_spill] sm:$0xff] }
 0x518   :  { %28245 = vrcp.f32 %v6570_v33 }
 0x519   :  { %26736 = vmatmul.mubr.msk.f32.vlgmr.msra.gmra.mrb[82].mxu0 %vm3555_vm6, %v6644_v54  ;;  %v36374_v54 = vld [vmem:[#allocation79_spill] sm:$0xff] }
 0x51a   :  { %v28242_v2 = vpop.eup %28241  ;;  %26744 = vmatpush3.msra.mxu0 %v36369_v53  ;;  %26745 = vmatprep.mubr.msk.f32.mxu0 %vm28952_vm5, %v36187_v26 }
 0x51b   :  { %v6576_v59 = vpop.xlane.xlu0 %6575  ;;  %26753 = vmatprep.subr.mxu0 %v36187_v26  ;;  %v6648_v30 = vmul.f32 %v28242_v2, %v31167_v29  ;;  %v36371_v29 = vld [vmem:[#allocation32_spill] sm:$0xff] }
 0x51c   :  { %28247 = vrcp.f32 %v6576_v59  ;;  %v31398_v27 = vadd.f32 %v36371_v29, %v36362_v62 }
 0x51d   :  { %26746 = vmatmul.mubr.msk.f32.vlgmr.msra.gmra.mrb[84].mxu0 %vm3555_vm6, %v6648_v30 }
 0x51e   :  { %v28244_v58 = vpop.eup %28243  ;;  %26754 = vmatpush3.msra.mxu0 %v36370_v7  ;;  %26755 = vmatprep.mubr.msk.f32.mxu0 %vm28952_vm5, %v36187_v26  ;;  %36372 = vst [vmem:[#allocation12_spill] sm:$0xff] %v31398_v27  ;;  %v6736_v2 = vmul.f32 %v36365_v17, %v31398_v27 }
 0x51f   :  { %v6582_v6 = vpop.xlane.xlu0 %6581  ;;  %26763 = vmatprep.subr.mxu0 %v36187_v26  ;;  %v6652_v0 = vmul.f32 %v28244_v58, %v31174_v15  ;;  %v36376_v58 = vld [vmem:[#allocation85_spill] sm:$0xff] }
 0x520   :  { %28249 = vrcp.f32 %v6582_v6 }
 0x521   :  { %26756 = vmatmul.mubr.msk.f32.vlgmr.msra.gmra.mrb[86].mxu0 %vm3555_vm6, %v6652_v0 }
 0x522   :  { %v28246_v38 = vpop.eup %28245  ;;  %26764 = vmatpush3.msra.mxu0 %v36373_v19  ;;  %26765 = vmatprep.mubr.msk.f32.mxu0 %vm28952_vm5, %v36187_v26  ;;  %v36379_v19 = vld [vmem:[#allocation104_spill] sm:$0xff] }
 0x523   :  { %v6588_v33 = vpop.xlane.xlu0 %6587  ;;  %26773 = vmatprep.subr.mxu0 %v36187_v26  ;;  %v6656_v21 = vmul.f32 %v28246_v38, %v31181_v46  ;;  %v31415_v46 = vadd.f32 %v36362_v62, %v29856_v44  ;;  %v36377_v62 = vld [vmem:[#allocation92_spill] sm:$0xff] }
 0x524   :  { %28251 = vrcp.f32 %v6588_v33  ;;  %v3665_v33 = vsub.f32 %v30836_v14, %v31131_v49 }
 0x525   :  { %26766 = vmatmul.mubr.msk.f32.vlgmr.msra.gmra.mrb[88].mxu0 %vm3555_vm6, %v6656_v21  ;;  %36375 = vst [vmem:[#allocation30_spill] sm:$0xff] %v31415_v46 }
 0x526   :  { %v28248_v15 = vpop.eup %28247  ;;  %26774 = vmatpush3.msra.mxu0 %v36374_v54  ;;  %26775 = vmatprep.mubr.msk.f32.mxu0 %vm28952_vm5, %v36187_v26  ;;  %v3710_v54 = vmul.f32 1.442695, %v3665_v33 }
 0x527   :  { %v6594_v53 = vpop.xlane.xlu0 %6593  ;;  %26783 = vmatprep.subr.mxu0 %v36187_v26  ;;  %v6660_v59 = vmul.f32 %v28248_v15, %v31188_v56  ;;  %9125 = vrot.lane.b32.xlu1 %v6736_v2, %s28951_s16  ;;  %v6735_v56 = vmul.f32 %v36365_v17, %v31415_v46  ;;  %v36378_v17 = vld [vmem:[#allocation98_spill] sm:$0xff] }
 0x528   :  { %28253 = vrcp.f32 %v6594_v53 }
 0x529   :  { %26776 = vmatmul.mubr.msk.f32.vlgmr.msra.gmra.mrb[90].mxu0 %vm3555_vm6, %v6660_v59  ;;  %v31449_v59 = vpop.xlane.xlu1 %3749 }
 0x52a   :  { %v28250_v30 = vpop.eup %28249  ;;  %26784 = vmatpush3.msra.mxu0 %v36376_v58  ;;  %26785 = vmatprep.mubr.msk.f32.mxu0 %vm28952_vm5, %v36187_v26  ;;  %v36381_v58 = vld [vmem:[#allocation110_spill] sm:$0xff] }
 0x52b   :  { %26793 = vmatprep.subr.mxu0 %v36187_v26  ;;  %v6664_v7 = vmul.f32 %v28250_v30, %v31194_v34 }
 0x52d   :  { %26786 = vmatmul.mubr.msk.f32.vlgmr.msra.gmra.mrb[92].mxu0 %vm3555_vm6, %v6664_v7  ;;  %9048 = vrot.lane.b32.xlu0 %v6735_v56, %s28951_s16  ;;  %v6543_v0 = vpop.xlane.xlu0 %6542  ;;  %v31458_v30 = vpop.xlane.xlu1 %3755 }
 0x52e   :  { %v28252_v44 = vpop.eup %28251  ;;  %26794 = vmatpush3.msra.mxu0 %v36377_v62  ;;  %26795 = vmatprep.mubr.msk.f32.mxu0 %vm28952_vm5, %v36187_v26  ;;  %28255 = vrcp.f32 %v6543_v0 }
 0x52f   :  { %26803 = vmatprep.subr.mxu0 %v36187_v26  ;;  %v6668_v6 = vmul.f32 %v28252_v44, %v31200_v51  ;;  %v3664_v51 = vsub.f32 %v30826_v37, %v31127_v36  ;;  %v36380_v36 = vld [vmem:[#allocation55_spill] sm:$0xff]  ;;  %v36382_v44 = vld [vmem:[#allocation61_spill] sm:$0xff] }
 0x531   :  { %26796 = vmatmul.mubr.msk.f32.vlgmr.msra.gmra.mrb[94].mxu0 %vm3555_vm6, %v6668_v6  ;;  %v6600_v29 = vpop.xlane.xlu0 %6599 }
 0x532   :  { %v28254_v34 = vpop.eup %28253  ;;  %26804 = vmatpush3.msra.mxu0 %v36378_v17  ;;  %26805 = vmatprep.mubr.msk.f32.mxu0 %vm28952_vm5, %v36187_v26  ;;  %28257 = vrcp.f32 %v6600_v29 }
 0x533   :  { %26813 = vmatprep.subr.mxu0 %v36187_v26  ;;  %v6672_v38 = vmul.f32 %v28254_v34, %v31205_v55  ;;  %v3708_v55 = vmul.f32 1.442695, %v3664_v51 }
 0x535   :  { %26806 = vmatmul.mubr.msk.f32.vlgmr.msra.gmra.mrb[96].mxu0 %vm3555_vm6, %v6672_v38  ;;  %v6549_v21 = vpop.xlane.xlu0 %6548  ;;  %v36383_v38 = vld [vmem:[#allocation116_spill] sm:$0xff] }
 0x536   :  { %26814 = vmatpush3.msra.mxu0 %v36379_v19  ;;  %26815 = vmatprep.mubr.msk.f32.mxu0 %vm28952_vm5, %v36187_v26  ;;  %28259 = vrcp.f32 %v6549_v21 }
 0x537   :  { %26823 = vmatprep.subr.mxu0 %v36187_v26 }
 0x538   :  { %v28256_v15 = vpop.eup %28255 }
 0x539   :  { %v6606_v2 = vpop.xlane.xlu0 %6605  ;;  %v6638_v53 = vmul.f32 %v28256_v15, %v31211_v52 }
 0x53a   :  { %28261 = vrcp.f32 %v6606_v2  ;;  %v36385_v2 = vld [vmem:[#allocation122_spill] sm:$0xff] }
 0x53b   :  { %28263 = vpow2.f32 %v3708_v55  ;;  %26721 = vmatmul.mubr.msk.f32.vlgmr.msra.gmra.mrb[80].mxu1 %vm3555_vm6, %v6638_v53  ;;  %v36384_v55 = vld [vmem:[#allocation66_spill] sm:$0xff] }
 0x53c   :  { %v28258_v37 = vpop.eup %28257  ;;  %28265 = vpow2.f32 %v3710_v54  ;;  %26729 = vmatpush3.msra.mxu1 %v36380_v36  ;;  %26730 = vmatprep.mubr.msk.f32.mxu1 %vm28952_vm5, %v36187_v26 }
 0x53d   :  { %v6555_v14 = vpop.xlane.xlu0 %6554  ;;  %v6676_v49 = vmul.f32 %v28258_v37, %v31216_v8  ;;  %26738 = vmatprep.subr.mxu1 %v36187_v26 }
 0x53e   :  { %28267 = vrcp.f32 %v6555_v14  ;;  %v36386_v14 = vld [vmem:[#allocation11_spill] sm:$0xff] }
 0x53f   :  { %26816 = vmatmul.mubr.msk.f32.vlgmr.msra.gmra.mrb[98].mxu0 %vm3555_vm6, %v6676_v49  ;;  %v31503_v49 = vunpack.i.h.bf16 %v36386_v14 }
 0x540   :  { %v28260_v52 = vpop.eup %28259  ;;  %26824 = vmatpush3.msra.mxu0 %v36381_v58  ;;  %26825 = vmatprep.mubr.msk.f32.mxu0 %vm28952_vm5, %v36187_v26 }
 0x541   :  { %v6612_v7 = vpop.xlane.xlu0 %6611  ;;  %v6642_v56 = vmul.f32 %v28260_v52, %v31221_v18  ;;  %26833 = vmatprep.subr.mxu0 %v36187_v26  ;;  %v31475_v18 = vpop.xlane.xlu1 %3761  ;;  %v36387_v52 = vld [vmem:[#allocation72_spill] sm:$0xff] }
 0x542   :  { %28269 = vrcp.f32 %v6612_v7 }
 0x543   :  { %26731 = vmatmul.mubr.msk.f32.vlgmr.msra.gmra.mrb[82].mxu1 %vm3555_vm6, %v6642_v56 }
 0x544   :  { %v28262_v8 = vpop.eup %28261  ;;  %26739 = vmatpush3.msra.mxu1 %v36382_v44  ;;  %26740 = vmatprep.mubr.msk.f32.mxu1 %vm28952_vm5, %v36187_v26 }
 0x545   :  { %v31469_v62 = vpop.eup %28263  ;;  %v6561_v6 = vpop.xlane.xlu0 %6560  ;;  %v6680_v0 = vmul.f32 %v28262_v8, %v31228_v57  ;;  %26748 = vmatprep.subr.mxu1 %v36187_v26  ;;  %v36388_v8 = vld [vmem:[#allocation128_spill] sm:$0xff] }
 0x546   :  { %v31473_v34 = vpop.eup %28265  ;;  %28271 = vrcp.f32 %v6561_v6  ;;  %v3784_v29 = vsel %vm3555_vm6, %v31469_v62, 0.0  ;;  %v31488_v21 = vpop.xlane.xlu1 %3767  ;;  %v36389_v6 = vld [vmem:[#allocation13_spill] sm:$0xff] }
 0x547   :  { %26826 = vmatmul.mubr.msk.f32.vlgmr.msra.gmra.mrb[100].mxu0 %vm3555_vm6, %v6680_v0  ;;  %v3787_v57 = vsel %vm3555_vm6, %v31473_v34, 0.0  ;;  %v3913_v0 = vmul.f32 %v31503_v49, %v36389_v6 }
 0x548   :  { %v28268_v17 = vpop.eup %28267  ;;  %26834 = vmatpush3.msra.mxu0 %v36383_v38  ;;  %26835 = vmatprep.mubr.msk.f32.mxu0 %vm28952_vm5, %v36187_v26 }
 0x549   :  { %v6618_v51 = vpop.xlane.xlu0 %6617  ;;  %v6646_v19 = vmul.f32 %v28268_v17, %v31235_v10  ;;  %26843 = vmatprep.subr.mxu0 %v36187_v26 }
 0x54a   :  { %28273 = vrcp.f32 %v6618_v51 }
 0x54b   :  { %3785 = vadd.xlane.f32.xlu1 %v3784_v29  ;;  %26741 = vmatmul.mubr.msk.f32.vlgmr.msra.gmra.mrb[84].mxu1 %vm3555_vm6, %v6646_v19  ;;  %v36390_v29 = vld [vmem:[#allocation78_spill] sm:$0xff] }
 0x54c   :  { %3788 = vadd.xlane.f32.xlu0 %v3787_v57  ;;  %v28270_v33 = vpop.eup %28269  ;;  %26749 = vmatpush3.msra.mxu1 %v36384_v55 }
 0x54d   :  { %26750 = vmatprep.mubr.msk.f32.mxu1 %vm28952_vm5, %v36187_v26  ;;  %v6567_v15 = vpop.xlane.xlu0 %6566  ;;  %v6684_v54 = vmul.f32 %v28270_v33, %v31242_v43  ;;  %26758 = vmatprep.subr.mxu1 %v36187_v26 }
 0x54e   :  { %28275 = vrcp.f32 %v6567_v15 }
 0x54f   :  { %26836 = vmatmul.mubr.msk.f32.vlgmr.msra.gmra.mrb[102].mxu0 %vm3555_vm6, %v6684_v54 }
 0x550   :  { %v28272_v10 = vpop.eup %28271  ;;  %26844 = vmatpush3.msra.mxu0 %v36385_v2  ;;  %26845 = vmatprep.mubr.msk.f32.mxu0 %vm28952_vm5, %v36187_v26 }
 0x551   :  { %v6597_v53 = vpop.xlane.xlu1 %6596  ;;  %v6624_v37 = vpop.xlane.xlu0 %6623  ;;  %v6650_v36 = vmul.f32 %v28272_v10, %v31248_v22  ;;  %26853 = vmatprep.subr.mxu0 %v36187_v26 }
 0x552   :  { %28277 = vrcp.f32 %v6624_v37 }
 0x553   :  { %26751 = vmatmul.mubr.msk.f32.vlgmr.msra.gmra.mrb[86].mxu1 %vm3555_vm6, %v6650_v36  ;;  %v3666_v36 = vsub.f32 %v30846_v1, %v31139_v12 }
 0x554   :  { %v28274_v43 = vpop.eup %28273  ;;  %26759 = vmatpush3.msra.mxu1 %v36387_v52  ;;  %26760 = vmatprep.mubr.msk.f32.mxu1 %vm28952_vm5, %v36187_v26 }
 0x555   :  { %v6603_v58 = vpop.xlane.xlu1 %6602  ;;  %v6573_v7 = vpop.xlane.xlu0 %6572  ;;  %v6688_v56 = vmul.f32 %v28274_v43, %v31254_v25  ;;  %26768 = vmatprep.subr.mxu1 %v36187_v26 }
 0x556   :  { %28279 = vrcp.f32 %v6573_v7 }
 0x557   :  { %26846 = vmatmul.mubr.msk.f32.vlgmr.msra.gmra.mrb[104].mxu0 %vm3555_vm6, %v6688_v56  ;;  %v3712_v56 = vmul.f32 1.442695, %v3666_v36 }
 0x558   :  { %v28276_v22 = vpop.eup %28275  ;;  %26854 = vmatpush3.msra.mxu0 %v36388_v8  ;;  %26855 = vmatprep.mubr.msk.f32.mxu0 %vm28952_vm5, %v36187_v26 }
 0x559   :  { %v6609_v44 = vpop.xlane.xlu1 %6608  ;;  %v6630_v17 = vpop.xlane.xlu0 %6629  ;;  %v6654_v38 = vmul.f32 %v28276_v22, %v31260_v60  ;;  %26863 = vmatprep.subr.mxu0 %v36187_v26  ;;  %v36391_v60 = vld [vmem:[#allocation14_spill] sm:$0xff] }
 0x55a   :  { %v3912_v33 = vmul.f32 %v31503_v49, %v36391_v60  ;;  %v36393_v22 = vld [vmem:[#allocation90_spill] sm:$0xff] }
 0x55b   :  { %26761 = vmatmul.mubr.msk.f32.vlgmr.msra.gmra.mrb[88].mxu1 %vm3555_vm6, %v6654_v38 }
 0x55c   :  { %9279 = vrot.lane.b32.xlu1 %v3913_v0, %s28951_s16  ;;  %v28278_v25 = vpop.eup %28277  ;;  %26769 = vmatpush3.msra.mxu1 %v36390_v29 }
 0x55d   :  { %v6615_v51 = vpop.xlane.xlu1 %6614  ;;  %26770 = vmatprep.mubr.msk.f32.mxu1 %vm28952_vm5, %v36187_v26  ;;  %v6579_v57 = vpop.xlane.xlu0 %6578  ;;  %v6692_v19 = vmul.f32 %v28278_v25, %v31268_v32  ;;  %26778 = vmatprep.subr.mxu1 %v36187_v26  ;;  %v36392_v32 = vld [vmem:[#allocation84_spill] sm:$0xff] }
 0x55e   :  { %28281 = vrcp.f32 %v6579_v57 }
 0x55f   :  { %26856 = vmatmul.mubr.msk.f32.vlgmr.msra.gmra.mrb[106].mxu0 %vm3555_vm6, %v6692_v19  ;;  %28283 = vrcp.f32 %v6630_v17  ;;  %v36394_v17 = vld [vmem:[#allocation96_spill] sm:$0xff] }
 0x560   :  { %v28280_v55 = vpop.eup %28279  ;;  %26865 = vmatprep.mubr.msk.f32.mxu0 %vm28952_vm5, %v36187_v26 }
 0x561   :  { %v6621_v15 = vpop.xlane.xlu1 %6620  ;;  %v31531_v54 = vpop.xlane.xlu0 %6635  ;;  %v6658_v10 = vmul.f32 %v28280_v55, %v31279_v11  ;;  %v3667_v11 = vsub.f32 %v30861_v23, %v31144_v63 }
 0x562   :  { %9202 = vrot.lane.b32.xlu0 %v3912_v33, %s28951_s16  ;;  %v36397_v33 = vld [vmem:[#allocation114_spill] sm:$0xff] }
 0x563   :  { %26771 = vmatmul.mubr.msk.f32.vlgmr.msra.gmra.mrb[90].mxu1 %vm3555_vm6, %v6658_v10  ;;  %v3714_v12 = vmul.f32 1.442695, %v3667_v11  ;;  %v36400_v11 = vld [vmem:[#allocation15_spill] sm:$0xff] }
 0x564   :  { %26779 = vmatpush3.msra.mxu1 %v36392_v32  ;;  %26780 = vmatprep.mubr.msk.f32.mxu1 %vm28952_vm5, %v36187_v26 }
 0x565   :  { %v6627_v2 = vpop.xlane.xlu1 %6626  ;;  %v6585_v37 = vpop.xlane.xlu0 %6584  ;;  %26788 = vmatprep.subr.mxu1 %v36187_v26 }
 0x566   :  { %28285 = vrcp.f32 %v6585_v37  ;;  %v36399_v37 = vld [vmem:[#allocation126_spill] sm:$0xff] }
 0x568   :  { %v28282_v43 = vpop.eup %28281 }
 0x569   :  { %v31541_v14 = vpop.xlane.xlu1 %6632  ;;  %v6591_v52 = vpop.xlane.xlu0 %6590  ;;  %v6662_v7 = vmul.f32 %v28282_v43, %v31302_v28 }
 0x56a   :  { %28287 = vrcp.f32 %v6591_v52  ;;  %v28284_v1 = vpop.eup %28283  ;;  %v3915_v52 = vmul.f32 %v31503_v49, %v36400_v11 }
 0x56b   :  { %26781 = vmatmul.mubr.msk.f32.vlgmr.msra.gmra.mrb[92].mxu1 %vm3555_vm6, %v6662_v7  ;;  %28289 = vrcp.f32 %v6597_v53  ;;  %v6696_v28 = vmul.f32 %v28284_v1, %v31290_v50  ;;  %v36404_v1 = vld [vmem:[#allocation154_spill] sm:$0xff] }
 0x56c   :  { %26789 = vmatpush3.msra.mxu1 %v36393_v22  ;;  %26790 = vmatprep.mubr.msk.f32.mxu1 %vm28952_vm5, %v36187_v26  ;;  %28291 = vpow2.f32 %v3712_v56  ;;  %v36403_v56 = vld [vmem:[#allocation142_spill] sm:$0xff] }
 0x56d   :  { %v31548_v8 = vpop.xlane.xlu1 %3773  ;;  %26798 = vmatprep.subr.mxu1 %v36187_v26  ;;  %28293 = vrcp.f32 %v6603_v58  ;;  %v36395_v58 = vld [vmem:[#allocation102_spill] sm:$0xff]  ;;  %v31595_v10 = vpop.xlane.xlu0 %3776 }
 0x56e   :  { %28295 = vpow2.f32 %v3714_v12  ;;  %v36405_v12 = vld [vmem:[#allocation48_spill] sm:$0xff] }
 0x56f   :  { %28297 = vrcp.f32 %v6609_v44 }
 0x570   :  { %v28286_v23 = vpop.eup %28285  ;;  %28299 = vrcp.f32 %v6615_v51 }
 0x571   :  { %v8972_v63 = vpop.permute.xlu1 %8971  ;;  %v6666_v53 = vmul.f32 %v28286_v23, %v31320_v47  ;;  %28301 = vrcp.f32 %v6621_v15  ;;  %v8895_v43 = vpop.permute.xlu0 %8894  ;;  %v3669_v23 = vsub.f32 %v36405_v12, %v36404_v1 }
 0x572   :  { %26864 = vmatpush3.msra.mxu0 %v8972_v63  ;;  %28303 = vrcp.f32 %v6627_v2 }
 0x573   :  { %26866 = vmatmul.mubr.msk.f32.vlgmr.msra.gmra.mrb[108].mxu0 %vm3555_vm6, %v6696_v28  ;;  %26873 = vmatprep.subr.mxu0 %v36187_v26  ;;  %28305 = vrcp.f32 %v31531_v54 }
 0x574   :  { %26791 = vmatmul.mubr.msk.f32.vlgmr.msra.gmra.mrb[94].mxu1 %vm3555_vm6, %v6666_v53  ;;  %26875 = vmatprep.mubr.msk.f32.mxu0 %vm28952_vm5, %v36187_v26  ;;  %v28288_v0 = vpop.eup %28287  ;;  %28307 = vrcp.f32 %v31541_v14 }
 0x575   :  { %26799 = vmatpush3.msra.mxu1 %v36394_v17  ;;  %26800 = vmatprep.mubr.msk.f32.mxu1 %vm28952_vm5, %v36187_v26  ;;  %v6670_v50 = vmul.f32 %v28288_v0, %v31328_v4  ;;  %v28290_v47 = vpop.eup %28289  ;;  %v36396_v4 = vld [vmem:[#allocation108_spill] sm:$0xff]  ;;  %v3718_v0 = vmul.f32 1.442695, %v3669_v23 }
 0x576   :  { %26808 = vmatprep.subr.mxu1 %v36187_v26  ;;  %v31569_v38 = vpop.eup %28291  ;;  %v6674_v44 = vmul.f32 %v28290_v47, %v31270_v42 }
 0x577   :  { %v28294_v25 = vpop.eup %28293  ;;  %v3790_v51 = vsel %vm3555_vm6, %v31569_v38, 0.0 }
 0x578   :  { %26801 = vmatmul.mubr.msk.f32.vlgmr.msra.gmra.mrb[96].mxu1 %vm3555_vm6, %v6670_v50  ;;  %v31573_v29 = vpop.eup %28295  ;;  %v6678_v57 = vmul.f32 %v28294_v25, %v31281_v45  ;;  %v36398_v45 = vld [vmem:[#allocation120_spill] sm:$0xff] }
 0x579   :  { %26809 = vmatpush3.msra.mxu1 %v36395_v58  ;;  %26810 = vmatprep.mubr.msk.f32.mxu1 %vm28952_vm5, %v36187_v26  ;;  %v28298_v19 = vpop.eup %28297  ;;  %v3793_v42 = vsel %vm3555_vm6, %v31573_v29, 0.0 }
 0x57a   :  { %26818 = vmatprep.subr.mxu1 %v36187_v26  ;;  %v6682_v55 = vmul.f32 %v28298_v19, %v31292_v40  ;;  %v28300_v15 = vpop.eup %28299 }
 0x57b   :  { %v6686_v32 = vmul.f32 %v28300_v15, %v31304_v3  ;;  %v28302_v2 = vpop.eup %28301  ;;  %v36410_v15 = vld [vmem:[#allocation156_spill] sm:$0xff] }
 0x57c   :  { %26811 = vmatmul.mubr.msk.f32.vlgmr.msra.gmra.mrb[98].mxu1 %vm3555_vm6, %v6674_v44  ;;  %v6690_v40 = vmul.f32 %v28302_v2, %v31308_v20  ;;  %v28304_v36 = vpop.eup %28303  ;;  %v36401_v20 = vld [vmem:[#allocation16_spill] sm:$0xff] }
 0x57d   :  { %26819 = vmatpush3.msra.mxu1 %v36396_v4  ;;  %26820 = vmatprep.mubr.msk.f32.mxu1 %vm28952_vm5, %v36187_v26  ;;  %v6694_v3 = vmul.f32 %v28304_v36, %v31316_v5  ;;  %v3914_v7 = vmul.f32 %v31503_v49, %v36401_v20  ;;  %v36402_v5 = vld [vmem:[#allocation166_spill] sm:$0xff]  ;;  %v28306_v53 = vpop.eup %28305  ;;  %v36406_v4 = vld [vmem:[#allocation17_spill] sm:$0xff] }
 0x57e   :  { %26828 = vmatprep.subr.mxu1 %v36187_v26  ;;  %v3668_v22 = vsub.f32 %v36403_v56, %v36402_v5  ;;  %v28308_v50 = vpop.eup %28307  ;;  %v6700_v54 = vmul.f32 %v28306_v53, %v31312_v39  ;;  %v36413_v5 = vld [vmem:[#allocation155_spill] sm:$0xff] }
 0x57f   :  { %v6698_v58 = vmul.f32 %v28308_v50, %v31324_v31 }
 0x580   :  { %3791 = vadd.xlane.f32.xlu1 %v3790_v51  ;;  %26821 = vmatmul.mubr.msk.f32.vlgmr.msra.gmra.mrb[100].mxu1 %vm3555_vm6, %v6678_v57  ;;  %v3716_v63 = vmul.f32 1.442695, %v3668_v22  ;;  %v3917_v51 = vmul.f32 %v31503_v49, %v36406_v4  ;;  %v36407_v57 = vld [vmem:[#allocation18_spill] sm:$0xff] }
 0x581   :  { %3794 = vadd.xlane.f32.xlu0 %v3793_v42  ;;  %26829 = vmatpush3.msra.mxu1 %v36397_v33  ;;  %v3916_v19 = vmul.f32 %v31503_v49, %v36407_v57  ;;  %v36408_v42 = vld [vmem:[#allocation167_spill] sm:$0xff] }
 0x582   :  { %26830 = vmatprep.mubr.msk.f32.mxu1 %vm28952_vm5, %v36187_v26  ;;  %26838 = vmatprep.subr.mxu1 %v36187_v26  ;;  %28309 = vpow2.f32 %v3716_v63  ;;  %v36409_v33 = vld [vmem:[#allocation143_spill] sm:$0xff]  ;;  %v36414_v63 = vld [vmem:[#allocation20_spill] sm:$0xff] }
 0x583   :  { %28311 = vpow2.f32 %v3718_v0  ;;  %v3919_v53 = vmul.f32 %v31503_v49, %v36414_v63  ;;  %v36415_v0 = vld [vmem:[#allocation19_spill] sm:$0xff] }
 0x584   :  { %26831 = vmatmul.mubr.msk.f32.vlgmr.msra.gmra.mrb[102].mxu1 %vm3555_vm6, %v6682_v55  ;;  %28313 = vrcp.f32 %v31346_v61  ;;  %v3670_v55 = vsub.f32 %v36409_v33, %v36408_v42  ;;  %v3918_v50 = vmul.f32 %v31503_v49, %v36415_v0 }
 0x585   :  { %26839 = vmatpush3.msra.mxu1 %v36398_v45  ;;  %26840 = vmatprep.mubr.msk.f32.mxu1 %vm28952_vm5, %v36187_v26  ;;  %28315 = vrcp.f32 %v31449_v59  ;;  %v36411_v45 = vld [vmem:[#allocation49_spill] sm:$0xff] }
 0x586   :  { %26848 = vmatprep.subr.mxu1 %v36187_v26  ;;  %v3720_v2 = vmul.f32 1.442695, %v3670_v55 }
 0x588   :  { %26841 = vmatmul.mubr.msk.f32.vlgmr.msra.gmra.mrb[104].mxu1 %vm3555_vm6, %v6686_v32  ;;  %v3671_v32 = vsub.f32 %v36411_v45, %v36410_v15  ;;  %28317 = vpow2.f32 %v3720_v2  ;;  %v36421_v2 = vld [vmem:[#allocation157_spill] sm:$0xff] }
 0x589   :  { %26849 = vmatpush3.msra.mxu1 %v36399_v37  ;;  %26850 = vmatprep.mubr.msk.f32.mxu1 %vm28952_vm5, %v36187_v26 }
 0x58a   :  { %26858 = vmatprep.subr.mxu1 %v36187_v26  ;;  %v3722_v36 = vmul.f32 1.442695, %v3671_v32  ;;  %v36420_v32 = vld [vmem:[#allocation151_spill] sm:$0xff] }
 0x58c   :  { %26851 = vmatmul.mubr.msk.f32.vlgmr.msra.gmra.mrb[106].mxu1 %vm3555_vm6, %v6690_v40  ;;  %v31639_v39 = vpop.eup %28309  ;;  %28319 = vpow2.f32 %v3722_v36 }
 0x58d   :  { %26859 = vmatpush3.msra.mxu1 %v8895_v43  ;;  %26860 = vmatprep.mubr.msk.f32.mxu1 %vm28952_vm5, %v36187_v26  ;;  %v31641_v44 = vpop.eup %28311  ;;  %v3796_v31 = vsel %vm3555_vm6, %v31639_v39, 0.0  ;;  %28321 = vrcp.f32 %v31355_v24 }
 0x58e   :  { %26868 = vmatprep.subr.mxu1 %v36187_v26  ;;  %v3799_v25 = vsel %vm3555_vm6, %v31641_v44, 0.0  ;;  %v28314_v40 = vpop.eup %28313  ;;  %28323 = vrcp.f32 %v31458_v30 }
 0x590   :  { %26861 = vmatmul.mubr.msk.f32.vlgmr.msra.gmra.mrb[108].mxu1 %vm3555_vm6, %v6694_v3  ;;  %v28316_v3 = vpop.eup %28315 }
 0x591   :  { %9433 = vrot.lane.b32.xlu1 %v3915_v52, %s28951_s16  ;;  %26870 = vmatprep.mubr.msk.f32.mxu1 %vm28952_vm5, %v36187_v26  ;;  %v3845_v56 = vmul.f32 %v28316_v3, %v36413_v5  ;;  %v36423_v5 = vld [vmem:[#allocation21_spill] sm:$0xff] }
 0x592   :  { %v31673_v22 = vpop.eup %28317 }
 0x593   :  { %v3802_v12 = vsel %vm3555_vm6, %v31673_v22, 0.0 }
 0x596   :  { %v31675_v1 = vpop.eup %28319 }
 0x597   :  { %9356 = vrot.lane.b32.xlu0 %v3914_v7, %s28951_s16  ;;  %v36412_v7 = vld [vmem:[#allocation150_spill] sm:$0xff]  ;;  %v3805_v23 = vsel %vm3555_vm6, %v31675_v1, 0.0  ;;  %v28322_v42 = vpop.eup %28321 }
 0x598   :  { %v3847_v61 = vmul.f32 %v28314_v40, %v36412_v7  ;;  %v28324_v15 = vpop.eup %28323  ;;  %v3851_v24 = vmul.f32 %v28322_v42, %v36420_v32 }
 0x599   :  { %v3849_v40 = vmul.f32 %v28324_v15, %v36421_v2  ;;  %v36428_v15 = vld [vmem:[#allocation152_spill] sm:$0xff] }
 0x5a2   :  { %v31625_v28 = vpop.xlane.xlu1 %3779 }
 0x5a4   :  { %v31627_v17 = vpop.xlane.xlu0 %3782 }
 0x5a6   :  { %v9126_v47 = vpop.permute.xlu1 %9125 }
 0x5a7   :  { %26874 = vmatpush3.msra.mxu0 %v9126_v47  ;;  %v36416_v47 = vld [vmem:[#allocation168_spill] sm:$0xff] }
 0x5a8   :  { %v9049_v14 = vpop.permute.xlu0 %9048  ;;  %26876 = vmatmul.mubr.msk.f32.vlgmr.msra.gmra.mrb[110].mxu0 %vm3555_vm6, %v6700_v54  ;;  %26883 = vmatprep.subr.mxu0 %v36187_v26  ;;  %v36417_v54 = vld [vmem:[#allocation144_spill] sm:$0xff] }
 0x5a9   :  { %26869 = vmatpush3.msra.mxu1 %v9049_v14  ;;  %26885 = vmatprep.mubr.msk.f32.mxu0 %vm28952_vm5, %v36187_v26  ;;  %v3672_v14 = vsub.f32 %v36417_v54, %v36416_v47  ;;  %v36427_v47 = vld [vmem:[#allocation137_spill] sm:$0xff] }
 0x5aa   :  { %26871 = vmatmul.mubr.msk.f32.vlgmr.msra.gmra.mrb[110].mxu1 %vm3555_vm6, %v6698_v58  ;;  %26878 = vmatprep.subr.mxu1 %v36187_v26  ;;  %v36418_v58 = vld [vmem:[#allocation158_spill] sm:$0xff] }
 0x5ab   :  { %26880 = vmatprep.mubr.msk.f32.mxu1 %vm28952_vm5, %v36187_v26 }
 0x5b5   :  { %3797 = vadd.xlane.f32.xlu1 %v3796_v31  ;;  %v36419_v31 = vld [vmem:[#allocation136_spill] sm:$0xff] }
 0x5b6   :  { %3800 = vadd.xlane.f32.xlu0 %v3799_v25  ;;  %v3673_v25 = vsub.f32 %v36419_v31, %v36418_v58 }
 0x5b8   :  { %v3726_v33 = vmul.f32 1.442695, %v3673_v25 }
 0x5c6   :  { %9587 = vrot.lane.b32.xlu1 %v3917_v51, %s28951_s16  ;;  %v3724_v51 = vmul.f32 1.442695, %v3672_v14 }
 0x5c8   :  { %28325 = vpow2.f32 %v3724_v51 }
 0x5c9   :  { %28327 = vpow2.f32 %v3726_v33 }
 0x5ca   :  { %28329 = vrcp.f32 %v31360_v13 }
 0x5cb   :  { %28331 = vrcp.f32 %v31475_v18 }
 0x5cc   :  { %9510 = vrot.lane.b32.xlu0 %v3916_v19, %s28951_s16 }
 0x5d2   :  { %v31707_v36 = vpop.eup %28325 }
 0x5d3   :  { %v31709_v3 = vpop.eup %28327 }
 0x5d4   :  { %v3811_v7 = vsel %vm3555_vm6, %v31709_v3, 0.0  ;;  %v28330_v31 = vpop.eup %28329 }
 0x5d5   :  { %v28332_v42 = vpop.eup %28331  ;;  %v3855_v13 = vmul.f32 %v28330_v31, %v36428_v15 }
 0x5d8   :  { %v31659_v37 = vpop.xlane.xlu1 %3785 }
 0x5d9   :  { %v31661_v43 = vpop.xlane.xlu0 %3788 }
 0x5dc   :  { %v9280_v52 = vpop.permute.xlu1 %9279 }
 0x5dd   :  { %v9203_v59 = vpop.permute.xlu0 %9202  ;;  %26884 = vmatpush3.msra.mxu0 %v9280_v52  ;;  %v3808_v52 = vsel %vm3555_vm6, %v31707_v36, 0.0 }
 0x5de   :  { %26879 = vmatpush3.msra.mxu1 %v9203_v59  ;;  %26886 = vmatmul.mubr.msk.f32.vlgmr.msra.gmra.mrb[80].mxu0 %vm3555_vm6, %v3847_v61  ;;  %v36422_v61 = vld [vmem:[#allocation22_spill] sm:$0xff] }
 0x5df   :  { %26881 = vmatmul.mubr.msk.f32.vlgmr.msra.gmra.mrb[80].mxu1 %vm3555_vm6, %v3845_v56  ;;  %26888 = vmatprep.subr.mxu1 %v36187_v26  ;;  %v3921_v59 = vmul.f32 %v31503_v49, %v36422_v61  ;;  %v3920_v56 = vmul.f32 %v31503_v49, %v36423_v5 }
 0x5e0   :  { %26893 = vmatprep.subr.mxu0 %v36187_v26  ;;  %26890 = vmatprep.mubr.msk.f32.mxu1 %vm28952_vm5, %v36187_v26 }
 0x5e1   :  { %26895 = vmatprep.mubr.msk.f32.mxu0 %vm28952_vm5, %v36187_v26 }
 0x5ea   :  { %3803 = vadd.xlane.f32.xlu1 %v3802_v12  ;;  %v36424_v12 = vld [vmem:[#allocation169_spill] sm:$0xff] }
 0x5eb   :  { %3806 = vadd.xlane.f32.xlu0 %v3805_v23  ;;  %v36425_v23 = vld [vmem:[#allocation145_spill] sm:$0xff] }
 0x5fb   :  { %9741 = vrot.lane.b32.xlu1 %v3919_v53, %s28951_s16  ;;  %v3674_v53 = vsub.f32 %v36425_v23, %v36424_v12  ;;  %v36432_v12 = vld [vmem:[#allocation170_spill] sm:$0xff] }
 0x5fc   :  { %v36433_v23 = vld [vmem:[#allocation146_spill] sm:$0xff] }
 0x5fd   :  { %v3728_v14 = vmul.f32 1.442695, %v3674_v53  ;;  %v3676_v53 = vsub.f32 %v36433_v23, %v36432_v12  ;;  %v36438_v12 = vld [vmem:[#allocation26_spill] sm:$0xff] }
 0x5fe   :  { %v3925_v23 = vmul.f32 %v31503_v49, %v36438_v12 }
 0x5ff   :  { %28333 = vpow2.f32 %v3728_v14  ;;  %v3732_v14 = vmul.f32 1.442695, %v3676_v53  ;;  %v36439_v53 = vld [vmem:[#allocation25_spill] sm:$0xff] }
 0x601   :  { %9664 = vrot.lane.b32.xlu0 %v3918_v50, %s28951_s16  ;;  %v36426_v50 = vld [vmem:[#allocation161_spill] sm:$0xff] }
 0x602   :  { %v3675_v54 = vsub.f32 %v36427_v47, %v36426_v50  ;;  %v36434_v50 = vld [vmem:[#allocation162_spill] sm:$0xff] }
 0x603   :  { %v36435_v47 = vld [vmem:[#allocation138_spill] sm:$0xff] }
 0x604   :  { %v3730_v25 = vmul.f32 1.442695, %v3675_v54  ;;  %v3677_v54 = vsub.f32 %v36435_v47, %v36434_v50  ;;  %v3924_v50 = vmul.f32 %v31503_v49, %v36439_v53  ;;  %v36440_v47 = vld [vmem:[#allocation171_spill] sm:$0xff] }
 0x606   :  { %28335 = vpow2.f32 %v3730_v25 }
 0x607   :  { %28337 = vrcp.f32 %v31366_v35 }
 0x608   :  { %28339 = vrcp.f32 %v31488_v21 }
 0x609   :  { %28341 = vpow2.f32 %v3732_v14 }
 0x60d   :  { %v31693_v19 = vpop.xlane.xlu1 %3791 }
 0x60e   :  { %v31695_v55 = vpop.xlane.xlu0 %3794 }
 0x611   :  { %v9434_v45 = vpop.permute.xlu1 %9433 }
 0x612   :  { %v9357_v30 = vpop.permute.xlu0 %9356  ;;  %26894 = vmatpush3.msra.mxu0 %v9434_v45  ;;  %v36429_v45 = vld [vmem:[#allocation159_spill] sm:$0xff] }
 0x613   :  { %26889 = vmatpush3.msra.mxu1 %v9357_v30  ;;  %26896 = vmatmul.mubr.msk.f32.vlgmr.msra.gmra.mrb[82].mxu0 %vm3555_vm6, %v3851_v24  ;;  %v3853_v32 = vmul.f32 %v28332_v42, %v36429_v45  ;;  %v31741_v24 = vpop.eup %28333  ;;  %v3734_v42 = vmul.f32 1.442695, %v3677_v54  ;;  %v36437_v45 = vld [vmem:[#allocation160_spill] sm:$0xff]  ;;  %v36441_v54 = vld [vmem:[#allocation147_spill] sm:$0xff] }
 0x614   :  { %26891 = vmatmul.mubr.msk.f32.vlgmr.msra.gmra.mrb[82].mxu1 %vm3555_vm6, %v3849_v40  ;;  %26898 = vmatprep.subr.mxu1 %v36187_v26  ;;  %v31743_v30 = vpop.eup %28335  ;;  %v3814_v2 = vsel %vm3555_vm6, %v31741_v24, 0.0  ;;  %v3678_v14 = vsub.f32 %v36441_v54, %v36440_v47  ;;  %v36444_v47 = vld [vmem:[#allocation28_spill] sm:$0xff] }
 0x615   :  { %26903 = vmatprep.subr.mxu0 %v36187_v26  ;;  %26900 = vmatprep.mubr.msk.f32.mxu1 %vm28952_vm5, %v36187_v26  ;;  %v3817_v40 = vsel %vm3555_vm6, %v31743_v30, 0.0  ;;  %v28338_v25 = vpop.eup %28337  ;;  %28343 = vpow2.f32 %v3734_v42  ;;  %v36443_v42 = vld [vmem:[#allocation139_spill] sm:$0xff]  ;;  %v3927_v54 = vmul.f32 %v31503_v49, %v36444_v47 }
 0x616   :  { %26905 = vmatprep.mubr.msk.f32.mxu0 %vm28952_vm5, %v36187_v26  ;;  %v28340_v15 = vpop.eup %28339  ;;  %28345 = vrcp.f32 %v31595_v10 }
 0x617   :  { %28347 = vrcp.f32 %v31548_v8 }
 0x61f   :  { %3809 = vadd.xlane.f32.xlu1 %v3808_v52  ;;  %v36430_v52 = vld [vmem:[#allocation24_spill] sm:$0xff] }
 0x620   :  { %3812 = vadd.xlane.f32.xlu0 %v3811_v7  ;;  %v3923_v7 = vmul.f32 %v31503_v49, %v36430_v52 }
 0x630   :  { %9895 = vrot.lane.b32.xlu1 %v3921_v59, %s28951_s16  ;;  %v36431_v59 = vld [vmem:[#allocation23_spill] sm:$0xff] }
 0x636   :  { %9818 = vrot.lane.b32.xlu0 %v3920_v56, %s28951_s16  ;;  %v3922_v56 = vmul.f32 %v31503_v49, %v36431_v59 }
 0x642   :  { %v31727_v58 = vpop.xlane.xlu1 %3797 }
 0x643   :  { %v31729_v51 = vpop.xlane.xlu0 %3800 }
 0x646   :  { %v9588_v33 = vpop.permute.xlu1 %9587 }
 0x647   :  { %v9511_v18 = vpop.permute.xlu0 %9510  ;;  %26904 = vmatpush3.msra.mxu0 %v9588_v33 }
 0x648   :  { %26899 = vmatpush3.msra.mxu1 %v9511_v18  ;;  %26906 = vmatmul.mubr.msk.f32.vlgmr.msra.gmra.mrb[84].mxu0 %vm3555_vm6, %v3855_v13  ;;  %v36436_v18 = vld [vmem:[#allocation153_spill] sm:$0xff] }
 0x649   :  { %26901 = vmatmul.mubr.msk.f32.vlgmr.msra.gmra.mrb[84].mxu1 %vm3555_vm6, %v3853_v32  ;;  %26908 = vmatprep.subr.mxu1 %v36187_v26  ;;  %v3859_v35 = vmul.f32 %v28338_v25, %v36436_v18  ;;  %v3857_v32 = vmul.f32 %v28340_v15, %v36437_v45  ;;  %v36442_v25 = vld [vmem:[#allocation163_spill] sm:$0xff] }
 0x64a   :  { %26913 = vmatprep.subr.mxu0 %v36187_v26  ;;  %26910 = vmatprep.mubr.msk.f32.mxu1 %vm28952_vm5, %v36187_v26  ;;  %v3679_v15 = vsub.f32 %v36443_v42, %v36442_v25  ;;  %v36446_v42 = vld [vmem:[#allocation172_spill] sm:$0xff] }
 0x64b   :  { %26915 = vmatprep.mubr.msk.f32.mxu0 %vm28952_vm5, %v36187_v26 }
 0x654   :  { %3815 = vadd.xlane.f32.xlu1 %v3814_v2  ;;  %v31775_v2 = vpop.eup %28341 }
 0x655   :  { %3818 = vadd.xlane.f32.xlu0 %v3817_v40  ;;  %v31777_v40 = vpop.eup %28343 }
 0x665   :  { %10049 = vrot.lane.b32.xlu1 %v3923_v7, %s28951_s16  ;;  %v3820_v7 = vsel %vm3555_vm6, %v31775_v2, 0.0 }
 0x66b   :  { %9972 = vrot.lane.b32.xlu0 %v3922_v56, %s28951_s16  ;;  %v3823_v56 = vsel %vm3555_vm6, %v31777_v40, 0.0 }
 0x677   :  { %v31761_v31 = vpop.xlane.xlu1 %3803 }
 0x678   :  { %v31763_v33 = vpop.xlane.xlu0 %3806 }
 0x67b   :  { %v9742_v13 = vpop.permute.xlu1 %9741 }
 0x67c   :  { %v9665_v21 = vpop.permute.xlu0 %9664  ;;  %26914 = vmatpush3.msra.mxu0 %v9742_v13  ;;  %v3736_v13 = vmul.f32 1.442695, %v3678_v14  ;;  %v36445_v14 = vld [vmem:[#allocation27_spill] sm:$0xff] }
 0x67d   :  { %26909 = vmatpush3.msra.mxu1 %v9665_v21  ;;  %26916 = vmatmul.mubr.msk.f32.vlgmr.msra.gmra.mrb[86].mxu0 %vm3555_vm6, %v3859_v35  ;;  %v28346_v35 = vpop.eup %28345  ;;  %v3738_v21 = vmul.f32 1.442695, %v3679_v15  ;;  %v3926_v25 = vmul.f32 %v31503_v49, %v36445_v14  ;;  %v36447_v15 = vld [vmem:[#allocation148_spill] sm:$0xff] }
 0x67e   :  { %26911 = vmatmul.mubr.msk.f32.vlgmr.msra.gmra.mrb[86].mxu1 %vm3555_vm6, %v3857_v32  ;;  %26918 = vmatprep.subr.mxu1 %v36187_v26  ;;  %v28348_v32 = vpop.eup %28347  ;;  %28349 = vpow2.f32 %v3736_v13  ;;  %v3863_v10 = vmul.f32 %v28346_v35, %v31336_v41  ;;  %v3680_v13 = vsub.f32 %v36447_v15, %v36446_v42  ;;  %v36448_v35 = vld [vmem:[#allocation164_spill] sm:$0xff] }
 0x67f   :  { %26923 = vmatprep.subr.mxu0 %v36187_v26  ;;  %26920 = vmatprep.mubr.msk.f32.mxu1 %vm28952_vm5, %v36187_v26  ;;  %28351 = vpow2.f32 %v3738_v21  ;;  %v36449_v21 = vld [vmem:[#allocation140_spill] sm:$0xff] }
 0x680   :  { %26925 = vmatprep.mubr.msk.f32.mxu0 %vm28952_vm5, %v36187_v26  ;;  %28353 = vrcp.f32 %v31627_v17 }
 0x681   :  { %28355 = vrcp.f32 %v31625_v28 }
 0x688   :  { %v31809_v41 = vpop.eup %28349 }
 0x689   :  { %3821 = vadd.xlane.f32.xlu1 %v3820_v7 }
 0x68a   :  { %3824 = vadd.xlane.f32.xlu0 %v3823_v56  ;;  %v3861_v56 = vmul.f32 %v28348_v32, %v31332_v16  ;;  %v3826_v16 = vsel %vm3555_vm6, %v31809_v41, 0.0  ;;  %v3681_v32 = vsub.f32 %v36449_v21, %v36448_v35  ;;  %v36451_v21 = vld [vmem:[#allocation31_spill] sm:$0xff] }
 0x69a   :  { %10203 = vrot.lane.b32.xlu1 %v3925_v23, %s28951_s16  ;;  %v31811_v23 = vpop.eup %28351 }
 0x6a0   :  { %10126 = vrot.lane.b32.xlu0 %v3924_v50, %s28951_s16  ;;  %v3829_v50 = vsel %vm3555_vm6, %v31811_v23, 0.0 }
 0x6ac   :  { %v31795_v18 = vpop.xlane.xlu1 %3809 }
 0x6ad   :  { %v31797_v45 = vpop.xlane.xlu0 %3812 }
 0x6b0   :  { %v9896_v7 = vpop.permute.xlu1 %9895 }
 0x6b1   :  { %v9819_v8 = vpop.permute.xlu0 %9818  ;;  %26924 = vmatpush3.msra.mxu0 %v9896_v7  ;;  %v3740_v7 = vmul.f32 1.442695, %v3680_v13  ;;  %v36450_v13 = vld [vmem:[#allocation33_spill] sm:$0xff] }
 0x6b2   :  { %26919 = vmatpush3.msra.mxu1 %v9819_v8  ;;  %26926 = vmatmul.mubr.msk.f32.vlgmr.msra.gmra.mrb[88].mxu0 %vm3555_vm6, %v3863_v10  ;;  %v28354_v8 = vpop.eup %28353  ;;  %v3929_v35 = vmul.f32 %v31503_v49, %v36450_v13 }
 0x6b3   :  { %26921 = vmatmul.mubr.msk.f32.vlgmr.msra.gmra.mrb[88].mxu1 %vm3555_vm6, %v3861_v56  ;;  %26928 = vmatprep.subr.mxu1 %v36187_v26  ;;  %v3742_v56 = vmul.f32 1.442695, %v3681_v32  ;;  %28357 = vpow2.f32 %v3740_v7  ;;  %v3867_v17 = vmul.f32 %v28354_v8, %v31371_v48  ;;  %v3928_v32 = vmul.f32 %v31503_v49, %v36451_v21  ;;  %v36452_v7 = vld [vmem:[#allocation34_spill] sm:$0xff] }
 0x6b4   :  { %26933 = vmatprep.subr.mxu0 %v36187_v26  ;;  %26930 = vmatprep.mubr.msk.f32.mxu1 %vm28952_vm5, %v36187_v26  ;;  %v3930_v8 = vmul.f32 %v31503_v49, %v36452_v7 }
 0x6b5   :  { %26935 = vmatprep.mubr.msk.f32.mxu0 %vm28952_vm5, %v36187_v26  ;;  %28359 = vpow2.f32 %v3742_v56  ;;  %v36453_v56 = vld [vmem:[#allocation173_spill] sm:$0xff] }
 0x6b6   :  { %28361 = vrcp.f32 %v31661_v43 }
 0x6b7   :  { %28363 = vrcp.f32 %v31659_v37 }
 0x6be   :  { %3827 = vadd.xlane.f32.xlu1 %v3826_v16 }
 0x6bf   :  { %3830 = vadd.xlane.f32.xlu0 %v3829_v50  ;;  %v28356_v50 = vpop.eup %28355 }
 0x6c0   :  { %v31843_v48 = vpop.eup %28357 }
 0x6c1   :  { %v31845_v42 = vpop.eup %28359 }
 0x6c2   :  { %v3835_v15 = vsel %vm3555_vm6, %v31845_v42, 0.0 }
 0x6cf   :  { %10357 = vrot.lane.b32.xlu1 %v3927_v54, %s28951_s16 }
 0x6d5   :  { %10280 = vrot.lane.b32.xlu0 %v3926_v25, %s28951_s16  ;;  %v3865_v25 = vmul.f32 %v28356_v50, %v31368_v9  ;;  %v3832_v9 = vsel %vm3555_vm6, %v31843_v48, 0.0  ;;  %v36454_v50 = vld [vmem:[#allocation149_spill] sm:$0xff] }
 0x6e1   :  { %v31829_v10 = vpop.xlane.xlu1 %3815 }
 0x6e2   :  { %v31831_v16 = vpop.xlane.xlu0 %3818 }
 0x6e5   :  { %v10050_v54 = vpop.permute.xlu1 %10049 }
 0x6e6   :  { %v9973_v28 = vpop.permute.xlu0 %9972  ;;  %26934 = vmatpush3.msra.mxu0 %v10050_v54  ;;  %v3682_v54 = vsub.f32 %v36454_v50, %v36453_v56  ;;  %v36458_v50 = vld [vmem:[#allocation37_spill] sm:$0xff] }
 0x6e7   :  { %26929 = vmatpush3.msra.mxu1 %v9973_v28  ;;  %26936 = vmatmul.mubr.msk.f32.vlgmr.msra.gmra.mrb[90].mxu0 %vm3555_vm6, %v3867_v17 }
 0x6e8   :  { %26931 = vmatmul.mubr.msk.f32.vlgmr.msra.gmra.mrb[90].mxu1 %vm3555_vm6, %v3865_v25  ;;  %26938 = vmatprep.subr.mxu1 %v36187_v26  ;;  %v3744_v17 = vmul.f32 1.442695, %v3682_v54  ;;  %v28362_v25 = vpop.eup %28361  ;;  %v3933_v54 = vmul.f32 %v31503_v49, %v36458_v50 }
 0x6e9   :  { %26943 = vmatprep.subr.mxu0 %v36187_v26  ;;  %26940 = vmatprep.mubr.msk.f32.mxu1 %vm28952_vm5, %v36187_v26  ;;  %v28364_v13 = vpop.eup %28363  ;;  %v3871_v43 = vmul.f32 %v28362_v25, %v31473_v34 }
 0x6ea   :  { %26945 = vmatprep.mubr.msk.f32.mxu0 %vm28952_vm5, %v36187_v26  ;;  %28365 = vpow2.f32 %v3744_v17  ;;  %v36459_v17 = vld [vmem:[#allocation38_spill] sm:$0xff] }
 0x6eb   :  { %v3934_v25 = vmul.f32 %v31503_v49, %v36459_v17 }
 0x6f3   :  { %3833 = vadd.xlane.f32.xlu1 %v3832_v9  ;;  %v36455_v9 = vld [vmem:[#allocation165_spill] sm:$0xff] }
 0x6f4   :  { %3836 = vadd.xlane.f32.xlu0 %v3835_v15  ;;  %v36456_v15 = vld [vmem:[#allocation141_spill] sm:$0xff]  ;;  %v31880_v34 = vpop.eup %28365 }
 0x704   :  { %10511 = vrot.lane.b32.xlu1 %v3929_v35, %s28951_s16  ;;  %v3683_v35 = vsub.f32 %v36456_v15, %v36455_v9  ;;  %v36460_v9 = vld [vmem:[#allocation35_spill] sm:$0xff] }
 0x705   :  { %v3931_v15 = vmul.f32 %v31503_v49, %v36460_v9 }
 0x706   :  { %v3746_v37 = vmul.f32 1.442695, %v3683_v35  ;;  %v36461_v35 = vld [vmem:[#allocation40_spill] sm:$0xff] }
 0x708   :  { %28367 = vpow2.f32 %v3746_v37  ;;  %v36462_v37 = vld [vmem:[#allocation39_spill] sm:$0xff] }
 0x709   :  { %28369 = vrcp.f32 %v31693_v19  ;;  %v36464_v19 = vld [vmem:[#allocation41_spill] sm:$0xff] }
 0x70a   :  { %10434 = vrot.lane.b32.xlu0 %v3928_v32, %s28951_s16  ;;  %28371 = vrcp.f32 %v31695_v55  ;;  %v3937_v55 = vmul.f32 %v31503_v49, %v36464_v19 }
 0x70b   :  { %28373 = vrcp.f32 %v31729_v51 }
 0x70c   :  { %28375 = vrcp.f32 %v31727_v58 }
 0x70d   :  { %28377 = vrcp.f32 %v31761_v31 }
 0x70e   :  { %10588 = vrot.lane.b32.xlu0 %v3930_v8, %s28951_s16  ;;  %v3869_v8 = vmul.f32 %v28364_v13, %v31469_v62  ;;  %v3838_v62 = vsel %vm3555_vm6, %v31880_v34, 0.0  ;;  %28379 = vrcp.f32 %v31795_v18 }
 0x70f   :  { %28381 = vrcp.f32 %v31763_v33 }
 0x710   :  { %28383 = vrcp.f32 %v31829_v10 }
 0x711   :  { %28385 = vrcp.f32 %v31797_v45 }
 0x712   :  { %v31884_v13 = vpop.eup %28367 }
 0x716   :  { %v31864_v28 = vpop.xlane.xlu1 %3821 }
 0x717   :  { %v31868_v32 = vpop.xlane.xlu0 %3824  ;;  %28387 = vrcp.f32 %v31864_v28 }
 0x718   :  { %28389 = vrcp.f32 %v31831_v16 }
 0x71a   :  { %v10204_v7 = vpop.permute.xlu1 %10203 }
 0x71b   :  { %v10127_v21 = vpop.permute.xlu0 %10126  ;;  %26944 = vmatpush3.msra.mxu0 %v10204_v7  ;;  %v36457_v7 = vld [vmem:[#allocation36_spill] sm:$0xff] }
 0x71c   :  { %26939 = vmatpush3.msra.mxu1 %v10127_v21  ;;  %26946 = vmatmul.mubr.msk.f32.vlgmr.msra.gmra.mrb[92].mxu0 %vm3555_vm6, %v3871_v43  ;;  %v3841_v21 = vsel %vm3555_vm6, %v31884_v13, 0.0  ;;  %v3932_v56 = vmul.f32 %v31503_v49, %v36457_v7  ;;  %v3936_v43 = vmul.f32 %v31503_v49, %v36461_v35 }
 0x71d   :  { %26941 = vmatmul.mubr.msk.f32.vlgmr.msra.gmra.mrb[92].mxu1 %vm3555_vm6, %v3869_v8  ;;  %26948 = vmatprep.subr.mxu1 %v36187_v26  ;;  %v3935_v8 = vmul.f32 %v31503_v49, %v36462_v37  ;;  %v36467_v37 = vld [vmem:[#allocation10_spill] sm:$0xff] }
 0x71e   :  { %26953 = vmatprep.subr.mxu0 %v36187_v26  ;;  %26950 = vmatprep.mubr.msk.f32.mxu1 %vm28952_vm5, %v36187_v26 }
 0x71f   :  { %26955 = vmatprep.mubr.msk.f32.mxu0 %vm28952_vm5, %v36187_v26 }
 0x728   :  { %3839 = vadd.xlane.f32.xlu1 %v3838_v62  ;;  %v36463_v62 = vld [vmem:[#allocation42_spill] sm:$0xff] }
 0x72d   :  { %3842 = vadd.xlane.f32.xlu0 %v3841_v21  ;;  %v3938_v21 = vmul.f32 %v31503_v49, %v36463_v62 }
 0x739   :  { %10742 = vrot.lane.b32.xlu1 %v3932_v56, %s28951_s16 }
 0x73d   :  { %10819 = vrot.lane.b32.xlu1 %v3933_v54, %s28951_s16  ;;  %v36465_v54 = vld [vmem:[#allocation29_spill] sm:$0xff] }
 0x741   :  { %10896 = vrot.lane.b32.xlu1 %v3934_v25, %s28951_s16  ;;  %v3940_v25 = vmul.f32 %v31503_v49, %v36465_v54 }
 0x743   :  { %10665 = vrot.lane.b32.xlu0 %v3931_v15, %s28951_s16  ;;  %v28370_v15 = vpop.eup %28369 }
 0x744   :  { %v28372_v35 = vpop.eup %28371  ;;  %v3873_v19 = vmul.f32 %v28370_v15, %v31569_v38  ;;  %v3943_v38 = vmul.f32 %v31503_v49, %v31398_v27 }
 0x745   :  { %11050 = vrot.lane.b32.xlu1 %v3936_v43, %s28951_s16  ;;  %v3875_v54 = vmul.f32 %v28372_v35, %v31573_v29 }
 0x747   :  { %10973 = vrot.lane.b32.xlu0 %v3935_v8, %s28951_s16  ;;  %v36466_v8 = vld [vmem:[#allocation43_spill] sm:$0xff] }
 0x748   :  { %v3939_v62 = vmul.f32 %v31503_v49, %v36466_v8 }
 0x749   :  { %11204 = vrot.lane.b32.xlu1 %v3938_v21, %s28951_s16 }
 0x74b   :  { %11127 = vrot.lane.b32.xlu0 %v3937_v55, %s28951_s16  ;;  %v31914_v56 = vpop.xlane.xlu1 %3827  ;;  %v3942_v55 = vmul.f32 %v31503_v49, %v31415_v46 }
 0x74c   :  { %v31918_v43 = vpop.xlane.xlu0 %3830  ;;  %28391 = vrcp.f32 %v31914_v56 }
 0x74d   :  { %11358 = vrot.lane.b32.xlu1 %v3940_v25, %s28951_s16  ;;  %v3941_v25 = vmul.f32 %v31503_v49, %v36467_v37  ;;  %28393 = vrcp.f32 %v31868_v32 }
 0x74f   :  { %11281 = vrot.lane.b32.xlu0 %v3939_v62, %s28951_s16  ;;  %v10358_v21 = vpop.permute.xlu1 %10357 }
 0x750   :  { %v10281_v7 = vpop.permute.xlu0 %10280  ;;  %26954 = vmatpush3.msra.mxu0 %v10358_v21 }
 0x751   :  { %26949 = vmatpush3.msra.mxu1 %v10281_v7  ;;  %11512 = vrot.lane.b32.xlu1 %v3942_v55, %s28951_s16  ;;  %v28374_v7 = vpop.eup %28373 }
 0x752   :  { %26951 = vmatmul.mubr.msk.f32.vlgmr.msra.gmra.mrb[94].mxu1 %vm3555_vm6, %v3873_v19  ;;  %26956 = vmatmul.mubr.msk.f32.vlgmr.msra.gmra.mrb[94].mxu0 %vm3555_vm6, %v3875_v54  ;;  %v28376_v62 = vpop.eup %28375  ;;  %v3879_v54 = vmul.f32 %v28374_v7, %v31641_v44 }
 0x753   :  { %11435 = vrot.lane.b32.xlu0 %v3941_v25, %s28951_s16  ;;  %26958 = vmatprep.subr.mxu1 %v36187_v26  ;;  %v3877_v15 = vmul.f32 %v28376_v62, %v31639_v39  ;;  %v28378_v21 = vpop.eup %28377 }
 0x754   :  { %26963 = vmatprep.subr.mxu0 %v36187_v26  ;;  %26960 = vmatprep.mubr.msk.f32.mxu1 %vm28952_vm5, %v36187_v26  ;;  %v3881_v44 = vmul.f32 %v28378_v21, %v31673_v22  ;;  %v28380_v22 = vpop.eup %28379 }
 0x755   :  { %26965 = vmatprep.mubr.msk.f32.mxu0 %vm28952_vm5, %v36187_v26  ;;  %v3885_v31 = vmul.f32 %v28380_v22, %v31707_v36  ;;  %v28382_v25 = vpop.eup %28381 }
 0x756   :  { %v28384_v18 = vpop.eup %28383  ;;  %v3883_v10 = vmul.f32 %v28382_v25, %v31675_v1  ;;  %v36470_v25 = vld [vmem:[#allocation45_spill] sm:$0xff] }
 0x757   :  { %11589 = vrot.lane.b32.xlu0 %v3943_v38, %s28951_s16  ;;  %v28386_v36 = vpop.eup %28385  ;;  %v3889_v28 = vmul.f32 %v28384_v18, %v31741_v24  ;;  %v36471_v18 = vld [vmem:[#allocation44_spill] sm:$0xff] }
 0x758   :  { %v28388_v32 = vpop.eup %28387  ;;  %v3887_v1 = vmul.f32 %v28386_v36, %v31709_v3  ;;  %v36474_v36 = vld [vmem:[#allocation50_spill] sm:$0xff] }
 0x759   :  { %v28390_v38 = vpop.eup %28389  ;;  %v3893_v3 = vmul.f32 %v28388_v32, %v31775_v2  ;;  %v36476_v32 = vld [vmem:[#allocation53_spill] sm:$0xff] }
 0x75a   :  { %v3891_v7 = vmul.f32 %v28390_v38, %v31743_v30  ;;  %v36478_v38 = vld [vmem:[#allocation56_spill] sm:$0xff] }
 0x780   :  { %v3834_v29 = vpop.xlane.xlu1 %3833 }
 0x781   :  { %v31946_v35 = vpop.xlane.xlu0 %3836  ;;  %28395 = vrcp.f32 %v3834_v29 }
 0x782   :  { %28397 = vrcp.f32 %v31918_v43  ;;  %v28392_v43 = vpop.eup %28391 }
 0x783   :  { %v28394_v62 = vpop.eup %28393 }
 0x784   :  { %v10512_v19 = vpop.permute.xlu1 %10511 }
 0x785   :  { %v10435_v49 = vpop.permute.xlu0 %10434  ;;  %26964 = vmatpush3.msra.mxu0 %v10512_v19 }
 0x786   :  { %26959 = vmatpush3.msra.mxu1 %v10435_v49  ;;  %26966 = vmatmul.mubr.msk.f32.vlgmr.msra.gmra.mrb[96].mxu0 %vm3555_vm6, %v3879_v54  ;;  %v3895_v54 = vmul.f32 %v28394_v62, %v31777_v40  ;;  %v36482_v62 = vld [vmem:[#allocation62_spill] sm:$0xff] }
 0x787   :  { %26961 = vmatmul.mubr.msk.f32.vlgmr.msra.gmra.mrb[96].mxu1 %vm3555_vm6, %v3877_v15  ;;  %26968 = vmatprep.subr.mxu1 %v36187_v26 }
 0x788   :  { %26970 = vmatprep.mubr.msk.f32.mxu1 %vm28952_vm5, %v36187_v26  ;;  %26973 = vmatprep.subr.mxu0 %v36187_v26 }
 0x789   :  { %v10589_v58 = vpop.permute.xlu0 %10588  ;;  %26975 = vmatprep.mubr.msk.f32.mxu0 %vm28952_vm5, %v36187_v26 }
 0x78a   :  { %26969 = vmatpush3.msra.mxu1 %v10589_v58 }
 0x78b   :  { %26971 = vmatmul.mubr.msk.f32.vlgmr.msra.gmra.mrb[98].mxu1 %vm3555_vm6, %v3881_v44  ;;  %26978 = vmatprep.subr.mxu1 %v36187_v26  ;;  %v28396_v19 = vpop.eup %28395 }
 0x78c   :  { %26980 = vmatprep.mubr.msk.f32.mxu1 %vm28952_vm5, %v36187_v26  ;;  %v28398_v49 = vpop.eup %28397 }
 0x78d   :  { %v3899_v40 = vmul.f32 %v28398_v49, %v31811_v23  ;;  %v36486_v49 = vld [vmem:[#allocation68_spill] sm:$0xff] }
 0x7b5   :  { %v3840_v39 = vpop.xlane.xlu1 %3839 }
 0x7b6   :  { %28399 = vrcp.f32 %v3840_v39  ;;  %v36468_v39 = vld [vmem:[#allocation9_spill] sm:$0xff] }
 0x7b7   :  { %28401 = vrcp.f32 %v31946_v35  ;;  %v3897_v35 = vmul.f32 %v28392_v43, %v31809_v41  ;;  %v3901_v41 = vmul.f32 %v28396_v19, %v31843_v48  ;;  %vm11665_vm7 = vcmp.ge.s32.totalorder %v36468_v39, 16  ;;  %v36480_v43 = vld [vmem:[#allocation59_spill] sm:$0xff]  ;;  %v36484_v19 = vld [vmem:[#allocation65_spill] sm:$0xff] }
 0x7b8   :  { %vm11666_vm8 = vcmp.lt.s32.totalorder %v36468_v39, 24 }
 0x7b9   :  { %v10743_v51 = vpop.permute.xlu1 %10742  ;;  %vm11667_vm9 = vmand %vm11665_vm7, %vm11666_vm8 }
 0x7ba   :  { %v3843_v55 = vpop.xlane.xlu0 %3842  ;;  %26979 = vmatpush3.msra.mxu1 %v10743_v51 }
 0x7bb   :  { %26981 = vmatmul.mubr.msk.f32.vlgmr.msra.gmra.mrb[100].mxu1 %vm3555_vm6, %v3885_v31  ;;  %26988 = vmatprep.subr.mxu1 %v36187_v26  ;;  %28403 = vrcp.f32 %v3843_v55  ;;  %v36469_v55 = vld [vmem:[#allocation46_spill] sm:$0xff] }
 0x7bc   :  { %26990 = vmatprep.mubr.msk.f32.mxu1 %vm28952_vm5, %v36187_v26 }
 0x7bd   :  { %v10820_v33 = vpop.permute.xlu1 %10819 }
 0x7be   :  { %v10666_v45 = vpop.permute.xlu0 %10665 }
 0x7bf   :  { %26974 = vmatpush3.msra.mxu0 %v10666_v45 }
 0x7c0   :  { %26976 = vmatmul.mubr.msk.f32.vlgmr.msra.gmra.mrb[98].mxu0 %vm3555_vm6, %v3883_v10  ;;  %26983 = vmatprep.subr.mxu0 %v36187_v26  ;;  %v28400_v21 = vpop.eup %28399  ;;  %v36473_v10 = vld [vmem:[#allocation52_spill] sm:$0xff] }
 0x7c1   :  { %26984 = vmatpush3.msra.mxu0 %v10820_v33  ;;  %v10897_v16 = vpop.permute.xlu1 %10896  ;;  %26985 = vmatprep.mubr.msk.f32.mxu0 %vm28952_vm5, %v36187_v26  ;;  %v28402_v44 = vpop.eup %28401  ;;  %v3905_v23 = vmul.f32 %v28400_v21, %v31880_v34  ;;  %v36488_v21 = vld [vmem:[#allocation71_spill] sm:$0xff] }
 0x7c2   :  { %v10974_v56 = vpop.permute.xlu0 %10973  ;;  %26989 = vmatpush3.msra.mxu1 %v10897_v16  ;;  %26993 = vmatprep.subr.mxu0 %v36187_v26  ;;  %v3903_v51 = vmul.f32 %v28402_v44, %v31845_v42  ;;  %v32038_v42 = vsel %vm11667_vm9, 1.0, %v36187_v26  ;;  %v36490_v44 = vld [vmem:[#allocation74_spill] sm:$0xff] }
 0x7c3   :  { %26991 = vmatmul.mubr.msk.f32.vlgmr.msra.gmra.mrb[102].mxu1 %vm3555_vm6, %v3889_v28  ;;  %26998 = vmatprep.subr.mxu1 %v36187_v26  ;;  %v11670_v33 = vmul.f32 %v32038_v42, %v36470_v25  ;;  %v11672_v16 = vmul.f32 %v32038_v42, %v36474_v36  ;;  %v36475_v28 = vld [vmem:[#allocation51_spill] sm:$0xff] }
 0x7c4   :  { %26986 = vmatmul.mubr.msk.f32.vlgmr.msra.gmra.mrb[100].mxu0 %vm3555_vm6, %v3887_v1  ;;  %27000 = vmatprep.mubr.msk.f32.mxu1 %vm28952_vm5, %v36187_v26  ;;  %v36477_v1 = vld [vmem:[#allocation58_spill] sm:$0xff] }
 0x7c5   :  { %26994 = vmatpush3.msra.mxu0 %v10974_v56  ;;  %v11051_v24 = vpop.permute.xlu1 %11050  ;;  %26995 = vmatprep.mubr.msk.f32.mxu0 %vm28952_vm5, %v36187_v26  ;;  %v28404_v31 = vpop.eup %28403  ;;  %v11673_v56 = vmul.f32 %v32038_v42, %v36476_v32 }
 0x7c6   :  { %v11128_v29 = vpop.permute.xlu0 %11127  ;;  %26999 = vmatpush3.msra.mxu1 %v11051_v24  ;;  %27003 = vmatprep.subr.mxu0 %v36187_v26  ;;  %v3907_v34 = vmul.f32 %v28404_v31, %v31884_v13  ;;  %v36472_v13 = vld [vmem:[#allocation47_spill] sm:$0xff]  ;;  %v11674_v24 = vmul.f32 %v32038_v42, %v36478_v38  ;;  %v36493_v31 = vld [vmem:[#allocation82_spill] sm:$0xff] }
 0x7c7   :  { %27001 = vmatmul.mubr.msk.f32.vlgmr.msra.gmra.mrb[104].mxu1 %vm3555_vm6, %v3893_v3  ;;  %27008 = vmatprep.subr.mxu1 %v36187_v26  ;;  %v11671_v45 = vmul.f32 %v32038_v42, %v36472_v13  ;;  %v36479_v3 = vld [vmem:[#allocation57_spill] sm:$0xff] }
 0x7c8   :  { %26996 = vmatmul.mubr.msk.f32.vlgmr.msra.gmra.mrb[102].mxu0 %vm3555_vm6, %v3891_v7  ;;  %27010 = vmatprep.mubr.msk.f32.mxu1 %vm28952_vm5, %v36187_v26  ;;  %v36481_v7 = vld [vmem:[#allocation64_spill] sm:$0xff] }
 0x7c9   :  { %27004 = vmatpush3.msra.mxu0 %v11128_v29  ;;  %v11205_v2 = vpop.permute.xlu1 %11204  ;;  %27005 = vmatprep.mubr.msk.f32.mxu0 %vm28952_vm5, %v36187_v26  ;;  %v11675_v29 = vmul.f32 %v32038_v42, %v36480_v43 }
 0x7ca   :  { %v11282_v30 = vpop.permute.xlu0 %11281  ;;  %27009 = vmatpush3.msra.mxu1 %v11205_v2  ;;  %27013 = vmatprep.subr.mxu0 %v36187_v26  ;;  %v11676_v2 = vmul.f32 %v32038_v42, %v36482_v62 }
 0x7cb   :  { %27011 = vmatmul.mubr.msk.f32.vlgmr.msra.gmra.mrb[106].mxu1 %vm3555_vm6, %v3897_v35  ;;  %27018 = vmatprep.subr.mxu1 %v36187_v26  ;;  %v36483_v35 = vld [vmem:[#allocation63_spill] sm:$0xff] }
 0x7cc   :  { %27006 = vmatmul.mubr.msk.f32.vlgmr.msra.gmra.mrb[104].mxu0 %vm3555_vm6, %v3895_v54  ;;  %27020 = vmatprep.mubr.msk.f32.mxu1 %vm28952_vm5, %v36187_v26  ;;  %v36485_v54 = vld [vmem:[#allocation70_spill] sm:$0xff] }
 0x7cd   :  { %27014 = vmatpush3.msra.mxu0 %v11282_v30  ;;  %v11359_v15 = vpop.permute.xlu1 %11358  ;;  %27015 = vmatprep.mubr.msk.f32.mxu0 %vm28952_vm5, %v36187_v26  ;;  %v11677_v30 = vmul.f32 %v32038_v42, %v36484_v19 }
 0x7ce   :  { %v11436_v58 = vpop.permute.xlu0 %11435  ;;  %27019 = vmatpush3.msra.mxu1 %v11359_v15  ;;  %27023 = vmatprep.subr.mxu0 %v36187_v26  ;;  %v11678_v15 = vmul.f32 %v32038_v42, %v36486_v49 }
 0x7cf   :  { %27021 = vmatmul.mubr.msk.f32.vlgmr.msra.gmra.mrb[108].mxu1 %vm3555_vm6, %v3901_v41  ;;  %27028 = vmatprep.subr.mxu1 %v36187_v26  ;;  %v36487_v41 = vld [vmem:[#allocation69_spill] sm:$0xff] }
 0x7d0   :  { %27016 = vmatmul.mubr.msk.f32.vlgmr.msra.gmra.mrb[106].mxu0 %vm3555_vm6, %v3899_v40  ;;  %27030 = vmatprep.mubr.msk.f32.mxu1 %vm28952_vm5, %v36187_v26  ;;  %v36489_v40 = vld [vmem:[#allocation76_spill] sm:$0xff] }
 0x7d1   :  { %27024 = vmatpush3.msra.mxu0 %v11436_v58  ;;  %v11513_v48 = vpop.permute.xlu1 %11512  ;;  %27025 = vmatprep.mubr.msk.f32.mxu0 %vm28952_vm5, %v36187_v26  ;;  %v11679_v58 = vmul.f32 %v32038_v42, %v36488_v21 }
 0x7d2   :  { %v11590_v22 = vpop.permute.xlu0 %11589  ;;  %27029 = vmatpush3.msra.mxu1 %v11513_v48  ;;  %27033 = vmatprep.subr.mxu0 %v36187_v26  ;;  %v11680_v48 = vmul.f32 %v32038_v42, %v36490_v44 }
 0x7d3   :  { %27031 = vmatmul.mubr.msk.f32.vlgmr.msra.gmra.mrb[110].mxu1 %vm3555_vm6, %v3905_v23  ;;  %27038 = vmatprep.subr.mxu1 %v36187_v26  ;;  %v36491_v23 = vld [vmem:[#allocation75_spill] sm:$0xff] }
 0x7d4   :  { %27026 = vmatmul.mubr.msk.f32.vlgmr.msra.gmra.mrb[108].mxu0 %vm3555_vm6, %v3903_v51  ;;  %27040 = vmatprep.mubr.msk.f32.mxu1 %vm28952_vm5, %v36187_v26 }
 0x7d5   :  { %27034 = vmatpush3.msra.mxu0 %v11590_v22  ;;  %27035 = vmatprep.mubr.msk.f32.mxu0 %vm28952_vm5, %v36187_v26  ;;  %v36492_v22 = vld [vmem:[#allocation77_spill] sm:$0xff] }
 0x7d6   :  { %27043 = vmatprep.subr.mxu0 %v36187_v26  ;;  %v11681_v51 = vmul.f32 %v32038_v42, %v36492_v22 }
 0x7d8   :  { %27036 = vmatmul.mubr.msk.f32.vlgmr.msra.gmra.mrb[110].mxu0 %vm3555_vm6, %v3907_v34  ;;  %v36494_v34 = vld [vmem:[#allocation80_spill] sm:$0xff] }
 0x7d9   :  { %27039 = vmatpush3.xpose.msk.msra.mxu1 %vm57_vm0, %v36469_v55  ;;  %27045 = vmatprep.mubr.msk.f32.mxu0 %vm28952_vm5, %v36187_v26 }
 0x7da   :  { %27048 = vmatprep.subr.mxu1 %v36187_v26 }
 0x7dc   :  { %27044 = vmatpush3.xpose.msk.msra.mxu0 %vm57_vm0, %v36471_v18  ;;  %27041 = vmatmul.mubr.msk.f32.vlgmr.msra.gmra.mrb[112].mxu1 %vm57_vm0, %v11670_v33  ;;  %v11682_v33 = vmul.f32 %v32038_v42, %v36494_v34  ;;  %v36510_v34 = vld [vmem:[#allocation105_spill] sm:$0xff] }
 0x7dd   :  { %27049 = vmatpush3.xpose.msk.msra.mxu1 %vm57_vm0, %v36473_v10  ;;  %27053 = vmatprep.subr.mxu0 %v36187_v26 }
 0x7de   :  { %27050 = vmatprep.mubr.msk.f32.mxu1 %vm28952_vm5, %v36187_v26  ;;  %27058 = vmatprep.subr.mxu1 %v36187_v26 }
 0x7df   :  { %27046 = vmatmul.mubr.msk.f32.vlgmr.msra.gmra.mrb[112].mxu0 %vm57_vm0, %v11671_v45  ;;  %v36495_v45 = vld [vmem:[#allocation81_spill] sm:$0xff] }
 0x7e0   :  { %27054 = vmatpush3.xpose.msk.msra.mxu0 %vm57_vm0, %v36475_v28  ;;  %27051 = vmatmul.mubr.msk.f32.vlgmr.msra.gmra.mrb[114].mxu1 %vm57_vm0, %v11672_v16  ;;  %v36496_v16 = vld [vmem:[#allocation83_spill] sm:$0xff] }
 0x7e1   :  { %27055 = vmatprep.mubr.msk.f32.mxu0 %vm28952_vm5, %v36187_v26  ;;  %27059 = vmatpush3.xpose.msk.msra.mxu1 %vm57_vm0, %v36477_v1 }
 0x7e2   :  { %27063 = vmatprep.subr.mxu0 %v36187_v26  ;;  %27060 = vmatprep.mubr.msk.f32.mxu1 %vm28952_vm5, %v36187_v26 }
 0x7e3   :  { %27056 = vmatmul.mubr.msk.f32.vlgmr.msra.gmra.mrb[114].mxu0 %vm57_vm0, %v11673_v56  ;;  %27068 = vmatprep.subr.mxu1 %v36187_v26  ;;  %v11683_v56 = vmul.f32 %v32038_v42, %v36496_v16 }
 0x7e4   :  { %27064 = vmatpush3.xpose.msk.msra.mxu0 %vm57_vm0, %v36479_v3  ;;  %27061 = vmatmul.mubr.msk.f32.vlgmr.msra.gmra.mrb[116].mxu1 %vm57_vm0, %v11674_v24  ;;  %v36497_v24 = vld [vmem:[#allocation88_spill] sm:$0xff] }
 0x7e5   :  { %27065 = vmatprep.mubr.msk.f32.mxu0 %vm28952_vm5, %v36187_v26  ;;  %27069 = vmatpush3.xpose.msk.msra.mxu1 %vm57_vm0, %v36481_v7 }
 0x7e6   :  { %27073 = vmatprep.subr.mxu0 %v36187_v26  ;;  %27070 = vmatprep.mubr.msk.f32.mxu1 %vm28952_vm5, %v36187_v26 }
 0x7e7   :  { %27066 = vmatmul.mubr.msk.f32.vlgmr.msra.gmra.mrb[116].mxu0 %vm57_vm0, %v11675_v29  ;;  %27078 = vmatprep.subr.mxu1 %v36187_v26  ;;  %v36498_v29 = vld [vmem:[#allocation86_spill] sm:$0xff] }
 0x7e8   :  { %27074 = vmatpush3.xpose.msk.msra.mxu0 %vm57_vm0, %v36483_v35  ;;  %27071 = vmatmul.mubr.msk.f32.vlgmr.msra.gmra.mrb[118].mxu1 %vm57_vm0, %v11676_v2  ;;  %v11684_v2 = vmul.f32 %v32038_v42, %v36498_v29  ;;  %v36506_v29 = vld [vmem:[#allocation99_spill] sm:$0xff] }
 0x7e9   :  { %27075 = vmatprep.mubr.msk.f32.mxu0 %vm28952_vm5, %v36187_v26  ;;  %27079 = vmatpush3.xpose.msk.msra.mxu1 %vm57_vm0, %v36485_v54 }
 0x7ea   :  { %27083 = vmatprep.subr.mxu0 %v36187_v26  ;;  %27080 = vmatprep.mubr.msk.f32.mxu1 %vm28952_vm5, %v36187_v26 }
 0x7eb   :  { %27076 = vmatmul.mubr.msk.f32.vlgmr.msra.gmra.mrb[118].mxu0 %vm57_vm0, %v11677_v30  ;;  %27088 = vmatprep.subr.mxu1 %v36187_v26  ;;  %v36499_v30 = vld [vmem:[#allocation87_spill] sm:$0xff] }
 0x7ec   :  { %27084 = vmatpush3.xpose.msk.msra.mxu0 %vm57_vm0, %v36487_v41  ;;  %27081 = vmatmul.mubr.msk.f32.vlgmr.msra.gmra.mrb[120].mxu1 %vm57_vm0, %v11678_v15  ;;  %v36500_v15 = vld [vmem:[#allocation89_spill] sm:$0xff] }
 0x7ed   :  { %27085 = vmatprep.mubr.msk.f32.mxu0 %vm28952_vm5, %v36187_v26  ;;  %27089 = vmatpush3.xpose.msk.msra.mxu1 %vm57_vm0, %v36489_v40 }
 0x7ee   :  { %27093 = vmatprep.subr.mxu0 %v36187_v26  ;;  %27090 = vmatprep.mubr.msk.f32.mxu1 %vm28952_vm5, %v36187_v26 }
 0x7ef   :  { %27086 = vmatmul.mubr.msk.f32.vlgmr.msra.gmra.mrb[120].mxu0 %vm57_vm0, %v11679_v58  ;;  %27098 = vmatprep.subr.mxu1 %v36187_v26  ;;  %v11685_v58 = vmul.f32 %v32038_v42, %v36500_v15 }
 0x7f0   :  { %27094 = vmatpush3.xpose.msk.msra.mxu0 %vm57_vm0, %v36491_v23  ;;  %27091 = vmatmul.mubr.msk.f32.vlgmr.msra.gmra.mrb[122].mxu1 %vm57_vm0, %v11680_v48  ;;  %v36501_v48 = vld [vmem:[#allocation95_spill] sm:$0xff] }
 0x7f1   :  { %27095 = vmatprep.mubr.msk.f32.mxu0 %vm28952_vm5, %v36187_v26  ;;  %27099 = vmatpush3.xpose.msk.msra.mxu1 %vm57_vm0, %v36493_v31  ;;  %v11690_v31 = vmul.f32 %v32038_v42, %v36510_v34  ;;  %v36513_v34 = vld [vmem:[#allocation113_spill] sm:$0xff] }
 0x7f2   :  { %27103 = vmatprep.subr.mxu0 %v36187_v26  ;;  %27100 = vmatprep.mubr.msk.f32.mxu1 %vm28952_vm5, %v36187_v26 }
 0x7f3   :  { %27096 = vmatmul.mubr.msk.f32.vlgmr.msra.gmra.mrb[122].mxu0 %vm57_vm0, %v11681_v51  ;;  %27108 = vmatprep.subr.mxu1 %v36187_v26  ;;  %v36502_v51 = vld [vmem:[#allocation93_spill] sm:$0xff] }
 0x7f4   :  { %27104 = vmatpush3.xpose.msk.msra.mxu0 %vm57_vm0, %v36495_v45  ;;  %27101 = vmatmul.mubr.msk.f32.vlgmr.msra.gmra.mrb[124].mxu1 %vm57_vm0, %v11682_v33  ;;  %v11686_v33 = vmul.f32 %v32038_v42, %v36502_v51  ;;  %v36505_v51 = vld [vmem:[#allocation101_spill] sm:$0xff] }
 0x7f5   :  { %27105 = vmatprep.mubr.msk.f32.mxu0 %vm28952_vm5, %v36187_v26  ;;  %27109 = vmatpush3.xpose.msk.msra.mxu1 %vm57_vm0, %v36497_v24  ;;  %v11688_v24 = vmul.f32 %v32038_v42, %v36506_v29  ;;  %v36509_v29 = vld [vmem:[#allocation107_spill] sm:$0xff] }
 0x7f6   :  { %27113 = vmatprep.subr.mxu0 %v36187_v26  ;;  %27110 = vmatprep.mubr.msk.f32.mxu1 %vm28952_vm5, %v36187_v26 }
 0x7f7   :  { %27106 = vmatmul.mubr.msk.f32.vlgmr.msra.gmra.mrb[124].mxu0 %vm57_vm0, %v11683_v56  ;;  %27118 = vmatprep.subr.mxu1 %v36187_v26  ;;  %v36503_v56 = vld [vmem:[#allocation94_spill] sm:$0xff] }
 0x7f8   :  { %27114 = vmatpush3.xpose.msk.msra.mxu0 %vm57_vm0, %v36499_v30  ;;  %27111 = vmatmul.mubr.msk.f32.vlgmr.msra.gmra.mrb[126].mxu1 %vm57_vm0, %v11684_v2  ;;  %v36504_v2 = vld [vmem:[#allocation91_spill] sm:$0xff] }
 0x7f9   :  { %27115 = vmatprep.mubr.msk.f32.mxu0 %vm28952_vm5, %v36187_v26  ;;  %27119 = vmatpush3.xpose.msk.msra.mxu1 %vm57_vm0, %v36501_v48  ;;  %v11687_v48 = vmul.f32 %v32038_v42, %v36504_v2 }
 0x7fa   :  { %27123 = vmatprep.subr.mxu0 %v36187_v26  ;;  %27120 = vmatprep.mubr.msk.f32.mxu1 %vm28952_vm5, %v36187_v26 }
 0x7fb   :  { %27116 = vmatmul.mubr.msk.f32.vlgmr.msra.gmra.mrb[126].mxu0 %vm57_vm0, %v11685_v58  ;;  %27128 = vmatprep.subr.mxu1 %v36187_v26  ;;  %v36507_v58 = vld [vmem:[#allocation100_spill] sm:$0xff] }
 0x7fc   :  { %27124 = vmatpush3.xpose.msk.msra.mxu0 %vm57_vm0, %v36503_v56  ;;  %27121 = vmatmul.mubr.msk.f32.vlgmr.msra.gmra.mrb[128].mxu1 %vm57_vm0, %v11686_v33  ;;  %v36508_v33 = vld [vmem:[#allocation97_spill] sm:$0xff] }
 0x7fd   :  { %27125 = vmatprep.mubr.msk.f32.mxu0 %vm28952_vm5, %v36187_v26  ;;  %27129 = vmatpush3.xpose.msk.msra.mxu1 %vm57_vm0, %v36505_v51  ;;  %v11689_v51 = vmul.f32 %v32038_v42, %v36508_v33  ;;  %v36514_v33 = vld [vmem:[#allocation111_spill] sm:$0xff] }
 0x7fe   :  { %27133 = vmatprep.subr.mxu0 %v36187_v26  ;;  %27130 = vmatprep.mubr.msk.f32.mxu1 %vm28952_vm5, %v36187_v26 }
 0x7ff   :  { %27126 = vmatmul.mubr.msk.f32.vlgmr.msra.gmra.mrb[128].mxu0 %vm57_vm0, %v11687_v48  ;;  %27138 = vmatprep.subr.mxu1 %v36187_v26  ;;  %v36512_v48 = vld [vmem:[#allocation103_spill] sm:$0xff] }
 0x800   :  { %27134 = vmatpush3.xpose.msk.msra.mxu0 %vm57_vm0, %v36507_v58  ;;  %27131 = vmatmul.mubr.msk.f32.vlgmr.msra.gmra.mrb[130].mxu1 %vm57_vm0, %v11688_v24  ;;  %v36511_v24 = vld [vmem:[#allocation106_spill] sm:$0xff]  ;;  %v11692_v58 = vmul.f32 %v32038_v42, %v36514_v33  ;;  %v36517_v33 = vld [vmem:[#allocation119_spill] sm:$0xff] }
 0x801   :  { %27135 = vmatprep.mubr.msk.f32.mxu0 %vm28952_vm5, %v36187_v26  ;;  %27139 = vmatpush3.xpose.msk.msra.mxu1 %vm57_vm0, %v36509_v29  ;;  %v11691_v29 = vmul.f32 %v32038_v42, %v36512_v48  ;;  %v36518_v48 = vld [vmem:[#allocation117_spill] sm:$0xff] }
 0x802   :  { %27143 = vmatprep.subr.mxu0 %v36187_v26  ;;  %27140 = vmatprep.mubr.msk.f32.mxu1 %vm28952_vm5, %v36187_v26 }
 0x803   :  { %27136 = vmatmul.mubr.msk.f32.vlgmr.msra.gmra.mrb[130].mxu0 %vm57_vm0, %v11689_v51  ;;  %27148 = vmatprep.subr.mxu1 %v36187_v26  ;;  %v36516_v51 = vld [vmem:[#allocation109_spill] sm:$0xff] }
 0x804   :  { %27144 = vmatpush3.xpose.msk.msra.mxu0 %vm57_vm0, %v36511_v24  ;;  %27141 = vmatmul.mubr.msk.f32.vlgmr.msra.gmra.mrb[132].mxu1 %vm57_vm0, %v11690_v31  ;;  %v36515_v31 = vld [vmem:[#allocation112_spill] sm:$0xff]  ;;  %v11694_v24 = vmul.f32 %v32038_v42, %v36518_v48  ;;  %v36521_v48 = vld [vmem:[#allocation125_spill] sm:$0xff] }
 0x805   :  { %27145 = vmatprep.mubr.msk.f32.mxu0 %vm28952_vm5, %v36187_v26  ;;  %27149 = vmatpush3.xpose.msk.msra.mxu1 %vm57_vm0, %v36513_v34  ;;  %v11693_v34 = vmul.f32 %v32038_v42, %v36516_v51  ;;  %v36522_v51 = vld [vmem:[#allocation123_spill] sm:$0xff] }
 0x806   :  { %27153 = vmatprep.subr.mxu0 %v36187_v26  ;;  %27150 = vmatprep.mubr.msk.f32.mxu1 %vm28952_vm5, %v36187_v26 }
 0x807   :  { %27146 = vmatmul.mubr.msk.f32.vlgmr.msra.gmra.mrb[132].mxu0 %vm57_vm0, %v11691_v29  ;;  %27158 = vmatprep.subr.mxu1 %v36187_v26  ;;  %v36519_v29 = vld [vmem:[#allocation118_spill] sm:$0xff] }
 0x808   :  { %27154 = vmatpush3.xpose.msk.msra.mxu0 %vm57_vm0, %v36515_v31  ;;  %27151 = vmatmul.mubr.msk.f32.vlgmr.msra.gmra.mrb[134].mxu1 %vm57_vm0, %v11692_v58  ;;  %v36520_v58 = vld [vmem:[#allocation115_spill] sm:$0xff]  ;;  %v11696_v31 = vmul.f32 %v32038_v42, %v36522_v51  ;;  %v36525_v51 = vld [vmem:[#allocation132_spill] sm:$0xff] }
 0x809   :  { %27155 = vmatprep.mubr.msk.f32.mxu0 %vm28952_vm5, %v36187_v26  ;;  %27159 = vmatpush3.xpose.msk.msra.mxu1 %vm57_vm0, %v36517_v33  ;;  %v11695_v33 = vmul.f32 %v32038_v42, %v36520_v58  ;;  %v36526_v58 = vld [vmem:[#allocation129_spill] sm:$0xff] }
 0x80a   :  { %27163 = vmatprep.subr.mxu0 %v36187_v26  ;;  %27160 = vmatprep.mubr.msk.f32.mxu1 %vm28952_vm5, %v36187_v26 }
 0x80b   :  { %27156 = vmatmul.mubr.msk.f32.vlgmr.msra.gmra.mrb[134].mxu0 %vm57_vm0, %v11693_v34  ;;  %27168 = vmatprep.subr.mxu1 %v36187_v26  ;;  %v36523_v34 = vld [vmem:[#allocation124_spill] sm:$0xff] }
 0x80c   :  { %27164 = vmatpush3.xpose.msk.msra.mxu0 %vm57_vm0, %v36519_v29  ;;  %27161 = vmatmul.mubr.msk.f32.vlgmr.msra.gmra.mrb[136].mxu1 %vm57_vm0, %v11694_v24  ;;  %v36524_v24 = vld [vmem:[#allocation121_spill] sm:$0xff]  ;;  %v11698_v29 = vmul.f32 %v32038_v42, %v36526_v58  ;;  %v36529_v58 = vld [vmem:[#allocation135_spill] sm:$0xff] }
 0x80d   :  { %27165 = vmatprep.mubr.msk.f32.mxu0 %vm28952_vm5, %v36187_v26  ;;  %27169 = vmatpush3.xpose.msk.msra.mxu1 %vm57_vm0, %v36521_v48  ;;  %v11697_v48 = vmul.f32 %v32038_v42, %v36524_v24  ;;  %v36530_v24 = vld [vmem:[#allocation133_spill] sm:$0xff] }
 0x80e   :  { %27173 = vmatprep.subr.mxu0 %v36187_v26  ;;  %27170 = vmatprep.mubr.msk.f32.mxu1 %vm28952_vm5, %v36187_v26 }
 0x80f   :  { %27166 = vmatmul.mubr.msk.f32.vlgmr.msra.gmra.mrb[136].mxu0 %vm57_vm0, %v11695_v33  ;;  %27178 = vmatprep.subr.mxu1 %v36187_v26  ;;  %v36527_v33 = vld [vmem:[#allocation130_spill] sm:$0xff] }
 0x810   :  { %27174 = vmatpush3.xpose.msk.msra.mxu0 %vm57_vm0, %v36523_v34  ;;  %27171 = vmatmul.mubr.msk.f32.vlgmr.msra.gmra.mrb[138].mxu1 %vm57_vm0, %v11696_v31  ;;  %v36528_v31 = vld [vmem:[#allocation127_spill] sm:$0xff]  ;;  %v11700_v34 = vmul.f32 %v32038_v42, %v36530_v24 }
 0x811   :  { %27175 = vmatprep.mubr.msk.f32.mxu0 %vm28952_vm5, %v36187_v26  ;;  %27179 = vmatpush3.xpose.msk.msra.mxu1 %vm57_vm0, %v36525_v51  ;;  %v11699_v51 = vmul.f32 %v32038_v42, %v36528_v31 }
 0x812   :  { %27183 = vmatprep.subr.mxu0 %v36187_v26  ;;  %27180 = vmatprep.mubr.msk.f32.mxu1 %vm28952_vm5, %v36187_v26 }
 0x813   :  { %27176 = vmatmul.mubr.msk.f32.vlgmr.msra.gmra.mrb[138].mxu0 %vm57_vm0, %v11697_v48  ;;  %27188 = vmatprep.subr.mxu1 %v36187_v26  ;;  %v36531_v48 = vld [vmem:[#allocation134_spill] sm:$0xff] }
 0x814   :  { %27184 = vmatpush3.xpose.msk.msra.mxu0 %vm57_vm0, %v36527_v33  ;;  %27181 = vmatmul.mubr.msk.f32.vlgmr.msra.gmra.mrb[140].mxu1 %vm57_vm0, %v11698_v29  ;;  %v36532_v29 = vld [vmem:[#allocation131_spill] sm:$0xff] }
 0x815   :  { %27185 = vmatprep.mubr.msk.f32.mxu0 %vm28952_vm5, %v36187_v26  ;;  %27189 = vmatpush3.xpose.msk.msra.mxu1 %vm57_vm0, %v36529_v58  ;;  %v11701_v58 = vmul.f32 %v32038_v42, %v36532_v29 }
 0x816   :  { %27193 = vmatprep.subr.mxu0 %v36187_v26  ;;  %27190 = vmatprep.mubr.msk.f32.mxu1 %vm28952_vm5, %v36187_v26 }
 0x817   :  { %27186 = vmatmul.mubr.msk.f32.vlgmr.msra.gmra.mrb[140].mxu0 %vm57_vm0, %v11699_v51  ;;  %27198 = vmatprep.subr.mxu1 %v36187_v26 }
 0x818   :  { %27194 = vmatpush3.xpose.msk.msra.mxu0 %vm57_vm0, %v36531_v48  ;;  %27191 = vmatmul.mubr.msk.f32.vlgmr.msra.gmra.mrb[142].mxu1 %vm57_vm0, %v11700_v34 }
 0x819   :  { %27195 = vmatprep.mubr.msk.f32.mxu0 %vm28952_vm5, %v36187_v26  ;;  %27200 = vmatprep.mubr.msk.f32.mxu1 %vm28952_vm5, %v36187_v26 }
 0x81a   :  { %27203 = vmatprep.subr.mxu0 %v36187_v26 }
 0x81b   :  { %27196 = vmatmul.mubr.msk.f32.vlgmr.msra.gmra.mrb[142].mxu0 %vm57_vm0, %v11701_v58 }
 0x81c   :  { %27205 = vmatprep.mubr.msk.f32.mxu0 %vm28952_vm5, %v36187_v26 }
 0x8af   :  { %v11771_v51 = vpop.f32.mrb[112].mxu1 }
 0x8b0   :  { %v32299_v24 = vmul.f32 0.35355338, %v11771_v51  ;;  %v27042_v34 = vpop.f32.mrb[113].mxu1 }
 0x8b2   :  { %v11844_v48 = vpop.f32.mrb[112].mxu0  ;;  %v14070_v29 = vsel %vm3555_vm6, %v32299_v24, -inf }
 0x8b3   :  { %v32303_v31 = vmul.f32 0.35355338, %v11844_v48  ;;  %v27047_v33 = vpop.f32.mrb[113].mxu0  ;;  %14071 = vmax.xlane.f32.xlu1 %v14070_v29  ;;  %v11917_v2 = vpop.f32.mrb[114].mxu1 }
 0x8b4   :  { %v32305_v56 = vmul.f32 0.35355338, %v11917_v2  ;;  %v27052_v44 = vpop.f32.mrb[115].mxu1 }
 0x8b5   :  { %v14073_v58 = vsel %vm3555_vm6, %v32303_v31, -inf }
 0x8b6   :  { %14074 = vmax.xlane.f32.xlu0 %v14073_v58  ;;  %v11990_v40 = vpop.f32.mrb[114].mxu0  ;;  %v14076_v34 = vsel %vm3555_vm6, %v32305_v56, -inf }
 0x8b7   :  { %v27057_v51 = vpop.f32.mrb[115].mxu0  ;;  %v12063_v15 = vpop.f32.mrb[116].mxu1  ;;  %v32313_v49 = vmul.f32 0.35355338, %v11990_v40 }
 0x8b8   :  { %v32311_v30 = vmul.f32 0.35355338, %v12063_v15  ;;  %v27062_v48 = vpop.f32.mrb[117].mxu1 }
 0x8b9   :  { %v14079_v15 = vsel %vm3555_vm6, %v32313_v49, -inf }
 0x8ba   :  { %v12136_v33 = vpop.f32.mrb[116].mxu0  ;;  %14077 = vmax.xlane.f32.xlu0 %v14076_v34  ;;  %v14082_v44 = vsel %vm3555_vm6, %v32311_v30, -inf }
 0x8bb   :  { %v27067_v2 = vpop.f32.mrb[117].mxu0  ;;  %14083 = vmax.xlane.f32.xlu1 %v14082_v44  ;;  %v12209_v29 = vpop.f32.mrb[118].mxu1  ;;  %v32319_v54 = vmul.f32 0.35355338, %v12136_v33 }
 0x8bc   :  { %v32317_v58 = vmul.f32 0.35355338, %v12209_v29  ;;  %v27072_v51 = vpop.f32.mrb[119].mxu1 }
 0x8bd   :  { %v14085_v33 = vsel %vm3555_vm6, %v32319_v54, -inf }
 0x8be   :  { %v12282_v16 = vpop.f32.mrb[118].mxu0  ;;  %14080 = vmax.xlane.f32.xlu0 %v14079_v15  ;;  %v14088_v40 = vsel %vm3555_vm6, %v32317_v58, -inf }
 0x8bf   :  { %v27077_v34 = vpop.f32.mrb[119].mxu0  ;;  %14089 = vmax.xlane.f32.xlu1 %v14088_v40  ;;  %v12355_v48 = vpop.f32.mrb[120].mxu1  ;;  %v32327_v2 = vmul.f32 0.35355338, %v12282_v16 }
 0x8c0   :  { %v32325_v45 = vmul.f32 0.35355338, %v12355_v48  ;;  %v27082_v44 = vpop.f32.mrb[121].mxu1 }
 0x8c1   :  { %v14091_v16 = vsel %vm3555_vm6, %v32327_v2, -inf }
 0x8c2   :  { %v12428_v29 = vpop.f32.mrb[120].mxu0  ;;  %14086 = vmax.xlane.f32.xlu0 %v14085_v33  ;;  %v14094_v51 = vsel %vm3555_vm6, %v32325_v45, -inf }
 0x8c3   :  { %v27087_v15 = vpop.f32.mrb[121].mxu0  ;;  %14095 = vmax.xlane.f32.xlu1 %v14094_v51  ;;  %v12501_v62 = vpop.f32.mrb[122].mxu1  ;;  %v32335_v34 = vmul.f32 0.35355338, %v12428_v29 }
 0x8c4   :  { %v32333_v7 = vmul.f32 0.35355338, %v12501_v62  ;;  %v27092_v40 = vpop.f32.mrb[123].mxu1 }
 0x8c5   :  { %v14097_v62 = vsel %vm3555_vm6, %v32335_v34, -inf }
 0x8c6   :  { %v12574_v48 = vpop.f32.mrb[122].mxu0  ;;  %14092 = vmax.xlane.f32.xlu0 %v14091_v16  ;;  %v14100_v44 = vsel %vm3555_vm6, %v32333_v7, -inf }
 0x8c7   :  { %v27097_v33 = vpop.f32.mrb[123].mxu0  ;;  %14101 = vmax.xlane.f32.xlu1 %v14100_v44  ;;  %v12647_v22 = vpop.f32.mrb[124].mxu1  ;;  %v32343_v15 = vmul.f32 0.35355338, %v12574_v48 }
 0x8c8   :  { %v32341_v23 = vmul.f32 0.35355338, %v12647_v22  ;;  %v27102_v51 = vpop.f32.mrb[125].mxu1 }
 0x8c9   :  { %v14103_v22 = vsel %vm3555_vm6, %v32343_v15, -inf }
 0x8ca   :  { %v12720_v29 = vpop.f32.mrb[124].mxu0  ;;  %14098 = vmax.xlane.f32.xlu0 %v14097_v62  ;;  %v14106_v40 = vsel %vm3555_vm6, %v32341_v23, -inf }
 0x8cb   :  { %v27107_v16 = vpop.f32.mrb[125].mxu0  ;;  %14107 = vmax.xlane.f32.xlu1 %v14106_v40  ;;  %v12793_v38 = vpop.f32.mrb[126].mxu1  ;;  %v32351_v33 = vmul.f32 0.35355338, %v12720_v29 }
 0x8cc   :  { %v32349_v1 = vmul.f32 0.35355338, %v12793_v38  ;;  %v27112_v44 = vpop.f32.mrb[127].mxu1 }
 0x8cd   :  { %v14109_v38 = vsel %vm3555_vm6, %v32351_v33, -inf }
 0x8ce   :  { %v12866_v48 = vpop.f32.mrb[126].mxu0  ;;  %14104 = vmax.xlane.f32.xlu0 %v14103_v22  ;;  %v14112_v51 = vsel %vm3555_vm6, %v32349_v1, -inf }
 0x8cf   :  { %v27117_v62 = vpop.f32.mrb[127].mxu0  ;;  %14113 = vmax.xlane.f32.xlu1 %v14112_v51  ;;  %v12939_v21 = vpop.f32.mrb[128].mxu1  ;;  %v32359_v16 = vmul.f32 0.35355338, %v12866_v48 }
 0x8d0   :  { %v32357_v41 = vmul.f32 0.35355338, %v12939_v21  ;;  %v27122_v40 = vpop.f32.mrb[129].mxu1 }
 0x8d1   :  { %v14115_v21 = vsel %vm3555_vm6, %v32359_v16, -inf }
 0x8d2   :  { %v13012_v29 = vpop.f32.mrb[128].mxu0  ;;  %14110 = vmax.xlane.f32.xlu0 %v14109_v38  ;;  %v14118_v44 = vsel %vm3555_vm6, %v32357_v41, -inf }
 0x8d3   :  { %v27127_v22 = vpop.f32.mrb[129].mxu0  ;;  %14119 = vmax.xlane.f32.xlu1 %v14118_v44  ;;  %v13085_v36 = vpop.f32.mrb[130].mxu1  ;;  %v32367_v62 = vmul.f32 0.35355338, %v13012_v29 }
 0x8d4   :  { %v32365_v10 = vmul.f32 0.35355338, %v13085_v36  ;;  %v27132_v51 = vpop.f32.mrb[131].mxu1 }
 0x8d5   :  { %v14121_v36 = vsel %vm3555_vm6, %v32367_v62, -inf }
 0x8d6   :  { %v13158_v48 = vpop.f32.mrb[130].mxu0  ;;  %14116 = vmax.xlane.f32.xlu0 %v14115_v21  ;;  %v14124_v40 = vsel %vm3555_vm6, %v32365_v10, -inf }
 0x8d7   :  { %v27137_v38 = vpop.f32.mrb[131].mxu0  ;;  %14125 = vmax.xlane.f32.xlu1 %v14124_v40  ;;  %v13231_v19 = vpop.f32.mrb[132].mxu1  ;;  %v32375_v22 = vmul.f32 0.35355338, %v13158_v48 }
 0x8d8   :  { %v32373_v35 = vmul.f32 0.35355338, %v13231_v19  ;;  %v27142_v44 = vpop.f32.mrb[133].mxu1 }
 0x8d9   :  { %v14127_v19 = vsel %vm3555_vm6, %v32375_v22, -inf }
 0x8da   :  { %v13304_v29 = vpop.f32.mrb[132].mxu0  ;;  %14122 = vmax.xlane.f32.xlu0 %v14121_v36  ;;  %v14130_v51 = vsel %vm3555_vm6, %v32373_v35, -inf }
 0x8db   :  { %v27147_v21 = vpop.f32.mrb[133].mxu0  ;;  %14131 = vmax.xlane.f32.xlu1 %v14130_v51  ;;  %v13377_v25 = vpop.f32.mrb[134].mxu1  ;;  %v32383_v38 = vmul.f32 0.35355338, %v13304_v29 }
 0x8dc   :  { %v32381_v55 = vmul.f32 0.35355338, %v13377_v25  ;;  %v27152_v40 = vpop.f32.mrb[135].mxu1 }
 0x8dd   :  { %v14133_v25 = vsel %vm3555_vm6, %v32383_v38, -inf }
 0x8de   :  { %v13450_v48 = vpop.f32.mrb[134].mxu0  ;;  %14128 = vmax.xlane.f32.xlu0 %v14127_v19  ;;  %v14136_v44 = vsel %vm3555_vm6, %v32381_v55, -inf }
 0x8df   :  { %v27157_v36 = vpop.f32.mrb[135].mxu0  ;;  %14137 = vmax.xlane.f32.xlu1 %v14136_v44  ;;  %v13523_v43 = vpop.f32.mrb[136].mxu1  ;;  %v32391_v21 = vmul.f32 0.35355338, %v13450_v48 }
 0x8e0   :  { %v32389_v3 = vmul.f32 0.35355338, %v13523_v43  ;;  %v27162_v51 = vpop.f32.mrb[137].mxu1 }
 0x8e1   :  { %v14139_v43 = vsel %vm3555_vm6, %v32391_v21, -inf }
 0x8e2   :  { %v13596_v29 = vpop.f32.mrb[136].mxu0  ;;  %14134 = vmax.xlane.f32.xlu0 %v14133_v25  ;;  %v14142_v40 = vsel %vm3555_vm6, %v32389_v3, -inf }
 0x8e3   :  { %v27167_v19 = vpop.f32.mrb[137].mxu0  ;;  %14143 = vmax.xlane.f32.xlu1 %v14142_v40  ;;  %v13669_v32 = vpop.f32.mrb[138].mxu1  ;;  %v32399_v36 = vmul.f32 0.35355338, %v13596_v29 }
 0x8e4   :  { %v32397_v28 = vmul.f32 0.35355338, %v13669_v32  ;;  %v27172_v44 = vpop.f32.mrb[139].mxu1 }
 0x8e5   :  { %v14145_v32 = vsel %vm3555_vm6, %v32399_v36, -inf }
 0x8e6   :  { %v13742_v48 = vpop.f32.mrb[138].mxu0  ;;  %14140 = vmax.xlane.f32.xlu0 %v14139_v43  ;;  %v14148_v51 = vsel %vm3555_vm6, %v32397_v28, -inf }
 0x8e7   :  { %v27177_v25 = vpop.f32.mrb[139].mxu0  ;;  %14149 = vmax.xlane.f32.xlu1 %v14148_v51  ;;  %v13815_v13 = vpop.f32.mrb[140].mxu1  ;;  %v32405_v19 = vmul.f32 0.35355338, %v13742_v48 }
 0x8e8   :  { %v27182_v18 = vpop.f32.mrb[141].mxu1  ;;  %v32409_v46 = vmul.f32 0.35355338, %v13815_v13 }
 0x8e9   :  { %v14151_v43 = vsel %vm3555_vm6, %v32405_v19, -inf }
 0x8ea   :  { %v13888_v40 = vpop.f32.mrb[140].mxu0  ;;  %14146 = vmax.xlane.f32.xlu0 %v14145_v32  ;;  %v14154_v18 = vsel %vm3555_vm6, %v32409_v46, -inf }
 0x8eb   :  { %v27187_v29 = vpop.f32.mrb[141].mxu0  ;;  %v13961_v44 = vpop.f32.mrb[142].mxu1  ;;  %v32413_v25 = vmul.f32 0.35355338, %v13888_v40 }
 0x8ec   :  { %v27192_v39 = vpop.f32.mrb[143].mxu1  ;;  %v32417_v48 = vmul.f32 0.35355338, %v13961_v44 }
 0x8ed   :  { %v14157_v32 = vsel %vm3555_vm6, %v32413_v25, -inf }
 0x8ee   :  { %v14034_v27 = vpop.f32.mrb[142].mxu0  ;;  %14152 = vmax.xlane.f32.xlu0 %v14151_v43  ;;  %36533 = vst [vmem:[#allocation54_spill] sm:$0xff] %v32417_v48  ;;  %v14160_v13 = vsel %vm3555_vm6, %v32417_v48, -inf }
 0x8ef   :  { %v27197_v51 = vpop.f32.mrb[143].mxu0  ;;  %v32423_v39 = vmul.f32 0.35355338, %v14034_v27 }
 0x8f1   :  { %36534 = vst [vmem:[#allocation60_spill] sm:$0xff] %v32423_v39  ;;  %v14163_v40 = vsel %vm3555_vm6, %v32423_v39, -inf }
 0x8f2   :  { %14155 = vmax.xlane.f32.xlu0 %v14154_v18 }
 0x8f6   :  { %14158 = vmax.xlane.f32.xlu0 %v14157_v32 }
 0x8f8   :  { %14423 = vrot.lane.b32.xlu1 %v32038_v42, %s28951_s16 }
 0x8fa   :  { %14161 = vmax.xlane.f32.xlu0 %v14160_v13 }
 0x8fe   :  { %14164 = vmax.xlane.f32.xlu0 %v14163_v40 }
 0x940   :  { %v14072_v29 = vpop.xlane.xlu1 %14071 }
 0x941   :  { %v14166_v44 = vsub.f32 %v32299_v24, %v14072_v29 }
 0x943   :  { %v14198_v43 = vmul.f32 1.442695, %v14166_v44  ;;  %v14075_v51 = vpop.xlane.xlu0 %14074 }
 0x944   :  { %v14167_v18 = vsub.f32 %v32303_v31, %v14075_v51 }
 0x945   :  { %28405 = vpow2.f32 %v14198_v43 }
 0x946   :  { %v14200_v32 = vmul.f32 1.442695, %v14167_v18 }
 0x947   :  { %v14078_v42 = vpop.xlane.xlu0 %14077 }
 0x948   :  { %28407 = vpow2.f32 %v14200_v32  ;;  %v14168_v27 = vsub.f32 %v32305_v56, %v14078_v42  ;;  %v14084_v37 = vpop.xlane.xlu1 %14083 }
 0x949   :  { %v14170_v13 = vsub.f32 %v32311_v30, %v14084_v37 }
 0x94a   :  { %v14202_v8 = vmul.f32 1.442695, %v14168_v27 }
 0x94b   :  { %v14081_v17 = vpop.xlane.xlu0 %14080  ;;  %v14206_v24 = vmul.f32 1.442695, %v14170_v13 }
 0x94c   :  { %28409 = vpow2.f32 %v14202_v8  ;;  %v14169_v40 = vsub.f32 %v32313_v49, %v14081_v17  ;;  %v14090_v50 = vpop.xlane.xlu1 %14089 }
 0x94d   :  { %v14172_v37 = vsub.f32 %v32317_v58, %v14090_v50 }
 0x94e   :  { %v14204_v29 = vmul.f32 1.442695, %v14169_v40 }
 0x94f   :  { %v32434_v44 = vpop.eup %28405  ;;  %v14087_v31 = vpop.xlane.xlu0 %14086  ;;  %v14210_v42 = vmul.f32 1.442695, %v14172_v37 }
 0x950   :  { %28411 = vpow2.f32 %v14204_v29  ;;  %v14171_v43 = vsub.f32 %v32319_v54, %v14087_v31  ;;  %v14096_v51 = vpop.xlane.xlu1 %14095  ;;  %v14262_v56 = vsel %vm3555_vm6, %v32434_v44, 0.0 }
 0x951   :  { %14263 = vadd.xlane.f32.xlu1 %v14262_v56  ;;  %28413 = vpow2.f32 %v14206_v24 }
 0x952   :  { %v32439_v18 = vpop.eup %28407  ;;  %v14208_v17 = vmul.f32 1.442695, %v14171_v43 }
 0x953   :  { %v14093_v8 = vpop.xlane.xlu0 %14092  ;;  %v14265_v49 = vsel %vm3555_vm6, %v32439_v18, 0.0 }
 0x954   :  { %14266 = vadd.xlane.f32.xlu0 %v14265_v49  ;;  %v14102_v30 = vpop.xlane.xlu1 %14101  ;;  %28415 = vpow2.f32 %v14208_v17  ;;  %v14173_v27 = vsub.f32 %v32327_v2, %v14093_v8 }
 0x955   :  { %v14176_v32 = vsub.f32 %v32333_v7, %v14102_v30  ;;  %v14174_v7 = vsub.f32 %v32325_v45, %v14096_v51 }
 0x956   :  { %v32445_v54 = vpop.eup %28409  ;;  %v14212_v31 = vmul.f32 1.442695, %v14173_v27 }
 0x957   :  { %v14218_v13 = vmul.f32 1.442695, %v14176_v32  ;;  %v14099_v40 = vpop.xlane.xlu0 %14098  ;;  %v14268_v50 = vsel %vm3555_vm6, %v32445_v54, 0.0  ;;  %v14214_v8 = vmul.f32 1.442695, %v14174_v7 }
 0x958   :  { %14269 = vadd.xlane.f32.xlu0 %v14268_v50  ;;  %v14108_v58 = vpop.xlane.xlu1 %14107 }
 0x959   :  { %28417 = vpow2.f32 %v14218_v13  ;;  %v14178_v24 = vsub.f32 %v32341_v23, %v14108_v58  ;;  %v14175_v23 = vsub.f32 %v32335_v34, %v14099_v40 }
 0x95a   :  { %v32451_v29 = vpop.eup %28411  ;;  %28419 = vpow2.f32 %v14210_v42 }
 0x95b   :  { %v14222_v43 = vmul.f32 1.442695, %v14178_v24  ;;  %v14271_v2 = vsel %vm3555_vm6, %v32451_v29, 0.0  ;;  %v32456_v56 = vpop.eup %28413  ;;  %v14105_v17 = vpop.xlane.xlu0 %14104  ;;  %v14216_v51 = vmul.f32 1.442695, %v14175_v23 }
 0x95c   :  { %14272 = vadd.xlane.f32.xlu0 %v14271_v2  ;;  %v14114_v37 = vpop.xlane.xlu1 %14113  ;;  %v14274_v49 = vsel %vm3555_vm6, %v32456_v56, 0.0  ;;  %v14177_v32 = vsub.f32 %v32343_v15, %v14105_v17 }
 0x95d   :  { %28421 = vpow2.f32 %v14222_v43 }
 0x95e   :  { %28423 = vpow2.f32 %v14212_v31  ;;  %v32461_v30 = vpop.eup %28415  ;;  %v14220_v58 = vmul.f32 1.442695, %v14177_v32 }
 0x95f   :  { %28425 = vpow2.f32 %v14214_v8  ;;  %v14111_v27 = vpop.xlane.xlu0 %14110  ;;  %v14277_v13 = vsel %vm3555_vm6, %v32461_v30, 0.0 }
 0x960   :  { %14275 = vadd.xlane.f32.xlu0 %v14274_v49  ;;  %v32463_v45 = vpop.xlane.xlu1 %14119  ;;  %28427 = vpow2.f32 %v14216_v51  ;;  %v14179_v24 = vsub.f32 %v32351_v33, %v14111_v27 }
 0x961   :  { %28429 = vpow2.f32 %v14220_v58 }
 0x962   :  { %v14224_v17 = vmul.f32 1.442695, %v14179_v24 }
 0x963   :  { %v32466_v42 = vpop.eup %28417 }
 0x964   :  { %v32470_v50 = vpop.eup %28419  ;;  %14278 = vadd.xlane.f32.xlu0 %v14277_v13  ;;  %v32472_v34 = vpop.xlane.xlu1 %14125  ;;  %v14292_v40 = vsel %vm3555_vm6, %v32466_v42, 0.0  ;;  %28431 = vpow2.f32 %v14224_v17 }
 0x965   :  { %14293 = vadd.xlane.f32.xlu1 %v14292_v40  ;;  %v14280_v7 = vsel %vm3555_vm6, %v32470_v50, 0.0 }
 0x967   :  { %v32477_v15 = vpop.eup %28421 }
 0x968   :  { %36535 = vst [vmem:[#allocation67_spill] sm:$0xff] %v32477_v15  ;;  %v32481_v31 = vpop.eup %28423  ;;  %14281 = vadd.xlane.f32.xlu0 %v14280_v7  ;;  %v32483_v43 = vpop.xlane.xlu1 %14131  ;;  %v14298_v2 = vsel %vm3555_vm6, %v32477_v15, 0.0 }
 0x969   :  { %14299 = vadd.xlane.f32.xlu1 %v14298_v2  ;;  %v14283_v8 = vsel %vm3555_vm6, %v32481_v31, 0.0  ;;  %v32489_v33 = vpop.eup %28425 }
 0x96a   :  { %v14286_v49 = vsel %vm3555_vm6, %v32489_v33, 0.0  ;;  %v32495_v51 = vpop.eup %28427 }
 0x96b   :  { %v14289_v27 = vsel %vm3555_vm6, %v32495_v51, 0.0  ;;  %v32501_v13 = vpop.eup %28429 }
 0x96c   :  { %14284 = vadd.xlane.f32.xlu0 %v14283_v8  ;;  %v32491_v23 = vpop.xlane.xlu1 %14137  ;;  %v14295_v58 = vsel %vm3555_vm6, %v32501_v13, 0.0  ;;  %v14180_v8 = vsub.f32 %v32349_v1, %v14114_v37 }
 0x96e   :  { %v32507_v24 = vpop.eup %28431 }
 0x96f   :  { %36536 = vst [vmem:[#allocation32_spill] sm:$0xff] %v32507_v24  ;;  %v14301_v17 = vsel %vm3555_vm6, %v32507_v24, 0.0 }
 0x970   :  { %14287 = vadd.xlane.f32.xlu0 %v14286_v49  ;;  %v32497_v32 = vpop.xlane.xlu1 %14143  ;;  %v14226_v49 = vmul.f32 1.442695, %v14180_v8 }
 0x972   :  { %28433 = vpow2.f32 %v14226_v49 }
 0x974   :  { %14290 = vadd.xlane.f32.xlu0 %v14289_v27  ;;  %v32503_v40 = vpop.xlane.xlu1 %14149 }
 0x978   :  { %14296 = vadd.xlane.f32.xlu0 %v14295_v58  ;;  %v32509_v7 = vpop.permute.xlu1 %14423  ;;  %v14117_v58 = vpop.xlane.xlu0 %14116 }
 0x979   :  { %v14426_v2 = vmul.f32 %v32509_v7, %v36391_v60  ;;  %v14427_v27 = vmul.f32 %v32509_v7, %v36389_v6  ;;  %v14181_v60 = vsub.f32 %v32359_v16, %v14117_v58  ;;  %v14429_v58 = vmul.f32 %v32509_v7, %v36400_v11 }
 0x97b   :  { %14459 = vrot.lane.b32.xlu1 %v14426_v2, %s28951_s16  ;;  %v14228_v39 = vmul.f32 1.442695, %v14181_v60  ;;  %v14182_v60 = vsub.f32 %v32357_v41, %v32463_v45 }
 0x97c   :  { %14302 = vadd.xlane.f32.xlu0 %v14301_v17  ;;  %v32520_v9 = vpop.eup %28433  ;;  %v14123_v2 = vpop.xlane.xlu0 %14122  ;;  %v14428_v17 = vmul.f32 %v32509_v7, %v36401_v20 }
 0x97d   :  { %36537 = vst [vmem:[#allocation73_spill] sm:$0xff] %v32520_v9  ;;  %v14304_v24 = vsel %vm3555_vm6, %v32520_v9, 0.0  ;;  %28435 = vpow2.f32 %v14228_v39  ;;  %v14183_v20 = vsub.f32 %v32367_v62, %v14123_v2 }
 0x97f   :  { %v14232_v45 = vmul.f32 1.442695, %v14183_v20 }
 0x980   :  { %v14129_v37 = vpop.xlane.xlu0 %14128 }
 0x984   :  { %v32532_v16 = vpop.xlane.xlu0 %14134 }
 0x987   :  { %v32525_v1 = vpop.eup %28435 }
 0x988   :  { %36538 = vst [vmem:[#allocation79_spill] sm:$0xff] %v32525_v1  ;;  %v14307_v8 = vsel %vm3555_vm6, %v32525_v1, 0.0  ;;  %v32534_v49 = vpop.xlane.xlu0 %14140  ;;  %v14430_v1 = vmul.f32 %v32509_v7, %v36407_v57 }
 0x98c   :  { %v32538_v39 = vpop.xlane.xlu0 %14146 }
 0x992   :  { %14536 = vrot.lane.b32.xlu0 %v14427_v27, %s28951_s16  ;;  %v32540_v27 = vpop.xlane.xlu0 %14152 }
 0x99f   :  { %14305 = vadd.xlane.f32.xlu1 %v14304_v24  ;;  %v14230_v24 = vmul.f32 1.442695, %v14182_v60 }
 0x9a1   :  { %28437 = vpow2.f32 %v14230_v24 }
 0x9a2   :  { %28439 = vpow2.f32 %v14232_v45 }
 0x9b0   :  { %14613 = vrot.lane.b32.xlu1 %v14428_v17, %s28951_s16  ;;  %v32545_v17 = vpop.xlane.xlu0 %14155 }
 0x9b1   :  { %14308 = vadd.xlane.f32.xlu0 %v14307_v8  ;;  %v32547_v8 = vpop.eup %28437 }
 0x9b2   :  { %36539 = vst [vmem:[#allocation85_spill] sm:$0xff] %v32547_v8  ;;  %v14310_v41 = vsel %vm3555_vm6, %v32547_v8, 0.0 }
 0x9b4   :  { %v32550_v6 = vpop.xlane.xlu0 %14158 }
 0x9b8   :  { %v32554_v60 = vpop.xlane.xlu0 %14161 }
 0x9b9   :  { %36540 = vst [vmem:[#allocation92_spill] sm:$0xff] %v32554_v60 }
 0x9bc   :  { %v32556_v11 = vpop.xlane.xlu0 %14164 }
 0x9bd   :  { %36541 = vst [vmem:[#allocation98_spill] sm:$0xff] %v32556_v11  ;;  %v14184_v11 = vsub.f32 %v32365_v10, %v32472_v34 }
 0x9bf   :  { %v14234_v48 = vmul.f32 1.442695, %v14184_v11 }
 0x9c7   :  { %14690 = vrot.lane.b32.xlu0 %v14429_v58, %s28951_s16  ;;  %v32558_v58 = vpop.eup %28439 }
 0x9c8   :  { %36542 = vst [vmem:[#allocation104_spill] sm:$0xff] %v32558_v58  ;;  %v14313_v62 = vsel %vm3555_vm6, %v32558_v58, 0.0 }
 0x9d4   :  { %14311 = vadd.xlane.f32.xlu1 %v14310_v41 }
 0x9de   :  { %v14264_v2 = vpop.xlane.xlu1 %14263 }
 0x9df   :  { %28441 = vrcp.f32 %v14264_v2  ;;  %v14431_v2 = vmul.f32 %v32509_v7, %v36406_v4 }
 0x9e0   :  { %28443 = vpow2.f32 %v14234_v48 }
 0x9e1   :  { %v14267_v24 = vpop.xlane.xlu0 %14266 }
 0x9e2   :  { %28445 = vrcp.f32 %v14267_v24 }
 0x9e5   :  { %v14270_v9 = vpop.xlane.xlu0 %14269  ;;  %14767 = vrot.lane.b32.xlu1 %v14430_v1, %s28951_s16 }
 0x9e6   :  { %14314 = vadd.xlane.f32.xlu0 %v14313_v62 }
 0x9e9   :  { %v14273_v20 = vpop.xlane.xlu0 %14272  ;;  %v28442_v58 = vpop.eup %28441 }
 0x9ea   :  { %v14359_v60 = vmul.f32 %v28442_v58, %v32434_v44  ;;  %v32591_v34 = vpop.eup %28443  ;;  %v14185_v44 = vsub.f32 %v32375_v22, %v14129_v37  ;;  %v14432_v37 = vmul.f32 %v32509_v7, %v36415_v0 }
 0x9eb   :  { %v14316_v58 = vsel %vm3555_vm6, %v32591_v34, 0.0 }
 0x9ed   :  { %v32565_v41 = vpop.xlane.xlu0 %14275 }
 0x9f1   :  { %v32567_v45 = vpop.xlane.xlu0 %14278 }
 0x9f2   :  { %v32569_v8 = vpop.xlane.xlu1 %14293 }
 0x9f5   :  { %v32573_v57 = vpop.xlane.xlu0 %14281 }
 0x9f6   :  { %v32575_v15 = vpop.xlane.xlu1 %14299 }
 0x9f9   :  { %v32577_v1 = vpop.xlane.xlu0 %14284 }
 0x9fa   :  { %v14460_v62 = vpop.permute.xlu1 %14459 }
 0x9fb   :  { %27199 = vmatpush3.msra.mxu1 %v14460_v62 }
 0x9fc   :  { %14844 = vrot.lane.b32.xlu0 %v14431_v2, %s28951_s16  ;;  %27201 = vmatmul.mubr.msk.f32.vlgmr.msra.gmra.mrb[80].mxu1 %vm3555_vm6, %v14359_v60  ;;  %v14236_v60 = vmul.f32 1.442695, %v14185_v44  ;;  %v28446_v2 = vpop.eup %28445 }
 0x9fd   :  { %v32584_v10 = vpop.xlane.xlu0 %14287  ;;  %27208 = vmatprep.subr.mxu1 %v36187_v26  ;;  %27210 = vmatprep.mubr.msk.f32.mxu1 %vm28952_vm5, %v36187_v26  ;;  %v14361_v24 = vmul.f32 %v28446_v2, %v32439_v18  ;;  %v14433_v2 = vmul.f32 %v32509_v7, %v36414_v63 }
 0x9fe   :  { %28447 = vpow2.f32 %v14236_v60 }
 0x9ff   :  { %28449 = vrcp.f32 %v14270_v9 }
 0xa01   :  { %v32589_v11 = vpop.xlane.xlu0 %14290 }
 0xa05   :  { %v32594_v48 = vpop.xlane.xlu0 %14296 }
 0xa08   :  { %v32605_v22 = vpop.eup %28447 }
 0xa09   :  { %v32598_v62 = vpop.xlane.xlu0 %14302  ;;  %14317 = vadd.xlane.f32.xlu1 %v14316_v58  ;;  %v14319_v44 = vsel %vm3555_vm6, %v32605_v22, 0.0  ;;  %v28450_v60 = vpop.eup %28449 }
 0xa0a   :  { %v14363_v0 = vmul.f32 %v28450_v60, %v32445_v54 }
 0xa0d   :  { %v14537_v4 = vpop.permute.xlu0 %14536 }
 0xa0e   :  { %27204 = vmatpush3.msra.mxu0 %v14537_v4  ;;  %v14186_v4 = vsub.f32 %v32373_v35, %v32483_v43  ;;  %v14187_v35 = vsub.f32 %v32383_v38, %v32532_v16  ;;  %v14434_v16 = vmul.f32 %v32509_v7, %v36423_v5 }
 0xa0f   :  { %27206 = vmatmul.mubr.msk.f32.vlgmr.msra.gmra.mrb[80].mxu0 %vm3555_vm6, %v14361_v24  ;;  %27213 = vmatprep.subr.mxu0 %v36187_v26 }
 0xa10   :  { %27215 = vmatprep.mubr.msk.f32.mxu0 %vm28952_vm5, %v36187_v26  ;;  %v14238_v18 = vmul.f32 1.442695, %v14186_v4  ;;  %v14240_v54 = vmul.f32 1.442695, %v14187_v35 }
 0xa12   :  { %28451 = vpow2.f32 %v14238_v18 }
 0xa13   :  { %28453 = vrcp.f32 %v14273_v20 }
 0xa14   :  { %28455 = vpow2.f32 %v14240_v54 }
 0xa15   :  { %28457 = vrcp.f32 %v32565_v41 }
 0xa1a   :  { %14921 = vrot.lane.b32.xlu1 %v14432_v37, %s28951_s16 }
 0xa1b   :  { %14320 = vadd.xlane.f32.xlu0 %v14319_v44 }
 0xa1c   :  { %v32624_v9 = vpop.eup %28451 }
 0xa1d   :  { %v14322_v43 = vsel %vm3555_vm6, %v32624_v9, 0.0  ;;  %v28454_v44 = vpop.eup %28453 }
 0xa1e   :  { %v14365_v4 = vmul.f32 %v28454_v44, %v32451_v29  ;;  %v32637_v38 = vpop.eup %28455  ;;  %v14188_v29 = vsub.f32 %v32381_v55, %v32491_v23  ;;  %v14189_v23 = vsub.f32 %v32391_v21, %v32534_v49  ;;  %v14436_v49 = vmul.f32 %v32509_v7, %v36431_v59 }
 0xa1f   :  { %v14325_v20 = vsel %vm3555_vm6, %v32637_v38, 0.0 }
 0xa20   :  { %v14242_v18 = vmul.f32 1.442695, %v14188_v29  ;;  %v14244_v41 = vmul.f32 1.442695, %v14189_v23 }
 0xa22   :  { %28459 = vpow2.f32 %v14242_v18  ;;  %v14437_v18 = vmul.f32 %v32509_v7, %v36430_v52 }
 0xa23   :  { %28461 = vrcp.f32 %v32567_v45 }
 0xa24   :  { %28463 = vpow2.f32 %v14244_v41 }
 0xa25   :  { %28465 = vrcp.f32 %v32573_v57 }
 0xa2c   :  { %v32614_v58 = vpop.xlane.xlu1 %14305 }
 0xa30   :  { %v14614_v24 = vpop.permute.xlu1 %14613 }
 0xa31   :  { %14998 = vrot.lane.b32.xlu0 %v14433_v2, %s28951_s16  ;;  %27209 = vmatpush3.msra.mxu1 %v14614_v24  ;;  %v28458_v2 = vpop.eup %28457  ;;  %v14435_v24 = vmul.f32 %v32509_v7, %v36422_v61 }
 0xa32   :  { %27211 = vmatmul.mubr.msk.f32.vlgmr.msra.gmra.mrb[82].mxu1 %vm3555_vm6, %v14363_v0  ;;  %27218 = vmatprep.subr.mxu1 %v36187_v26  ;;  %v32658_v55 = vpop.eup %28459 }
 0xa33   :  { %27220 = vmatprep.mubr.msk.f32.mxu1 %vm28952_vm5, %v36187_v26  ;;  %v28462_v44 = vpop.eup %28461 }
 0xa34   :  { %v32671_v21 = vpop.eup %28463 }
 0xa35   :  { %v14331_v45 = vsel %vm3555_vm6, %v32671_v21, 0.0  ;;  %v28466_v29 = vpop.eup %28465 }
 0xa3e   :  { %v32630_v37 = vpop.xlane.xlu0 %14308  ;;  %14323 = vadd.xlane.f32.xlu1 %v14322_v43  ;;  %v14367_v43 = vmul.f32 %v28458_v2, %v32456_v56  ;;  %v14328_v56 = vsel %vm3555_vm6, %v32658_v55, 0.0 }
 0xa42   :  { %v14691_v0 = vpop.permute.xlu0 %14690 }
 0xa43   :  { %27214 = vmatpush3.msra.mxu0 %v14691_v0 }
 0xa44   :  { %27216 = vmatmul.mubr.msk.f32.vlgmr.msra.gmra.mrb[82].mxu0 %vm3555_vm6, %v14365_v4  ;;  %27223 = vmatprep.subr.mxu0 %v36187_v26  ;;  %v14369_v4 = vmul.f32 %v28462_v44, %v32461_v30  ;;  %v14190_v30 = vsub.f32 %v32389_v3, %v32497_v32  ;;  %v14191_v3 = vsub.f32 %v32399_v36, %v32538_v39 }
 0xa45   :  { %27225 = vmatprep.mubr.msk.f32.mxu0 %vm28952_vm5, %v36187_v26  ;;  %v14438_v39 = vmul.f32 %v32509_v7, %v36439_v53 }
 0xa46   :  { %v14248_v32 = vmul.f32 1.442695, %v14191_v3 }
 0xa4f   :  { %15075 = vrot.lane.b32.xlu1 %v14434_v16, %s28951_s16  ;;  %v14246_v16 = vmul.f32 1.442695, %v14190_v30 }
 0xa50   :  { %14326 = vadd.xlane.f32.xlu0 %v14325_v20 }
 0xa51   :  { %28467 = vpow2.f32 %v14246_v16 }
 0xa52   :  { %28469 = vrcp.f32 %v32577_v1 }
 0xa53   :  { %28471 = vpow2.f32 %v14248_v32 }
 0xa54   :  { %28473 = vrcp.f32 %v32584_v10 }
 0xa5b   :  { %v32692_v57 = vpop.eup %28467 }
 0xa61   :  { %v32647_v60 = vpop.xlane.xlu1 %14311 }
 0xa65   :  { %v14768_v35 = vpop.permute.xlu1 %14767 }
 0xa66   :  { %15152 = vrot.lane.b32.xlu0 %v14435_v24, %s28951_s16  ;;  %27219 = vmatpush3.msra.mxu1 %v14768_v35  ;;  %v14371_v24 = vmul.f32 %v28466_v29, %v32470_v50  ;;  %v14334_v50 = vsel %vm3555_vm6, %v32692_v57, 0.0 }
 0xa67   :  { %27221 = vmatmul.mubr.msk.f32.vlgmr.msra.gmra.mrb[84].mxu1 %vm3555_vm6, %v14367_v43  ;;  %27228 = vmatprep.subr.mxu1 %v36187_v26  ;;  %v28470_v43 = vpop.eup %28469 }
 0xa68   :  { %27230 = vmatprep.mubr.msk.f32.mxu1 %vm28952_vm5, %v36187_v26  ;;  %v32705_v36 = vpop.eup %28471 }
 0xa69   :  { %v14337_v1 = vsel %vm3555_vm6, %v32705_v36, 0.0 }
 0xa73   :  { %v32664_v54 = vpop.xlane.xlu0 %14314  ;;  %14329 = vadd.xlane.f32.xlu1 %v14328_v56  ;;  %v14373_v56 = vmul.f32 %v28470_v43, %v32481_v31  ;;  %v14192_v31 = vsub.f32 %v32397_v28, %v32503_v40  ;;  %v14193_v40 = vsub.f32 %v32405_v19, %v32540_v27  ;;  %v14440_v27 = vmul.f32 %v32509_v7, %v36445_v14 }
 0xa75   :  { %v14250_v41 = vmul.f32 1.442695, %v14192_v31  ;;  %v14252_v10 = vmul.f32 1.442695, %v14193_v40  ;;  %v36546_v40 = vld [vmem:[#allocation33_spill] sm:$0xff] }
 0xa77   :  { %v14845_v0 = vpop.permute.xlu0 %14844  ;;  %28475 = vpow2.f32 %v14250_v41  ;;  %v36545_v41 = vld [vmem:[#allocation54_spill] sm:$0xff] }
 0xa78   :  { %27224 = vmatpush3.msra.mxu0 %v14845_v0  ;;  %v28474_v0 = vpop.eup %28473  ;;  %28477 = vrcp.f32 %v32589_v11 }
 0xa79   :  { %27226 = vmatmul.mubr.msk.f32.vlgmr.msra.gmra.mrb[84].mxu0 %vm3555_vm6, %v14369_v4  ;;  %27233 = vmatprep.subr.mxu0 %v36187_v26  ;;  %v14439_v4 = vmul.f32 %v32509_v7, %v36438_v12  ;;  %28479 = vpow2.f32 %v14252_v10 }
 0xa7a   :  { %27235 = vmatprep.mubr.msk.f32.mxu0 %vm28952_vm5, %v36187_v26  ;;  %28481 = vrcp.f32 %v32569_v8 }
 0xa81   :  { %v32726_v28 = vpop.eup %28475 }
 0xa82   :  { %v28478_v16 = vpop.eup %28477 }
 0xa83   :  { %v32739_v19 = vpop.eup %28479 }
 0xa84   :  { %15229 = vrot.lane.b32.xlu1 %v14436_v49, %s28951_s16  ;;  %v14343_v11 = vsel %vm3555_vm6, %v32739_v19, 0.0  ;;  %v28482_v3 = vpop.eup %28481 }
 0xa85   :  { %14332 = vadd.xlane.f32.xlu0 %v14331_v45  ;;  %v14375_v45 = vmul.f32 %v28474_v0, %v32489_v33  ;;  %v14340_v33 = vsel %vm3555_vm6, %v32726_v28, 0.0  ;;  %v14379_v43 = vmul.f32 %v28482_v3, %v32466_v42 }
 0xa96   :  { %v32681_v20 = vpop.xlane.xlu1 %14317 }
 0xa9a   :  { %v14922_v2 = vpop.permute.xlu1 %14921 }
 0xa9b   :  { %15306 = vrot.lane.b32.xlu0 %v14437_v18, %s28951_s16  ;;  %27229 = vmatpush3.msra.mxu1 %v14922_v2  ;;  %v14377_v18 = vmul.f32 %v28478_v16, %v32495_v51  ;;  %v14194_v51 = vsub.f32 %v32409_v46, %v32545_v17  ;;  %v14195_v17 = vsub.f32 %v32413_v25, %v32550_v6  ;;  %v36543_v25 = vld [vmem:[#allocation31_spill] sm:$0xff] }
 0xa9c   :  { %27231 = vmatmul.mubr.msk.f32.vlgmr.msra.gmra.mrb[86].mxu1 %vm3555_vm6, %v14371_v24  ;;  %27238 = vmatprep.subr.mxu1 %v36187_v26  ;;  %v36547_v16 = vld [vmem:[#allocation67_spill] sm:$0xff] }
 0xa9d   :  { %27240 = vmatprep.mubr.msk.f32.mxu1 %vm28952_vm5, %v36187_v26  ;;  %v14254_v2 = vmul.f32 1.442695, %v14194_v51  ;;  %v14256_v8 = vmul.f32 1.442695, %v14195_v17  ;;  %v36549_v51 = vld [vmem:[#allocation98_spill] sm:$0xff] }
 0xa9f   :  { %28483 = vpow2.f32 %v14254_v2  ;;  %v36550_v2 = vld [vmem:[#allocation60_spill] sm:$0xff] }
 0xaa0   :  { %28485 = vrcp.f32 %v32594_v48  ;;  %v14442_v48 = vmul.f32 %v32509_v7, %v36543_v25  ;;  %v14197_v3 = vsub.f32 %v36550_v2, %v36549_v51  ;;  %v36559_v2 = vld [vmem:[#allocation73_spill] sm:$0xff] }
 0xaa1   :  { %28487 = vpow2.f32 %v14256_v8 }
 0xaa2   :  { %28489 = vrcp.f32 %v32575_v15  ;;  %v36548_v15 = vld [vmem:[#allocation34_spill] sm:$0xff] }
 0xaa8   :  { %v32698_v35 = vpop.xlane.xlu0 %14320  ;;  %14335 = vadd.xlane.f32.xlu1 %v14334_v50  ;;  %v14441_v50 = vmul.f32 %v32509_v7, %v36444_v47 }
 0xaa9   :  { %v32760_v46 = vpop.eup %28483 }
 0xaaa   :  { %v14346_v42 = vsel %vm3555_vm6, %v32760_v46, 0.0 }
 0xaac   :  { %v14999_v23 = vpop.permute.xlu0 %14998 }
 0xaad   :  { %27234 = vmatpush3.msra.mxu0 %v14999_v23 }
 0xaae   :  { %27236 = vmatmul.mubr.msk.f32.vlgmr.msra.gmra.mrb[86].mxu0 %vm3555_vm6, %v14373_v56  ;;  %27243 = vmatprep.subr.mxu0 %v36187_v26  ;;  %v28486_v56 = vpop.eup %28485 }
 0xaaf   :  { %27245 = vmatprep.mubr.msk.f32.mxu0 %vm28952_vm5, %v36187_v26  ;;  %v32773_v6 = vpop.eup %28487 }
 0xab0   :  { %v14349_v31 = vsel %vm3555_vm6, %v32773_v6, 0.0 }
 0xab9   :  { %15383 = vrot.lane.b32.xlu1 %v14438_v39, %s28951_s16 }
 0xaba   :  { %14338 = vadd.xlane.f32.xlu0 %v14337_v1  ;;  %v14381_v1 = vmul.f32 %v28486_v56, %v32501_v13  ;;  %v36544_v13 = vld [vmem:[#allocation92_spill] sm:$0xff] }
 0xabb   :  { %v14196_v0 = vsub.f32 %v36545_v41, %v36544_v13  ;;  %v36554_v13 = vld [vmem:[#allocation38_spill] sm:$0xff] }
 0xabc   :  { %v14448_v41 = vmul.f32 %v32509_v7, %v36554_v13 }
 0xacb   :  { %v32715_v44 = vpop.xlane.xlu1 %14323 }
 0xacf   :  { %v15076_v49 = vpop.permute.xlu1 %15075 }
 0xad0   :  { %15460 = vrot.lane.b32.xlu0 %v14439_v4, %s28951_s16  ;;  %27239 = vmatpush3.msra.mxu1 %v15076_v49  ;;  %v14258_v4 = vmul.f32 1.442695, %v14196_v0  ;;  %v36555_v0 = vld [vmem:[#allocation39_spill] sm:$0xff] }
 0xad1   :  { %27241 = vmatmul.mubr.msk.f32.vlgmr.msra.gmra.mrb[88].mxu1 %vm3555_vm6, %v14375_v45  ;;  %27248 = vmatprep.subr.mxu1 %v36187_v26  ;;  %v28490_v45 = vpop.eup %28489 }
 0xad2   :  { %27250 = vmatprep.mubr.msk.f32.mxu1 %vm28952_vm5, %v36187_v26  ;;  %28491 = vpow2.f32 %v14258_v4  ;;  %v14449_v4 = vmul.f32 %v32509_v7, %v36555_v0 }
 0xad3   :  { %28493 = vrcp.f32 %v32598_v62  ;;  %v36552_v62 = vld [vmem:[#allocation35_spill] sm:$0xff] }
 0xad4   :  { %v14445_v56 = vmul.f32 %v32509_v7, %v36552_v62 }
 0xadd   :  { %v32732_v30 = vpop.xlane.xlu0 %14326  ;;  %14341 = vadd.xlane.f32.xlu1 %v14340_v33  ;;  %v14443_v33 = vmul.f32 %v32509_v7, %v36546_v40 }
 0xae1   :  { %v15153_v29 = vpop.permute.xlu0 %15152 }
 0xae2   :  { %27244 = vmatpush3.msra.mxu0 %v15153_v29  ;;  %v14383_v29 = vmul.f32 %v28490_v45, %v36547_v16  ;;  %v36556_v45 = vld [vmem:[#allocation41_spill] sm:$0xff]  ;;  %v36557_v16 = vld [vmem:[#allocation43_spill] sm:$0xff] }
 0xae3   :  { %27246 = vmatmul.mubr.msk.f32.vlgmr.msra.gmra.mrb[88].mxu0 %vm3555_vm6, %v14377_v18  ;;  %27253 = vmatprep.subr.mxu0 %v36187_v26  ;;  %v14444_v18 = vmul.f32 %v32509_v7, %v36548_v15 }
 0xae4   :  { %27255 = vmatprep.mubr.msk.f32.mxu0 %vm28952_vm5, %v36187_v26 }
 0xaee   :  { %15537 = vrot.lane.b32.xlu1 %v14440_v27, %s28951_s16  ;;  %v32797_v27 = vpop.eup %28491 }
 0xaef   :  { %14344 = vadd.xlane.f32.xlu0 %v14343_v11  ;;  %v14352_v11 = vsel %vm3555_vm6, %v32797_v27, 0.0 }
 0xb00   :  { %v32749_v24 = vpop.xlane.xlu1 %14329 }
 0xb04   :  { %v15230_v32 = vpop.permute.xlu1 %15229 }
 0xb05   :  { %15614 = vrot.lane.b32.xlu0 %v14441_v50, %s28951_s16  ;;  %27249 = vmatpush3.msra.mxu1 %v15230_v32  ;;  %v28494_v32 = vpop.eup %28493 }
 0xb06   :  { %27251 = vmatmul.mubr.msk.f32.vlgmr.msra.gmra.mrb[90].mxu1 %vm3555_vm6, %v14379_v43  ;;  %27258 = vmatprep.subr.mxu1 %v36187_v26  ;;  %v14260_v43 = vmul.f32 1.442695, %v14197_v3 }
 0xb07   :  { %27260 = vmatprep.mubr.msk.f32.mxu1 %vm28952_vm5, %v36187_v26 }
 0xb08   :  { %28495 = vpow2.f32 %v14260_v43 }
 0xb09   :  { %28497 = vrcp.f32 %v32614_v58  ;;  %v36558_v58 = vld [vmem:[#allocation10_spill] sm:$0xff] }
 0xb0a   :  { %v14455_v51 = vmul.f32 %v32509_v7, %v36558_v58  ;;  %28499 = vrcp.f32 %v32630_v37 }
 0xb0b   :  { %28501 = vrcp.f32 %v32647_v60 }
 0xb0c   :  { %28503 = vrcp.f32 %v32664_v54 }
 0xb0d   :  { %28505 = vrcp.f32 %v32681_v20 }
 0xb0e   :  { %28507 = vrcp.f32 %v32698_v35 }
 0xb0f   :  { %28509 = vrcp.f32 %v32732_v30 }
 0xb12   :  { %v32766_v23 = vpop.xlane.xlu0 %14332  ;;  %14347 = vadd.xlane.f32.xlu1 %v14346_v42  ;;  %v36551_v42 = vld [vmem:[#allocation32_spill] sm:$0xff] }
 0xb13   :  { %v14385_v8 = vmul.f32 %v28494_v32, %v36551_v42  ;;  %v36560_v32 = vld [vmem:[#allocation36_spill] sm:$0xff]  ;;  %28511 = vrcp.f32 %v32766_v23 }
 0xb14   :  { %v14446_v43 = vmul.f32 %v32509_v7, %v36560_v32 }
 0xb16   :  { %v15307_v39 = vpop.permute.xlu0 %15306 }
 0xb17   :  { %27254 = vmatpush3.msra.mxu0 %v15307_v39  ;;  %v32813_v39 = vpop.eup %28495 }
 0xb18   :  { %27256 = vmatmul.mubr.msk.f32.vlgmr.msra.gmra.mrb[90].mxu0 %vm3555_vm6, %v14381_v1  ;;  %27263 = vmatprep.subr.mxu0 %v36187_v26  ;;  %v36553_v1 = vld [vmem:[#allocation37_spill] sm:$0xff] }
 0xb19   :  { %27265 = vmatprep.mubr.msk.f32.mxu0 %vm28952_vm5, %v36187_v26 }
 0xb23   :  { %15691 = vrot.lane.b32.xlu1 %v14442_v48, %s28951_s16  ;;  %v14447_v48 = vmul.f32 %v32509_v7, %v36553_v1 }
 0xb24   :  { %14350 = vadd.xlane.f32.xlu0 %v14349_v31  ;;  %v14355_v31 = vsel %vm3555_vm6, %v32813_v39, 0.0 }
 0xb35   :  { %v32783_v49 = vpop.xlane.xlu1 %14335 }
 0xb39   :  { %v15384_v10 = vpop.permute.xlu1 %15383 }
 0xb3a   :  { %15768 = vrot.lane.b32.xlu0 %v14443_v33, %s28951_s16  ;;  %27259 = vmatpush3.msra.mxu1 %v15384_v10  ;;  %v14451_v33 = vmul.f32 %v32509_v7, %v36556_v45 }
 0xb3b   :  { %27261 = vmatmul.mubr.msk.f32.vlgmr.msra.gmra.mrb[92].mxu1 %vm3555_vm6, %v14383_v29  ;;  %27268 = vmatprep.subr.mxu1 %v36187_v26  ;;  %v14453_v29 = vmul.f32 %v32509_v7, %v36557_v16  ;;  %v36639_v16 = vld [vmem:[#allocation13_spill] sm:$0xff] }
 0xb3c   :  { %27270 = vmatprep.mubr.msk.f32.mxu1 %vm28952_vm5, %v36187_v26 }
 0xb3e   :  { %15845 = vrot.lane.b32.xlu0 %v14444_v18, %s28951_s16  ;;  %v28498_v18 = vpop.eup %28497 }
 0xb3f   :  { %v14387_v3 = vmul.f32 %v28498_v18, %v36559_v2  ;;  %v36565_v18 = vld [vmem:[#allocation79_spill] sm:$0xff] }
 0xb47   :  { %v32803_v50 = vpop.xlane.xlu0 %14338  ;;  %14353 = vadd.xlane.f32.xlu1 %v14352_v11 }
 0xb48   :  { %28513 = vrcp.f32 %v32803_v50 }
 0xb4b   :  { %v15461_v17 = vpop.permute.xlu0 %15460 }
 0xb4c   :  { %27264 = vmatpush3.msra.mxu0 %v15461_v17  ;;  %v36561_v17 = vld [vmem:[#allocation12_spill] sm:$0xff] }
 0xb4d   :  { %27266 = vmatmul.mubr.msk.f32.vlgmr.msra.gmra.mrb[92].mxu0 %vm3555_vm6, %v14385_v8  ;;  %27273 = vmatprep.subr.mxu0 %v36187_v26  ;;  %v14457_v42 = vmul.f32 %v32509_v7, %v36561_v17  ;;  %v36562_v8 = vld [vmem:[#allocation40_spill] sm:$0xff] }
 0xb4e   :  { %27275 = vmatprep.mubr.msk.f32.mxu0 %vm28952_vm5, %v36187_v26 }
 0xb58   :  { %15922 = vrot.lane.b32.xlu1 %v14445_v56, %s28951_s16  ;;  %v14450_v56 = vmul.f32 %v32509_v7, %v36562_v8 }
 0xb5c   :  { %16076 = vrot.lane.b32.xlu1 %v14447_v48, %s28951_s16  ;;  %v36563_v48 = vld [vmem:[#allocation42_spill] sm:$0xff] }
 0xb5d   :  { %14356 = vadd.xlane.f32.xlu0 %v14355_v31  ;;  %v14452_v31 = vmul.f32 %v32509_v7, %v36563_v48 }
 0xb60   :  { %16153 = vrot.lane.b32.xlu1 %v14448_v41, %s28951_s16 }
 0xb64   :  { %16230 = vrot.lane.b32.xlu1 %v14449_v4, %s28951_s16  ;;  %v28500_v4 = vpop.eup %28499 }
 0xb68   :  { %16384 = vrot.lane.b32.xlu1 %v14451_v33, %s28951_s16  ;;  %v36564_v33 = vld [vmem:[#allocation29_spill] sm:$0xff] }
 0xb6a   :  { %v32830_v10 = vpop.xlane.xlu1 %14341 }
 0xb6c   :  { %16538 = vrot.lane.b32.xlu1 %v14453_v29, %s28951_s16  ;;  %v14454_v29 = vmul.f32 %v32509_v7, %v36564_v33 }
 0xb6e   :  { %v15538_v11 = vpop.permute.xlu1 %15537 }
 0xb6f   :  { %27269 = vmatpush3.msra.mxu1 %v15538_v11  ;;  %v14389_v11 = vmul.f32 %v28500_v4, %v36565_v18 }
 0xb70   :  { %16692 = vrot.lane.b32.xlu1 %v14455_v51, %s28951_s16  ;;  %27271 = vmatmul.mubr.msk.f32.vlgmr.msra.gmra.mrb[94].mxu1 %vm3555_vm6, %v14387_v3  ;;  %v36566_v51 = vld [vmem:[#allocation30_spill] sm:$0xff] }
 0xb71   :  { %27278 = vmatprep.subr.mxu1 %v36187_v26  ;;  %27280 = vmatprep.mubr.msk.f32.mxu1 %vm28952_vm5, %v36187_v26  ;;  %v14456_v2 = vmul.f32 %v32509_v7, %v36566_v51 }
 0xb73   :  { %15999 = vrot.lane.b32.xlu0 %v14446_v43, %s28951_s16  ;;  %v28502_v43 = vpop.eup %28501 }
 0xb74   :  { %16846 = vrot.lane.b32.xlu1 %v14457_v42, %s28951_s16  ;;  %v28504_v60 = vpop.eup %28503 }
 0xb75   :  { %v28506_v18 = vpop.eup %28505 }
 0xb76   :  { %v28508_v20 = vpop.eup %28507 }
 0xb77   :  { %16307 = vrot.lane.b32.xlu0 %v14450_v56, %s28951_s16  ;;  %v36567_v56 = vld [vmem:[#allocation85_spill] sm:$0xff] }
 0xb7b   :  { %16461 = vrot.lane.b32.xlu0 %v14452_v31, %s28951_s16  ;;  %v14391_v31 = vmul.f32 %v28502_v43, %v36567_v56 }
 0xb7c   :  { %v14345_v41 = vpop.xlane.xlu0 %14344 }
 0xb7d   :  { %28515 = vrcp.f32 %v14345_v41 }
 0xb7e   :  { %28517 = vrcp.f32 %v32715_v44 }
 0xb7f   :  { %16615 = vrot.lane.b32.xlu0 %v14454_v29, %s28951_s16  ;;  %v36568_v29 = vld [vmem:[#allocation104_spill] sm:$0xff] }
 0xb80   :  { %v15615_v37 = vpop.permute.xlu0 %15614 }
 0xb81   :  { %27274 = vmatpush3.msra.mxu0 %v15615_v37  ;;  %v14393_v37 = vmul.f32 %v28504_v60, %v36568_v29 }
 0xb82   :  { %27276 = vmatmul.mubr.msk.f32.vlgmr.msra.gmra.mrb[94].mxu0 %vm3555_vm6, %v14389_v11  ;;  %27283 = vmatprep.subr.mxu0 %v36187_v26 }
 0xb83   :  { %16769 = vrot.lane.b32.xlu0 %v14456_v2, %s28951_s16  ;;  %27285 = vmatprep.mubr.msk.f32.mxu0 %vm28952_vm5, %v36187_v26  ;;  %v14395_v2 = vmul.f32 %v28506_v18, %v32591_v34  ;;  %v14397_v34 = vmul.f32 %v28508_v20, %v32605_v22 }
 0xb9f   :  { %v32868_v3 = vpop.xlane.xlu1 %14347 }
 0xba3   :  { %v15692_v42 = vpop.permute.xlu1 %15691 }
 0xba4   :  { %27279 = vmatpush3.msra.mxu1 %v15692_v42  ;;  %v28510_v42 = vpop.eup %28509 }
 0xba5   :  { %27281 = vmatmul.mubr.msk.f32.vlgmr.msra.gmra.mrb[96].mxu1 %vm3555_vm6, %v14391_v31  ;;  %27288 = vmatprep.subr.mxu1 %v36187_v26  ;;  %v14401_v30 = vmul.f32 %v28510_v42, %v32637_v38  ;;  %v28512_v23 = vpop.eup %28511  ;;  %v36570_v42 = vld [vmem:[#allocation44_spill] sm:$0xff] }
 0xba6   :  { %27290 = vmatprep.mubr.msk.f32.mxu1 %vm28952_vm5, %v36187_v26  ;;  %v14405_v56 = vmul.f32 %v28512_v23, %v32671_v21  ;;  %v28514_v31 = vpop.eup %28513 }
 0xba7   :  { %v14409_v41 = vmul.f32 %v28514_v31, %v32705_v36  ;;  %v28516_v60 = vpop.eup %28515 }
 0xba8   :  { %v28518_v21 = vpop.eup %28517 }
 0xbb1   :  { %v14351_v7 = vpop.xlane.xlu0 %14350 }
 0xbb2   :  { %28519 = vrcp.f32 %v14351_v7  ;;  %v14413_v7 = vmul.f32 %v28516_v60, %v32739_v19  ;;  %v36576_v60 = vld [vmem:[#allocation46_spill] sm:$0xff] }
 0xbb3   :  { %28521 = vrcp.f32 %v32749_v24 }
 0xbb4   :  { %28523 = vrcp.f32 %v32783_v49  ;;  %v14399_v49 = vmul.f32 %v28518_v21, %v32624_v9 }
 0xbb5   :  { %v15769_v4 = vpop.permute.xlu0 %15768 }
 0xbb6   :  { %27284 = vmatpush3.msra.mxu0 %v15769_v4 }
 0xbb7   :  { %27286 = vmatmul.mubr.msk.f32.vlgmr.msra.gmra.mrb[96].mxu0 %vm3555_vm6, %v14393_v37  ;;  %27293 = vmatprep.subr.mxu0 %v36187_v26 }
 0xbb8   :  { %27295 = vmatprep.mubr.msk.f32.mxu0 %vm28952_vm5, %v36187_v26 }
 0xbb9   :  { %v15846_v11 = vpop.permute.xlu0 %15845 }
 0xbba   :  { %27289 = vmatpush3.msra.mxu1 %v15846_v11 }
 0xbbb   :  { %27291 = vmatmul.mubr.msk.f32.vlgmr.msra.gmra.mrb[98].mxu1 %vm3555_vm6, %v14395_v2  ;;  %27298 = vmatprep.subr.mxu1 %v36187_v26  ;;  %v36569_v2 = vld [vmem:[#allocation9_spill] sm:$0xff] }
 0xbbc   :  { %27300 = vmatprep.mubr.msk.f32.mxu1 %vm28952_vm5, %v36187_v26  ;;  %v28520_v36 = vpop.eup %28519  ;;  %vm16954_vm10 = vcmp.ge.s32.totalorder %v36569_v2, 24  ;;  %vm16955_vm11 = vcmp.lt.s32.totalorder %v36569_v2, 32  ;;  %v36587_v2 = vld [vmem:[#allocation77_spill] sm:$0xff] }
 0xbbd   :  { %v28522_v29 = vpop.eup %28521  ;;  %v14417_v9 = vmul.f32 %v28520_v36, %v32773_v6  ;;  %vm16956_vm12 = vmand %vm16954_vm10, %vm16955_vm11 }
 0xbbe   :  { %v14403_v37 = vmul.f32 %v28522_v29, %v32658_v55  ;;  %v28524_v18 = vpop.eup %28523 }
 0xbbf   :  { %v14407_v6 = vmul.f32 %v28524_v18, %v32692_v57  ;;  %v36585_v18 = vld [vmem:[#allocation56_spill] sm:$0xff] }
 0xbd4   :  { %v32889_v54 = vpop.xlane.xlu1 %14353 }
 0xbd8   :  { %v15923_v43 = vpop.permute.xlu1 %15922 }
 0xbd9   :  { %27294 = vmatpush3.msra.mxu0 %v15923_v43 }
 0xbda   :  { %27296 = vmatmul.mubr.msk.f32.vlgmr.msra.gmra.mrb[98].mxu0 %vm3555_vm6, %v14397_v34  ;;  %27303 = vmatprep.subr.mxu0 %v36187_v26 }
 0xbdb   :  { %27305 = vmatprep.mubr.msk.f32.mxu0 %vm28952_vm5, %v36187_v26 }
 0xbdc   :  { %v16077_v35 = vpop.permute.xlu1 %16076 }
 0xbdd   :  { %27304 = vmatpush3.msra.mxu0 %v16077_v35  ;;  %v36571_v35 = vld [vmem:[#allocation47_spill] sm:$0xff] }
 0xbde   :  { %27306 = vmatmul.mubr.msk.f32.vlgmr.msra.gmra.mrb[100].mxu0 %vm3555_vm6, %v14401_v30  ;;  %27313 = vmatprep.subr.mxu0 %v36187_v26 }
 0xbdf   :  { %27315 = vmatprep.mubr.msk.f32.mxu0 %vm28952_vm5, %v36187_v26 }
 0xbe0   :  { %v16154_v22 = vpop.permute.xlu1 %16153 }
 0xbe4   :  { %v16231_v50 = vpop.permute.xlu1 %16230 }
 0xbe5   :  { %27314 = vmatpush3.msra.mxu0 %v16231_v50  ;;  %v36572_v50 = vld [vmem:[#allocation51_spill] sm:$0xff] }
 0xbe6   :  { %27316 = vmatmul.mubr.msk.f32.vlgmr.msra.gmra.mrb[102].mxu0 %vm3555_vm6, %v14405_v56  ;;  %27323 = vmatprep.subr.mxu0 %v36187_v26  ;;  %v36573_v56 = vld [vmem:[#allocation53_spill] sm:$0xff] }
 0xbe7   :  { %27325 = vmatprep.mubr.msk.f32.mxu0 %vm28952_vm5, %v36187_v26 }
 0xbe8   :  { %v16385_v38 = vpop.permute.xlu1 %16384 }
 0xbe9   :  { %27324 = vmatpush3.msra.mxu0 %v16385_v38 }
 0xbea   :  { %v14357_v44 = vpop.xlane.xlu0 %14356  ;;  %27326 = vmatmul.mubr.msk.f32.vlgmr.msra.gmra.mrb[104].mxu0 %vm3555_vm6, %v14409_v41  ;;  %27333 = vmatprep.subr.mxu0 %v36187_v26  ;;  %v36575_v41 = vld [vmem:[#allocation59_spill] sm:$0xff] }
 0xbeb   :  { %28525 = vrcp.f32 %v14357_v44  ;;  %27335 = vmatprep.mubr.msk.f32.mxu0 %vm28952_vm5, %v36187_v26  ;;  %v36577_v44 = vld [vmem:[#allocation45_spill] sm:$0xff] }
 0xbec   :  { %v16539_v24 = vpop.permute.xlu1 %16538  ;;  %28527 = vrcp.f32 %v32830_v10 }
 0xbed   :  { %27334 = vmatpush3.msra.mxu0 %v16539_v24  ;;  %28529 = vrcp.f32 %v32868_v3  ;;  %v36578_v24 = vld [vmem:[#allocation63_spill] sm:$0xff] }
 0xbee   :  { %v16000_v4 = vpop.permute.xlu0 %15999  ;;  %27336 = vmatmul.mubr.msk.f32.vlgmr.msra.gmra.mrb[106].mxu0 %vm3555_vm6, %v14413_v7  ;;  %27343 = vmatprep.subr.mxu0 %v36187_v26  ;;  %28531 = vrcp.f32 %v32889_v54  ;;  %v36579_v7 = vld [vmem:[#allocation65_spill] sm:$0xff] }
 0xbef   :  { %27299 = vmatpush3.msra.mxu1 %v16000_v4  ;;  %27345 = vmatprep.mubr.msk.f32.mxu0 %vm28952_vm5, %v36187_v26  ;;  %v36580_v4 = vld [vmem:[#allocation52_spill] sm:$0xff] }
 0xbf0   :  { %27301 = vmatmul.mubr.msk.f32.vlgmr.msra.gmra.mrb[100].mxu1 %vm3555_vm6, %v14399_v49  ;;  %27308 = vmatprep.subr.mxu1 %v36187_v26  ;;  %v16693_v19 = vpop.permute.xlu1 %16692  ;;  %v36581_v49 = vld [vmem:[#allocation50_spill] sm:$0xff] }
 0xbf1   :  { %27309 = vmatpush3.msra.mxu1 %v16154_v22  ;;  %27310 = vmatprep.mubr.msk.f32.mxu1 %vm28952_vm5, %v36187_v26 }
 0xbf2   :  { %v16308_v10 = vpop.permute.xlu0 %16307  ;;  %27318 = vmatprep.subr.mxu1 %v36187_v26  ;;  %27344 = vmatpush3.msra.mxu0 %v16693_v19  ;;  %v36582_v19 = vld [vmem:[#allocation69_spill] sm:$0xff] }
 0xbf3   :  { %27346 = vmatmul.mubr.msk.f32.vlgmr.msra.gmra.mrb[108].mxu0 %vm3555_vm6, %v14417_v9  ;;  %27353 = vmatprep.subr.mxu0 %v36187_v26  ;;  %v36583_v9 = vld [vmem:[#allocation71_spill] sm:$0xff] }
 0xbf4   :  { %27311 = vmatmul.mubr.msk.f32.vlgmr.msra.gmra.mrb[102].mxu1 %vm3555_vm6, %v14403_v37  ;;  %v16847_v3 = vpop.permute.xlu1 %16846  ;;  %27355 = vmatprep.mubr.msk.f32.mxu0 %vm28952_vm5, %v36187_v26  ;;  %v36584_v37 = vld [vmem:[#allocation58_spill] sm:$0xff] }
 0xbf5   :  { %v28526_v11 = vpop.eup %28525  ;;  %27319 = vmatpush3.msra.mxu1 %v16308_v10  ;;  %27320 = vmatprep.mubr.msk.f32.mxu1 %vm28952_vm5, %v36187_v26 }
 0xbf6   :  { %v16462_v55 = vpop.permute.xlu0 %16461  ;;  %27328 = vmatprep.subr.mxu1 %v36187_v26  ;;  %27354 = vmatpush3.msra.mxu0 %v16847_v3  ;;  %v14421_v20 = vmul.f32 %v28526_v11, %v32813_v39  ;;  %v28528_v43 = vpop.eup %28527  ;;  %v32954_v39 = vsel %vm16956_vm12, 1.0, %v36187_v26  ;;  %v36586_v11 = vld [vmem:[#allocation75_spill] sm:$0xff] }
 0xbf7   :  { %27363 = vmatprep.subr.mxu0 %v36187_v26  ;;  %v14411_v34 = vmul.f32 %v28528_v43, %v32726_v28  ;;  %v28530_v57 = vpop.eup %28529  ;;  %v16960_v30 = vmul.f32 %v32954_v39, %v36571_v35  ;;  %v16962_v31 = vmul.f32 %v32954_v39, %v36573_v56  ;;  %v16959_v21 = vmul.f32 %v32954_v39, %v36577_v44  ;;  %v36593_v35 = vld [vmem:[#allocation68_spill] sm:$0xff]  ;;  %v36597_v56 = vld [vmem:[#allocation74_spill] sm:$0xff] }
 0xbf8   :  { %27321 = vmatmul.mubr.msk.f32.vlgmr.msra.gmra.mrb[104].mxu1 %vm3555_vm6, %v14407_v6  ;;  %27356 = vmatmul.mubr.msk.f32.vlgmr.msra.gmra.mrb[110].mxu0 %vm3555_vm6, %v14421_v20  ;;  %v14415_v28 = vmul.f32 %v28530_v57, %v32760_v46  ;;  %v28532_v23 = vpop.eup %28531  ;;  %v36574_v46 = vld [vmem:[#allocation57_spill] sm:$0xff]  ;;  %v16966_v36 = vmul.f32 %v32954_v39, %v36579_v7  ;;  %v16961_v29 = vmul.f32 %v32954_v39, %v36581_v49  ;;  %v36588_v6 = vld [vmem:[#allocation64_spill] sm:$0xff]  ;;  %v36589_v20 = vld [vmem:[#allocation62_spill] sm:$0xff] }
 0xbf9   :  { %27329 = vmatpush3.msra.mxu1 %v16462_v55  ;;  %27330 = vmatprep.mubr.msk.f32.mxu1 %vm28952_vm5, %v36187_v26  ;;  %v14419_v38 = vmul.f32 %v28532_v23, %v32797_v27  ;;  %v16964_v27 = vmul.f32 %v32954_v39, %v36575_v41  ;;  %v16968_v10 = vmul.f32 %v32954_v39, %v36583_v9 }
 0xbfa   :  { %v16616_v54 = vpop.permute.xlu0 %16615  ;;  %27338 = vmatprep.subr.mxu1 %v36187_v26  ;;  %27365 = vmatprep.mubr.msk.f32.mxu0 %vm28952_vm5, %v36187_v26  ;;  %v16963_v3 = vmul.f32 %v32954_v39, %v36585_v18  ;;  %v16970_v55 = vmul.f32 %v32954_v39, %v36587_v2  ;;  %v16965_v43 = vmul.f32 %v32954_v39, %v36589_v20 }
 0xbfc   :  { %27331 = vmatmul.mubr.msk.f32.vlgmr.msra.gmra.mrb[106].mxu1 %vm3555_vm6, %v14411_v34  ;;  %v36591_v34 = vld [vmem:[#allocation83_spill] sm:$0xff] }
 0xbfd   :  { %27339 = vmatpush3.msra.mxu1 %v16616_v54  ;;  %27364 = vmatpush3.xpose.msk.msra.mxu0 %vm57_vm0, %v36570_v42  ;;  %v36590_v54 = vld [vmem:[#allocation81_spill] sm:$0xff]  ;;  %v16972_v57 = vmul.f32 %v32954_v39, %v36591_v34  ;;  %v36592_v42 = vld [vmem:[#allocation70_spill] sm:$0xff] }
 0xbfe   :  { %v16770_v22 = vpop.permute.xlu0 %16769  ;;  %27340 = vmatprep.mubr.msk.f32.mxu1 %vm28952_vm5, %v36187_v26  ;;  %27348 = vmatprep.subr.mxu1 %v36187_v26 }
 0xbff   :  { %27373 = vmatprep.subr.mxu0 %v36187_v26 }
 0xc00   :  { %27341 = vmatmul.mubr.msk.f32.vlgmr.msra.gmra.mrb[108].mxu1 %vm3555_vm6, %v14415_v28  ;;  %27366 = vmatmul.mubr.msk.f32.vlgmr.msra.gmra.mrb[144].mxu0 %vm57_vm0, %v16960_v30  ;;  %v16967_v30 = vmul.f32 %v32954_v39, %v36593_v35  ;;  %v36595_v28 = vld [vmem:[#allocation89_spill] sm:$0xff] }
 0xc01   :  { %27349 = vmatpush3.msra.mxu1 %v16770_v22  ;;  %27374 = vmatpush3.xpose.msk.msra.mxu0 %vm57_vm0, %v36572_v50  ;;  %v36594_v22 = vld [vmem:[#allocation87_spill] sm:$0xff]  ;;  %v16974_v23 = vmul.f32 %v32954_v39, %v36595_v28  ;;  %v36596_v50 = vld [vmem:[#allocation76_spill] sm:$0xff] }
 0xc02   :  { %27350 = vmatprep.mubr.msk.f32.mxu1 %vm28952_vm5, %v36187_v26  ;;  %27375 = vmatprep.mubr.msk.f32.mxu0 %vm28952_vm5, %v36187_v26 }
 0xc03   :  { %27383 = vmatprep.subr.mxu0 %v36187_v26  ;;  %27358 = vmatprep.subr.mxu1 %v36187_v26 }
 0xc04   :  { %27351 = vmatmul.mubr.msk.f32.vlgmr.msra.gmra.mrb[110].mxu1 %vm3555_vm6, %v14419_v38  ;;  %27376 = vmatmul.mubr.msk.f32.vlgmr.msra.gmra.mrb[146].mxu0 %vm57_vm0, %v16962_v31  ;;  %v16969_v31 = vmul.f32 %v32954_v39, %v36597_v56  ;;  %v36598_v38 = vld [vmem:[#allocation94_spill] sm:$0xff] }
 0xc05   :  { %27384 = vmatpush3.xpose.msk.msra.mxu0 %vm57_vm0, %v36574_v46  ;;  %27385 = vmatprep.mubr.msk.f32.mxu0 %vm28952_vm5, %v36187_v26  ;;  %v36599_v46 = vld [vmem:[#allocation91_spill] sm:$0xff] }
 0xc06   :  { %27360 = vmatprep.mubr.msk.f32.mxu1 %vm28952_vm5, %v36187_v26  ;;  %27393 = vmatprep.subr.mxu0 %v36187_v26  ;;  %v16976_v41 = vmul.f32 %v32954_v39, %v36599_v46 }
 0xc08   :  { %27359 = vmatpush3.xpose.msk.msra.mxu1 %vm57_vm0, %v36576_v60  ;;  %27386 = vmatmul.mubr.msk.f32.vlgmr.msra.gmra.mrb[148].mxu0 %vm57_vm0, %v16964_v27  ;;  %v36600_v27 = vld [vmem:[#allocation82_spill] sm:$0xff]  ;;  %v36601_v60 = vld [vmem:[#allocation80_spill] sm:$0xff] }
 0xc09   :  { %27368 = vmatprep.subr.mxu1 %v36187_v26  ;;  %27394 = vmatpush3.xpose.msk.msra.mxu0 %vm57_vm0, %v36578_v24  ;;  %v16971_v44 = vmul.f32 %v32954_v39, %v36601_v60  ;;  %v36603_v24 = vld [vmem:[#allocation97_spill] sm:$0xff] }
 0xc0a   :  { %27395 = vmatprep.mubr.msk.f32.mxu0 %vm28952_vm5, %v36187_v26  ;;  %27403 = vmatprep.subr.mxu0 %v36187_v26  ;;  %v16978_v7 = vmul.f32 %v32954_v39, %v36603_v24 }
 0xc0b   :  { %27361 = vmatmul.mubr.msk.f32.vlgmr.msra.gmra.mrb[144].mxu1 %vm57_vm0, %v16959_v21  ;;  %v36602_v21 = vld [vmem:[#allocation100_spill] sm:$0xff] }
 0xc0c   :  { %27369 = vmatpush3.xpose.msk.msra.mxu1 %vm57_vm0, %v36580_v4  ;;  %27370 = vmatprep.mubr.msk.f32.mxu1 %vm28952_vm5, %v36187_v26  ;;  %v36605_v4 = vld [vmem:[#allocation86_spill] sm:$0xff] }
 0xc0d   :  { %27396 = vmatmul.mubr.msk.f32.vlgmr.msra.gmra.mrb[150].mxu0 %vm57_vm0, %v16966_v36  ;;  %27378 = vmatprep.subr.mxu1 %v36187_v26  ;;  %v36604_v36 = vld [vmem:[#allocation88_spill] sm:$0xff]  ;;  %v16973_v49 = vmul.f32 %v32954_v39, %v36605_v4 }
 0xc0e   :  { %27404 = vmatpush3.xpose.msk.msra.mxu0 %vm57_vm0, %v36582_v19  ;;  %27405 = vmatprep.mubr.msk.f32.mxu0 %vm28952_vm5, %v36187_v26  ;;  %v36607_v19 = vld [vmem:[#allocation103_spill] sm:$0xff] }
 0xc0f   :  { %27371 = vmatmul.mubr.msk.f32.vlgmr.msra.gmra.mrb[146].mxu1 %vm57_vm0, %v16961_v29  ;;  %27413 = vmatprep.subr.mxu0 %v36187_v26  ;;  %v36606_v29 = vld [vmem:[#allocation106_spill] sm:$0xff]  ;;  %v16980_v9 = vmul.f32 %v32954_v39, %v36607_v19 }
 0xc10   :  { %27379 = vmatpush3.xpose.msk.msra.mxu1 %vm57_vm0, %v36584_v37  ;;  %27380 = vmatprep.mubr.msk.f32.mxu1 %vm28952_vm5, %v36187_v26  ;;  %v36609_v37 = vld [vmem:[#allocation93_spill] sm:$0xff] }
 0xc11   :  { %27406 = vmatmul.mubr.msk.f32.vlgmr.msra.gmra.mrb[152].mxu0 %vm57_vm0, %v16968_v10  ;;  %27388 = vmatprep.subr.mxu1 %v36187_v26  ;;  %v36608_v10 = vld [vmem:[#allocation95_spill] sm:$0xff]  ;;  %v16975_v18 = vmul.f32 %v32954_v39, %v36609_v37 }
 0xc12   :  { %27414 = vmatpush3.xpose.msk.msra.mxu0 %vm57_vm0, %v36586_v11  ;;  %27415 = vmatprep.mubr.msk.f32.mxu0 %vm28952_vm5, %v36187_v26  ;;  %v36611_v11 = vld [vmem:[#allocation109_spill] sm:$0xff] }
 0xc13   :  { %27381 = vmatmul.mubr.msk.f32.vlgmr.msra.gmra.mrb[148].mxu1 %vm57_vm0, %v16963_v3  ;;  %27423 = vmatprep.subr.mxu0 %v36187_v26  ;;  %v36610_v3 = vld [vmem:[#allocation112_spill] sm:$0xff]  ;;  %v16982_v2 = vmul.f32 %v32954_v39, %v36611_v11 }
 0xc14   :  { %27389 = vmatpush3.xpose.msk.msra.mxu1 %vm57_vm0, %v36588_v6  ;;  %27390 = vmatprep.mubr.msk.f32.mxu1 %vm28952_vm5, %v36187_v26  ;;  %v36613_v6 = vld [vmem:[#allocation99_spill] sm:$0xff] }
 0xc15   :  { %27416 = vmatmul.mubr.msk.f32.vlgmr.msra.gmra.mrb[154].mxu0 %vm57_vm0, %v16970_v55  ;;  %27398 = vmatprep.subr.mxu1 %v36187_v26  ;;  %v36612_v55 = vld [vmem:[#allocation101_spill] sm:$0xff]  ;;  %v16977_v20 = vmul.f32 %v32954_v39, %v36613_v6 }
 0xc16   :  { %27424 = vmatpush3.xpose.msk.msra.mxu0 %vm57_vm0, %v36590_v54  ;;  %27425 = vmatprep.mubr.msk.f32.mxu0 %vm28952_vm5, %v36187_v26  ;;  %v36615_v54 = vld [vmem:[#allocation115_spill] sm:$0xff] }
 0xc17   :  { %27391 = vmatmul.mubr.msk.f32.vlgmr.msra.gmra.mrb[150].mxu1 %vm57_vm0, %v16965_v43  ;;  %27433 = vmatprep.subr.mxu0 %v36187_v26  ;;  %v36614_v43 = vld [vmem:[#allocation118_spill] sm:$0xff]  ;;  %v16984_v34 = vmul.f32 %v32954_v39, %v36615_v54 }
 0xc18   :  { %27399 = vmatpush3.xpose.msk.msra.mxu1 %vm57_vm0, %v36592_v42  ;;  %27400 = vmatprep.mubr.msk.f32.mxu1 %vm28952_vm5, %v36187_v26  ;;  %v36617_v42 = vld [vmem:[#allocation105_spill] sm:$0xff] }
 0xc19   :  { %27426 = vmatmul.mubr.msk.f32.vlgmr.msra.gmra.mrb[156].mxu0 %vm57_vm0, %v16972_v57  ;;  %27408 = vmatprep.subr.mxu1 %v36187_v26  ;;  %v36616_v57 = vld [vmem:[#allocation107_spill] sm:$0xff]  ;;  %v16979_v35 = vmul.f32 %v32954_v39, %v36617_v42 }
 0xc1a   :  { %27434 = vmatpush3.xpose.msk.msra.mxu0 %vm57_vm0, %v36594_v22  ;;  %27435 = vmatprep.mubr.msk.f32.mxu0 %vm28952_vm5, %v36187_v26  ;;  %v36619_v22 = vld [vmem:[#allocation121_spill] sm:$0xff] }
 0xc1b   :  { %27401 = vmatmul.mubr.msk.f32.vlgmr.msra.gmra.mrb[152].mxu1 %vm57_vm0, %v16967_v30  ;;  %27443 = vmatprep.subr.mxu0 %v36187_v26  ;;  %v36618_v30 = vld [vmem:[#allocation124_spill] sm:$0xff]  ;;  %v16986_v28 = vmul.f32 %v32954_v39, %v36619_v22 }
 0xc1c   :  { %27409 = vmatpush3.xpose.msk.msra.mxu1 %vm57_vm0, %v36596_v50  ;;  %27410 = vmatprep.mubr.msk.f32.mxu1 %vm28952_vm5, %v36187_v26  ;;  %v36621_v50 = vld [vmem:[#allocation111_spill] sm:$0xff] }
 0xc1d   :  { %27436 = vmatmul.mubr.msk.f32.vlgmr.msra.gmra.mrb[158].mxu0 %vm57_vm0, %v16974_v23  ;;  %27418 = vmatprep.subr.mxu1 %v36187_v26  ;;  %v36620_v23 = vld [vmem:[#allocation113_spill] sm:$0xff]  ;;  %v16981_v56 = vmul.f32 %v32954_v39, %v36621_v50 }
 0xc1e   :  { %27444 = vmatpush3.xpose.msk.msra.mxu0 %vm57_vm0, %v36598_v38  ;;  %27445 = vmatprep.mubr.msk.f32.mxu0 %vm28952_vm5, %v36187_v26  ;;  %v36623_v38 = vld [vmem:[#allocation127_spill] sm:$0xff] }
 0xc1f   :  { %27411 = vmatmul.mubr.msk.f32.vlgmr.msra.gmra.mrb[154].mxu1 %vm57_vm0, %v16969_v31  ;;  %27453 = vmatprep.subr.mxu0 %v36187_v26  ;;  %v36622_v31 = vld [vmem:[#allocation130_spill] sm:$0xff]  ;;  %v16988_v46 = vmul.f32 %v32954_v39, %v36623_v38 }
 0xc20   :  { %27419 = vmatpush3.xpose.msk.msra.mxu1 %vm57_vm0, %v36600_v27  ;;  %27420 = vmatprep.mubr.msk.f32.mxu1 %vm28952_vm5, %v36187_v26  ;;  %v36625_v27 = vld [vmem:[#allocation117_spill] sm:$0xff] }
 0xc21   :  { %27446 = vmatmul.mubr.msk.f32.vlgmr.msra.gmra.mrb[160].mxu0 %vm57_vm0, %v16976_v41  ;;  %27428 = vmatprep.subr.mxu1 %v36187_v26  ;;  %v36624_v41 = vld [vmem:[#allocation119_spill] sm:$0xff]  ;;  %v16983_v60 = vmul.f32 %v32954_v39, %v36625_v27 }
 0xc22   :  { %27454 = vmatpush3.xpose.msk.msra.mxu0 %vm57_vm0, %v36602_v21  ;;  %27455 = vmatprep.mubr.msk.f32.mxu0 %vm28952_vm5, %v36187_v26  ;;  %v36627_v21 = vld [vmem:[#allocation131_spill] sm:$0xff] }
 0xc23   :  { %27421 = vmatmul.mubr.msk.f32.vlgmr.msra.gmra.mrb[156].mxu1 %vm57_vm0, %v16971_v44  ;;  %27463 = vmatprep.subr.mxu0 %v36187_v26  ;;  %v36626_v44 = vld [vmem:[#allocation134_spill] sm:$0xff]  ;;  %v16990_v24 = vmul.f32 %v32954_v39, %v36627_v21 }
 0xc24   :  { %27429 = vmatpush3.xpose.msk.msra.mxu1 %vm57_vm0, %v36604_v36  ;;  %27430 = vmatprep.mubr.msk.f32.mxu1 %vm28952_vm5, %v36187_v26  ;;  %v36629_v36 = vld [vmem:[#allocation123_spill] sm:$0xff] }
 0xc25   :  { %27456 = vmatmul.mubr.msk.f32.vlgmr.msra.gmra.mrb[162].mxu0 %vm57_vm0, %v16978_v7  ;;  %27438 = vmatprep.subr.mxu1 %v36187_v26  ;;  %v36628_v7 = vld [vmem:[#allocation125_spill] sm:$0xff]  ;;  %v16985_v4 = vmul.f32 %v32954_v39, %v36629_v36 }
 0xc26   :  { %27464 = vmatpush3.xpose.msk.msra.mxu0 %vm57_vm0, %v36606_v29  ;;  %27465 = vmatprep.mubr.msk.f32.mxu0 %vm28952_vm5, %v36187_v26  ;;  %v36631_v29 = vld [vmem:[#allocation129_spill] sm:$0xff] }
 0xc27   :  { %27431 = vmatmul.mubr.msk.f32.vlgmr.msra.gmra.mrb[158].mxu1 %vm57_vm0, %v16973_v49  ;;  %27473 = vmatprep.subr.mxu0 %v36187_v26  ;;  %v36630_v49 = vld [vmem:[#allocation132_spill] sm:$0xff]  ;;  %v16987_v19 = vmul.f32 %v32954_v39, %v36631_v29 }
 0xc28   :  { %27439 = vmatpush3.xpose.msk.msra.mxu1 %vm57_vm0, %v36608_v10  ;;  %27440 = vmatprep.mubr.msk.f32.mxu1 %vm28952_vm5, %v36187_v26  ;;  %v36633_v10 = vld [vmem:[#allocation133_spill] sm:$0xff] }
 0xc29   :  { %27466 = vmatmul.mubr.msk.f32.vlgmr.msra.gmra.mrb[164].mxu0 %vm57_vm0, %v16980_v9  ;;  %27448 = vmatprep.subr.mxu1 %v36187_v26  ;;  %v36632_v9 = vld [vmem:[#allocation135_spill] sm:$0xff]  ;;  %v16989_v37 = vmul.f32 %v32954_v39, %v36633_v10 }
 0xc2a   :  { %27474 = vmatpush3.xpose.msk.msra.mxu0 %vm57_vm0, %v36610_v3  ;;  %27475 = vmatprep.mubr.msk.f32.mxu0 %vm28952_vm5, %v36187_v26 }
 0xc2b   :  { %27441 = vmatmul.mubr.msk.f32.vlgmr.msra.gmra.mrb[160].mxu1 %vm57_vm0, %v16975_v18  ;;  %27483 = vmatprep.subr.mxu0 %v36187_v26 }
 0xc2c   :  { %27449 = vmatpush3.xpose.msk.msra.mxu1 %vm57_vm0, %v36612_v55  ;;  %27450 = vmatprep.mubr.msk.f32.mxu1 %vm28952_vm5, %v36187_v26 }
 0xc2d   :  { %27476 = vmatmul.mubr.msk.f32.vlgmr.msra.gmra.mrb[166].mxu0 %vm57_vm0, %v16982_v2  ;;  %27458 = vmatprep.subr.mxu1 %v36187_v26 }
 0xc2e   :  { %27484 = vmatpush3.xpose.msk.msra.mxu0 %vm57_vm0, %v36614_v43  ;;  %27485 = vmatprep.mubr.msk.f32.mxu0 %vm28952_vm5, %v36187_v26 }
 0xc2f   :  { %27451 = vmatmul.mubr.msk.f32.vlgmr.msra.gmra.mrb[162].mxu1 %vm57_vm0, %v16977_v20  ;;  %27493 = vmatprep.subr.mxu0 %v36187_v26 }
 0xc30   :  { %27459 = vmatpush3.xpose.msk.msra.mxu1 %vm57_vm0, %v36616_v57  ;;  %27460 = vmatprep.mubr.msk.f32.mxu1 %vm28952_vm5, %v36187_v26 }
 0xc31   :  { %27486 = vmatmul.mubr.msk.f32.vlgmr.msra.gmra.mrb[168].mxu0 %vm57_vm0, %v16984_v34  ;;  %27468 = vmatprep.subr.mxu1 %v36187_v26 }
 0xc32   :  { %27494 = vmatpush3.xpose.msk.msra.mxu0 %vm57_vm0, %v36618_v30  ;;  %27495 = vmatprep.mubr.msk.f32.mxu0 %vm28952_vm5, %v36187_v26 }
 0xc33   :  { %27461 = vmatmul.mubr.msk.f32.vlgmr.msra.gmra.mrb[164].mxu1 %vm57_vm0, %v16979_v35  ;;  %27503 = vmatprep.subr.mxu0 %v36187_v26 }
 0xc34   :  { %27469 = vmatpush3.xpose.msk.msra.mxu1 %vm57_vm0, %v36620_v23  ;;  %27470 = vmatprep.mubr.msk.f32.mxu1 %vm28952_vm5, %v36187_v26 }
 0xc35   :  { %27496 = vmatmul.mubr.msk.f32.vlgmr.msra.gmra.mrb[170].mxu0 %vm57_vm0, %v16986_v28  ;;  %27478 = vmatprep.subr.mxu1 %v36187_v26 }
 0xc36   :  { %27504 = vmatpush3.xpose.msk.msra.mxu0 %vm57_vm0, %v36622_v31  ;;  %27505 = vmatprep.mubr.msk.f32.mxu0 %vm28952_vm5, %v36187_v26 }
 0xc37   :  { %27471 = vmatmul.mubr.msk.f32.vlgmr.msra.gmra.mrb[166].mxu1 %vm57_vm0, %v16981_v56  ;;  %27513 = vmatprep.subr.mxu0 %v36187_v26 }
 0xc38   :  { %27479 = vmatpush3.xpose.msk.msra.mxu1 %vm57_vm0, %v36624_v41  ;;  %27480 = vmatprep.mubr.msk.f32.mxu1 %vm28952_vm5, %v36187_v26 }
 0xc39   :  { %27506 = vmatmul.mubr.msk.f32.vlgmr.msra.gmra.mrb[172].mxu0 %vm57_vm0, %v16988_v46  ;;  %27488 = vmatprep.subr.mxu1 %v36187_v26 }
 0xc3a   :  { %27514 = vmatpush3.xpose.msk.msra.mxu0 %vm57_vm0, %v36626_v44  ;;  %27515 = vmatprep.mubr.msk.f32.mxu0 %vm28952_vm5, %v36187_v26 }
 0xc3b   :  { %27481 = vmatmul.mubr.msk.f32.vlgmr.msra.gmra.mrb[168].mxu1 %vm57_vm0, %v16983_v60  ;;  %27523 = vmatprep.subr.mxu0 %v36187_v26 }
 0xc3c   :  { %27489 = vmatpush3.xpose.msk.msra.mxu1 %vm57_vm0, %v36628_v7  ;;  %27490 = vmatprep.mubr.msk.f32.mxu1 %vm28952_vm5, %v36187_v26 }
 0xc3d   :  { %27516 = vmatmul.mubr.msk.f32.vlgmr.msra.gmra.mrb[174].mxu0 %vm57_vm0, %v16990_v24  ;;  %27498 = vmatprep.subr.mxu1 %v36187_v26 }
 0xc3e   :  { %27525 = vmatprep.mubr.msk.f32.mxu0 %vm28952_vm5, %v36187_v26 }
 0xc3f   :  { %27491 = vmatmul.mubr.msk.f32.vlgmr.msra.gmra.mrb[170].mxu1 %vm57_vm0, %v16985_v4 }
 0xc40   :  { %27499 = vmatpush3.xpose.msk.msra.mxu1 %vm57_vm0, %v36630_v49  ;;  %27500 = vmatprep.mubr.msk.f32.mxu1 %vm28952_vm5, %v36187_v26 }
 0xc41   :  { %27508 = vmatprep.subr.mxu1 %v36187_v26 }
 0xc43   :  { %27501 = vmatmul.mubr.msk.f32.vlgmr.msra.gmra.mrb[172].mxu1 %vm57_vm0, %v16987_v19 }
 0xc44   :  { %27509 = vmatpush3.xpose.msk.msra.mxu1 %vm57_vm0, %v36632_v9  ;;  %27510 = vmatprep.mubr.msk.f32.mxu1 %vm28952_vm5, %v36187_v26 }
 0xc45   :  { %27518 = vmatprep.subr.mxu1 %v36187_v26 }
 0xc47   :  { %27511 = vmatmul.mubr.msk.f32.vlgmr.msra.gmra.mrb[174].mxu1 %vm57_vm0, %v16989_v37 }
 0xc48   :  { %27520 = vmatprep.mubr.msk.f32.mxu1 %vm28952_vm5, %v36187_v26 }
 0xcd3   :  { %v17133_v18 = vpop.f32.mrb[144].mxu0 }
 0xcd4   :  { %v33225_v3 = vmul.f32 0.35355338, %v17133_v18  ;;  %v27367_v11 = vpop.f32.mrb[145].mxu0 }
 0xcd6   :  { %v19362_v2 = vsel %vm3555_vm6, %v33225_v3, -inf }
 0xcd7   :  { %19363 = vmax.xlane.f32.xlu1 %v19362_v2  ;;  %v17279_v55 = vpop.f32.mrb[146].mxu0 }
 0xcd8   :  { %v27377_v6 = vpop.f32.mrb[147].mxu0  ;;  %v33235_v56 = vmul.f32 0.35355338, %v17279_v55 }
 0xcda   :  { %v19368_v24 = vsel %vm3555_vm6, %v33235_v56, -inf }
 0xcdb   :  { %v17425_v20 = vpop.f32.mrb[148].mxu0 }
 0xcdc   :  { %v27387_v43 = vpop.f32.mrb[149].mxu0  ;;  %v33241_v44 = vmul.f32 0.35355338, %v17425_v20 }
 0xcde   :  { %v17060_v54 = vpop.f32.mrb[144].mxu1  ;;  %v19374_v10 = vsel %vm3555_vm6, %v33241_v44, -inf }
 0xcdf   :  { %v33229_v34 = vmul.f32 0.35355338, %v17060_v54  ;;  %v27362_v57 = vpop.f32.mrb[145].mxu1 }
 0xce0   :  { %v17571_v42 = vpop.f32.mrb[150].mxu0 }
 0xce1   :  { %v27397_v35 = vpop.f32.mrb[151].mxu0  ;;  %v19359_v30 = vsel %vm3555_vm6, %v33229_v34, -inf  ;;  %v33249_v19 = vmul.f32 0.35355338, %v17571_v42 }
 0xce2   :  { %19360 = vmax.xlane.f32.xlu0 %v19359_v30  ;;  %v17206_v22 = vpop.f32.mrb[146].mxu1 }
 0xce3   :  { %v33233_v28 = vmul.f32 0.35355338, %v17206_v22  ;;  %v27372_v23 = vpop.f32.mrb[147].mxu1  ;;  %v19380_v43 = vsel %vm3555_vm6, %v33249_v19, -inf }
 0xce4   :  { %v17717_v50 = vpop.f32.mrb[152].mxu0 }
 0xce5   :  { %v27407_v31 = vpop.f32.mrb[153].mxu0  ;;  %v19365_v38 = vsel %vm3555_vm6, %v33233_v28, -inf  ;;  %v33257_v6 = vmul.f32 0.35355338, %v17717_v50 }
 0xce6   :  { %19366 = vmax.xlane.f32.xlu0 %v19365_v38  ;;  %v17352_v46 = vpop.f32.mrb[148].mxu1 }
 0xce7   :  { %v33239_v41 = vmul.f32 0.35355338, %v17352_v46  ;;  %v27382_v27 = vpop.f32.mrb[149].mxu1  ;;  %v19386_v50 = vsel %vm3555_vm6, %v33257_v6, -inf }
 0xce8   :  { %v17863_v60 = vpop.f32.mrb[154].mxu0 }
 0xce9   :  { %v27417_v21 = vpop.f32.mrb[155].mxu0  ;;  %v19371_v7 = vsel %vm3555_vm6, %v33239_v41, -inf  ;;  %v33265_v22 = vmul.f32 0.35355338, %v17863_v60 }
 0xcea   :  { %19369 = vmax.xlane.f32.xlu0 %v19368_v24  ;;  %19372 = vmax.xlane.f32.xlu1 %v19371_v7  ;;  %v17498_v36 = vpop.f32.mrb[150].mxu1 }
 0xceb   :  { %v33247_v4 = vmul.f32 0.35355338, %v17498_v36  ;;  %v27392_v49 = vpop.f32.mrb[151].mxu1  ;;  %v19392_v60 = vsel %vm3555_vm6, %v33265_v22, -inf }
 0xcec   :  { %v18009_v29 = vpop.f32.mrb[156].mxu0 }
 0xced   :  { %v27427_v9 = vpop.f32.mrb[157].mxu0  ;;  %v19377_v37 = vsel %vm3555_vm6, %v33247_v4, -inf  ;;  %v33273_v24 = vmul.f32 0.35355338, %v18009_v29 }
 0xcee   :  { %19375 = vmax.xlane.f32.xlu0 %v19374_v10  ;;  %19378 = vmax.xlane.f32.xlu1 %v19377_v37  ;;  %v17644_v18 = vpop.f32.mrb[152].mxu1 }
 0xcef   :  { %v33255_v11 = vmul.f32 0.35355338, %v17644_v18  ;;  %v27402_v2 = vpop.f32.mrb[153].mxu1  ;;  %v19398_v29 = vsel %vm3555_vm6, %v33273_v24, -inf }
 0xcf0   :  { %v18155_v55 = vpop.f32.mrb[158].mxu0 }
 0xcf1   :  { %v27437_v20 = vpop.f32.mrb[159].mxu0  ;;  %v19383_v54 = vsel %vm3555_vm6, %v33255_v11, -inf  ;;  %v33281_v18 = vmul.f32 0.35355338, %v18155_v55 }
 0xcf2   :  { %19381 = vmax.xlane.f32.xlu0 %v19380_v43  ;;  %19384 = vmax.xlane.f32.xlu1 %v19383_v54  ;;  %v17790_v57 = vpop.f32.mrb[154].mxu1 }
 0xcf3   :  { %v33263_v42 = vmul.f32 0.35355338, %v17790_v57  ;;  %v27412_v35 = vpop.f32.mrb[155].mxu1  ;;  %v19404_v55 = vsel %vm3555_vm6, %v33281_v18, -inf }
 0xcf4   :  { %v18301_v30 = vpop.f32.mrb[160].mxu0 }
 0xcf5   :  { %v27447_v23 = vpop.f32.mrb[161].mxu0  ;;  %v19389_v31 = vsel %vm3555_vm6, %v33263_v42, -inf }
 0xcf6   :  { %19387 = vmax.xlane.f32.xlu0 %v19386_v50  ;;  %19390 = vmax.xlane.f32.xlu1 %v19389_v31  ;;  %v17936_v38 = vpop.f32.mrb[156].mxu1  ;;  %v33289_v23 = vmul.f32 0.35355338, %v18301_v30 }
 0xcf7   :  { %v33271_v46 = vmul.f32 0.35355338, %v17936_v38  ;;  %v27422_v27 = vpop.f32.mrb[157].mxu1 }
 0xcf8   :  { %v18447_v21 = vpop.f32.mrb[162].mxu0  ;;  %v19410_v30 = vsel %vm3555_vm6, %v33289_v23, -inf }
 0xcf9   :  { %v27457_v7 = vpop.f32.mrb[163].mxu0  ;;  %v19395_v36 = vsel %vm3555_vm6, %v33271_v46, -inf }
 0xcfa   :  { %19393 = vmax.xlane.f32.xlu0 %v19392_v60  ;;  %19396 = vmax.xlane.f32.xlu1 %v19395_v36  ;;  %v18082_v49 = vpop.f32.mrb[158].mxu1  ;;  %v33297_v36 = vmul.f32 0.35355338, %v18447_v21 }
 0xcfb   :  { %v33279_v9 = vmul.f32 0.35355338, %v18082_v49  ;;  %v27432_v10 = vpop.f32.mrb[159].mxu1 }
 0xcfc   :  { %v18593_v37 = vpop.f32.mrb[164].mxu0  ;;  %v19416_v21 = vsel %vm3555_vm6, %v33297_v36, -inf }
 0xcfd   :  { %v27467_v2 = vpop.f32.mrb[165].mxu0  ;;  %v19401_v20 = vsel %vm3555_vm6, %v33279_v9, -inf }
 0xcfe   :  { %19399 = vmax.xlane.f32.xlu0 %v19398_v29  ;;  %19402 = vmax.xlane.f32.xlu1 %v19401_v20  ;;  %v18228_v43 = vpop.f32.mrb[160].mxu1 }
 0xcff   :  { %v33287_v54 = vmul.f32 0.35355338, %v18228_v43  ;;  %v27442_v57 = vpop.f32.mrb[161].mxu1 }
 0xd00   :  { %v18739_v35 = vpop.f32.mrb[166].mxu0  ;;  %v33305_v57 = vmul.f32 0.35355338, %v18593_v37 }
 0xd01   :  { %v27477_v50 = vpop.f32.mrb[167].mxu0  ;;  %v19407_v31 = vsel %vm3555_vm6, %v33287_v54, -inf }
 0xd02   :  { %19405 = vmax.xlane.f32.xlu0 %v19404_v55  ;;  %19408 = vmax.xlane.f32.xlu1 %v19407_v31  ;;  %v18374_v38 = vpop.f32.mrb[162].mxu1  ;;  %v19422_v37 = vsel %vm3555_vm6, %v33305_v57, -inf }
 0xd03   :  { %v33295_v27 = vmul.f32 0.35355338, %v18374_v38  ;;  %v27452_v7 = vpop.f32.mrb[163].mxu1 }
 0xd04   :  { %v18885_v60 = vpop.f32.mrb[168].mxu0 }
 0xd05   :  { %v27487_v49 = vpop.f32.mrb[169].mxu0  ;;  %v19413_v10 = vsel %vm3555_vm6, %v33295_v27, -inf }
 0xd06   :  { %19411 = vmax.xlane.f32.xlu0 %v19410_v30  ;;  %19414 = vmax.xlane.f32.xlu1 %v19413_v10  ;;  %v18520_v2 = vpop.f32.mrb[164].mxu1  ;;  %v33313_v30 = vmul.f32 0.35355338, %v18739_v35 }
 0xd07   :  { %v33303_v29 = vmul.f32 0.35355338, %v18520_v2  ;;  %v27462_v20 = vpop.f32.mrb[165].mxu1 }
 0xd08   :  { %v19031_v43 = vpop.f32.mrb[170].mxu0  ;;  %v19428_v35 = vsel %vm3555_vm6, %v33313_v30, -inf }
 0xd09   :  { %v27497_v50 = vpop.f32.mrb[171].mxu0  ;;  %v19419_v55 = vsel %vm3555_vm6, %v33303_v29, -inf }
 0xd0a   :  { %19417 = vmax.xlane.f32.xlu0 %v19416_v21  ;;  %19420 = vmax.xlane.f32.xlu1 %v19419_v55  ;;  %v18666_v31 = vpop.f32.mrb[166].mxu1 }
 0xd0b   :  { %v33311_v38 = vmul.f32 0.35355338, %v18666_v31  ;;  %v27472_v7 = vpop.f32.mrb[167].mxu1  ;;  %v33321_v31 = vmul.f32 0.35355338, %v18885_v60 }
 0xd0c   :  { %v19177_v49 = vpop.f32.mrb[172].mxu0 }
 0xd0d   :  { %v27507_v10 = vpop.f32.mrb[173].mxu0  ;;  %v19425_v2 = vsel %vm3555_vm6, %v33311_v38, -inf }
 0xd0e   :  { %19423 = vmax.xlane.f32.xlu0 %v19422_v37  ;;  %19426 = vmax.xlane.f32.xlu1 %v19425_v2  ;;  %v18812_v20 = vpop.f32.mrb[168].mxu1  ;;  %v33329_v2 = vmul.f32 0.35355338, %v19031_v43  ;;  %v33339_v43 = vmul.f32 0.35355338, %v19177_v49 }
 0xd0f   :  { %v33319_v50 = vmul.f32 0.35355338, %v18812_v20  ;;  %v27482_v21 = vpop.f32.mrb[169].mxu1  ;;  %v19434_v20 = vsel %vm3555_vm6, %v33321_v31, -inf }
 0xd10   :  { %v19323_v55 = vpop.f32.mrb[174].mxu0 }
 0xd11   :  { %v27517_v7 = vpop.f32.mrb[175].mxu0  ;;  %v19431_v10 = vsel %vm3555_vm6, %v33319_v50, -inf }
 0xd12   :  { %19429 = vmax.xlane.f32.xlu0 %v19428_v35  ;;  %19432 = vmax.xlane.f32.xlu1 %v19431_v10  ;;  %v18958_v51 = vpop.f32.mrb[170].mxu1  ;;  %v19440_v35 = vsel %vm3555_vm6, %v33329_v2, -inf }
 0xd13   :  { %v33327_v33 = vmul.f32 0.35355338, %v18958_v51  ;;  %v27492_v37 = vpop.f32.mrb[171].mxu1 }
 0xd15   :  { %v19437_v60 = vsel %vm3555_vm6, %v33327_v33, -inf }
 0xd16   :  { %19435 = vmax.xlane.f32.xlu0 %v19434_v20  ;;  %19438 = vmax.xlane.f32.xlu1 %v19437_v60  ;;  %v19104_v21 = vpop.f32.mrb[172].mxu1  ;;  %v19446_v20 = vsel %vm3555_vm6, %v33339_v43, -inf  ;;  %v33347_v60 = vmul.f32 0.35355338, %v19323_v55 }
 0xd17   :  { %v27502_v7 = vpop.f32.mrb[173].mxu1  ;;  %v33335_v48 = vmul.f32 0.35355338, %v19104_v21 }
 0xd18   :  { %36635 = vst [vmem:[#allocation110_spill] sm:$0xff] %v33347_v60  ;;  %v19452_v49 = vsel %vm3555_vm6, %v33347_v60, -inf }
 0xd19   :  { %v19443_v37 = vsel %vm3555_vm6, %v33335_v48, -inf }
 0xd1a   :  { %19441 = vmax.xlane.f32.xlu0 %v19440_v35  ;;  %v19250_v51 = vpop.f32.mrb[174].mxu1 }
 0xd1b   :  { %v27512_v10 = vpop.f32.mrb[175].mxu1  ;;  %v33343_v8 = vmul.f32 0.35355338, %v19250_v51 }
 0xd1d   :  { %36634 = vst [vmem:[#allocation55_spill] sm:$0xff] %v33343_v8  ;;  %v19449_v21 = vsel %vm3555_vm6, %v33343_v8, -inf }
 0xd1e   :  { %19444 = vmax.xlane.f32.xlu0 %v19443_v37 }
 0xd22   :  { %19447 = vmax.xlane.f32.xlu0 %v19446_v20 }
 0xd26   :  { %19450 = vmax.xlane.f32.xlu0 %v19449_v21 }
 0xd27   :  { %19712 = vrot.lane.b32.xlu1 %v32954_v39, %s28951_s16 }
 0xd2a   :  { %19453 = vmax.xlane.f32.xlu0 %v19452_v49 }
 0xd64   :  { %v19364_v7 = vpop.xlane.xlu1 %19363 }
 0xd65   :  { %v19456_v35 = vsub.f32 %v33225_v3, %v19364_v7 }
 0xd67   :  { %v19489_v51 = vmul.f32 1.442695, %v19456_v35 }
 0xd69   :  { %28533 = vpow2.f32 %v19489_v51 }
 0xd6f   :  { %v19361_v10 = vpop.xlane.xlu0 %19360 }
 0xd70   :  { %v19455_v55 = vsub.f32 %v33229_v34, %v19361_v10 }
 0xd72   :  { %v19487_v37 = vmul.f32 1.442695, %v19455_v55 }
 0xd73   :  { %v33357_v20 = vpop.eup %28533  ;;  %v19367_v17 = vpop.xlane.xlu0 %19366 }
 0xd74   :  { %28535 = vpow2.f32 %v19487_v37  ;;  %v19457_v21 = vsub.f32 %v33233_v28, %v19367_v17  ;;  %v19554_v39 = vsel %vm3555_vm6, %v33357_v20, 0.0 }
 0xd75   :  { %19555 = vadd.xlane.f32.xlu0 %v19554_v39 }
 0xd76   :  { %v19491_v49 = vmul.f32 1.442695, %v19457_v21 }
 0xd77   :  { %v19370_v13 = vpop.xlane.xlu0 %19369  ;;  %v19373_v58 = vpop.xlane.xlu1 %19372 }
 0xd78   :  { %28537 = vpow2.f32 %v19491_v49  ;;  %v19458_v3 = vsub.f32 %v33235_v56, %v19370_v13  ;;  %v19459_v7 = vsub.f32 %v33239_v41, %v19373_v58 }
 0xd7a   :  { %v19493_v34 = vmul.f32 1.442695, %v19458_v3  ;;  %v19495_v35 = vmul.f32 1.442695, %v19459_v7 }
 0xd7b   :  { %v19376_v51 = vpop.xlane.xlu0 %19375  ;;  %v19379_v10 = vpop.xlane.xlu1 %19378 }
 0xd7c   :  { %28539 = vpow2.f32 %v19493_v34  ;;  %v19460_v55 = vsub.f32 %v33241_v44, %v19376_v51  ;;  %v19461_v37 = vsub.f32 %v33247_v4, %v19379_v10 }
 0xd7d   :  { %28541 = vpow2.f32 %v19495_v35 }
 0xd7e   :  { %v33365_v17 = vpop.eup %28535  ;;  %v19497_v28 = vmul.f32 1.442695, %v19460_v55  ;;  %v19499_v56 = vmul.f32 1.442695, %v19461_v37 }
 0xd7f   :  { %v19382_v21 = vpop.xlane.xlu0 %19381  ;;  %v19385_v39 = vpop.xlane.xlu1 %19384  ;;  %v19551_v13 = vsel %vm3555_vm6, %v33365_v17, 0.0 }
 0xd80   :  { %19552 = vadd.xlane.f32.xlu1 %v19551_v13  ;;  %28543 = vpow2.f32 %v19497_v28  ;;  %v19462_v41 = vsub.f32 %v33249_v19, %v19382_v21  ;;  %v19463_v35 = vsub.f32 %v33255_v11, %v19385_v39 }
 0xd81   :  { %28545 = vpow2.f32 %v19499_v56 }
 0xd82   :  { %v33370_v58 = vpop.eup %28537  ;;  %v19501_v34 = vmul.f32 1.442695, %v19462_v41 }
 0xd83   :  { %v19388_v49 = vpop.xlane.xlu0 %19387  ;;  %v19391_v44 = vpop.xlane.xlu1 %19390  ;;  %v19557_v3 = vsel %vm3555_vm6, %v33370_v58, 0.0 }
 0xd84   :  { %v19465_v7 = vsub.f32 %v33263_v42, %v19391_v44  ;;  %19558 = vadd.xlane.f32.xlu0 %v19557_v3  ;;  %v19503_v42 = vmul.f32 1.442695, %v19463_v35  ;;  %v19464_v21 = vsub.f32 %v33257_v6, %v19388_v49 }
 0xd86   :  { %v33376_v4 = vpop.eup %28539  ;;  %v19507_v51 = vmul.f32 1.442695, %v19465_v7  ;;  %v19505_v41 = vmul.f32 1.442695, %v19464_v21 }
 0xd87   :  { %v19397_v10 = vpop.xlane.xlu1 %19396  ;;  %v19560_v55 = vsel %vm3555_vm6, %v33376_v4, 0.0  ;;  %v33381_v19 = vpop.eup %28541 }
 0xd88   :  { %v19467_v28 = vsub.f32 %v33271_v46, %v19397_v10  ;;  %19561 = vadd.xlane.f32.xlu0 %v19560_v55  ;;  %28547 = vpow2.f32 %v19507_v51  ;;  %v19394_v37 = vpop.xlane.xlu0 %19393  ;;  %v19563_v11 = vsel %vm3555_vm6, %v33381_v19, 0.0 }
 0xd89   :  { %28549 = vpow2.f32 %v19501_v34  ;;  %v19466_v46 = vsub.f32 %v33265_v22, %v19394_v37 }
 0xd8a   :  { %v19511_v13 = vmul.f32 1.442695, %v19467_v28  ;;  %v33387_v39 = vpop.eup %28543 }
 0xd8b   :  { %v19403_v56 = vpop.xlane.xlu1 %19402  ;;  %v19566_v7 = vsel %vm3555_vm6, %v33387_v39, 0.0  ;;  %v33394_v6 = vpop.eup %28545  ;;  %v19509_v49 = vmul.f32 1.442695, %v19466_v46 }
 0xd8c   :  { %19564 = vadd.xlane.f32.xlu0 %v19563_v11  ;;  %28551 = vpow2.f32 %v19511_v13  ;;  %v19400_v44 = vpop.xlane.xlu0 %19399  ;;  %v19569_v22 = vsel %vm3555_vm6, %v33394_v6, 0.0 }
 0xd8d   :  { %28553 = vpow2.f32 %v19503_v42  ;;  %v19468_v34 = vsub.f32 %v33273_v24, %v19400_v44 }
 0xd8e   :  { %28555 = vpow2.f32 %v19505_v41 }
 0xd8f   :  { %v33390_v3 = vpop.xlane.xlu1 %19408  ;;  %28557 = vpow2.f32 %v19509_v49  ;;  %v19513_v28 = vmul.f32 1.442695, %v19468_v34 }
 0xd90   :  { %19567 = vadd.xlane.f32.xlu0 %v19566_v7 }
 0xd91   :  { %28559 = vpow2.f32 %v19513_v28 }
 0xd92   :  { %v33397_v35 = vpop.eup %28547 }
 0xd93   :  { %v33399_v51 = vpop.xlane.xlu1 %19414  ;;  %v33403_v10 = vpop.eup %28549  ;;  %v19581_v55 = vsel %vm3555_vm6, %v33397_v35, 0.0 }
 0xd94   :  { %19570 = vadd.xlane.f32.xlu0 %v19569_v22  ;;  %19582 = vadd.xlane.f32.xlu1 %v19581_v55  ;;  %v19572_v24 = vsel %vm3555_vm6, %v33403_v10, 0.0 }
 0xd96   :  { %v33407_v37 = vpop.eup %28551 }
 0xd97   :  { %36636 = vst [vmem:[#allocation61_spill] sm:$0xff] %v33407_v37  ;;  %v33409_v42 = vpop.xlane.xlu1 %19420  ;;  %v33413_v21 = vpop.eup %28553  ;;  %v19587_v13 = vsel %vm3555_vm6, %v33407_v37, 0.0 }
 0xd98   :  { %19573 = vadd.xlane.f32.xlu0 %v19572_v24  ;;  %19588 = vadd.xlane.f32.xlu1 %v19587_v13  ;;  %v19575_v41 = vsel %vm3555_vm6, %v33413_v21, 0.0  ;;  %v33421_v46 = vpop.eup %28555  ;;  %v36638_v13 = vld [vmem:[#allocation14_spill] sm:$0xff] }
 0xd99   :  { %v19578_v7 = vsel %vm3555_vm6, %v33421_v46, 0.0  ;;  %v33427_v49 = vpop.eup %28557 }
 0xd9a   :  { %v19584_v22 = vsel %vm3555_vm6, %v33427_v49, 0.0 }
 0xd9b   :  { %v33417_v11 = vpop.xlane.xlu1 %19426  ;;  %v33433_v55 = vpop.eup %28559 }
 0xd9c   :  { %19576 = vadd.xlane.f32.xlu0 %v19575_v41  ;;  %36637 = vst [vmem:[#allocation116_spill] sm:$0xff] %v33433_v55  ;;  %v19590_v24 = vsel %vm3555_vm6, %v33433_v55, 0.0 }
 0xd9f   :  { %v33423_v44 = vpop.xlane.xlu1 %19432 }
 0xda0   :  { %19579 = vadd.xlane.f32.xlu0 %v19578_v7  ;;  %v19469_v7 = vsub.f32 %v33279_v9, %v19403_v56 }
 0xda2   :  { %v19515_v62 = vmul.f32 1.442695, %v19469_v7 }
 0xda3   :  { %v33429_v34 = vpop.xlane.xlu1 %19438 }
 0xda4   :  { %19585 = vadd.xlane.f32.xlu0 %v19584_v22  ;;  %28561 = vpow2.f32 %v19515_v62  ;;  %v19406_v22 = vpop.xlane.xlu0 %19405  ;;  %v36642_v62 = vld [vmem:[#allocation16_spill] sm:$0xff] }
 0xda5   :  { %v19470_v0 = vsub.f32 %v33281_v18, %v19406_v22  ;;  %v19471_v22 = vsub.f32 %v33287_v54, %v33390_v3 }
 0xda7   :  { %v33435_v28 = vpop.permute.xlu1 %19712 }
 0xda8   :  { %19591 = vadd.xlane.f32.xlu0 %v19590_v24  ;;  %v19715_v41 = vmul.f32 %v33435_v28, %v36638_v13  ;;  %v19716_v45 = vmul.f32 %v33435_v28, %v36639_v16  ;;  %v19517_v24 = vmul.f32 1.442695, %v19470_v0 }
 0xdaa   :  { %19748 = vrot.lane.b32.xlu1 %v19715_v41, %s28951_s16  ;;  %28563 = vpow2.f32 %v19517_v24  ;;  %v19412_v41 = vpop.xlane.xlu0 %19411  ;;  %v19519_v24 = vmul.f32 1.442695, %v19471_v22 }
 0xdac   :  { %28565 = vpow2.f32 %v19519_v24 }
 0xdae   :  { %v33447_v1 = vpop.eup %28561  ;;  %v19418_v56 = vpop.xlane.xlu0 %19417 }
 0xdaf   :  { %36640 = vst [vmem:[#allocation66_spill] sm:$0xff] %v33447_v1  ;;  %v19593_v13 = vsel %vm3555_vm6, %v33447_v1, 0.0  ;;  %v36643_v1 = vld [vmem:[#allocation15_spill] sm:$0xff] }
 0xdb2   :  { %v33457_v18 = vpop.xlane.xlu0 %19423 }
 0xdb4   :  { %v33451_v9 = vpop.eup %28563 }
 0xdb5   :  { %36641 = vst [vmem:[#allocation122_spill] sm:$0xff] %v33451_v9  ;;  %v19596_v16 = vsel %vm3555_vm6, %v33451_v9, 0.0 }
 0xdb6   :  { %v33460_v0 = vpop.xlane.xlu0 %19429  ;;  %v33476_v32 = vpop.eup %28565 }
 0xdb7   :  { %36644 = vst [vmem:[#allocation11_spill] sm:$0xff] %v33476_v32  ;;  %v19599_v54 = vsel %vm3555_vm6, %v33476_v32, 0.0 }
 0xdba   :  { %v33462_v7 = vpop.xlane.xlu0 %19435 }
 0xdbe   :  { %19825 = vrot.lane.b32.xlu0 %v19716_v45, %s28951_s16  ;;  %v19717_v45 = vmul.f32 %v33435_v28, %v36642_v62 }
 0xdce   :  { %19594 = vadd.xlane.f32.xlu1 %v19593_v13  ;;  %v33466_v13 = vpop.xlane.xlu0 %19441 }
 0xdd2   :  { %v33471_v62 = vpop.xlane.xlu0 %19444 }
 0xdd6   :  { %v33474_v9 = vpop.xlane.xlu0 %19447 }
 0xdda   :  { %v33480_v3 = vpop.xlane.xlu0 %19450 }
 0xddb   :  { %36645 = vst [vmem:[#allocation72_spill] sm:$0xff] %v33480_v3 }
 0xddd   :  { %19597 = vadd.xlane.f32.xlu0 %v19596_v16  ;;  %v19718_v16 = vmul.f32 %v33435_v28, %v36643_v1 }
 0xdde   :  { %v33482_v1 = vpop.xlane.xlu0 %19453 }
 0xddf   :  { %19902 = vrot.lane.b32.xlu1 %v19717_v45, %s28951_s16  ;;  %v19472_v45 = vsub.f32 %v33289_v23, %v19412_v41  ;;  %36646 = vst [vmem:[#allocation128_spill] sm:$0xff] %v33482_v1  ;;  %v36648_v41 = vld [vmem:[#allocation18_spill] sm:$0xff]  ;;  %v19473_v1 = vsub.f32 %v33295_v27, %v33399_v51  ;;  %v19474_v51 = vsub.f32 %v33297_v36, %v19418_v56 }
 0xde1   :  { %v19521_v15 = vmul.f32 1.442695, %v19472_v45  ;;  %v19719_v45 = vmul.f32 %v33435_v28, %v36648_v41 }
 0xde3   :  { %28567 = vpow2.f32 %v19521_v15 }
 0xded   :  { %v33484_v24 = vpop.eup %28567 }
 0xdee   :  { %36647 = vst [vmem:[#allocation78_spill] sm:$0xff] %v33484_v24  ;;  %v19602_v23 = vsel %vm3555_vm6, %v33484_v24, 0.0  ;;  %v19523_v24 = vmul.f32 1.442695, %v19473_v1 }
 0xdf3   :  { %19979 = vrot.lane.b32.xlu0 %v19718_v16, %s28951_s16 }
 0xe02   :  { %v19556_v22 = vpop.xlane.xlu0 %19555 }
 0xe03   :  { %19600 = vadd.xlane.f32.xlu1 %v19599_v54 }
 0xe0d   :  { %v19553_v54 = vpop.xlane.xlu1 %19552 }
 0xe0e   :  { %28569 = vrcp.f32 %v19553_v54 }
 0xe0f   :  { %28571 = vpow2.f32 %v19523_v24  ;;  %v19525_v24 = vmul.f32 1.442695, %v19474_v51 }
 0xe10   :  { %28573 = vrcp.f32 %v19556_v22  ;;  %v36650_v22 = vld [vmem:[#allocation19_spill] sm:$0xff] }
 0xe11   :  { %v19559_v16 = vpop.xlane.xlu0 %19558  ;;  %28575 = vpow2.f32 %v19525_v24  ;;  %v19721_v51 = vmul.f32 %v33435_v28, %v36650_v22 }
 0xe12   :  { %19603 = vadd.xlane.f32.xlu0 %v19602_v23  ;;  %28577 = vrcp.f32 %v19559_v16 }
 0xe14   :  { %20056 = vrot.lane.b32.xlu1 %v19719_v45, %s28951_s16  ;;  %v36649_v45 = vld [vmem:[#allocation17_spill] sm:$0xff] }
 0xe15   :  { %v19562_v32 = vpop.xlane.xlu0 %19561  ;;  %v19720_v40 = vmul.f32 %v33435_v28, %v36649_v45 }
 0xe18   :  { %v28570_v8 = vpop.eup %28569 }
 0xe19   :  { %v33491_v55 = vpop.xlane.xlu0 %19564  ;;  %v19648_v25 = vmul.f32 %v28570_v8, %v33365_v17  ;;  %v33520_v1 = vpop.eup %28571 }
 0xe1a   :  { %v28574_v8 = vpop.eup %28573 }
 0xe1b   :  { %v33531_v36 = vpop.eup %28575 }
 0xe1c   :  { %v19608_v56 = vsel %vm3555_vm6, %v33531_v36, 0.0 }
 0xe1d   :  { %v33493_v15 = vpop.xlane.xlu0 %19567 }
 0xe21   :  { %v33495_v60 = vpop.xlane.xlu0 %19570  ;;  %v33499_v37 = vpop.xlane.xlu1 %19582 }
 0xe25   :  { %v33501_v23 = vpop.xlane.xlu0 %19573  ;;  %v33503_v41 = vpop.xlane.xlu1 %19588 }
 0xe28   :  { %20133 = vrot.lane.b32.xlu0 %v19720_v40, %s28951_s16 }
 0xe29   :  { %v33508_v54 = vpop.xlane.xlu0 %19576  ;;  %v19749_v3 = vpop.permute.xlu1 %19748 }
 0xe2a   :  { %27519 = vmatpush3.msra.mxu1 %v19749_v3  ;;  %v19650_v3 = vmul.f32 %v28574_v8, %v33357_v20  ;;  %v19475_v20 = vsub.f32 %v33303_v29, %v33409_v42  ;;  %v19476_v29 = vsub.f32 %v33305_v57, %v33457_v18 }
 0xe2b   :  { %27521 = vmatmul.mubr.msk.f32.vlgmr.msra.gmra.mrb[80].mxu1 %vm3555_vm6, %v19648_v25  ;;  %27528 = vmatprep.subr.mxu1 %v36187_v26  ;;  %v19605_v25 = vsel %vm3555_vm6, %v33520_v1, 0.0 }
 0xe2c   :  { %27530 = vmatprep.mubr.msk.f32.mxu1 %vm28952_vm5, %v36187_v26  ;;  %v19527_v24 = vmul.f32 1.442695, %v19475_v20  ;;  %v19529_v42 = vmul.f32 1.442695, %v19476_v29  ;;  %v19723_v20 = vmul.f32 %v33435_v28, %v36423_v5 }
 0xe2d   :  { %v33513_v27 = vpop.xlane.xlu0 %19579 }
 0xe2e   :  { %28579 = vpow2.f32 %v19527_v24 }
 0xe2f   :  { %28581 = vrcp.f32 %v19562_v32 }
 0xe30   :  { %28583 = vpow2.f32 %v19529_v42 }
 0xe31   :  { %v33518_v40 = vpop.xlane.xlu0 %19585  ;;  %28585 = vrcp.f32 %v33491_v55 }
 0xe35   :  { %v33522_v45 = vpop.xlane.xlu0 %19591 }
 0xe38   :  { %19606 = vadd.xlane.f32.xlu1 %v19605_v25  ;;  %v19722_v25 = vmul.f32 %v33435_v28, %v36414_v63 }
 0xe39   :  { %v19826_v17 = vpop.permute.xlu0 %19825 }
 0xe3a   :  { %27524 = vmatpush3.msra.mxu0 %v19826_v17  ;;  %v28578_v17 = vpop.eup %28577 }
 0xe3b   :  { %27526 = vmatmul.mubr.msk.f32.vlgmr.msra.gmra.mrb[80].mxu0 %vm3555_vm6, %v19650_v3  ;;  %27533 = vmatprep.subr.mxu0 %v36187_v26  ;;  %v33552_v63 = vpop.eup %28579 }
 0xe3c   :  { %27535 = vmatprep.mubr.msk.f32.mxu0 %vm28952_vm5, %v36187_v26  ;;  %v28582_v22 = vpop.eup %28581 }
 0xe3d   :  { %v33563_v57 = vpop.eup %28583 }
 0xe3e   :  { %v19614_v18 = vsel %vm3555_vm6, %v33563_v57, 0.0 }
 0xe47   :  { %19609 = vadd.xlane.f32.xlu0 %v19608_v56  ;;  %v19652_v56 = vmul.f32 %v28578_v17, %v33370_v58  ;;  %v19611_v58 = vsel %vm3555_vm6, %v33552_v63, 0.0  ;;  %v19724_v17 = vmul.f32 %v33435_v28, %v36422_v61  ;;  %v19478_v61 = vsub.f32 %v33313_v30, %v33460_v0 }
 0xe49   :  { %20210 = vrot.lane.b32.xlu1 %v19721_v51, %s28951_s16  ;;  %v19654_v51 = vmul.f32 %v28582_v22, %v33376_v4  ;;  %v19477_v4 = vsub.f32 %v33311_v38, %v33417_v11  ;;  %v19533_v11 = vmul.f32 1.442695, %v19478_v61  ;;  %v19725_v22 = vmul.f32 %v33435_v28, %v36431_v59 }
 0xe4b   :  { %v19531_v24 = vmul.f32 1.442695, %v19477_v4 }
 0xe4d   :  { %28587 = vpow2.f32 %v19531_v24 }
 0xe4e   :  { %28589 = vrcp.f32 %v33493_v15 }
 0xe4f   :  { %28591 = vpow2.f32 %v19533_v11 }
 0xe50   :  { %28593 = vrcp.f32 %v33495_v60 }
 0xe5b   :  { %v33540_v8 = vpop.xlane.xlu1 %19594 }
 0xe5d   :  { %20287 = vrot.lane.b32.xlu0 %v19722_v25, %s28951_s16 }
 0xe5f   :  { %v19903_v3 = vpop.permute.xlu1 %19902 }
 0xe60   :  { %27529 = vmatpush3.msra.mxu1 %v19903_v3  ;;  %v28586_v3 = vpop.eup %28585 }
 0xe61   :  { %27531 = vmatmul.mubr.msk.f32.vlgmr.msra.gmra.mrb[82].mxu1 %vm3555_vm6, %v19652_v56  ;;  %27538 = vmatprep.subr.mxu1 %v36187_v26  ;;  %v19656_v5 = vmul.f32 %v28586_v3, %v33381_v19  ;;  %v33586_v38 = vpop.eup %28587 }
 0xe62   :  { %27540 = vmatprep.mubr.msk.f32.mxu1 %vm28952_vm5, %v36187_v26  ;;  %v28590_v29 = vpop.eup %28589  ;;  %v19617_v19 = vsel %vm3555_vm6, %v33586_v38, 0.0 }
 0xe63   :  { %v19658_v42 = vmul.f32 %v28590_v29, %v33387_v39  ;;  %v33597_v30 = vpop.eup %28591  ;;  %v19479_v39 = vsub.f32 %v33319_v50, %v33423_v44 }
 0xe64   :  { %v19620_v0 = vsel %vm3555_vm6, %v33597_v30, 0.0 }
 0xe6a   :  { %v33554_v16 = vpop.xlane.xlu0 %19597 }
 0xe6d   :  { %19612 = vadd.xlane.f32.xlu1 %v19611_v58  ;;  %v19535_v58 = vmul.f32 1.442695, %v19479_v39  ;;  %v19483_v39 = vsub.f32 %v33335_v48, %v33471_v62 }
 0xe6e   :  { %v19980_v32 = vpop.permute.xlu0 %19979 }
 0xe6f   :  { %27534 = vmatpush3.msra.mxu0 %v19980_v32  ;;  %28595 = vpow2.f32 %v19535_v58  ;;  %v19543_v58 = vmul.f32 1.442695, %v19483_v39 }
 0xe70   :  { %27536 = vmatmul.mubr.msk.f32.vlgmr.msra.gmra.mrb[82].mxu0 %vm3555_vm6, %v19654_v51  ;;  %27543 = vmatprep.subr.mxu0 %v36187_v26  ;;  %v19726_v51 = vmul.f32 %v33435_v28, %v36430_v52  ;;  %28597 = vrcp.f32 %v33501_v23  ;;  %v19480_v52 = vsub.f32 %v33321_v31, %v33462_v7 }
 0xe71   :  { %27545 = vmatprep.mubr.msk.f32.mxu0 %vm28952_vm5, %v36187_v26 }
 0xe72   :  { %v19537_v60 = vmul.f32 1.442695, %v19480_v52 }
 0xe74   :  { %28599 = vpow2.f32 %v19537_v60 }
 0xe75   :  { %28601 = vrcp.f32 %v33508_v54 }
 0xe7c   :  { %19615 = vadd.xlane.f32.xlu0 %v19614_v18  ;;  %v28594_v18 = vpop.eup %28593 }
 0xe7d   :  { %v19660_v59 = vmul.f32 %v28594_v18, %v33394_v6  ;;  %v33620_v50 = vpop.eup %28595  ;;  %v19730_v18 = vmul.f32 %v33435_v28, %v36444_v47  ;;  %v19484_v47 = vsub.f32 %v33339_v43, %v33474_v9 }
 0xe7e   :  { %20364 = vrot.lane.b32.xlu1 %v19723_v20, %s28951_s16  ;;  %v28598_v4 = vpop.eup %28597  ;;  %v19623_v6 = vsel %vm3555_vm6, %v33620_v50, 0.0 }
 0xe7f   :  { %v19662_v24 = vmul.f32 %v28598_v4, %v33403_v10  ;;  %v33631_v31 = vpop.eup %28599  ;;  %v19481_v10 = vsub.f32 %v33327_v33, %v33429_v34  ;;  %v19545_v62 = vmul.f32 1.442695, %v19484_v47 }
 0xe80   :  { %v19626_v7 = vsel %vm3555_vm6, %v33631_v31, 0.0  ;;  %v28602_v61 = vpop.eup %28601 }
 0xe81   :  { %v19539_v3 = vmul.f32 1.442695, %v19481_v10  ;;  %v36653_v10 = vld [vmem:[#allocation55_spill] sm:$0xff] }
 0xe83   :  { %28603 = vpow2.f32 %v19539_v3 }
 0xe84   :  { %28605 = vrcp.f32 %v33513_v27 }
 0xe8d   :  { %v33656_v33 = vpop.eup %28603 }
 0xe8e   :  { %v19629_v27 = vsel %vm3555_vm6, %v33656_v33, 0.0 }
 0xe90   :  { %v33573_v25 = vpop.xlane.xlu1 %19600 }
 0xe92   :  { %20441 = vrot.lane.b32.xlu0 %v19724_v17, %s28951_s16  ;;  %v19727_v17 = vmul.f32 %v33435_v28, %v36439_v53  ;;  %v19664_v53 = vmul.f32 %v28602_v61, %v33413_v21 }
 0xe94   :  { %v20057_v56 = vpop.permute.xlu1 %20056 }
 0xe95   :  { %27539 = vmatpush3.msra.mxu1 %v20057_v56 }
 0xe96   :  { %27541 = vmatmul.mubr.msk.f32.vlgmr.msra.gmra.mrb[84].mxu1 %vm3555_vm6, %v19656_v5  ;;  %27548 = vmatprep.subr.mxu1 %v36187_v26  ;;  %v19728_v5 = vmul.f32 %v33435_v28, %v36438_v12  ;;  %v19482_v12 = vsub.f32 %v33329_v2, %v33466_v13 }
 0xe97   :  { %27550 = vmatprep.mubr.msk.f32.mxu1 %vm28952_vm5, %v36187_v26 }
 0xe98   :  { %v19541_v34 = vmul.f32 1.442695, %v19482_v12 }
 0xe9a   :  { %28607 = vpow2.f32 %v19541_v34  ;;  %v36655_v34 = vld [vmem:[#allocation61_spill] sm:$0xff] }
 0xe9b   :  { %28609 = vrcp.f32 %v33499_v37 }
 0xe9c   :  { %28611 = vpow2.f32 %v19543_v58 }
 0xe9d   :  { %28613 = vrcp.f32 %v33518_v40 }
 0xe9e   :  { %28615 = vpow2.f32 %v19545_v62 }
 0xe9f   :  { %v33588_v55 = vpop.xlane.xlu0 %19603  ;;  %28617 = vrcp.f32 %v33503_v41 }
 0xea2   :  { %19618 = vadd.xlane.f32.xlu1 %v19617_v19  ;;  %v28606_v19 = vpop.eup %28605 }
 0xea3   :  { %v20134_v15 = vpop.permute.xlu0 %20133 }
 0xea4   :  { %27544 = vmatpush3.msra.mxu0 %v20134_v15  ;;  %v33669_v2 = vpop.eup %28607 }
 0xea5   :  { %27546 = vmatmul.mubr.msk.f32.vlgmr.msra.gmra.mrb[84].mxu0 %vm3555_vm6, %v19658_v42  ;;  %27553 = vmatprep.subr.mxu0 %v36187_v26  ;;  %v19666_v42 = vmul.f32 %v28606_v19, %v33421_v46  ;;  %v19632_v13 = vsel %vm3555_vm6, %v33669_v2, 0.0  ;;  %v19729_v46 = vmul.f32 %v33435_v28, %v36445_v14 }
 0xea6   :  { %27555 = vmatprep.mubr.msk.f32.mxu0 %vm28952_vm5, %v36187_v26 }
 0xeb1   :  { %19621 = vadd.xlane.f32.xlu0 %v19620_v0 }
 0xeb3   :  { %20518 = vrot.lane.b32.xlu1 %v19725_v22, %s28951_s16 }
 0xec5   :  { %v33607_v32 = vpop.xlane.xlu1 %19606 }
 0xec7   :  { %20595 = vrot.lane.b32.xlu0 %v19726_v51, %s28951_s16 }
 0xec9   :  { %v20211_v20 = vpop.permute.xlu1 %20210 }
 0xeca   :  { %27549 = vmatpush3.msra.mxu1 %v20211_v20  ;;  %v28610_v20 = vpop.eup %28609 }
 0xecb   :  { %27551 = vmatmul.mubr.msk.f32.vlgmr.msra.gmra.mrb[86].mxu1 %vm3555_vm6, %v19660_v59  ;;  %27558 = vmatprep.subr.mxu1 %v36187_v26  ;;  %v19668_v14 = vmul.f32 %v28610_v20, %v33397_v35  ;;  %v33694_v48 = vpop.eup %28611  ;;  %v36658_v20 = vld [vmem:[#allocation116_spill] sm:$0xff] }
 0xecc   :  { %27560 = vmatprep.mubr.msk.f32.mxu1 %vm28952_vm5, %v36187_v26  ;;  %v28614_v60 = vpop.eup %28613  ;;  %v19635_v40 = vsel %vm3555_vm6, %v33694_v48, 0.0 }
 0xecd   :  { %v33707_v43 = vpop.eup %28615 }
 0xece   :  { %v19638_v9 = vsel %vm3555_vm6, %v33707_v43, 0.0 }
 0xed4   :  { %v33622_v44 = vpop.xlane.xlu0 %19609 }
 0xed7   :  { %19624 = vadd.xlane.f32.xlu1 %v19623_v6  ;;  %v19670_v6 = vmul.f32 %v28614_v60, %v33427_v49  ;;  %v36659_v60 = vld [vmem:[#allocation34_spill] sm:$0xff] }
 0xed8   :  { %v20288_v23 = vpop.permute.xlu0 %20287 }
 0xed9   :  { %27554 = vmatpush3.msra.mxu0 %v20288_v23 }
 0xeda   :  { %27556 = vmatmul.mubr.msk.f32.vlgmr.msra.gmra.mrb[86].mxu0 %vm3555_vm6, %v19662_v24  ;;  %27563 = vmatprep.subr.mxu0 %v36187_v26 }
 0xedb   :  { %27565 = vmatprep.mubr.msk.f32.mxu0 %vm28952_vm5, %v36187_v26 }
 0xee6   :  { %19627 = vadd.xlane.f32.xlu0 %v19626_v7  ;;  %v36651_v7 = vld [vmem:[#allocation31_spill] sm:$0xff] }
 0xee7   :  { %v19731_v49 = vmul.f32 %v33435_v28, %v36651_v7  ;;  %v36662_v7 = vld [vmem:[#allocation39_spill] sm:$0xff] }
 0xee8   :  { %20672 = vrot.lane.b32.xlu1 %v19727_v17, %s28951_s16  ;;  %v36652_v17 = vld [vmem:[#allocation72_spill] sm:$0xff] }
 0xee9   :  { %v19485_v3 = vsub.f32 %v36653_v10, %v36652_v17  ;;  %v36663_v17 = vld [vmem:[#allocation41_spill] sm:$0xff] }
 0xeea   :  { %v19740_v10 = vmul.f32 %v33435_v28, %v36663_v17 }
 0xefa   :  { %v33641_v56 = vpop.xlane.xlu1 %19612 }
 0xefc   :  { %20749 = vrot.lane.b32.xlu0 %v19728_v5, %s28951_s16  ;;  %v19547_v5 = vmul.f32 1.442695, %v19485_v3 }
 0xefe   :  { %v20365_v11 = vpop.permute.xlu1 %20364  ;;  %v33647_v29 = vpop.f32.mrb[80].mxu1  ;;  %28619 = vpow2.f32 %v19547_v5  ;;  %v36664_v5 = vld [vmem:[#allocation43_spill] sm:$0xff] }
 0xeff   :  { %27559 = vmatpush3.msra.mxu1 %v20365_v11  ;;  %v27522_v54 = vpop.f32.mrb[81].mxu1  ;;  %v36654_v11 = vld [vmem:[#allocation33_spill] sm:$0xff]  ;;  %28621 = vrcp.f32 %v33522_v45 }
 0xf00   :  { %27561 = vmatmul.mubr.msk.f32.vlgmr.msra.gmra.mrb[88].mxu1 %vm3555_vm6, %v19664_v53  ;;  %27568 = vmatprep.subr.mxu1 %v36187_v26  ;;  %v19732_v53 = vmul.f32 %v33435_v28, %v36654_v11  ;;  %v28618_v54 = vpop.eup %28617  ;;  %v19742_v11 = vmul.f32 %v33435_v28, %v36664_v5 }
 0xf01   :  { %27570 = vmatprep.mubr.msk.f32.mxu1 %vm28952_vm5, %v36187_v26  ;;  %v19672_v19 = vmul.f32 %v28618_v54, %v36655_v34  ;;  %v36666_v34 = vld [vmem:[#allocation10_spill] sm:$0xff] }
 0xf09   :  { %v33658_v21 = vpop.xlane.xlu0 %19615 }
 0xf0c   :  { %19630 = vadd.xlane.f32.xlu1 %v19629_v27 }
 0xf0d   :  { %v20442_v15 = vpop.permute.xlu0 %20441 }
 0xf0e   :  { %v33663_v0 = vpop.f32.mrb[80].mxu0  ;;  %27564 = vmatpush3.msra.mxu0 %v20442_v15  ;;  %v36656_v15 = vld [vmem:[#allocation128_spill] sm:$0xff] }
 0xf0f   :  { %v27527_v22 = vpop.f32.mrb[81].mxu0  ;;  %27566 = vmatmul.mubr.msk.f32.vlgmr.msra.gmra.mrb[88].mxu0 %vm3555_vm6, %v19666_v42  ;;  %27573 = vmatprep.subr.mxu0 %v36187_v26  ;;  %v36657_v42 = vld [vmem:[#allocation110_spill] sm:$0xff] }
 0xf10   :  { %27575 = vmatprep.mubr.msk.f32.mxu0 %vm28952_vm5, %v36187_v26  ;;  %v19486_v22 = vsub.f32 %v36657_v42, %v36656_v15 }
 0xf1b   :  { %19633 = vadd.xlane.f32.xlu0 %v19632_v13  ;;  %v33732_v13 = vpop.eup %28619 }
 0xf1c   :  { %v28622_v58 = vpop.eup %28621  ;;  %v19641_v45 = vsel %vm3555_vm6, %v33732_v13, 0.0 }
 0xf1d   :  { %20826 = vrot.lane.b32.xlu1 %v19729_v46, %s28951_s16  ;;  %v19549_v46 = vmul.f32 1.442695, %v19486_v22  ;;  %v36668_v22 = vld [vmem:[#allocation66_spill] sm:$0xff] }
 0xf1f   :  { %28623 = vpow2.f32 %v19549_v46 }
 0xf20   :  { %28625 = vrcp.f32 %v33540_v8 }
 0xf21   :  { %28627 = vrcp.f32 %v33554_v16  ;;  %v36671_v16 = vld [vmem:[#allocation42_spill] sm:$0xff] }
 0xf22   :  { %28629 = vrcp.f32 %v33573_v25 }
 0xf23   :  { %28631 = vrcp.f32 %v33588_v55 }
 0xf24   :  { %28633 = vrcp.f32 %v33607_v32 }
 0xf25   :  { %28635 = vrcp.f32 %v33641_v56 }
 0xf26   :  { %28637 = vrcp.f32 %v33622_v44 }
 0xf27   :  { %28639 = vrcp.f32 %v33658_v21 }
 0xf29   :  { %v33745_v47 = vpop.eup %28623 }
 0xf2a   :  { %v19644_v62 = vsel %vm3555_vm6, %v33745_v47, 0.0 }
 0xf2f   :  { %v33679_v51 = vpop.xlane.xlu1 %19618 }
 0xf30   :  { %28641 = vrcp.f32 %v33679_v51 }
 0xf31   :  { %20903 = vrot.lane.b32.xlu0 %v19730_v18, %s28951_s16 }
 0xf33   :  { %v20519_v59 = vpop.permute.xlu1 %20518 }
 0xf34   :  { %v33685_v52 = vpop.f32.mrb[82].mxu1  ;;  %27569 = vmatpush3.msra.mxu1 %v20519_v59  ;;  %v19674_v59 = vmul.f32 %v28622_v58, %v36658_v20  ;;  %v36670_v20 = vld [vmem:[#allocation40_spill] sm:$0xff] }
 0xf35   :  { %v27532_v37 = vpop.f32.mrb[83].mxu1  ;;  %27571 = vmatmul.mubr.msk.f32.vlgmr.msra.gmra.mrb[90].mxu1 %vm3555_vm6, %v19668_v14  ;;  %27578 = vmatprep.subr.mxu1 %v36187_v26 }
 0xf36   :  { %27580 = vmatprep.mubr.msk.f32.mxu1 %vm28952_vm5, %v36187_v26 }
 0xf3e   :  { %v33696_v35 = vpop.xlane.xlu0 %19621 }
 0xf3f   :  { %28643 = vrcp.f32 %v33696_v35 }
 0xf41   :  { %19636 = vadd.xlane.f32.xlu1 %v19635_v40  ;;  %v19733_v40 = vmul.f32 %v33435_v28, %v36659_v60 }
 0xf42   :  { %v20596_v4 = vpop.permute.xlu0 %20595 }
 0xf43   :  { %v33701_v23 = vpop.f32.mrb[82].mxu0  ;;  %27574 = vmatpush3.msra.mxu0 %v20596_v4  ;;  %v36660_v4 = vld [vmem:[#allocation36_spill] sm:$0xff] }
 0xf44   :  { %v27537_v24 = vpop.f32.mrb[83].mxu0  ;;  %27576 = vmatmul.mubr.msk.f32.vlgmr.msra.gmra.mrb[90].mxu0 %vm3555_vm6, %v19670_v6  ;;  %27583 = vmatprep.subr.mxu0 %v36187_v26  ;;  %v19735_v6 = vmul.f32 %v33435_v28, %v36660_v4 }
 0xf45   :  { %27585 = vmatprep.mubr.msk.f32.mxu0 %vm28952_vm5, %v36187_v26  ;;  %v36661_v24 = vld [vmem:[#allocation37_spill] sm:$0xff] }
 0xf50   :  { %19639 = vadd.xlane.f32.xlu0 %v19638_v9  ;;  %v19736_v9 = vmul.f32 %v33435_v28, %v36661_v24  ;;  %v36673_v24 = vld [vmem:[#allocation122_spill] sm:$0xff] }
 0xf52   :  { %20980 = vrot.lane.b32.xlu1 %v19731_v49, %s28951_s16  ;;  %v19738_v49 = vmul.f32 %v33435_v28, %v36662_v7 }
 0xf64   :  { %v33717_v61 = vpop.xlane.xlu1 %19624 }
 0xf65   :  { %28645 = vrcp.f32 %v33717_v61 }
 0xf66   :  { %21057 = vrot.lane.b32.xlu0 %v19732_v53, %s28951_s16  ;;  %v36665_v53 = vld [vmem:[#allocation35_spill] sm:$0xff] }
 0xf67   :  { %v19734_v54 = vmul.f32 %v33435_v28, %v36665_v53 }
 0xf68   :  { %v20673_v12 = vpop.permute.xlu1 %20672 }
 0xf69   :  { %v33723_v27 = vpop.f32.mrb[84].mxu1  ;;  %27579 = vmatpush3.msra.mxu1 %v20673_v12  ;;  %v28626_v12 = vpop.eup %28625 }
 0xf6a   :  { %v27542_v41 = vpop.f32.mrb[85].mxu1  ;;  %27581 = vmatmul.mubr.msk.f32.vlgmr.msra.gmra.mrb[92].mxu1 %vm3555_vm6, %v19672_v19  ;;  %27588 = vmatprep.subr.mxu1 %v36187_v26  ;;  %v19744_v19 = vmul.f32 %v33435_v28, %v36666_v34  ;;  %v19676_v46 = vmul.f32 %v28626_v12, %v36668_v22  ;;  %v28628_v60 = vpop.eup %28627 }
 0xf6b   :  { %27590 = vmatprep.mubr.msk.f32.mxu1 %vm28952_vm5, %v36187_v26  ;;  %v36667_v41 = vld [vmem:[#allocation38_spill] sm:$0xff] }
 0xf6c   :  { %v19737_v15 = vmul.f32 %v33435_v28, %v36667_v41  ;;  %v36676_v41 = vld [vmem:[#allocation78_spill] sm:$0xff] }
 0xf73   :  { %v33734_v39 = vpop.xlane.xlu0 %19627 }
 0xf74   :  { %28647 = vrcp.f32 %v33734_v39 }
 0xf76   :  { %19642 = vadd.xlane.f32.xlu1 %v19641_v45  ;;  %v36669_v45 = vld [vmem:[#allocation12_spill] sm:$0xff] }
 0xf77   :  { %v20750_v18 = vpop.permute.xlu0 %20749 }
 0xf78   :  { %v33739_v14 = vpop.f32.mrb[84].mxu0  ;;  %27584 = vmatpush3.msra.mxu0 %v20750_v18  ;;  %v19746_v18 = vmul.f32 %v33435_v28, %v36669_v45 }
 0xf79   :  { %v27547_v37 = vpop.f32.mrb[85].mxu0  ;;  %27586 = vmatmul.mubr.msk.f32.vlgmr.msra.gmra.mrb[92].mxu0 %vm3555_vm6, %v19674_v59  ;;  %27593 = vmatprep.subr.mxu0 %v36187_v26  ;;  %v19739_v59 = vmul.f32 %v33435_v28, %v36670_v20 }
 0xf7a   :  { %27595 = vmatprep.mubr.msk.f32.mxu0 %vm28952_vm5, %v36187_v26  ;;  %v19741_v37 = vmul.f32 %v33435_v28, %v36671_v16 }
 0xf85   :  { %19645 = vadd.xlane.f32.xlu0 %v19644_v62 }
 0xf87   :  { %21134 = vrot.lane.b32.xlu1 %v19733_v40, %s28951_s16  ;;  %v36672_v40 = vld [vmem:[#allocation29_spill] sm:$0xff] }
 0xf88   :  { %v19743_v4 = vmul.f32 %v33435_v28, %v36672_v40 }
 0xf8b   :  { %21288 = vrot.lane.b32.xlu1 %v19735_v6, %s28951_s16 }
 0xf8f   :  { %21365 = vrot.lane.b32.xlu1 %v19736_v9, %s28951_s16  ;;  %v19678_v9 = vmul.f32 %v28628_v60, %v36673_v24 }
 0xf93   :  { %21519 = vrot.lane.b32.xlu1 %v19738_v49, %s28951_s16  ;;  %v36674_v49 = vld [vmem:[#allocation30_spill] sm:$0xff] }
 0xf94   :  { %v19745_v17 = vmul.f32 %v33435_v28, %v36674_v49 }
 0xf97   :  { %21673 = vrot.lane.b32.xlu1 %v19740_v10, %s28951_s16 }
 0xf99   :  { %v33765_v3 = vpop.xlane.xlu1 %19630 }
 0xf9a   :  { %28649 = vrcp.f32 %v33765_v3 }
 0xf9b   :  { %21827 = vrot.lane.b32.xlu1 %v19742_v11, %s28951_s16  ;;  %21211 = vrot.lane.b32.xlu0 %v19734_v54, %s28951_s16  ;;  %v28630_v11 = vpop.eup %28629  ;;  %v36675_v54 = vld [vmem:[#allocation11_spill] sm:$0xff] }
 0xf9c   :  { %v19680_v12 = vmul.f32 %v28630_v11, %v36675_v54  ;;  %v28632_v25 = vpop.eup %28631 }
 0xf9d   :  { %v20827_v8 = vpop.permute.xlu1 %20826 }
 0xf9e   :  { %v33777_v42 = vpop.f32.mrb[86].mxu1  ;;  %27589 = vmatpush3.msra.mxu1 %v20827_v8 }
 0xf9f   :  { %21981 = vrot.lane.b32.xlu1 %v19744_v19, %s28951_s16  ;;  %21442 = vrot.lane.b32.xlu0 %v19737_v15, %s28951_s16  ;;  %v27552_v58 = vpop.f32.mrb[87].mxu1  ;;  %v19682_v15 = vmul.f32 %v28632_v25, %v36676_v41  ;;  %v22244_v25 = vld [vmem:[%s35889_s3 + $0x8] sm:$0xff] }
 0xfa0   :  { %27591 = vmatmul.mubr.msk.f32.vlgmr.msra.gmra.mrb[94].mxu1 %vm3555_vm6, %v19676_v46  ;;  %27598 = vmatprep.subr.mxu1 %v36187_v26  ;;  %v28634_v58 = vpop.eup %28633 }
 0xfa1   :  { %27600 = vmatprep.mubr.msk.f32.mxu1 %vm28952_vm5, %v36187_v26  ;;  %v28636_v20 = vpop.eup %28635 }
 0xfa2   :  { %v19688_v56 = vmul.f32 %v28636_v20, %v33552_v63 }
 0xfa3   :  { %22135 = vrot.lane.b32.xlu1 %v19746_v18, %s28951_s16  ;;  %21596 = vrot.lane.b32.xlu0 %v19739_v59, %s28951_s16  ;;  %v19684_v18 = vmul.f32 %v28634_v58, %v33520_v1 }
 0xfa7   :  { %21750 = vrot.lane.b32.xlu0 %v19741_v37, %s28951_s16  ;;  %v28638_v37 = vpop.eup %28637 }
 0xfa8   :  { %v33796_v62 = vpop.xlane.xlu0 %19633  ;;  %v28640_v21 = vpop.eup %28639  ;;  %v19686_v60 = vmul.f32 %v28638_v37, %v33531_v36 }
 0xfa9   :  { %v28642_v40 = vpop.eup %28641  ;;  %28651 = vrcp.f32 %v33796_v62  ;;  %v19690_v36 = vmul.f32 %v28640_v21, %v33563_v57 }
 0xfaa   :  { %v28644_v61 = vpop.eup %28643 }
 0xfab   :  { %21904 = vrot.lane.b32.xlu0 %v19743_v4, %s28951_s16  ;;  %v28646_v62 = vpop.eup %28645  ;;  %v19694_v57 = vmul.f32 %v28644_v61, %v33597_v30 }
 0xfac   :  { %v20904_v6 = vpop.permute.xlu0 %20903  ;;  %v28648_v24 = vpop.eup %28647 }
 0xfad   :  { %v33802_v7 = vpop.f32.mrb[86].mxu0  ;;  %27594 = vmatpush3.msra.mxu0 %v20904_v6  ;;  %v19692_v6 = vmul.f32 %v28642_v40, %v33586_v38  ;;  %v19696_v38 = vmul.f32 %v28646_v62, %v33620_v50  ;;  %v28650_v49 = vpop.eup %28649  ;;  %v19698_v30 = vmul.f32 %v28648_v24, %v33631_v31 }
 0xfae   :  { %v27557_v10 = vpop.f32.mrb[87].mxu0  ;;  %27596 = vmatmul.mubr.msk.f32.vlgmr.msra.gmra.mrb[94].mxu0 %vm3555_vm6, %v19678_v9  ;;  %27603 = vmatprep.subr.mxu0 %v36187_v26  ;;  %v19700_v50 = vmul.f32 %v28650_v49, %v33656_v33 }
 0xfaf   :  { %22058 = vrot.lane.b32.xlu0 %v19745_v17, %s28951_s16  ;;  %27605 = vmatprep.mubr.msk.f32.mxu0 %vm28952_vm5, %v36187_v26 }
 0xfb3   :  { %v28652_v10 = vpop.eup %28651 }
 0xfb4   :  { %v19702_v31 = vmul.f32 %v28652_v10, %v33669_v2  ;;  %v36677_v10 = vld [vmem:[#allocation5_spill] sm:$0xff] }
 0xfce   :  { %v19637_v5 = vpop.xlane.xlu1 %19636 }
 0xfcf   :  { %28653 = vrcp.f32 %v19637_v5 }
 0xfd2   :  { %v20981_v53 = vpop.permute.xlu1 %20980 }
 0xfd3   :  { %v33813_v8 = vpop.f32.mrb[88].mxu1  ;;  %27599 = vmatpush3.msra.mxu1 %v20981_v53 }
 0xfd4   :  { %v27562_v28 = vpop.f32.mrb[89].mxu1  ;;  %27601 = vmatmul.mubr.msk.f32.vlgmr.msra.gmra.mrb[96].mxu1 %vm3555_vm6, %v19680_v12  ;;  %27608 = vmatprep.subr.mxu1 %v36187_v26 }
 0xfd5   :  { %27610 = vmatprep.mubr.msk.f32.mxu1 %vm28952_vm5, %v36187_v26 }
 0xfd9   :  { %v28654_v11 = vpop.eup %28653 }
 0xfda   :  { %v19704_v33 = vmul.f32 %v28654_v11, %v33694_v48  ;;  %v28917_v11 = vld [vmem:[%s35886_s0 + $0x8] sm:$0xff] }
 0xfdd   :  { %v19640_v34 = vpop.xlane.xlu0 %19639 }
 0xfde   :  { %28655 = vrcp.f32 %v19640_v34  ;;  %v22243_v34 = vld [vmem:[%s35889_s3] sm:$0xff] }
 0xfdf   :  { %v27854_v41 = vpack.c.bf16 %v22244_v25, %v22243_v34 }
 0xfe1   :  { %v21058_v19 = vpop.permute.xlu0 %21057 }
 0xfe2   :  { %v33821_v22 = vpop.f32.mrb[88].mxu0  ;;  %27604 = vmatpush3.msra.mxu0 %v21058_v19 }
 0xfe3   :  { %v27567_v46 = vpop.f32.mrb[89].mxu0  ;;  %27606 = vmatmul.mubr.msk.f32.vlgmr.msra.gmra.mrb[96].mxu0 %vm3555_vm6, %v19682_v15  ;;  %27613 = vmatprep.subr.mxu0 %v36187_v26 }
 0xfe4   :  { %27615 = vmatprep.mubr.msk.f32.mxu0 %vm28952_vm5, %v36187_v26  ;;  %v22245_v46 = vld [vmem:[%s35889_s3 + $0x10] sm:$0xff] }
 0xfe8   :  { %v28656_v53 = vpop.eup %28655 }
 0xfe9   :  { %v19706_v48 = vmul.f32 %v28656_v53, %v33707_v43 }
0x1003   :  { %v19643_v55 = vpop.xlane.xlu1 %19642 }
0x1004   :  { %28657 = vrcp.f32 %v19643_v55  ;;  %v22246_v55 = vld [vmem:[%s35889_s3 + $0x18] sm:$0xff] }
0x1007   :  { %v21135_v45 = vpop.permute.xlu1 %21134 }
0x1008   :  { %v33830_v59 = vpop.f32.mrb[90].mxu1  ;;  %27609 = vmatpush3.msra.mxu1 %v21135_v45 }
0x1009   :  { %v27572_v16 = vpop.f32.mrb[91].mxu1  ;;  %27611 = vmatmul.mubr.msk.f32.vlgmr.msra.gmra.mrb[98].mxu1 %vm3555_vm6, %v19684_v18  ;;  %27618 = vmatprep.subr.mxu1 %v36187_v26 }
0x100a   :  { %27620 = vmatprep.mubr.msk.f32.mxu1 %vm28952_vm5, %v36187_v26 }
0x100b   :  { %v21289_v32 = vpop.permute.xlu1 %21288 }
0x100c   :  { %27619 = vmatpush3.msra.mxu1 %v21289_v32 }
0x100d   :  { %27621 = vmatmul.mubr.msk.f32.vlgmr.msra.gmra.mrb[100].mxu1 %vm3555_vm6, %v19688_v56  ;;  %27628 = vmatprep.subr.mxu1 %v36187_v26 }
0x100e   :  { %27630 = vmatprep.mubr.msk.f32.mxu1 %vm28952_vm5, %v36187_v26  ;;  %v28658_v28 = vpop.eup %28657 }
0x100f   :  { %v21366_v1 = vpop.permute.xlu1 %21365  ;;  %v19708_v19 = vmul.f32 %v28658_v28, %v33732_v13  ;;  %v27858_v13 = vpack.c.bf16 %v22246_v55, %v22245_v46 }
0x1012   :  { %v19646_v44 = vpop.xlane.xlu0 %19645 }
0x1013   :  { %v21520_v63 = vpop.permute.xlu1 %21519  ;;  %28659 = vrcp.f32 %v19646_v44 }
0x1016   :  { %v21212_v51 = vpop.permute.xlu0 %21211 }
0x1017   :  { %v33849_v4 = vpop.f32.mrb[90].mxu0  ;;  %27614 = vmatpush3.msra.mxu0 %v21212_v51  ;;  %v21674_v39 = vpop.permute.xlu1 %21673 }
0x1018   :  { %v27577_v35 = vpop.f32.mrb[91].mxu0  ;;  %27616 = vmatmul.mubr.msk.f32.vlgmr.msra.gmra.mrb[98].mxu0 %vm3555_vm6, %v19686_v60  ;;  %27623 = vmatprep.subr.mxu0 %v36187_v26 }
0x1019   :  { %27624 = vmatpush3.msra.mxu0 %v21366_v1  ;;  %27625 = vmatprep.mubr.msk.f32.mxu0 %vm28952_vm5, %v36187_v26 }
0x101a   :  { %v21443_v3 = vpop.permute.xlu0 %21442  ;;  %27633 = vmatprep.subr.mxu0 %v36187_v26 }
0x101b   :  { %27629 = vmatpush3.msra.mxu1 %v21443_v3  ;;  %v21828_v17 = vpop.permute.xlu1 %21827 }
0x101c   :  { %27626 = vmatmul.mubr.msk.f32.vlgmr.msra.gmra.mrb[100].mxu0 %vm3555_vm6, %v19690_v36  ;;  %27631 = vmatmul.mubr.msk.f32.vlgmr.msra.gmra.mrb[102].mxu1 %vm3555_vm6, %v19692_v6 }
0x101d   :  { %27634 = vmatpush3.msra.mxu0 %v21520_v63  ;;  %27638 = vmatprep.subr.mxu1 %v36187_v26  ;;  %v28660_v15 = vpop.eup %28659 }
0x101e   :  { %v21597_v9 = vpop.permute.xlu0 %21596  ;;  %27635 = vmatprep.mubr.msk.f32.mxu0 %vm28952_vm5, %v36187_v26  ;;  %27640 = vmatprep.mubr.msk.f32.mxu1 %vm28952_vm5, %v36187_v26  ;;  %v19710_v43 = vmul.f32 %v28660_v15, %v33745_v47  ;;  %v28920_v15 = vld [vmem:[%s35886_s0 + $0x18] sm:$0xff] }
0x101f   :  { %27639 = vmatpush3.msra.mxu1 %v21597_v9  ;;  %27643 = vmatprep.subr.mxu0 %v36187_v26  ;;  %v21982_v54 = vpop.permute.xlu1 %21981 }
0x1020   :  { %27636 = vmatmul.mubr.msk.f32.vlgmr.msra.gmra.mrb[102].mxu0 %vm3555_vm6, %v19694_v57  ;;  %27641 = vmatmul.mubr.msk.f32.vlgmr.msra.gmra.mrb[104].mxu1 %vm3555_vm6, %v19696_v38 }
0x1021   :  { %27644 = vmatpush3.msra.mxu0 %v21674_v39  ;;  %27648 = vmatprep.subr.mxu1 %v36187_v26 }
0x1022   :  { %v21751_v5 = vpop.permute.xlu0 %21750  ;;  %27645 = vmatprep.mubr.msk.f32.mxu0 %vm28952_vm5, %v36187_v26  ;;  %27650 = vmatprep.mubr.msk.f32.mxu1 %vm28952_vm5, %v36187_v26 }
0x1023   :  { %27649 = vmatpush3.msra.mxu1 %v21751_v5  ;;  %27653 = vmatprep.subr.mxu0 %v36187_v26  ;;  %v22136_v58 = vpop.permute.xlu1 %22135 }
0x1024   :  { %27646 = vmatmul.mubr.msk.f32.vlgmr.msra.gmra.mrb[104].mxu0 %vm3555_vm6, %v19698_v30  ;;  %27651 = vmatmul.mubr.msk.f32.vlgmr.msra.gmra.mrb[106].mxu1 %vm3555_vm6, %v19700_v50 }
0x1025   :  { %27654 = vmatpush3.msra.mxu0 %v21828_v17  ;;  %27658 = vmatprep.subr.mxu1 %v36187_v26 }
0x1026   :  { %v21905_v12 = vpop.permute.xlu0 %21904  ;;  %27655 = vmatprep.mubr.msk.f32.mxu0 %vm28952_vm5, %v36187_v26  ;;  %27660 = vmatprep.mubr.msk.f32.mxu1 %vm28952_vm5, %v36187_v26 }
0x1027   :  { %27659 = vmatpush3.msra.mxu1 %v21905_v12  ;;  %27663 = vmatprep.subr.mxu0 %v36187_v26 }
0x1028   :  { %27656 = vmatmul.mubr.msk.f32.vlgmr.msra.gmra.mrb[106].mxu0 %vm3555_vm6, %v19702_v31  ;;  %27661 = vmatmul.mubr.msk.f32.vlgmr.msra.gmra.mrb[108].mxu1 %vm3555_vm6, %v19704_v33 }
0x1029   :  { %27664 = vmatpush3.msra.mxu0 %v21982_v54  ;;  %27668 = vmatprep.subr.mxu1 %v36187_v26  ;;  %v28918_v54 = vld [vmem:[%s35886_s0] sm:$0xff] }
0x102a   :  { %v22059_v2 = vpop.permute.xlu0 %22058  ;;  %27665 = vmatprep.mubr.msk.f32.mxu0 %vm28952_vm5, %v36187_v26  ;;  %27670 = vmatprep.mubr.msk.f32.mxu1 %vm28952_vm5, %v36187_v26 }
0x102b   :  { %27669 = vmatpush3.msra.mxu1 %v22059_v2  ;;  %27673 = vmatprep.subr.mxu0 %v36187_v26 }
0x102c   :  { %27666 = vmatmul.mubr.msk.f32.vlgmr.msra.gmra.mrb[108].mxu0 %vm3555_vm6, %v19706_v48  ;;  %27671 = vmatmul.mubr.msk.f32.vlgmr.msra.gmra.mrb[110].mxu1 %vm3555_vm6, %v19708_v19  ;;  %v28919_v48 = vld [vmem:[%s35886_s0 + $0x10] sm:$0xff] }
0x102d   :  { %27674 = vmatpush3.msra.mxu0 %v22136_v58  ;;  %27675 = vmatprep.mubr.msk.f32.mxu0 %vm28952_vm5, %v36187_v26 }
0x102e   :  { %27855 = vmatprep.subr.bf16.mxu0 %v27854_v41  ;;  %27878 = vmatprep.subr.bf16.mxu1 %v27854_v41 }
0x102f   :  { %27880 = vmatpush3.bf16.msra.mxu1 %v27854_v41 }
0x1030   :  { %27676 = vmatmul.mubr.msk.f32.vlgmr.msra.gmra.mrb[110].mxu0 %vm3555_vm6, %v19710_v43  ;;  %27879 = vmatprep.subr.bf16.mxu1 %v27858_v13 }
0x1031   :  { %27857 = vmatpush3.bf16.msra.mxu0 %v27854_v41  ;;  %27686 = vmatprep.mubr.msk.f32.mxu0 %vm57_vm0, %v33647_v29 }
0x1032   :  { %27859 = vmatprep.subr.bf16.mxu0 %v27858_v13 }
0x1033   :  { %27881 = vmatpush3.bf16.msra.mxu1 %v27858_v13 }
0x1035   :  { %27861 = vmatpush3.bf16.msra.mxu0 %v27858_v13 }
0x1038   :  { %27687 = vmatmul.mubr.msk.f32.vlgmr.msra.gmra.mrb[176].mxu0 %vm57_vm0, %v33663_v0 }
0x1039   :  { %27689 = vmatprep.mubr.msk.f32.mxu0 %vm57_vm0, %v33685_v52 }
0x103c   :  { %27690 = vmatmul.mubr.msk.f32.gmra.mrb[178].mxu0 %vm57_vm0, %v33701_v23 }
0x103d   :  { %27692 = vmatprep.mubr.msk.f32.mxu0 %vm57_vm0, %v33723_v27  ;;  %v20744_v26 = vpop.f32.mrb[92].mxu1 }
0x103e   :  { %v27582_v47 = vpop.f32.mrb[93].mxu1 }
0x1040   :  { %27693 = vmatmul.mubr.msk.f32.gmra.mrb[180].mxu0 %vm57_vm0, %v33739_v14 }
0x1041   :  { %27695 = vmatprep.mubr.msk.f32.mxu0 %vm57_vm0, %v33777_v42 }
0x1044   :  { %27696 = vmatmul.mubr.msk.f32.gmra.mrb[182].mxu0 %vm57_vm0, %v33802_v7 }
0x1045   :  { %27698 = vmatprep.mubr.msk.f32.mxu0 %vm57_vm0, %v33813_v8 }
0x1048   :  { %27699 = vmatmul.mubr.msk.f32.gmra.mrb[184].mxu0 %vm57_vm0, %v33821_v22 }
0x1049   :  { %27701 = vmatprep.mubr.msk.f32.mxu0 %vm57_vm0, %v33830_v59 }
0x104c   :  { %27702 = vmatmul.mubr.msk.f32.gmra.mrb[186].mxu0 %vm57_vm0, %v33849_v4  ;;  %v20821_v29 = vpop.f32.mrb[92].mxu0 }
0x104d   :  { %27704 = vmatprep.mubr.msk.f32.mxu0 %vm57_vm0, %v20744_v26  ;;  %v27587_v0 = vpop.f32.mrb[93].mxu0  ;;  %v28921_v26 = vld [vmem:[%s35886_s0 + $0x20] sm:$0xff] }
0x1050   :  { %27705 = vmatmul.mubr.msk.f32.gmra.mrb[188].mxu0 %vm57_vm0, %v20821_v29 }
0x1073   :  { %v20898_v52 = vpop.f32.mrb[94].mxu1 }
0x1074   :  { %v27592_v23 = vpop.f32.mrb[95].mxu1  ;;  %27707 = vmatprep.mubr.msk.f32.mxu1 %vm57_vm0, %v20898_v52 }
0x1075   :  { %v28922_v23 = vld [vmem:[%s35886_s0 + $0x28] sm:$0xff] }
0x1081   :  { %v20975_v27 = vpop.f32.mrb[94].mxu0 }
0x1082   :  { %v27597_v14 = vpop.f32.mrb[95].mxu0  ;;  %27708 = vmatmul.mubr.msk.f32.vlgmr.msra.gmra.mrb[176].mxu1 %vm57_vm0, %v20975_v27 }
0x10a7   :  { %v21052_v42 = vpop.f32.mrb[96].mxu1 }
0x10a8   :  { %v27602_v7 = vpop.f32.mrb[97].mxu1  ;;  %27710 = vmatprep.mubr.msk.f32.mxu1 %vm57_vm0, %v21052_v42 }
0x10b6   :  { %v21129_v8 = vpop.f32.mrb[96].mxu0 }
0x10b7   :  { %v27607_v22 = vpop.f32.mrb[97].mxu0  ;;  %27711 = vmatmul.mubr.msk.f32.gmra.mrb[178].mxu1 %vm57_vm0, %v21129_v8  ;;  %v28923_v8 = vld [vmem:[%s35886_s0 + $0x30] sm:$0xff] }
0x10dc   :  { %v21206_v45 = vpop.f32.mrb[98].mxu1 }
0x10dd   :  { %v27612_v18 = vpop.f32.mrb[99].mxu1  ;;  %27713 = vmatprep.mubr.msk.f32.mxu1 %vm57_vm0, %v21206_v45 }
0x10e0   :  { %v21360_v20 = vpop.f32.mrb[100].mxu1 }
0x10e1   :  { %v27622_v59 = vpop.f32.mrb[101].mxu1 }
0x10e2   :  { %v28924_v59 = vld [vmem:[%s35886_s0 + $0x38] sm:$0xff] }
0x10eb   :  { %v21283_v16 = vpop.f32.mrb[98].mxu0 }
0x10ec   :  { %v27617_v32 = vpop.f32.mrb[99].mxu0  ;;  %27714 = vmatmul.mubr.msk.f32.gmra.mrb[180].mxu1 %vm57_vm0, %v21283_v16 }
0x10ed   :  { %27716 = vmatprep.mubr.msk.f32.mxu1 %vm57_vm0, %v21360_v20 }
0x10ef   :  { %v21437_v56 = vpop.f32.mrb[100].mxu0  ;;  %v21514_v1 = vpop.f32.mrb[102].mxu1 }
0x10f0   :  { %v27627_v44 = vpop.f32.mrb[101].mxu0  ;;  %v27632_v37 = vpop.f32.mrb[103].mxu1  ;;  %27717 = vmatmul.mubr.msk.f32.gmra.mrb[182].mxu1 %vm57_vm0, %v21437_v56 }
0x10f1   :  { %27719 = vmatprep.mubr.msk.f32.mxu1 %vm57_vm0, %v21514_v1  ;;  %v28925_v44 = vld [vmem:[%s35886_s0 + $0x40] sm:$0xff] }
0x10f3   :  { %v21591_v63 = vpop.f32.mrb[102].mxu0  ;;  %v21668_v21 = vpop.f32.mrb[104].mxu1 }
0x10f4   :  { %v27637_v51 = vpop.f32.mrb[103].mxu0  ;;  %v27642_v60 = vpop.f32.mrb[105].mxu1  ;;  %27720 = vmatmul.mubr.msk.f32.gmra.mrb[184].mxu1 %vm57_vm0, %v21591_v63 }
0x10f5   :  { %27722 = vmatprep.mubr.msk.f32.mxu1 %vm57_vm0, %v21668_v21  ;;  %v28926_v21 = vld [vmem:[%s35886_s0 + $0x48] sm:$0xff] }
0x10f7   :  { %v21745_v40 = vpop.f32.mrb[104].mxu0  ;;  %v21822_v4 = vpop.f32.mrb[106].mxu1 }
0x10f8   :  { %v27647_v35 = vpop.f32.mrb[105].mxu0  ;;  %v27652_v61 = vpop.f32.mrb[107].mxu1  ;;  %27723 = vmatmul.mubr.msk.f32.gmra.mrb[186].mxu1 %vm57_vm0, %v21745_v40 }
0x10f9   :  { %27725 = vmatprep.mubr.msk.f32.mxu1 %vm57_vm0, %v21822_v4 }
0x10fb   :  { %v21899_v39 = vpop.f32.mrb[106].mxu0  ;;  %v21976_v3 = vpop.f32.mrb[108].mxu1 }
0x10fc   :  { %v27657_v36 = vpop.f32.mrb[107].mxu0  ;;  %v27662_v6 = vpop.f32.mrb[109].mxu1  ;;  %27726 = vmatmul.mubr.msk.f32.gmra.mrb[188].mxu1 %vm57_vm0, %v21899_v39  ;;  %v28927_v39 = vld [vmem:[%s35886_s0 + $0x50] sm:$0xff] }
0x10fd   :  { %27728 = vmatprep.mubr.msk.f32.mxu1 %vm57_vm0, %v21976_v3 }
0x10ff   :  { %v22053_v62 = vpop.f32.mrb[108].mxu0  ;;  %v22130_v24 = vpop.f32.mrb[110].mxu1 }
0x1100   :  { %v27667_v9 = vpop.f32.mrb[109].mxu0  ;;  %v27672_v57 = vpop.f32.mrb[111].mxu1  ;;  %27729 = vmatmul.mubr.msk.f32.gmra.mrb[190].mxu1 %vm57_vm0, %v22053_v62 }
0x1101   :  { %27731 = vmatprep.mubr.msk.f32.mxu1 %vm57_vm0, %v22130_v24  ;;  %v28928_v24 = vld [vmem:[%s35886_s0 + $0x58] sm:$0xff] }
0x1103   :  { %v22207_v38 = vpop.f32.mrb[110].mxu0 }
0x1104   :  { %v27677_v49 = vpop.f32.mrb[111].mxu0  ;;  %27732 = vmatmul.mubr.msk.f32.gmra.mrb[192].mxu1 %vm57_vm0, %v22207_v38 }
0x110b   :  { %v27688_v17 = vpop.f32.mrb[176].mxu0 }
0x110c   :  { %v22419_v5 = vadd.f32 %v27688_v17, %v36677_v10  ;;  %v22413_v30 = vpop.f32.mrb[177].mxu0  ;;  %v28929_v17 = vld [vmem:[%s35886_s0 + $0x60] sm:$0xff] }
0x110d   :  { %v22414_v50 = vadd.f32 %v22413_v30, %v36677_v10  ;;  %v28930_v30 = vld [vmem:[%s35886_s0 + $0x68] sm:$0xff] }
0x110e   :  { %v33966_v53 = vadd.f32 %v28917_v11, %v22419_v5 }
0x110f   :  { %v33971_v12 = vadd.f32 %v28918_v54, %v22414_v50  ;;  %v27691_v31 = vpop.f32.mrb[178].mxu0 }
0x1110   :  { %v22429_v33 = vadd.f32 %v27691_v31, %v36677_v10  ;;  %v22423_v28 = vpop.f32.mrb[179].mxu0  ;;  %v22607_v34 = vsel %vm57_vm0, %v33966_v53, 0.0 }
0x1111   :  { %v22424_v25 = vadd.f32 %v22423_v28, %v36677_v10  ;;  %22608 = vadd.xlane.f32.xlu1 %v22607_v34  ;;  %v22604_v2 = vsel %vm57_vm0, %v33971_v12, 0.0 }
0x1112   :  { %22605 = vadd.xlane.f32.xlu0 %v22604_v2  ;;  %v33987_v46 = vadd.f32 %v28920_v15, %v22429_v33  ;;  %v28931_v2 = vld [vmem:[%s35886_s0 + $0x78] sm:$0xff] }
0x1113   :  { %v33982_v19 = vadd.f32 %v28919_v48, %v22424_v25  ;;  %v27694_v41 = vpop.f32.mrb[180].mxu0 }
0x1114   :  { %v22433_v55 = vpop.f32.mrb[181].mxu0  ;;  %v22439_v58 = vadd.f32 %v27694_v41, %v36677_v10  ;;  %v22613_v52 = vsel %vm57_vm0, %v33987_v46, 0.0  ;;  %v28932_v41 = vld [vmem:[%s35886_s0 + $0x70] sm:$0xff] }
0x1115   :  { %v22434_v43 = vadd.f32 %v22433_v55, %v36677_v10  ;;  %v22610_v13 = vsel %vm57_vm0, %v33982_v19, 0.0 }
0x1116   :  { %22611 = vadd.xlane.f32.xlu0 %v22610_v13  ;;  %v34003_v27 = vadd.f32 %v28922_v23, %v22439_v58  ;;  %v28934_v23 = vld [vmem:[%s35886_s0 + $0x80] sm:$0xff] }
0x1117   :  { %v33996_v47 = vadd.f32 %v28921_v26, %v22434_v43  ;;  %v27697_v29 = vpop.f32.mrb[182].mxu0 }
0x1118   :  { %v22443_v0 = vpop.f32.mrb[183].mxu0  ;;  %v22449_v14 = vadd.f32 %v27697_v29, %v36677_v10  ;;  %v22619_v56 = vsel %vm57_vm0, %v34003_v27, 0.0 }
0x1119   :  { %v22444_v42 = vadd.f32 %v22443_v0, %v36677_v10  ;;  %v22616_v7 = vsel %vm57_vm0, %v33996_v47, 0.0  ;;  %v28933_v0 = vld [vmem:[%s35886_s0 + $0x88] sm:$0xff] }
0x111a   :  { %22614 = vadd.xlane.f32.xlu0 %v22613_v52  ;;  %22617 = vadd.xlane.f32.xlu1 %v22616_v7  ;;  %v34018_v16 = vadd.f32 %v28924_v59, %v22449_v14 }
0x111b   :  { %v34012_v22 = vadd.f32 %v28923_v8, %v22444_v42  ;;  %v27700_v45 = vpop.f32.mrb[184].mxu0 }
0x111c   :  { %v22459_v18 = vadd.f32 %v27700_v45, %v36677_v10  ;;  %v22453_v20 = vpop.f32.mrb[185].mxu0  ;;  %v22625_v35 = vsel %vm57_vm0, %v34018_v16, 0.0 }
0x111d   :  { %v22454_v32 = vadd.f32 %v22453_v20, %v36677_v10  ;;  %v22622_v1 = vsel %vm57_vm0, %v34012_v22, 0.0 }
0x111e   :  { %22620 = vadd.xlane.f32.xlu0 %v22619_v56  ;;  %22623 = vadd.xlane.f32.xlu1 %v22622_v1  ;;  %v34033_v51 = vadd.f32 %v28926_v21, %v22459_v18  ;;  %v28936_v1 = vld [vmem:[%s35886_s0 + $0x90] sm:$0xff] }
0x111f   :  { %v34028_v37 = vadd.f32 %v28925_v44, %v22454_v32  ;;  %v27703_v63 = vpop.f32.mrb[186].mxu0  ;;  %v28935_v32 = vld [vmem:[%s35886_s0 + $0x98] sm:$0xff] }
0x1120   :  { %36679 = vst [vmem:[#allocation90_spill] sm:$0xff] %v34033_v51  ;;  %v22463_v60 = vpop.f32.mrb[187].mxu0  ;;  %v22469_v40 = vadd.f32 %v27703_v63, %v36677_v10  ;;  %v22631_v62 = vsel %vm57_vm0, %v34033_v51, 0.0 }
0x1121   :  { %36678 = vst [vmem:[#allocation84_spill] sm:$0xff] %v34028_v37  ;;  %v22464_v4 = vadd.f32 %v22463_v60, %v36677_v10  ;;  %v22628_v61 = vsel %vm57_vm0, %v34028_v37, 0.0 }
0x1122   :  { %22626 = vadd.xlane.f32.xlu0 %v22625_v35  ;;  %22629 = vadd.xlane.f32.xlu1 %v22628_v61  ;;  %v34051_v9 = vadd.f32 %v28928_v24, %v22469_v40 }
0x1123   :  { %v34044_v3 = vadd.f32 %v28927_v39, %v22464_v4  ;;  %v27706_v36 = vpop.f32.mrb[188].mxu0  ;;  %v28937_v39 = vld [vmem:[%s35886_s0 + $0xa8] sm:$0xff] }
0x1124   :  { %v22473_v6 = vpop.f32.mrb[189].mxu0  ;;  %36681 = vst [vmem:[#allocation102_spill] sm:$0xff] %v34051_v9  ;;  %v22479_v57 = vadd.f32 %v27706_v36, %v36677_v10  ;;  %v22637_v11 = vsel %vm57_vm0, %v34051_v9, 0.0 }
0x1125   :  { %36680 = vst [vmem:[#allocation96_spill] sm:$0xff] %v34044_v3  ;;  %v22474_v38 = vadd.f32 %v22473_v6, %v36677_v10  ;;  %v22634_v49 = vsel %vm57_vm0, %v34044_v3, 0.0  ;;  %v28938_v6 = vld [vmem:[%s35886_s0 + $0xa0] sm:$0xff] }
0x1126   :  { %22632 = vadd.xlane.f32.xlu0 %v22631_v62  ;;  %22635 = vadd.xlane.f32.xlu1 %v22634_v49  ;;  %v34065_v50 = vadd.f32 %v28930_v30, %v22479_v57 }
0x1127   :  { %v34060_v5 = vadd.f32 %v28929_v17, %v22474_v38 }
0x1128   :  { %36683 = vst [vmem:[#allocation114_spill] sm:$0xff] %v34065_v50  ;;  %v22643_v31 = vsel %vm57_vm0, %v34065_v50, 0.0 }
0x1129   :  { %36682 = vst [vmem:[#allocation108_spill] sm:$0xff] %v34060_v5  ;;  %v22640_v54 = vsel %vm57_vm0, %v34060_v5, 0.0 }
0x112a   :  { %22638 = vadd.xlane.f32.xlu0 %v22637_v11  ;;  %22641 = vadd.xlane.f32.xlu1 %v22640_v54  ;;  %v28939_v11 = vld [vmem:[%s35886_s0 + $0xb8] sm:$0xff] }
0x112e   :  { %22644 = vadd.xlane.f32.xlu0 %v22643_v31 }
0x1155   :  { %v27709_v33 = vpop.f32.mrb[176].mxu1 }
0x1156   :  { %v22489_v28 = vadd.f32 %v27709_v33, %v36677_v10  ;;  %v22483_v34 = vpop.f32.mrb[177].mxu1  ;;  %v28940_v33 = vld [vmem:[%s35886_s0 + $0xb0] sm:$0xff] }
0x1157   :  { %v22484_v25 = vadd.f32 %v22483_v34, %v36677_v10 }
0x1158   :  { %v34078_v48 = vadd.f32 %v28931_v2, %v22489_v28 }
0x1159   :  { %v34083_v15 = vadd.f32 %v28932_v41, %v22484_v25 }
0x115a   :  { %36684 = vst [vmem:[#allocation120_spill] sm:$0xff] %v34078_v48  ;;  %v22649_v55 = vsel %vm57_vm0, %v34078_v48, 0.0 }
0x115b   :  { %36685 = vst [vmem:[#allocation126_spill] sm:$0xff] %v34083_v15  ;;  %22650 = vadd.xlane.f32.xlu0 %v22649_v55  ;;  %v22646_v58 = vsel %vm57_vm0, %v34083_v15, 0.0 }
0x115c   :  { %22647 = vadd.xlane.f32.xlu1 %v22646_v58 }
0x118a   :  { %v27712_v43 = vpop.f32.mrb[178].mxu1 }
0x118b   :  { %v22499_v13 = vadd.f32 %v27712_v43, %v36677_v10  ;;  %v22493_v26 = vpop.f32.mrb[179].mxu1 }
0x118c   :  { %v22494_v29 = vadd.f32 %v22493_v26, %v36677_v10 }
0x118d   :  { %v34094_v52 = vadd.f32 %v28933_v0, %v22499_v13  ;;  %v28941_v13 = vld [vmem:[%s35886_s0 + $0xc8] sm:$0xff] }
0x118e   :  { %v34099_v14 = vadd.f32 %v28934_v23, %v22494_v29  ;;  %v28942_v29 = vld [vmem:[%s35886_s0 + $0xc0] sm:$0xff] }
0x118f   :  { %36686 = vst [vmem:[#allocation166_spill] sm:$0xff] %v34094_v52  ;;  %v22655_v42 = vsel %vm57_vm0, %v34094_v52, 0.0 }
0x1190   :  { %36687 = vst [vmem:[#allocation142_spill] sm:$0xff] %v34099_v14  ;;  %22656 = vadd.xlane.f32.xlu0 %v22655_v42  ;;  %v22652_v7 = vsel %vm57_vm0, %v34099_v14, 0.0 }
0x1191   :  { %22653 = vadd.xlane.f32.xlu1 %v22652_v7 }
0x119e   :  { %v22609_v43 = vpop.xlane.xlu1 %22608 }
0x119f   :  { %v34105_v8 = vpop.xlane.xlu0 %22605 }
0x11a3   :  { %v34122_v4 = vpop.xlane.xlu0 %22611 }
0x11a7   :  { %v22615_v31 = vpop.xlane.xlu0 %22614 }
0x11bf   :  { %v27715_v45 = vpop.f32.mrb[180].mxu1 }
0x11c0   :  { %v22509_v18 = vadd.f32 %v27715_v45, %v36677_v10  ;;  %v22503_v20 = vpop.f32.mrb[181].mxu1 }
0x11c1   :  { %v22504_v59 = vadd.f32 %v22503_v20, %v36677_v10 }
0x11c2   :  { %v34112_v56 = vadd.f32 %v28935_v32, %v22509_v18  ;;  %v22621_v18 = vpop.xlane.xlu0 %22620  ;;  %v22618_v32 = vpop.xlane.xlu1 %22617 }
0x11c3   :  { %v34117_v44 = vadd.f32 %v28936_v1, %v22504_v59  ;;  %v27718_v63 = vpop.f32.mrb[182].mxu1  ;;  %v28943_v1 = vld [vmem:[%s35886_s0 + $0xd8] sm:$0xff] }
0x11c4   :  { %36688 = vst [vmem:[#allocation154_spill] sm:$0xff] %v34112_v56  ;;  %v22519_v21 = vadd.f32 %v27718_v63, %v36677_v10  ;;  %v22513_v60 = vpop.f32.mrb[183].mxu1  ;;  %v22661_v40 = vsel %vm57_vm0, %v34112_v56, 0.0 }
0x11c5   :  { %36689 = vst [vmem:[#allocation48_spill] sm:$0xff] %v34117_v44  ;;  %v22514_v35 = vadd.f32 %v22513_v60, %v36677_v10  ;;  %22662 = vadd.xlane.f32.xlu0 %v22661_v40  ;;  %v22658_v61 = vsel %vm57_vm0, %v34117_v44, 0.0 }
0x11c6   :  { %v34130_v36 = vadd.f32 %v28937_v39, %v22519_v21  ;;  %22659 = vadd.xlane.f32.xlu1 %v22658_v61  ;;  %v28944_v21 = vld [vmem:[%s35886_s0 + $0xd0] sm:$0xff] }
0x11c7   :  { %v34135_v62 = vadd.f32 %v28938_v6, %v22514_v35  ;;  %v27721_v24 = vpop.f32.mrb[184].mxu1  ;;  %v22701_v35 = vmul.f32 0.03125, %v22609_v43 }
0x11c8   :  { %36690 = vst [vmem:[#allocation167_spill] sm:$0xff] %v34130_v36  ;;  %v22529_v57 = vadd.f32 %v27721_v24, %v36677_v10  ;;  %v22523_v38 = vpop.f32.mrb[185].mxu1  ;;  %v22667_v49 = vsel %vm57_vm0, %v34130_v36, 0.0  ;;  %v22700_v24 = vmul.f32 0.03125, %v34105_v8 }
0x11c9   :  { %36691 = vst [vmem:[#allocation143_spill] sm:$0xff] %v34135_v62  ;;  %v22524_v17 = vadd.f32 %v22523_v38, %v36677_v10  ;;  %22668 = vadd.xlane.f32.xlu0 %v22667_v49  ;;  %v22664_v30 = vsel %vm57_vm0, %v34135_v62, 0.0  ;;  %v28945_v49 = vld [vmem:[%s35886_s0 + $0xe8] sm:$0xff] }
0x11ca   :  { %v34146_v54 = vadd.f32 %v28939_v11, %v22529_v57  ;;  %22665 = vadd.xlane.f32.xlu1 %v22664_v30  ;;  %v22627_v30 = vpop.xlane.xlu0 %22626  ;;  %v28946_v11 = vld [vmem:[%s35886_s0 + $0xe0] sm:$0xff]  ;;  %v34209_v43 = vsub.f32 %v33971_v12, %v22700_v24 }
0x11cb   :  { %v34151_v28 = vadd.f32 %v28940_v33, %v22524_v17  ;;  %v27724_v34 = vpop.f32.mrb[186].mxu1 }
0x11cc   :  { %36692 = vst [vmem:[#allocation156_spill] sm:$0xff] %v34146_v54  ;;  %v22539_v25 = vadd.f32 %v27724_v34, %v36677_v10  ;;  %v22533_v2 = vpop.f32.mrb[187].mxu1  ;;  %v22673_v41 = vsel %vm57_vm0, %v34146_v54, 0.0  ;;  %v34203_v34 = vsub.f32 %v33966_v53, %v22701_v35 }
0x11cd   :  { %36693 = vst [vmem:[#allocation49_spill] sm:$0xff] %v34151_v28  ;;  %v22534_v55 = vadd.f32 %v22533_v2, %v36677_v10  ;;  %22674 = vadd.xlane.f32.xlu0 %v22673_v41  ;;  %v22670_v58 = vsel %vm57_vm0, %v34151_v28, 0.0  ;;  %v22624_v2 = vpop.xlane.xlu1 %22623 }
0x11ce   :  { %v34162_v26 = vadd.f32 %v28941_v13, %v22539_v25  ;;  %22671 = vadd.xlane.f32.xlu1 %v22670_v58  ;;  %v22703_v25 = vmul.f32 0.03125, %v22615_v31  ;;  %v22702_v13 = vmul.f32 0.03125, %v34122_v4  ;;  %v28947_v31 = vld [vmem:[%s35886_s0 + $0xf8] sm:$0xff] }
0x11cf   :  { %v34167_v0 = vadd.f32 %v28942_v29, %v22534_v55  ;;  %v27727_v23 = vpop.f32.mrb[188].mxu1 }
0x11d0   :  { %36694 = vst [vmem:[#allocation150_spill] sm:$0xff] %v34162_v26  ;;  %v22549_v42 = vadd.f32 %v27727_v23, %v36677_v10  ;;  %v22543_v7 = vpop.f32.mrb[189].mxu1  ;;  %v22679_v45 = vsel %vm57_vm0, %v34162_v26, 0.0  ;;  %v34226_v4 = vsub.f32 %v33987_v46, %v22703_v25 }
0x11d1   :  { %36695 = vst [vmem:[#allocation155_spill] sm:$0xff] %v34167_v0  ;;  %v22544_v20 = vadd.f32 %v22543_v7, %v36677_v10  ;;  %22680 = vadd.xlane.f32.xlu0 %v22679_v45  ;;  %v22676_v59 = vsel %vm57_vm0, %v34167_v0, 0.0  ;;  %v28948_v7 = vld [vmem:[%s35886_s0 + $0xf0] sm:$0xff] }
0x11d2   :  { %v34178_v63 = vadd.f32 %v28943_v1, %v22549_v42  ;;  %22677 = vadd.xlane.f32.xlu1 %v22676_v59  ;;  %v22765_v59 = vmul.f32 %v34203_v34, %v34203_v34  ;;  %v34233_v1 = vsub.f32 %v33982_v19, %v22702_v13 }
0x11d3   :  { %v34183_v60 = vadd.f32 %v28944_v21, %v22544_v20  ;;  %v27730_v40 = vpop.f32.mrb[190].mxu1  ;;  %v22704_v21 = vmul.f32 0.03125, %v22618_v32 }
0x11d4   :  { %36696 = vst [vmem:[#allocation20_spill] sm:$0xff] %v34178_v63  ;;  %v22559_v61 = vadd.f32 %v27730_v40, %v36677_v10  ;;  %v22553_v39 = vpop.f32.mrb[191].mxu1  ;;  %v22685_v6 = vsel %vm57_vm0, %v34178_v63, 0.0  ;;  %v22633_v40 = vpop.xlane.xlu0 %22632  ;;  %v22799_v24 = vsel %vm57_vm0, %v22765_v59, 0.0 }
0x11d5   :  { %36697 = vst [vmem:[#allocation168_spill] sm:$0xff] %v34183_v60  ;;  %v22554_v57 = vadd.f32 %v22553_v39, %v36677_v10  ;;  %22686 = vadd.xlane.f32.xlu0 %v22685_v6  ;;  %v22682_v38 = vsel %vm57_vm0, %v34183_v60, 0.0  ;;  %v22630_v39 = vpop.xlane.xlu1 %22629  ;;  %v22707_v6 = vmul.f32 0.03125, %v22627_v30  ;;  %v34246_v32 = vsub.f32 %v33996_v47, %v22704_v21 }
0x11d6   :  { %v34195_v17 = vadd.f32 %v28945_v49, %v22559_v61  ;;  %22683 = vadd.xlane.f32.xlu1 %v22682_v38  ;;  %v22764_v61 = vmul.f32 %v34209_v43, %v34209_v43  ;;  %v22706_v38 = vmul.f32 0.03125, %v22624_v2  ;;  %v22709_v30 = vmul.f32 0.03125, %v22633_v40 }
0x11d7   :  { %v34200_v33 = vadd.f32 %v28946_v11, %v22554_v57  ;;  %v27733_v8 = vpop.f32.mrb[192].mxu1  ;;  %v22767_v57 = vmul.f32 %v34226_v4, %v34226_v4  ;;  %v22766_v11 = vmul.f32 %v34233_v1, %v34233_v1  ;;  %v34252_v25 = vsub.f32 %v34018_v16, %v22707_v6 }
0x11d8   :  { %36698 = vst [vmem:[#allocation144_spill] sm:$0xff] %v34195_v17  ;;  %v22569_v41 = vadd.f32 %v27733_v8, %v36677_v10  ;;  %v22563_v55 = vpop.f32.mrb[193].mxu1  ;;  %v22691_v58 = vsel %vm57_vm0, %v34195_v17, 0.0  ;;  %v22796_v49 = vsel %vm57_vm0, %v22764_v61, 0.0  ;;  %v22639_v8 = vpop.xlane.xlu0 %22638  ;;  %v34258_v2 = vsub.f32 %v34012_v22, %v22706_v38 }
0x11d9   :  { %36699 = vst [vmem:[#allocation158_spill] sm:$0xff] %v34200_v33  ;;  %v22564_v29 = vadd.f32 %v22563_v55, %v36677_v10  ;;  %22692 = vadd.xlane.f32.xlu0 %v22691_v58  ;;  %v22688_v23 = vsel %vm57_vm0, %v34200_v33, 0.0  ;;  %v22705_v10 = vmul.f32 0.03125, %v22621_v18  ;;  %v22805_v55 = vsel %vm57_vm0, %v22767_v57, 0.0 }
0x11da   :  { %v34218_v42 = vadd.f32 %v28947_v31, %v22569_v41  ;;  %22689 = vadd.xlane.f32.xlu1 %v22688_v23  ;;  %v22636_v41 = vpop.xlane.xlu1 %22635  ;;  %v22708_v13 = vmul.f32 0.03125, %v22630_v39  ;;  %v22768_v23 = vmul.f32 %v34246_v32, %v34246_v32  ;;  %v34264_v31 = vsub.f32 %v34033_v51, %v22709_v30 }
0x11db   :  { %v34223_v45 = vadd.f32 %v28948_v7, %v22564_v29  ;;  %v34240_v18 = vsub.f32 %v34003_v27, %v22705_v10  ;;  %v22802_v29 = vsel %vm57_vm0, %v22766_v11, 0.0  ;;  %v22711_v7 = vmul.f32 0.03125, %v22639_v8 }
0x11dc   :  { %36700 = vst [vmem:[#allocation136_spill] sm:$0xff] %v34218_v42  ;;  %v22697_v20 = vsel %vm57_vm0, %v34218_v42, 0.0  ;;  %v34270_v59 = vsub.f32 %v34028_v37, %v22708_v13  ;;  %v22710_v21 = vmul.f32 0.03125, %v22636_v41  ;;  %v22645_v40 = vpop.xlane.xlu0 %22644  ;;  %v22770_v61 = vmul.f32 %v34258_v2, %v34258_v2 }
0x11dd   :  { %36701 = vst [vmem:[#allocation151_spill] sm:$0xff] %v34223_v45  ;;  %22698 = vadd.xlane.f32.xlu0 %v22697_v20  ;;  %v22694_v35 = vsel %vm57_vm0, %v34223_v45, 0.0  ;;  %v22769_v58 = vmul.f32 %v34240_v18, %v34240_v18  ;;  %v22771_v20 = vmul.f32 %v34252_v25, %v34252_v25  ;;  %v34276_v6 = vsub.f32 %v34051_v9, %v22711_v7 }
0x11de   :  { %22695 = vadd.xlane.f32.xlu1 %v22694_v35  ;;  %v22808_v35 = vsel %vm57_vm0, %v22768_v23, 0.0  ;;  %v22642_v39 = vpop.xlane.xlu1 %22641  ;;  %v22773_v38 = vmul.f32 %v34264_v31, %v34264_v31  ;;  %v22814_v30 = vsel %vm57_vm0, %v22770_v61, 0.0  ;;  %v22772_v41 = vmul.f32 %v34270_v59, %v34270_v59 }
0x11df   :  { %v22811_v10 = vsel %vm57_vm0, %v22769_v58, 0.0  ;;  %v22817_v57 = vsel %vm57_vm0, %v22771_v20, 0.0  ;;  %v22712_v11 = vmul.f32 0.03125, %v22642_v39  ;;  %v22775_v23 = vmul.f32 %v34276_v6, %v34276_v6 }
0x11e0   :  { %v22820_v20 = vsel %vm57_vm0, %v22772_v41, 0.0 }
0x11e1   :  { %22800 = vadd.xlane.f32.xlu0 %v22799_v24  ;;  %v22713_v24 = vmul.f32 0.03125, %v22645_v40  ;;  %v34294_v7 = vsub.f32 %v34060_v5, %v22712_v11 }
0x11e2   :  { %22797 = vadd.xlane.f32.xlu1 %v22796_v49  ;;  %v34282_v49 = vsub.f32 %v34044_v3, %v22710_v21 }
0x11e3   :  { %v34288_v58 = vsub.f32 %v34065_v50, %v22713_v24 }
0x11e4   :  { %v22774_v21 = vmul.f32 %v34282_v49, %v34282_v49 }
0x11e5   :  { %22806 = vadd.xlane.f32.xlu0 %v22805_v55  ;;  %v22777_v61 = vmul.f32 %v34288_v58, %v34288_v58 }
0x11e6   :  { %22803 = vadd.xlane.f32.xlu1 %v22802_v29  ;;  %v22823_v29 = vsel %vm57_vm0, %v22773_v38, 0.0  ;;  %v22826_v24 = vsel %vm57_vm0, %v22774_v21, 0.0 }
0x11e7   :  { %v22835_v38 = vsel %vm57_vm0, %v22777_v61, 0.0 }
0x11e8   :  { %v22651_v8 = vpop.xlane.xlu0 %22650 }
0x11e9   :  { %22812 = vadd.xlane.f32.xlu0 %v22811_v10  ;;  %v22648_v55 = vpop.xlane.xlu1 %22647  ;;  %v22715_v13 = vmul.f32 0.03125, %v22651_v8 }
0x11ea   :  { %22809 = vadd.xlane.f32.xlu1 %v22808_v35  ;;  %v22714_v10 = vmul.f32 0.03125, %v22648_v55  ;;  %v22829_v35 = vsel %vm57_vm0, %v22775_v23, 0.0 }
0x11eb   :  { %v34300_v40 = vsub.f32 %v34078_v48, %v22715_v13  ;;  %v23092_v13 = vld [vmem:[%s35890_s4] sm:$0xff] }
0x11ec   :  { %v34306_v39 = vsub.f32 %v34083_v15, %v22714_v10  ;;  %v23094_v10 = vld [vmem:[%s35890_s4 + $0x10] sm:$0xff] }
0x11ed   :  { %22818 = vadd.xlane.f32.xlu0 %v22817_v57  ;;  %v22776_v57 = vmul.f32 %v34294_v7, %v34294_v7  ;;  %v22779_v11 = vmul.f32 %v34300_v40, %v34300_v40 }
0x11ee   :  { %22815 = vadd.xlane.f32.xlu1 %v22814_v30  ;;  %v22778_v30 = vmul.f32 %v34306_v39, %v34306_v39 }
0x11ef   :  { %v22832_v8 = vsel %vm57_vm0, %v22776_v57, 0.0  ;;  %v22841_v41 = vsel %vm57_vm0, %v22779_v11, 0.0 }
0x11f0   :  { %v22838_v55 = vsel %vm57_vm0, %v22778_v30, 0.0 }
0x11f1   :  { %22824 = vadd.xlane.f32.xlu0 %v22823_v29  ;;  %v23093_v29 = vld [vmem:[%s35890_s4 + $0x8] sm:$0xff] }
0x11f2   :  { %22821 = vadd.xlane.f32.xlu1 %v22820_v20  ;;  %v27862_v23 = vpack.c.bf16 %v23093_v29, %v23092_v13  ;;  %v23095_v20 = vld [vmem:[%s35890_s4 + $0x18] sm:$0xff] }
0x11f3   :  { %v27866_v21 = vpack.c.bf16 %v23095_v20, %v23094_v10 }
0x11f4   :  { %27863 = vmatprep.subr.bf16.mxu0 %v27862_v23 }
0x11f5   :  { %22830 = vadd.xlane.f32.xlu0 %v22829_v35  ;;  %27865 = vmatpush3.bf16.msra.mxu0 %v27862_v23 }
0x11f6   :  { %22827 = vadd.xlane.f32.xlu1 %v22826_v24  ;;  %27867 = vmatprep.subr.bf16.mxu0 %v27866_v21 }
0x11f9   :  { %22836 = vadd.xlane.f32.xlu0 %v22835_v38  ;;  %27869 = vmatpush3.bf16.msra.mxu0 %v27866_v21 }
0x11fa   :  { %22833 = vadd.xlane.f32.xlu1 %v22832_v8 }
0x11fd   :  { %22842 = vadd.xlane.f32.xlu0 %v22841_v41 }
0x11fe   :  { %22839 = vadd.xlane.f32.xlu1 %v22838_v55 }
0x121d   :  { %v22657_v35 = vpop.xlane.xlu0 %22656 }
0x121e   :  { %v22717_v61 = vmul.f32 0.03125, %v22657_v35  ;;  %v22654_v24 = vpop.xlane.xlu1 %22653 }
0x121f   :  { %v22716_v57 = vmul.f32 0.03125, %v22654_v24 }
0x1220   :  { %v34332_v38 = vsub.f32 %v34094_v52, %v22717_v61 }
0x1221   :  { %v34335_v11 = vsub.f32 %v34099_v14, %v22716_v57 }
0x1222   :  { %v22781_v8 = vmul.f32 %v34332_v38, %v34332_v38 }
0x1223   :  { %v22780_v30 = vmul.f32 %v34335_v11, %v34335_v11 }
0x1224   :  { %v22847_v41 = vsel %vm57_vm0, %v22781_v8, 0.0 }
0x1225   :  { %22848 = vadd.xlane.f32.xlu0 %v22847_v41  ;;  %v22844_v55 = vsel %vm57_vm0, %v22780_v30, 0.0 }
0x1226   :  { %22845 = vadd.xlane.f32.xlu1 %v22844_v55 }
0x1252   :  { %v22663_v13 = vpop.xlane.xlu0 %22662 }
0x1253   :  { %v22719_v29 = vmul.f32 0.03125, %v22663_v13  ;;  %v22660_v23 = vpop.xlane.xlu1 %22659 }
0x1254   :  { %v22718_v10 = vmul.f32 0.03125, %v22660_v23 }
0x1255   :  { %v34344_v20 = vsub.f32 %v34112_v56, %v22719_v29 }
0x1256   :  { %v34347_v21 = vsub.f32 %v34117_v44, %v22718_v10  ;;  %v22669_v35 = vpop.xlane.xlu0 %22668 }
0x1257   :  { %v22721_v61 = vmul.f32 0.03125, %v22669_v35  ;;  %v22666_v24 = vpop.xlane.xlu1 %22665  ;;  %v22783_v57 = vmul.f32 %v34344_v20, %v34344_v20 }
0x1258   :  { %v22720_v8 = vmul.f32 0.03125, %v22666_v24  ;;  %v22782_v30 = vmul.f32 %v34347_v21, %v34347_v21 }
0x1259   :  { %v34354_v41 = vsub.f32 %v34130_v36, %v22721_v61  ;;  %v22853_v55 = vsel %vm57_vm0, %v22783_v57, 0.0 }
0x125a   :  { %v34358_v13 = vsub.f32 %v34135_v62, %v22720_v8  ;;  %v22675_v29 = vpop.xlane.xlu0 %22674  ;;  %22854 = vadd.xlane.f32.xlu0 %v22853_v55  ;;  %v22850_v23 = vsel %vm57_vm0, %v22782_v30, 0.0 }
0x125b   :  { %v22723_v10 = vmul.f32 0.03125, %v22675_v29  ;;  %22851 = vadd.xlane.f32.xlu1 %v22850_v23  ;;  %v22672_v35 = vpop.xlane.xlu1 %22671  ;;  %v22785_v24 = vmul.f32 %v34354_v41, %v34354_v41 }
0x125c   :  { %v22722_v44 = vmul.f32 0.03125, %v22672_v35  ;;  %v22784_v61 = vmul.f32 %v34358_v13, %v34358_v13 }
0x125d   :  { %v34366_v36 = vsub.f32 %v34146_v54, %v22723_v10  ;;  %v22859_v57 = vsel %vm57_vm0, %v22785_v24, 0.0 }
0x125e   :  { %v34370_v8 = vsub.f32 %v34151_v28, %v22722_v44  ;;  %v22681_v55 = vpop.xlane.xlu0 %22680  ;;  %22860 = vadd.xlane.f32.xlu0 %v22859_v57  ;;  %v22856_v30 = vsel %vm57_vm0, %v22784_v61, 0.0 }
0x125f   :  { %v22725_v29 = vmul.f32 0.03125, %v22681_v55  ;;  %22857 = vadd.xlane.f32.xlu1 %v22856_v30  ;;  %v22678_v23 = vpop.xlane.xlu1 %22677  ;;  %v22787_v35 = vmul.f32 %v34366_v36, %v34366_v36 }
0x1260   :  { %v22724_v62 = vmul.f32 0.03125, %v22678_v23  ;;  %v22786_v10 = vmul.f32 %v34370_v8, %v34370_v8 }
0x1261   :  { %v34378_v54 = vsub.f32 %v34162_v26, %v22725_v29  ;;  %v22865_v44 = vsel %vm57_vm0, %v22787_v35, 0.0 }
0x1262   :  { %v34382_v24 = vsub.f32 %v34167_v0, %v22724_v62  ;;  %v22687_v57 = vpop.xlane.xlu0 %22686  ;;  %22866 = vadd.xlane.f32.xlu0 %v22865_v44  ;;  %v22862_v61 = vsel %vm57_vm0, %v22786_v10, 0.0 }
0x1263   :  { %v22727_v55 = vmul.f32 0.03125, %v22687_v57  ;;  %22863 = vadd.xlane.f32.xlu1 %v22862_v61  ;;  %v22684_v30 = vpop.xlane.xlu1 %22683  ;;  %v22789_v23 = vmul.f32 %v34378_v54, %v34378_v54 }
0x1264   :  { %v22726_v28 = vmul.f32 0.03125, %v22684_v30  ;;  %v22788_v29 = vmul.f32 %v34382_v24, %v34382_v24 }
0x1265   :  { %v34390_v26 = vsub.f32 %v34178_v63, %v22727_v55  ;;  %v22871_v62 = vsel %vm57_vm0, %v22789_v23, 0.0 }
0x1266   :  { %v34394_v35 = vsub.f32 %v34183_v60, %v22726_v28  ;;  %v22693_v44 = vpop.xlane.xlu0 %22692  ;;  %22872 = vadd.xlane.f32.xlu0 %v22871_v62  ;;  %v22868_v10 = vsel %vm57_vm0, %v22788_v29, 0.0 }
0x1267   :  { %v22729_v57 = vmul.f32 0.03125, %v22693_v44  ;;  %22869 = vadd.xlane.f32.xlu1 %v22868_v10  ;;  %v22690_v61 = vpop.xlane.xlu1 %22689  ;;  %v22791_v30 = vmul.f32 %v34390_v26, %v34390_v26 }
0x1268   :  { %v22728_v0 = vmul.f32 0.03125, %v22690_v61  ;;  %v22790_v55 = vmul.f32 %v34394_v35, %v34394_v35 }
0x1269   :  { %v34402_v63 = vsub.f32 %v34195_v17, %v22729_v57  ;;  %v22877_v28 = vsel %vm57_vm0, %v22791_v30, 0.0 }
0x126a   :  { %v34406_v23 = vsub.f32 %v34200_v33, %v22728_v0  ;;  %22878 = vadd.xlane.f32.xlu0 %v22877_v28  ;;  %v22699_v29 = vpop.xlane.xlu0 %22698  ;;  %v22874_v62 = vsel %vm57_vm0, %v22790_v55, 0.0 }
0x126b   :  { %v22731_v44 = vmul.f32 0.03125, %v22699_v29  ;;  %22875 = vadd.xlane.f32.xlu1 %v22874_v62  ;;  %v22696_v10 = vpop.xlane.xlu1 %22695  ;;  %v22793_v61 = vmul.f32 %v34402_v63, %v34402_v63 }
0x126c   :  { %v22730_v60 = vmul.f32 0.03125, %v22696_v10  ;;  %v22792_v57 = vmul.f32 %v34406_v23, %v34406_v23 }
0x126d   :  { %v34414_v17 = vsub.f32 %v34218_v42, %v22731_v44  ;;  %v22883_v0 = vsel %vm57_vm0, %v22793_v61, 0.0 }
0x126e   :  { %v34418_v30 = vsub.f32 %v34223_v45, %v22730_v60  ;;  %22884 = vadd.xlane.f32.xlu0 %v22883_v0  ;;  %v22801_v55 = vpop.xlane.xlu0 %22800  ;;  %v22880_v28 = vsel %vm57_vm0, %v22792_v57, 0.0 }
0x126f   :  { %v22893_v29 = vmul.f32 0.03125, %v22801_v55  ;;  %22881 = vadd.xlane.f32.xlu1 %v22880_v28  ;;  %v22798_v62 = vpop.xlane.xlu1 %22797  ;;  %v22795_v10 = vmul.f32 %v34414_v17, %v34414_v17 }
0x1270   :  { %v22892_v33 = vmul.f32 0.03125, %v22798_v62  ;;  %v22794_v44 = vmul.f32 %v34418_v30, %v34418_v30 }
0x1271   :  { %v22925_v42 = vadd.f32 1e-06, %v22893_v29  ;;  %v22889_v61 = vsel %vm57_vm0, %v22795_v10, 0.0 }
0x1272   :  { %v22924_v56 = vadd.f32 1e-06, %v22892_v33  ;;  %22890 = vadd.xlane.f32.xlu0 %v22889_v61  ;;  %v22807_v60 = vpop.xlane.xlu0 %22806  ;;  %v22886_v0 = vsel %vm57_vm0, %v22794_v44, 0.0 }
0x1273   :  { %28661 = vrsqrt.f32 %v22925_v42  ;;  %v22895_v57 = vmul.f32 0.03125, %v22807_v60  ;;  %22887 = vadd.xlane.f32.xlu1 %v22886_v0  ;;  %v22804_v55 = vpop.xlane.xlu1 %22803 }
0x1274   :  { %28663 = vrsqrt.f32 %v22924_v56  ;;  %v22894_v28 = vmul.f32 0.03125, %v22804_v55 }
0x1275   :  { %v22927_v45 = vadd.f32 1e-06, %v22895_v57 }
0x1276   :  { %v22926_v14 = vadd.f32 1e-06, %v22894_v28  ;;  %v22813_v62 = vpop.xlane.xlu0 %22812 }
0x1277   :  { %28665 = vrsqrt.f32 %v22927_v45  ;;  %v22897_v52 = vmul.f32 0.03125, %v22813_v62  ;;  %v22810_v15 = vpop.xlane.xlu1 %22809 }
0x1278   :  { %28667 = vrsqrt.f32 %v22926_v14  ;;  %v22896_v29 = vmul.f32 0.03125, %v22810_v15 }
0x1279   :  { %v22929_v10 = vadd.f32 1e-06, %v22897_v52  ;;  %v36702_v52 = vld [vmem:[#allocation6_spill] sm:$0xff] }
0x127a   :  { %v22928_v33 = vadd.f32 1e-06, %v22896_v29  ;;  %v22819_v61 = vpop.xlane.xlu0 %22818 }
0x127b   :  { %28669 = vrsqrt.f32 %v22929_v10  ;;  %v22899_v48 = vmul.f32 0.03125, %v22819_v61  ;;  %v22816_v44 = vpop.xlane.xlu1 %22815 }
0x127c   :  { %28671 = vrsqrt.f32 %v22928_v33  ;;  %v22898_v42 = vmul.f32 0.03125, %v22816_v44 }
0x127d   :  { %v28662_v60 = vpop.eup %28661  ;;  %v22931_v0 = vadd.f32 1e-06, %v22899_v48 }
0x127e   :  { %v28664_v56 = vpop.eup %28663  ;;  %v22989_v57 = vmul.f32 %v28662_v60, %v34203_v34  ;;  %v22930_v55 = vadd.f32 1e-06, %v22898_v42  ;;  %v22825_v28 = vpop.xlane.xlu0 %22824 }
0x127f   :  { %28673 = vrsqrt.f32 %v22931_v0  ;;  %v22901_v45 = vmul.f32 0.03125, %v22825_v28  ;;  %v22822_v62 = vpop.xlane.xlu1 %22821  ;;  %v22988_v15 = vmul.f32 %v28664_v56, %v34209_v43  ;;  %v36703_v0 = vld [vmem:[#allocation7_spill] sm:$0xff] }
0x1280   :  { %v23025_v14 = vmul.f32 %v36702_v52, %v22989_v57  ;;  %28675 = vrsqrt.f32 %v22930_v55  ;;  %v22900_v29 = vmul.f32 0.03125, %v22822_v62 }
0x1281   :  { %v28666_v10 = vpop.eup %28665  ;;  %v22933_v61 = vadd.f32 1e-06, %v22901_v45  ;;  %v23024_v33 = vmul.f32 %v36702_v52, %v22988_v15 }
0x1282   :  { %v28668_v44 = vpop.eup %28667  ;;  %v22932_v48 = vadd.f32 1e-06, %v22900_v29  ;;  %v22831_v5 = vpop.xlane.xlu0 %22830  ;;  %v22991_v34 = vmul.f32 %v28666_v10, %v34226_v4  ;;  %v23061_v56 = vadd.f32 %v36703_v0, %v23025_v14 }
0x1283   :  { %28677 = vrsqrt.f32 %v22933_v61  ;;  %v22903_v42 = vmul.f32 0.03125, %v22831_v5  ;;  %v22828_v60 = vpop.xlane.xlu1 %22827  ;;  %v23060_v28 = vadd.f32 %v36703_v0, %v23024_v33  ;;  %v22990_v43 = vmul.f32 %v28668_v44, %v34233_v1 }
0x1284   :  { %28679 = vrsqrt.f32 %v22932_v48  ;;  %v22902_v57 = vmul.f32 0.03125, %v22828_v60  ;;  %v23027_v55 = vmul.f32 %v36702_v52, %v22991_v34 }
0x1285   :  { %v28670_v45 = vpop.eup %28669  ;;  %v22935_v62 = vadd.f32 1e-06, %v22903_v42  ;;  %27742 = vmatprep.mubr.msk.f32.mxu0 %vm57_vm0, %v23060_v28  ;;  %v23026_v15 = vmul.f32 %v36702_v52, %v22990_v43 }
0x1286   :  { %v28672_v4 = vpop.eup %28671  ;;  %v22934_v29 = vadd.f32 1e-06, %v22902_v57  ;;  %v22837_v5 = vpop.xlane.xlu0 %22836  ;;  %27743 = vmatmul.mubr.msk.f32.vlgmr.msra.gmra.mrb[190].mxu0 %vm57_vm0, %v23061_v56  ;;  %v22993_v10 = vmul.f32 %v28670_v45, %v34240_v18  ;;  %v23063_v48 = vadd.f32 %v36703_v0, %v23027_v55 }
0x1287   :  { %28681 = vrsqrt.f32 %v22935_v62  ;;  %v22905_v1 = vmul.f32 0.03125, %v22837_v5  ;;  %v22834_v14 = vpop.xlane.xlu1 %22833  ;;  %v23062_v61 = vadd.f32 %v36703_v0, %v23026_v15  ;;  %v22992_v33 = vmul.f32 %v28672_v4, %v34246_v32 }
0x1288   :  { %28683 = vrsqrt.f32 %v22934_v29  ;;  %v22904_v44 = vmul.f32 0.03125, %v22834_v14  ;;  %v23029_v34 = vmul.f32 %v36702_v52, %v22993_v10 }
0x1289   :  { %v28674_v42 = vpop.eup %28673  ;;  %v22937_v60 = vadd.f32 1e-06, %v22905_v1  ;;  %27745 = vmatprep.mubr.msk.f32.mxu0 %vm57_vm0, %v23062_v61  ;;  %v23028_v28 = vmul.f32 %v36702_v52, %v22992_v33 }
0x128a   :  { %v28676_v18 = vpop.eup %28675  ;;  %v22936_v43 = vadd.f32 1e-06, %v22904_v44  ;;  %v22843_v56 = vpop.xlane.xlu0 %22842  ;;  %27746 = vmatmul.mubr.msk.f32.gmra.mrb[192].mxu0 %vm57_vm0, %v23063_v48  ;;  %v22995_v57 = vmul.f32 %v28674_v42, %v34252_v25  ;;  %v23065_v4 = vadd.f32 %v36703_v0, %v23029_v34 }
0x128b   :  { %28685 = vrsqrt.f32 %v22937_v60  ;;  %v22907_v32 = vmul.f32 0.03125, %v22843_v56  ;;  %v22840_v45 = vpop.xlane.xlu1 %22839  ;;  %v23064_v55 = vadd.f32 %v36703_v0, %v23028_v28  ;;  %v22994_v62 = vmul.f32 %v28676_v18, %v34258_v2 }
0x128c   :  { %28687 = vrsqrt.f32 %v22936_v43  ;;  %v22906_v15 = vmul.f32 0.03125, %v22840_v45  ;;  %v23031_v29 = vmul.f32 %v36702_v52, %v22995_v57 }
0x128d   :  { %v28678_v5 = vpop.eup %28677  ;;  %v22939_v10 = vadd.f32 1e-06, %v22907_v32  ;;  %27748 = vmatprep.mubr.msk.f32.mxu0 %vm57_vm0, %v23064_v55  ;;  %v23030_v1 = vmul.f32 %v36702_v52, %v22994_v62 }
0x128e   :  { %v28680_v25 = vpop.eup %28679  ;;  %v22938_v14 = vadd.f32 1e-06, %v22906_v15  ;;  %27749 = vmatmul.mubr.msk.f32.gmra.mrb[194].mxu0 %vm57_vm0, %v23065_v4  ;;  %v22997_v61 = vmul.f32 %v28678_v5, %v34264_v31  ;;  %v23067_v44 = vadd.f32 %v36703_v0, %v23031_v29 }
0x128f   :  { %28689 = vrsqrt.f32 %v22939_v10  ;;  %v23066_v2 = vadd.f32 %v36703_v0, %v23030_v1  ;;  %v22996_v33 = vmul.f32 %v28680_v25, %v34270_v59 }
0x1290   :  { %28691 = vrsqrt.f32 %v22938_v14  ;;  %v23033_v48 = vmul.f32 %v36702_v52, %v22997_v61 }
0x1291   :  { %v28682_v34 = vpop.eup %28681  ;;  %27751 = vmatprep.mubr.msk.f32.mxu0 %vm57_vm0, %v23066_v2  ;;  %v23032_v42 = vmul.f32 %v36702_v52, %v22996_v33 }
0x1292   :  { %v28684_v60 = vpop.eup %28683  ;;  %27752 = vmatmul.mubr.msk.f32.gmra.mrb[196].mxu0 %vm57_vm0, %v23067_v44  ;;  %v22999_v31 = vmul.f32 %v28682_v34, %v34276_v6  ;;  %v23069_v59 = vadd.f32 %v36703_v0, %v23033_v48 }
0x1293   :  { %v23068_v28 = vadd.f32 %v36703_v0, %v23032_v42  ;;  %v22998_v18 = vmul.f32 %v28684_v60, %v34282_v49 }
0x1294   :  { %v23035_v43 = vmul.f32 %v36702_v52, %v22999_v31 }
0x1295   :  { %v28686_v56 = vpop.eup %28685  ;;  %27754 = vmatprep.mubr.msk.f32.mxu0 %vm57_vm0, %v23068_v28  ;;  %v23034_v57 = vmul.f32 %v36702_v52, %v22998_v18 }
0x1296   :  { %v28688_v32 = vpop.eup %28687  ;;  %27755 = vmatmul.mubr.msk.f32.gmra.mrb[198].mxu0 %vm57_vm0, %v23069_v59  ;;  %v23001_v45 = vmul.f32 %v28686_v56, %v34288_v58  ;;  %v23071_v49 = vadd.f32 %v36703_v0, %v23035_v43 }
0x1297   :  { %v23070_v6 = vadd.f32 %v36703_v0, %v23034_v57  ;;  %v23000_v55 = vmul.f32 %v28688_v32, %v34294_v7 }
0x1298   :  { %v23037_v62 = vmul.f32 %v36702_v52, %v23001_v45 }
0x1299   :  { %v28690_v15 = vpop.eup %28689  ;;  %27757 = vmatprep.mubr.msk.f32.mxu0 %vm57_vm0, %v23070_v6  ;;  %v23036_v4 = vmul.f32 %v36702_v52, %v23000_v55 }
0x129a   :  { %v28692_v29 = vpop.eup %28691  ;;  %27758 = vmatmul.mubr.msk.f32.gmra.mrb[200].mxu0 %vm57_vm0, %v23071_v49  ;;  %v23003_v5 = vmul.f32 %v28690_v15, %v34300_v40  ;;  %v23073_v7 = vadd.f32 %v36703_v0, %v23037_v62 }
0x129b   :  { %v23072_v58 = vadd.f32 %v36703_v0, %v23036_v4  ;;  %v23002_v10 = vmul.f32 %v28692_v29, %v34306_v39 }
0x129c   :  { %v23039_v1 = vmul.f32 %v36702_v52, %v23003_v5 }
0x129d   :  { %27760 = vmatprep.mubr.msk.f32.mxu0 %vm57_vm0, %v23072_v58  ;;  %v23038_v25 = vmul.f32 %v36702_v52, %v23002_v10 }
0x129e   :  { %27761 = vmatmul.mubr.msk.f32.gmra.mrb[202].mxu0 %vm57_vm0, %v23073_v7  ;;  %v23075_v61 = vadd.f32 %v36703_v0, %v23039_v1 }
0x129f   :  { %v23074_v14 = vadd.f32 %v36703_v0, %v23038_v25 }
0x12a1   :  { %27763 = vmatprep.mubr.msk.f32.mxu0 %vm57_vm0, %v23074_v14 }
0x12a2   :  { %27764 = vmatmul.mubr.msk.f32.gmra.mrb[204].mxu0 %vm57_vm0, %v23075_v61 }
0x12b2   :  { %v22849_v40 = vpop.xlane.xlu0 %22848 }
0x12b3   :  { %v22909_v39 = vmul.f32 0.03125, %v22849_v40  ;;  %v22846_v2 = vpop.xlane.xlu1 %22845 }
0x12b4   :  { %v22908_v33 = vmul.f32 0.03125, %v22846_v2 }
0x12b5   :  { %v22941_v44 = vadd.f32 1e-06, %v22909_v39 }
0x12b6   :  { %v22940_v48 = vadd.f32 1e-06, %v22908_v33 }
0x12b7   :  { %28693 = vrsqrt.f32 %v22941_v44 }
0x12b8   :  { %28695 = vrsqrt.f32 %v22940_v48 }
0x12c1   :  { %v28694_v34 = vpop.eup %28693 }
0x12c2   :  { %v28696_v42 = vpop.eup %28695  ;;  %v23005_v60 = vmul.f32 %v28694_v34, %v34332_v38 }
0x12c3   :  { %v23004_v31 = vmul.f32 %v28696_v42, %v34335_v11 }
0x12c4   :  { %v23041_v28 = vmul.f32 %v36702_v52, %v23005_v60 }
0x12c5   :  { %v23040_v18 = vmul.f32 %v36702_v52, %v23004_v31 }
0x12c6   :  { %v23077_v43 = vadd.f32 %v36703_v0, %v23041_v28 }
0x12c7   :  { %v23076_v59 = vadd.f32 %v36703_v0, %v23040_v18 }
0x12c9   :  { %27766 = vmatprep.mubr.msk.f32.mxu0 %vm57_vm0, %v23076_v59 }
0x12ca   :  { %27767 = vmatmul.mubr.msk.f32.gmra.mrb[206].mxu0 %vm57_vm0, %v23077_v43 }
0x12e7   :  { %v22855_v56 = vpop.xlane.xlu0 %22854 }
0x12e8   :  { %v22911_v57 = vmul.f32 0.03125, %v22855_v56  ;;  %v22852_v32 = vpop.xlane.xlu1 %22851 }
0x12e9   :  { %v22910_v45 = vmul.f32 0.03125, %v22852_v32 }
0x12ea   :  { %v22943_v6 = vadd.f32 1e-06, %v22911_v57 }
0x12eb   :  { %v22942_v38 = vadd.f32 1e-06, %v22910_v45  ;;  %v22861_v55 = vpop.xlane.xlu0 %22860 }
0x12ec   :  { %28697 = vrsqrt.f32 %v22943_v6  ;;  %v22913_v11 = vmul.f32 0.03125, %v22861_v55  ;;  %v22858_v49 = vpop.xlane.xlu1 %22857 }
0x12ed   :  { %28699 = vrsqrt.f32 %v22942_v38  ;;  %v22912_v62 = vmul.f32 0.03125, %v22858_v49 }
0x12ee   :  { %v22945_v15 = vadd.f32 1e-06, %v22913_v11 }
0x12ef   :  { %v22944_v4 = vadd.f32 1e-06, %v22912_v62  ;;  %v22867_v29 = vpop.xlane.xlu0 %22866 }
0x12f0   :  { %28701 = vrsqrt.f32 %v22945_v15  ;;  %v22915_v5 = vmul.f32 0.03125, %v22867_v29  ;;  %v22864_v58 = vpop.xlane.xlu1 %22863 }
0x12f1   :  { %28703 = vrsqrt.f32 %v22944_v4  ;;  %v22914_v10 = vmul.f32 0.03125, %v22864_v58 }
0x12f2   :  { %v22947_v7 = vadd.f32 1e-06, %v22915_v5 }
0x12f3   :  { %v22946_v1 = vadd.f32 1e-06, %v22914_v10  ;;  %v22873_v25 = vpop.xlane.xlu0 %22872 }
0x12f4   :  { %28705 = vrsqrt.f32 %v22947_v7  ;;  %v22917_v14 = vmul.f32 0.03125, %v22873_v25  ;;  %v22870_v61 = vpop.xlane.xlu1 %22869 }
0x12f5   :  { %28707 = vrsqrt.f32 %v22946_v1  ;;  %v22916_v40 = vmul.f32 0.03125, %v22870_v61 }
0x12f6   :  { %v28698_v39 = vpop.eup %28697  ;;  %v22949_v2 = vadd.f32 1e-06, %v22917_v14 }
0x12f7   :  { %v28700_v33 = vpop.eup %28699  ;;  %v22948_v44 = vadd.f32 1e-06, %v22916_v40  ;;  %v22879_v48 = vpop.xlane.xlu0 %22878  ;;  %v23007_v34 = vmul.f32 %v28698_v39, %v34344_v20 }
0x12f8   :  { %28709 = vrsqrt.f32 %v22949_v2  ;;  %v22919_v42 = vmul.f32 0.03125, %v22879_v48  ;;  %v22876_v60 = vpop.xlane.xlu1 %22875  ;;  %v23006_v31 = vmul.f32 %v28700_v33, %v34347_v21 }
0x12f9   :  { %28711 = vrsqrt.f32 %v22948_v44  ;;  %v22918_v28 = vmul.f32 0.03125, %v22876_v60  ;;  %v23043_v18 = vmul.f32 %v36702_v52, %v23007_v34 }
0x12fa   :  { %v28702_v59 = vpop.eup %28701  ;;  %v22951_v43 = vadd.f32 1e-06, %v22919_v42  ;;  %v23042_v56 = vmul.f32 %v36702_v52, %v23006_v31 }
0x12fb   :  { %v28704_v57 = vpop.eup %28703  ;;  %v22950_v32 = vadd.f32 1e-06, %v22918_v28  ;;  %v22885_v45 = vpop.xlane.xlu0 %22884  ;;  %v23009_v6 = vmul.f32 %v28702_v59, %v34354_v41  ;;  %v23079_v49 = vadd.f32 %v36703_v0, %v23043_v18 }
0x12fc   :  { %28713 = vrsqrt.f32 %v22951_v43  ;;  %v22921_v20 = vmul.f32 0.03125, %v22885_v45  ;;  %v22882_v38 = vpop.xlane.xlu1 %22881  ;;  %v23078_v55 = vadd.f32 %v36703_v0, %v23042_v56  ;;  %v23008_v21 = vmul.f32 %v28704_v57, %v34358_v13 }
0x12fd   :  { %28715 = vrsqrt.f32 %v22950_v32  ;;  %v22920_v11 = vmul.f32 0.03125, %v22882_v38  ;;  %v23045_v62 = vmul.f32 %v36702_v52, %v23009_v6 }
0x12fe   :  { %v28706_v15 = vpop.eup %28705  ;;  %v22953_v4 = vadd.f32 1e-06, %v22921_v20  ;;  %27769 = vmatprep.mubr.msk.f32.mxu0 %vm57_vm0, %v23078_v55  ;;  %v23044_v29 = vmul.f32 %v36702_v52, %v23008_v21 }
0x12ff   :  { %v28708_v41 = vpop.eup %28707  ;;  %v22952_v5 = vadd.f32 1e-06, %v22920_v11  ;;  %v22891_v58 = vpop.xlane.xlu0 %22890  ;;  %27770 = vmatmul.mubr.msk.f32.gmra.mrb[208].mxu0 %vm57_vm0, %v23079_v49  ;;  %v23011_v10 = vmul.f32 %v28706_v15, %v34366_v36  ;;  %v23081_v61 = vadd.f32 %v36703_v0, %v23045_v62 }
0x1300   :  { %28717 = vrsqrt.f32 %v22953_v4  ;;  %v22923_v13 = vmul.f32 0.03125, %v22891_v58  ;;  %v22888_v7 = vpop.xlane.xlu1 %22887  ;;  %v23080_v1 = vadd.f32 %v36703_v0, %v23044_v29  ;;  %v23010_v25 = vmul.f32 %v28708_v41, %v34370_v8 }
0x1301   :  { %28719 = vrsqrt.f32 %v22952_v5  ;;  %v22922_v14 = vmul.f32 0.03125, %v22888_v7  ;;  %v23047_v40 = vmul.f32 %v36702_v52, %v23011_v10 }
0x1302   :  { %v28710_v39 = vpop.eup %28709  ;;  %v22955_v2 = vadd.f32 1e-06, %v22923_v13  ;;  %27772 = vmatprep.mubr.msk.f32.mxu0 %vm57_vm0, %v23080_v1  ;;  %v23046_v33 = vmul.f32 %v36702_v52, %v23010_v25  ;;  %v36704_v13 = vld [vmem:[#allocation2_spill] sm:$0xff] }
0x1303   :  { %v28712_v36 = vpop.eup %28711  ;;  %v22954_v44 = vadd.f32 1e-06, %v22922_v14  ;;  %27773 = vmatmul.mubr.msk.f32.gmra.mrb[210].mxu0 %vm57_vm0, %v23081_v61  ;;  %v23013_v48 = vmul.f32 %v28710_v39, %v34378_v54  ;;  %v23083_v42 = vadd.f32 %v36703_v0, %v23047_v40 }
0x1304   :  { %28721 = vrsqrt.f32 %v22955_v2  ;;  %v23082_v8 = vadd.f32 %v36703_v0, %v23046_v33  ;;  %v23012_v34 = vmul.f32 %v28712_v36, %v34382_v24 }
0x1305   :  { %28723 = vrsqrt.f32 %v22954_v44  ;;  %v23049_v60 = vmul.f32 %v36702_v52, %v23013_v48 }
0x1306   :  { %v28714_v31 = vpop.eup %28713  ;;  %27775 = vmatprep.mubr.msk.f32.mxu0 %vm57_vm0, %v23082_v8  ;;  %v23048_v28 = vmul.f32 %v36702_v52, %v23012_v34 }
0x1307   :  { %v28716_v18 = vpop.eup %28715  ;;  %27776 = vmatmul.mubr.msk.f32.gmra.mrb[212].mxu0 %vm57_vm0, %v23083_v42  ;;  %v23015_v54 = vmul.f32 %v28714_v31, %v34390_v26  ;;  %v23085_v24 = vadd.f32 %v36703_v0, %v23049_v60 }
0x1308   :  { %v23084_v59 = vadd.f32 %v36703_v0, %v23048_v28  ;;  %v23014_v43 = vmul.f32 %v28716_v18, %v34394_v35 }
0x1309   :  { %v23051_v56 = vmul.f32 %v36702_v52, %v23015_v54 }
0x130a   :  { %v28718_v57 = vpop.eup %28717  ;;  %27778 = vmatprep.mubr.msk.f32.mxu0 %vm57_vm0, %v23084_v59  ;;  %v23050_v32 = vmul.f32 %v36702_v52, %v23014_v43 }
0x130b   :  { %v28720_v45 = vpop.eup %28719  ;;  %27779 = vmatmul.mubr.msk.f32.gmra.mrb[214].mxu0 %vm57_vm0, %v23085_v24  ;;  %v23017_v6 = vmul.f32 %v28718_v57, %v34402_v63  ;;  %v23087_v35 = vadd.f32 %v36703_v0, %v23051_v56 }
0x130c   :  { %v23086_v26 = vadd.f32 %v36703_v0, %v23050_v32  ;;  %v23016_v20 = vmul.f32 %v28720_v45, %v34406_v23 }
0x130d   :  { %v23053_v38 = vmul.f32 %v36702_v52, %v23017_v6 }
0x130e   :  { %v28722_v55 = vpop.eup %28721  ;;  %27781 = vmatprep.mubr.msk.f32.mxu0 %vm57_vm0, %v23086_v26  ;;  %v23052_v21 = vmul.f32 %v36702_v52, %v23016_v20 }
0x130f   :  { %v28724_v11 = vpop.eup %28723  ;;  %27782 = vmatmul.mubr.msk.f32.gmra.mrb[216].mxu0 %vm57_vm0, %v23087_v35  ;;  %v23019_v49 = vmul.f32 %v28722_v55, %v34414_v17  ;;  %v23089_v23 = vadd.f32 %v36703_v0, %v23053_v38  ;;  %v24285_v17 = vld [vmem:[%s35891_s5] sm:$0xff] }
0x1310   :  { %v23088_v63 = vadd.f32 %v36703_v0, %v23052_v21  ;;  %v23018_v62 = vmul.f32 %v28724_v11, %v34418_v30  ;;  %v24286_v30 = vld [vmem:[%s35891_s5 + $0x8] sm:$0xff] }
0x1311   :  { %v23055_v15 = vmul.f32 %v36702_v52, %v23019_v49  ;;  %v27870_v5 = vpack.c.bf16 %v24286_v30, %v24285_v17 }
0x1312   :  { %27784 = vmatprep.mubr.msk.f32.mxu0 %vm57_vm0, %v23088_v63  ;;  %v23054_v4 = vmul.f32 %v36702_v52, %v23018_v62  ;;  %v24287_v52 = vld [vmem:[%s35891_s5 + $0x10] sm:$0xff] }
0x1313   :  { %27785 = vmatmul.mubr.msk.f32.gmra.mrb[218].mxu0 %vm57_vm0, %v23089_v23  ;;  %v23091_v41 = vadd.f32 %v36703_v0, %v23055_v15  ;;  %27871 = vmatprep.subr.bf16.mxu1 %v27870_v5  ;;  %v36171_v23 = vmov -1.0  }
0x1314   :  { %v23090_v29 = vadd.f32 %v36703_v0, %v23054_v4  ;;  %27873 = vmatpush3.bf16.msra.mxu1 %v27870_v5  ;;  %v24288_v0 = vld [vmem:[%s35891_s5 + $0x18] sm:$0xff] }
0x1315   :  { %v27874_v58 = vpack.c.bf16 %v24288_v0, %v24287_v52 }
0x1316   :  { %27787 = vmatprep.mubr.msk.f32.mxu0 %vm57_vm0, %v23090_v29 }
0x1317   :  { %27788 = vmatmul.mubr.msk.f32.gmra.mrb[220].mxu0 %vm57_vm0, %v23091_v41  ;;  %27875 = vmatprep.subr.bf16.mxu1 %v27874_v58 }
0x1318   :  { %27877 = vmatpush3.bf16.msra.mxu1 %v27874_v58 }
0x1359   :  { %v27744_v10 = vpop.f32.mrb[190].mxu0 }
0x135a   :  { %v23268_v7 = vadd.f32 %v27744_v10, %v36704_v13  ;;  %v23262_v1 = vpop.f32.mrb[191].mxu0 }
0x135b   :  { %v23263_v25 = vadd.f32 %v23262_v1, %v36704_v13 }
0x135c   :  { %v23454_v14 = vmul.f32 0.70710677, %v23268_v7  ;;  %v34576_v56 = vmul.f32 0.5, %v23268_v7 }
0x135d   :  { %v23453_v61 = vmul.f32 0.70710677, %v23263_v25  ;;  %v27747_v40 = vpop.f32.mrb[192].mxu0  ;;  %v34582_v26 = vmul.f32 0.5, %v23263_v25 }
0x135e   :  { %v23550_v39 = vand.u32 2147483647, %v23454_v14  ;;  %v23278_v2 = vadd.f32 %v27747_v40, %v36704_v13  ;;  %v23272_v33 = vpop.f32.mrb[193].mxu0  ;;  %vm23486_vm13 = vcmp.ge.f32.partialorder %v23454_v14, 0.0 }
0x135f   :  { %v23549_v36 = vand.u32 2147483647, %v23453_v61  ;;  %v23273_v44 = vadd.f32 %v23272_v33, %v36704_v13  ;;  %vm23485_vm14 = vcmp.ge.f32.partialorder %v23453_v61, 0.0  ;;  %v34596_v15 = vsel %vm23486_vm13, 1.0, %v36171_v23 }
0x1360   :  { %v23582_v48 = vmul.f32 0.3275911, %v23550_v39  ;;  %v34571_v34 = vmul.f32 0.70710677, %v23278_v2  ;;  %v23998_v59 = vsub.f32 0.0, %v23550_v39  ;;  %v34602_v30 = vsel %vm23485_vm14, 1.0, %v36171_v23 }
0x1361   :  { %v23581_v8 = vmul.f32 0.3275911, %v23549_v36  ;;  %v34573_v60 = vmul.f32 0.70710677, %v23273_v44  ;;  %v27750_v31 = vpop.f32.mrb[194].mxu0  ;;  %v23997_v57 = vsub.f32 0.0, %v23549_v36 }
0x1362   :  { %v23614_v42 = vadd.f32 1.0, %v23582_v48  ;;  %v23552_v18 = vand.u32 2147483647, %v34571_v34  ;;  %v23282_v54 = vpop.f32.mrb[195].mxu0  ;;  %v34580_v45 = vadd.f32 %v27750_v31, %v36704_v13  ;;  %v24030_v11 = vmul.f32 %v23998_v59, %v23550_v39 }
0x1363   :  { %v23613_v28 = vadd.f32 1.0, %v23581_v8  ;;  %v23551_v32 = vand.u32 2147483647, %v34573_v60  ;;  %v34585_v35 = vadd.f32 %v23282_v54, %v36704_v13  ;;  %v24029_v4 = vmul.f32 %v23997_v57, %v23549_v36 }
0x1364   :  { %28725 = vrcp.f32 %v23614_v42  ;;  %v23584_v43 = vmul.f32 0.3275911, %v23552_v18  ;;  %v24000_v38 = vsub.f32 0.0, %v23552_v18  ;;  %v34588_v21 = vmul.f32 0.70710677, %v34580_v45 }
0x1365   :  { %28727 = vrcp.f32 %v23613_v28  ;;  %v27753_v24 = vpop.f32.mrb[196].mxu0  ;;  %v23583_v55 = vmul.f32 0.3275911, %v23551_v32  ;;  %v23999_v49 = vsub.f32 0.0, %v23551_v32  ;;  %v34591_v63 = vmul.f32 0.70710677, %v34585_v35 }
0x1366   :  { %v23292_v6 = vpop.f32.mrb[197].mxu0  ;;  %v23616_v20 = vadd.f32 1.0, %v23584_v43  ;;  %v23554_v41 = vand.u32 2147483647, %v34588_v21  ;;  %v34604_v5 = vmul.f32 0.5, %v23278_v2  ;;  %v34606_v52 = vmul.f32 0.5, %v23273_v44 }
0x1367   :  { %v23615_v29 = vadd.f32 1.0, %v23583_v55  ;;  %v23553_v0 = vand.u32 2147483647, %v34591_v63  ;;  %v24032_v58 = vmul.f32 %v24000_v38, %v23552_v18  ;;  %v24063_v1 = vmul.f32 1.442695, %v24030_v11 }
0x1368   :  { %28729 = vrcp.f32 %v23616_v20  ;;  %v23586_v10 = vmul.f32 0.3275911, %v23554_v41  ;;  %v24002_v7 = vsub.f32 0.0, %v23554_v41  ;;  %v24031_v25 = vmul.f32 %v23999_v49, %v23551_v32 }
0x1369   :  { %v34593_v62 = vpop.f32.mrb[198].mxu0  ;;  %28731 = vrcp.f32 %v23615_v29  ;;  %v23585_v14 = vmul.f32 0.3275911, %v23553_v0  ;;  %v34610_v61 = vadd.f32 %v27753_v24, %v36704_v13  ;;  %v24061_v2 = vmul.f32 1.442695, %v24029_v4 }
0x136a   :  { %v34599_v17 = vpop.f32.mrb[199].mxu0  ;;  %vm23488_vm15 = vcmp.ge.f32.partialorder %v34571_v34, 0.0  ;;  %v23618_v33 = vadd.f32 1.0, %v23586_v10  ;;  %v24001_v36 = vsub.f32 0.0, %v23553_v0  ;;  %v24034_v42 = vmul.f32 %v24002_v7, %v23554_v41 }
0x136b   :  { %v23617_v31 = vadd.f32 1.0, %v23585_v14  ;;  %v34623_v28 = vadd.f32 %v23292_v6, %v36704_v13  ;;  %v24067_v54 = vmul.f32 1.442695, %v24032_v58  ;;  %v34627_v59 = vmul.f32 0.70710677, %v34610_v61 }
0x136c   :  { %28733 = vrcp.f32 %v23618_v33  ;;  %v34630_v43 = vsel %vm23488_vm15, 1.0, %v36171_v23  ;;  %v24065_v24 = vmul.f32 1.442695, %v24031_v25  ;;  %vm23487_vm1 = vcmp.ge.f32.partialorder %v34573_v60, 0.0 }
0x136d   :  { %v34612_v40 = vpop.f32.mrb[200].mxu0  ;;  %28735 = vrcp.f32 %v23617_v31  ;;  %v23556_v6 = vand.u32 2147483647, %v34627_v59  ;;  %v24071_v11 = vmul.f32 1.442695, %v24034_v42  ;;  %v24033_v49 = vmul.f32 %v24001_v36, %v23553_v0 }
0x136e   :  { %v34614_v39 = vpop.eup %28725  ;;  %v34617_v44 = vpop.f32.mrb[201].mxu0  ;;  %v34642_v4 = vmul.f32 0.70710677, %v34623_v28  ;;  %28737 = vpow2.f32 %v24063_v1  ;;  %v34647_v7 = vsel %vm23487_vm1, 1.0, %v36171_v23  ;;  %vm23490_vm2 = vcmp.ge.f32.partialorder %v34588_v21, 0.0 }
0x136f   :  { %v34619_v48 = vpop.eup %28727  ;;  %v23710_v8 = vmul.f32 1.0614054, %v34614_v39  ;;  %v23588_v58 = vmul.f32 0.3275911, %v23556_v6  ;;  %v24004_v10 = vsub.f32 0.0, %v23556_v6  ;;  %28739 = vpow2.f32 %v24061_v2 }
0x1370   :  { %v23709_v18 = vmul.f32 1.0614054, %v34619_v48  ;;  %v23555_v25 = vand.u32 2147483647, %v34642_v4  ;;  %v24069_v1 = vmul.f32 1.442695, %v24033_v49 }
0x1371   :  { %v23742_v34 = vadd.f32 -1.4531521, %v23710_v8  ;;  %v34632_v57 = vpop.f32.mrb[202].mxu0  ;;  %v23620_v8 = vadd.f32 1.0, %v23588_v58  ;;  %v24036_v23 = vmul.f32 %v24004_v10, %v23556_v6  ;;  %vm23489_vm3 = vcmp.ge.f32.partialorder %v34591_v63, 0.0 }
0x1372   :  { %v23741_v32 = vadd.f32 -1.4531521, %v23709_v18  ;;  %v34636_v20 = vpop.f32.mrb[203].mxu0  ;;  %v34638_v38 = vpop.eup %28729  ;;  %vm23492_vm4 = vcmp.ge.f32.partialorder %v34627_v59, 0.0  ;;  %vm23491_vm5 = vcmp.ge.f32.partialorder %v34642_v4, 0.0 }
0x1373   :  { %v23774_v55 = vmul.f32 %v34614_v39, %v23742_v34  ;;  %v23712_v41 = vmul.f32 1.0614054, %v34638_v38  ;;  %v34652_v33 = vpop.eup %28731  ;;  %v23587_v34 = vmul.f32 0.3275911, %v23555_v25  ;;  %28741 = vrcp.f32 %v23620_v8 }
0x1374   :  { %v23773_v29 = vmul.f32 %v34619_v48, %v23741_v32  ;;  %v23711_v18 = vmul.f32 1.0614054, %v34652_v33  ;;  %28743 = vpow2.f32 %v24067_v54  ;;  %v24075_v8 = vmul.f32 1.442695, %v24036_v23 }
0x1375   :  { %v23806_v60 = vadd.f32 1.4214138, %v23774_v55  ;;  %v34650_v14 = vpop.f32.mrb[204].mxu0  ;;  %v23744_v36 = vadd.f32 -1.4531521, %v23712_v41  ;;  %v23619_v2 = vadd.f32 1.0, %v23587_v34  ;;  %28745 = vpow2.f32 %v24065_v24 }
0x1376   :  { %v23805_v0 = vadd.f32 1.4214138, %v23773_v29  ;;  %v34654_v42 = vpop.f32.mrb[205].mxu0  ;;  %v23743_v29 = vadd.f32 -1.4531521, %v23711_v18  ;;  %v34660_v41 = vpop.eup %28733 }
0x1377   :  { %v23838_v31 = vmul.f32 %v34614_v39, %v23806_v60  ;;  %v23776_v55 = vmul.f32 %v34638_v38, %v23744_v36  ;;  %v24003_v60 = vsub.f32 0.0, %v23555_v25  ;;  %v34662_v9 = vpop.eup %28735  ;;  %v23714_v36 = vmul.f32 1.0614054, %v34660_v41 }
0x1378   :  { %v23837_v32 = vmul.f32 %v34619_v48, %v23805_v0  ;;  %v23775_v0 = vmul.f32 %v34652_v33, %v23743_v29  ;;  %28747 = vrcp.f32 %v23619_v2  ;;  %v23713_v10 = vmul.f32 1.0614054, %v34662_v9  ;;  %v28738_v37 = vpop.eup %28737 }
0x1379   :  { %v23870_v50 = vadd.f32 -0.28449672, %v23838_v31  ;;  %v23808_v3 = vadd.f32 1.4214138, %v23776_v55  ;;  %v23746_v24 = vadd.f32 -1.4531521, %v23714_v36  ;;  %28749 = vpow2.f32 %v24071_v11 }
0x137a   :  { %v23869_v58 = vadd.f32 -0.28449672, %v23837_v32  ;;  %v23807_v18 = vadd.f32 1.4214138, %v23775_v0  ;;  %v23745_v55 = vadd.f32 -1.4531521, %v23713_v10  ;;  %28751 = vpow2.f32 %v24069_v1 }
0x137b   :  { %v23902_v49 = vmul.f32 %v34614_v39, %v23870_v50  ;;  %v23840_v54 = vmul.f32 %v34638_v38, %v23808_v3  ;;  %v24035_v50 = vmul.f32 %v24003_v60, %v23555_v25  ;;  %v28740_v3 = vpop.eup %28739  ;;  %v34678_v11 = vadd.f32 %v34593_v62, %v36704_v13 }
0x137c   :  { %v23901_v6 = vmul.f32 %v34619_v48, %v23869_v58  ;;  %v23839_v2 = vmul.f32 %v34652_v33, %v23807_v18  ;;  %v23778_v58 = vmul.f32 %v34660_v41, %v23746_v24  ;;  %28753 = vpow2.f32 %v24075_v8 }
0x137d   :  { %v23934_v31 = vadd.f32 0.2548296, %v23902_v49  ;;  %v23872_v32 = vadd.f32 -0.28449672, %v23840_v54  ;;  %v23777_v49 = vmul.f32 %v34662_v9, %v23745_v55  ;;  %v24073_v54 = vmul.f32 1.442695, %v24035_v50 }
0x137e   :  { %v23933_v34 = vadd.f32 0.2548296, %v23901_v6  ;;  %v23871_v60 = vadd.f32 -0.28449672, %v23839_v2  ;;  %v23810_v0 = vadd.f32 1.4214138, %v23778_v58 }
0x137f   :  { %v23966_v29 = vmul.f32 %v34614_v39, %v23934_v31  ;;  %v23904_v23 = vmul.f32 %v34638_v38, %v23872_v32  ;;  %v34680_v39 = vpop.eup %28741  ;;  %v23809_v1 = vadd.f32 1.4214138, %v23777_v49  ;;  %28755 = vpow2.f32 %v24073_v54 }
0x1380   :  { %v23965_v51 = vmul.f32 %v34619_v48, %v23933_v34  ;;  %v28744_v10 = vpop.eup %28743  ;;  %v23903_v31 = vmul.f32 %v34652_v33, %v23871_v60  ;;  %v23842_v18 = vmul.f32 %v34660_v41, %v23810_v0  ;;  %v23716_v62 = vmul.f32 1.0614054, %v34680_v39 }
0x1381   :  { %v24126_v25 = vmul.f32 %v28738_v37, %v23966_v29  ;;  %v23936_v6 = vadd.f32 0.2548296, %v23904_v23  ;;  %v28746_v37 = vpop.eup %28745  ;;  %v23841_v34 = vmul.f32 %v34662_v9, %v23809_v1 }
0x1382   :  { %v24125_v36 = vmul.f32 %v28740_v3, %v23965_v51  ;;  %v34689_v51 = vmul.f32 0.70710677, %v34678_v11  ;;  %v34691_v32 = vpop.eup %28747  ;;  %v23935_v50 = vadd.f32 0.2548296, %v23903_v31  ;;  %v23874_v29 = vadd.f32 -0.28449672, %v23842_v18 }
0x1383   :  { %v24158_v48 = vsub.f32 1.0, %v24126_v25  ;;  %v23968_v8 = vmul.f32 %v34638_v38, %v23936_v6  ;;  %v23748_v2 = vadd.f32 -1.4531521, %v23716_v62  ;;  %v23873_v23 = vadd.f32 -0.28449672, %v23841_v34  ;;  %v28750_v49 = vpop.eup %28749 }
0x1384   :  { %v24157_v24 = vsub.f32 1.0, %v24125_v36  ;;  %v23715_v38 = vmul.f32 1.0614054, %v34691_v32  ;;  %v23967_v60 = vmul.f32 %v34652_v33, %v23935_v50  ;;  %v23906_v0 = vmul.f32 %v34660_v41, %v23874_v29  ;;  %v28752_v31 = vpop.eup %28751 }
0x1385   :  { %v24190_v55 = vmul.f32 %v24158_v48, %v34596_v15  ;;  %v24128_v3 = vmul.f32 %v28744_v10, %v23968_v8  ;;  %v23780_v36 = vmul.f32 %v34680_v39, %v23748_v2  ;;  %v23905_v1 = vmul.f32 %v34662_v9, %v23873_v23 }
0x1386   :  { %v24189_v58 = vmul.f32 %v24157_v24, %v34602_v30  ;;  %v23747_v48 = vadd.f32 -1.4531521, %v23715_v38  ;;  %v24127_v10 = vmul.f32 %v28746_v37, %v23967_v60  ;;  %v23938_v18 = vadd.f32 0.2548296, %v23906_v0 }
0x1387   :  { %v24222_v25 = vadd.f32 1.0, %v24190_v55  ;;  %v24160_v6 = vsub.f32 1.0, %v24128_v3  ;;  %v23812_v62 = vadd.f32 1.4214138, %v23780_v36  ;;  %v23937_v33 = vadd.f32 0.2548296, %v23905_v1  ;;  %v28754_v55 = vpop.eup %28753 }
0x1388   :  { %v24221_v15 = vadd.f32 1.0, %v24189_v58  ;;  %v23779_v34 = vmul.f32 %v34691_v32, %v23747_v48  ;;  %v24159_v50 = vsub.f32 1.0, %v24127_v10  ;;  %v23970_v29 = vmul.f32 %v34660_v41, %v23938_v18 }
0x1389   :  { %v24254_v30 = vmul.f32 %v24222_v25, %v34576_v56  ;;  %v24192_v8 = vmul.f32 %v24160_v6, %v34630_v43  ;;  %v23844_v2 = vmul.f32 %v34680_v39, %v23812_v62  ;;  %v23558_v58 = vand.u32 2147483647, %v34689_v51 }
0x138a   :  { %v24253_v24 = vmul.f32 %v24221_v15, %v34582_v26  ;;  %v23969_v56 = vmul.f32 %v34662_v9, %v23937_v33  ;;  %v23811_v37 = vadd.f32 1.4214138, %v23779_v34  ;;  %v34711_v26 = vadd.f32 %v34599_v17, %v36704_v13 }
0x138b   :  { %v24191_v43 = vmul.f32 %v24159_v50, %v34647_v7  ;;  %v24130_v3 = vmul.f32 %v28750_v49, %v23970_v29  ;;  %v23876_v23 = vadd.f32 -0.28449672, %v23844_v2  ;;  %v23590_v38 = vmul.f32 0.3275911, %v23558_v58  ;;  %v28756_v2 = vpop.eup %28755 }
0x138c   :  { %27798 = vmatprep.mubr.msk.f32.mxu1 %vm57_vm0, %v24253_v24  ;;  %v24224_v41 = vadd.f32 1.0, %v24192_v8  ;;  %v36705_v25 = vmov -1.0   ;;  %v24129_v60 = vmul.f32 %v28752_v31, %v23969_v56  ;;  %v23843_v54 = vmul.f32 %v34691_v32, %v23811_v37 }
0x138d   :  { %27799 = vmatmul.mubr.msk.f32.vlgmr.msra.gmra.mrb[194].mxu1 %vm57_vm0, %v24254_v30  ;;  %v23522_v9 = vsel %vm23490_vm2, 1.0, %v36705_v25  ;;  %v24223_v0 = vadd.f32 1.0, %v24191_v43  ;;  %v24162_v17 = vsub.f32 1.0, %v24130_v3  ;;  %v23908_v36 = vmul.f32 %v34680_v39, %v23876_v23 }
0x138e   :  { %v23622_v15 = vadd.f32 1.0, %v23590_v38  ;;  %v23521_v7 = vsel %vm23489_vm3, 1.0, %v36705_v25  ;;  %v24161_v49 = vsub.f32 1.0, %v24129_v60  ;;  %v23875_v6 = vadd.f32 -0.28449672, %v23843_v54 }
0x138f   :  { %v34725_v1 = vmul.f32 0.70710677, %v34711_v26  ;;  %v24255_v21 = vmul.f32 %v24223_v0, %v34606_v52  ;;  %v24194_v48 = vmul.f32 %v24162_v17, %v23522_v9  ;;  %v23940_v31 = vadd.f32 0.2548296, %v23908_v36 }
0x1390   :  { %28757 = vrcp.f32 %v23622_v15  ;;  %v24256_v30 = vmul.f32 %v24224_v41, %v34604_v5  ;;  %v24193_v10 = vmul.f32 %v24161_v49, %v23521_v7  ;;  %v23907_v18 = vmul.f32 %v34691_v32, %v23875_v6 }
0x1391   :  { %v34732_v62 = vadd.f32 %v34612_v40, %v36704_v13  ;;  %v24226_v63 = vadd.f32 1.0, %v24194_v48  ;;  %v23972_v24 = vmul.f32 %v34680_v39, %v23940_v31  ;;  %v23557_v8 = vand.u32 2147483647, %v34725_v1  ;;  %27801 = vmatprep.mubr.msk.f32.mxu1 %vm57_vm0, %v24255_v21 }
0x1392   :  { %v23425_v52 = vmul.f32 0.5, %v34585_v35  ;;  %v24225_v33 = vadd.f32 1.0, %v24193_v10  ;;  %v23939_v5 = vadd.f32 0.2548296, %v23907_v18  ;;  %27802 = vmatmul.mubr.msk.f32.gmra.mrb[196].mxu1 %vm57_vm0, %v24256_v30  ;;  %v23426_v34 = vmul.f32 0.5, %v34580_v45 }
0x1393   :  { %v24132_v50 = vmul.f32 %v28754_v55, %v23972_v24  ;;  %v24006_v40 = vsub.f32 0.0, %v23558_v58  ;;  %v23589_v29 = vmul.f32 0.3275911, %v23557_v8  ;;  %v34743_v37 = vmul.f32 0.70710677, %v34732_v62 }
0x1394   :  { %v24257_v56 = vmul.f32 %v24225_v33, %v23425_v52  ;;  %v23971_v39 = vmul.f32 %v34691_v32, %v23939_v5  ;;  %v34747_v35 = vadd.f32 %v34617_v44, %v36704_v13  ;;  %v24258_v59 = vmul.f32 %v24226_v63, %v23426_v34 }
0x1395   :  { %v23524_v43 = vsel %vm23492_vm4, 1.0, %v36705_v25  ;;  %v24164_v3 = vsub.f32 1.0, %v24132_v50  ;;  %v23621_v23 = vadd.f32 1.0, %v23589_v29  ;;  %v23560_v55 = vand.u32 2147483647, %v34743_v37 }
0x1396   :  { %v24131_v45 = vmul.f32 %v28756_v2, %v23971_v39  ;;  %v34754_v32 = vadd.f32 %v34632_v57, %v36704_v13  ;;  %27804 = vmatprep.mubr.msk.f32.mxu1 %vm57_vm0, %v24257_v56  ;;  %v24038_v41 = vmul.f32 %v24006_v40, %v23558_v58  ;;  %v34759_v60 = vmul.f32 0.70710677, %v34747_v35 }
0x1397   :  { %v24196_v38 = vmul.f32 %v24164_v3, %v23524_v43  ;;  %28759 = vrcp.f32 %v23621_v23  ;;  %27805 = vmatmul.mubr.msk.f32.gmra.mrb[198].mxu1 %vm57_vm0, %v24258_v59  ;;  %v23592_v9 = vmul.f32 0.3275911, %v23560_v55  ;;  %v23523_v54 = vsel %vm23491_vm5, 1.0, %v36705_v25 }
0x1398   :  { %v24163_v44 = vsub.f32 1.0, %v24131_v45  ;;  %v24005_v0 = vsub.f32 0.0, %v23557_v8  ;;  %v34766_v15 = vmul.f32 0.70710677, %v34754_v32  ;;  %v23427_v49 = vmul.f32 0.5, %v34623_v28 }
0x1399   :  { %v23624_v36 = vadd.f32 1.0, %v23592_v9  ;;  %v24228_v7 = vadd.f32 1.0, %v24196_v38  ;;  %v23559_v58 = vand.u32 2147483647, %v34759_v60  ;;  %v24079_v31 = vmul.f32 1.442695, %v24038_v41 }
0x139a   :  { %v34761_v4 = vpop.eup %28757  ;;  %v24195_v17 = vmul.f32 %v24163_v44, %v23523_v54  ;;  %v23428_v10 = vmul.f32 0.5, %v34610_v61  ;;  %v24037_v52 = vmul.f32 %v24005_v0, %v23557_v8  ;;  %v34777_v33 = vand.u32 2147483647, %v34766_v15 }
0x139b   :  { %v23718_v57 = vmul.f32 1.0614054, %v34761_v4  ;;  %28761 = vrcp.f32 %v23624_v36  ;;  %v23591_v18 = vmul.f32 0.3275911, %v23559_v58  ;;  %v24008_v5 = vsub.f32 0.0, %v23560_v55 }
0x139c   :  { %v24227_v21 = vadd.f32 1.0, %v24195_v17  ;;  %v24260_v28 = vmul.f32 %v24228_v7, %v23428_v10  ;;  %v34781_v50 = vadd.f32 %v34636_v20, %v36704_v13  ;;  %28763 = vpow2.f32 %v24079_v31 }
0x139d   :  { %v34770_v6 = vpop.f32.mrb[206].mxu0  ;;  %v23750_v48 = vadd.f32 -1.4531521, %v23718_v57  ;;  %v23623_v34 = vadd.f32 1.0, %v23591_v18  ;;  %v23594_v29 = vmul.f32 0.3275911, %v34777_v33  ;;  %v34795_v56 = vadd.f32 %v34650_v14, %v36704_v13 }
0x139e   :  { %v34772_v30 = vpop.f32.mrb[207].mxu0  ;;  %v24259_v63 = vmul.f32 %v24227_v21, %v23427_v49  ;;  %v34788_v8 = vmul.f32 0.5, %v34678_v11  ;;  %v34791_v2 = vmul.f32 0.70710677, %v34781_v50  ;;  %vm23494_vm6 = vcmp.ge.f32.partialorder %v34689_v51, 0.0 }
0x139f   :  { %v23782_v24 = vmul.f32 %v34761_v4, %v23750_v48  ;;  %28765 = vrcp.f32 %v23623_v34  ;;  %v23626_v59 = vadd.f32 1.0, %v23594_v29  ;;  %vm23493_vm7 = vcmp.ge.f32.partialorder %v34725_v1, 0.0 }
0x13a0   :  { %27807 = vmatprep.mubr.msk.f32.mxu1 %vm57_vm0, %v24259_v63  ;;  %v24077_v11 = vmul.f32 1.442695, %v24037_v52  ;;  %v24040_v43 = vmul.f32 %v24008_v5, %v23560_v55  ;;  %v23561_v3 = vand.u32 2147483647, %v34791_v2  ;;  %v24007_v38 = vsub.f32 0.0, %v23559_v58 }
0x13a1   :  { %v23814_v40 = vadd.f32 1.4214138, %v23782_v24  ;;  %v34785_v61 = vpop.eup %28759  ;;  %27808 = vmatmul.mubr.msk.f32.gmra.mrb[200].mxu1 %vm57_vm0, %v24260_v28  ;;  %28767 = vrcp.f32 %v23626_v59  ;;  %v23526_v14 = vsel %vm23494_vm6, 1.0, %v36705_v25  ;;  %v34805_v44 = vmul.f32 0.5, %v34711_v26 }
0x13a2   :  { %v23717_v39 = vmul.f32 1.0614054, %v34785_v61  ;;  %v23593_v51 = vmul.f32 0.3275911, %v23561_v3  ;;  %v34808_v41 = vmul.f32 0.70710677, %v34795_v56  ;;  %v34819_v0 = vadd.f32 %v34654_v42, %v36704_v13 }
0x13a3   :  { %v23846_v20 = vmul.f32 %v34761_v4, %v23814_v40  ;;  %v34814_v55 = vsel %vm23493_vm7, 1.0, %v36705_v25  ;;  %28769 = vpow2.f32 %v24077_v11  ;;  %vm23496_vm8 = vcmp.ge.f32.partialorder %v34743_v37, 0.0 }
0x13a4   :  { %v23749_v45 = vadd.f32 -1.4531521, %v23717_v39  ;;  %v23625_v17 = vadd.f32 1.0, %v23593_v51  ;;  %v24083_v7 = vmul.f32 1.442695, %v24040_v43  ;;  %v24039_v49 = vmul.f32 %v24007_v38, %v23559_v58 }
0x13a5   :  { %v23878_v23 = vadd.f32 -0.28449672, %v23846_v20  ;;  %v34810_v9 = vpop.eup %28761  ;;  %v24010_v48 = vsub.f32 0.0, %v34777_v33  ;;  %v23564_v31 = vand.u32 2147483647, %v34808_v41  ;;  %v24009_v63 = vsub.f32 0.0, %v23561_v3 }
0x13a6   :  { %v23781_v54 = vmul.f32 %v34785_v61, %v23749_v45  ;;  %v23720_v26 = vmul.f32 1.0614054, %v34810_v9  ;;  %28771 = vrcp.f32 %v23625_v17  ;;  %v28764_v10 = vpop.eup %28763  ;;  %v34828_v24 = vmul.f32 0.70710677, %v34819_v0 }
0x13a7   :  { %v23910_v1 = vmul.f32 %v34761_v4, %v23878_v23  ;;  %v34833_v28 = vmul.f32 0.5, %v34732_v62  ;;  %v34838_v58 = vsel %vm23496_vm8, 1.0, %v36705_v25  ;;  %v23596_v34 = vmul.f32 0.3275911, %v23564_v31 }
0x13a8   :  { %v23813_v36 = vadd.f32 1.4214138, %v23781_v54  ;;  %v23752_v21 = vadd.f32 -1.4531521, %v23720_v26  ;;  %28773 = vpow2.f32 %v24083_v7  ;;  %v24081_v39 = vmul.f32 1.442695, %v24039_v49 }
0x13a9   :  { %v23942_v57 = vadd.f32 0.2548296, %v23910_v1  ;;  %v34830_v52 = vpop.eup %28765  ;;  %v24042_v59 = vmul.f32 %v24010_v48, %v34777_v33  ;;  %v23628_v11 = vadd.f32 1.0, %v23596_v34  ;;  %v24041_v23 = vmul.f32 %v24009_v63, %v23561_v3 }
0x13aa   :  { %v23845_v18 = vmul.f32 %v34785_v61, %v23813_v36  ;;  %v23784_v5 = vmul.f32 %v34810_v9, %v23752_v21  ;;  %v23719_v29 = vmul.f32 1.0614054, %v34830_v52  ;;  %v34847_v45 = vand.u32 2147483647, %v34828_v24 }
0x13ab   :  { %v23974_v42 = vmul.f32 %v34761_v4, %v23942_v57  ;;  %v34843_v62 = vpop.eup %28767  ;;  %28775 = vrcp.f32 %v23628_v11  ;;  %v34855_v17 = vadd.f32 %v34770_v6, %v36704_v13  ;;  %v24012_v7 = vsub.f32 0.0, %v23564_v31 }
0x13ac   :  { %v23877_v40 = vadd.f32 -0.28449672, %v23845_v18  ;;  %v23816_v20 = vadd.f32 1.4214138, %v23784_v5  ;;  %v23751_v37 = vadd.f32 -1.4531521, %v23719_v29  ;;  %28777 = vpow2.f32 %v24081_v39 }
0x13ad   :  { %v24134_v4 = vmul.f32 %v28764_v10, %v23974_v42  ;;  %v23722_v1 = vmul.f32 1.0614054, %v34843_v62  ;;  %v23595_v33 = vmul.f32 0.3275911, %v34847_v45  ;;  %v28770_v57 = vpop.eup %28769  ;;  %v24087_v48 = vmul.f32 1.442695, %v24042_v59 }
0x13ae   :  { %v23909_v43 = vmul.f32 %v34785_v61, %v23877_v40  ;;  %v23848_v51 = vmul.f32 %v34810_v9, %v23816_v20  ;;  %v23783_v26 = vmul.f32 %v34830_v52, %v23751_v37  ;;  %v24085_v34 = vmul.f32 1.442695, %v24041_v23 }
0x13af   :  { %v24166_v38 = vsub.f32 1.0, %v24134_v4  ;;  %v23754_v36 = vadd.f32 -1.4531521, %v23722_v1  ;;  %v23627_v10 = vadd.f32 1.0, %v23595_v33  ;;  %v34865_v29 = vmul.f32 0.70710677, %v34855_v17 }
0x13b0   :  { %v23941_v54 = vadd.f32 0.2548296, %v23909_v43  ;;  %v23880_v3 = vadd.f32 -0.28449672, %v23848_v51  ;;  %v23815_v21 = vadd.f32 1.4214138, %v23783_v26  ;;  %v34858_v42 = vpop.eup %28771  ;;  %v24044_v39 = vmul.f32 %v24012_v7, %v23564_v31 }
0x13b1   :  { %v24198_v18 = vmul.f32 %v24166_v38, %v23526_v14  ;;  %v23786_v5 = vmul.f32 %v34843_v62, %v23754_v36  ;;  %v23721_v40 = vmul.f32 1.0614054, %v34858_v42  ;;  %28779 = vrcp.f32 %v23627_v10 }
0x13b2   :  { %v23973_v49 = vmul.f32 %v34785_v61, %v23941_v54  ;;  %v23912_v63 = vmul.f32 %v34810_v9, %v23880_v3  ;;  %v23847_v4 = vmul.f32 %v34830_v52, %v23815_v21  ;;  %v28774_v59 = vpop.eup %28773  ;;  %28781 = vpow2.f32 %v24087_v48 }
0x13b3   :  { %v23818_v20 = vadd.f32 1.4214138, %v23786_v5  ;;  %v23753_v43 = vadd.f32 -1.4531521, %v23721_v40  ;;  %v24230_v37 = vadd.f32 1.0, %v24198_v18  ;;  %vm23495_vm9 = vcmp.ge.f32.partialorder %v34759_v60, 0.0 }
0x13b4   :  { %v24133_v6 = vmul.f32 %v28770_v57, %v23973_v49  ;;  %v23944_v61 = vadd.f32 0.2548296, %v23912_v63  ;;  %v23879_v14 = vadd.f32 -0.28449672, %v23847_v4  ;;  %v34874_v31 = vand.u32 2147483647, %v34865_v29 }
0x13b5   :  { %v23850_v38 = vmul.f32 %v34843_v62, %v23818_v20  ;;  %v23785_v54 = vmul.f32 %v34858_v42, %v23753_v43  ;;  %v34876_v26 = vpop.eup %28775  ;;  %28783 = vpow2.f32 %v24085_v34  ;;  %v24091_v3 = vmul.f32 1.442695, %v24044_v39 }
0x13b6   :  { %v24165_v11 = vsub.f32 1.0, %v24133_v6  ;;  %v23976_v23 = vmul.f32 %v34810_v9, %v23944_v61  ;;  %v23911_v1 = vmul.f32 %v34830_v52, %v23879_v14  ;;  %v24011_v49 = vsub.f32 0.0, %v34847_v45  ;;  %v28778_v21 = vpop.eup %28777 }
0x13b7   :  { %v23882_v57 = vadd.f32 -0.28449672, %v23850_v38  ;;  %v23817_v7 = vadd.f32 1.4214138, %v23785_v54  ;;  %v23724_v10 = vmul.f32 1.0614054, %v34876_v26  ;;  %v24262_v63 = vmul.f32 %v24230_v37, %v34788_v8 }
0x13b8   :  { %v24197_v51 = vmul.f32 %v24165_v11, %v34814_v55  ;;  %v24136_v33 = vmul.f32 %v28774_v59, %v23976_v23  ;;  %v23943_v36 = vadd.f32 0.2548296, %v23911_v1  ;;  %v23598_v18 = vmul.f32 0.3275911, %v34874_v31 }
0x13b9   :  { %v23914_v48 = vmul.f32 %v34843_v62, %v23882_v57  ;;  %v23849_v6 = vmul.f32 %v34858_v42, %v23817_v7  ;;  %v23756_v40 = vadd.f32 -1.4531521, %v23724_v10  ;;  %v34888_v20 = vadd.f32 %v34772_v30, %v36704_v13 }
0x13ba   :  { %v24229_v9 = vadd.f32 1.0, %v24197_v51  ;;  %v24168_v55 = vsub.f32 1.0, %v24136_v33  ;;  %v23975_v34 = vmul.f32 %v34830_v52, %v23943_v36  ;;  %v23630_v61 = vadd.f32 1.0, %v23598_v18 }
0x13bb   :  { %v23946_v4 = vadd.f32 0.2548296, %v23914_v48  ;;  %vm23498_vm10 = vcmp.ge.f32.partialorder %v34766_v15, 0.0  ;;  %v23881_v59 = vadd.f32 -0.28449672, %v23849_v6  ;;  %v24043_v11 = vmul.f32 %v24011_v49, %v34847_v45  ;;  %v34893_v8 = vpop.eup %28779 }
0x13bc   :  { %v24261_v5 = vmul.f32 %v24229_v9, %v34805_v44  ;;  %v24135_v39 = vmul.f32 %v28778_v21, %v23975_v34  ;;  %v24200_v44 = vmul.f32 %v24168_v55, %v34838_v58  ;;  %v23788_v14 = vmul.f32 %v34876_v26, %v23756_v40  ;;  %v28782_v30 = vpop.eup %28781 }
0x13bd   :  { %v23978_v52 = vmul.f32 %v34843_v62, %v23946_v4  ;;  %28785 = vrcp.f32 %v23630_v61  ;;  %v23527_v43 = vsel %vm23495_vm9, 1.0, %v36705_v25  ;;  %v23913_v45 = vmul.f32 %v34858_v42, %v23881_v59 }
0x13be   :  { %27810 = vmatprep.mubr.msk.f32.mxu1 %vm57_vm0, %v24261_v5  ;;  %v24167_v37 = vsub.f32 1.0, %v24135_v39  ;;  %v23723_v23 = vmul.f32 1.0614054, %v34893_v8  ;;  %v23820_v51 = vadd.f32 1.4214138, %v23788_v14  ;;  %28787 = vpow2.f32 %v24091_v3 }
0x13bf   :  { %27811 = vmatmul.mubr.msk.f32.gmra.mrb[202].mxu1 %vm57_vm0, %v24262_v63  ;;  %v24138_v38 = vmul.f32 %v28782_v30, %v23978_v52  ;;  %v34905_v58 = vmul.f32 0.70710677, %v34888_v20  ;;  %v23945_v1 = vadd.f32 0.2548296, %v23913_v45  ;;  %v24089_v33 = vmul.f32 1.442695, %v24043_v11  ;;  %v28784_v57 = vpop.eup %28783 }
0x13c0   :  { %v24199_v62 = vmul.f32 %v24167_v37, %v23527_v43  ;;  %v23755_v54 = vadd.f32 -1.4531521, %v23723_v23  ;;  %v24232_v9 = vadd.f32 1.0, %v24200_v44  ;;  %v23852_v60 = vmul.f32 %v34876_v26, %v23820_v51 }
0x13c1   :  { %v24170_v36 = vsub.f32 1.0, %v24138_v38  ;;  %v23565_v7 = vand.u32 2147483647, %v34905_v58  ;;  %v23431_v49 = vmul.f32 0.5, %v34747_v35  ;;  %v23977_v55 = vmul.f32 %v34858_v42, %v23945_v1 }
0x13c2   :  { %v24231_v21 = vadd.f32 1.0, %v24199_v62  ;;  %v23787_v3 = vmul.f32 %v34893_v8, %v23755_v54  ;;  %v23530_v48 = vsel %vm23498_vm10, 1.0, %v36705_v25  ;;  %vm23497_vm11 = vcmp.ge.f32.partialorder %v34791_v2, 0.0 }
0x13c3   :  { %v23884_v10 = vadd.f32 -0.28449672, %v23852_v60  ;;  %v23597_v18 = vmul.f32 0.3275911, %v23565_v7  ;;  %v24137_v5 = vmul.f32 %v28784_v57, %v23977_v55  ;;  %28789 = vpow2.f32 %v24089_v33 }
0x13c4   :  { %v24263_v63 = vmul.f32 %v24231_v21, %v23431_v49  ;;  %v23819_v34 = vadd.f32 1.4214138, %v23787_v3  ;;  %v24264_v6 = vmul.f32 %v24232_v9, %v34833_v28  ;;  %v24202_v35 = vmul.f32 %v24170_v36, %v23530_v48 }
0x13c5   :  { %v23916_v4 = vmul.f32 %v34876_v26, %v23884_v10  ;;  %v23629_v42 = vadd.f32 1.0, %v23597_v18  ;;  %v24169_v40 = vsub.f32 1.0, %v24137_v5  ;;  %v24014_v15 = vsub.f32 0.0, %v34874_v31 }
0x13c6   :  { %v23851_v61 = vmul.f32 %v34893_v8, %v23819_v34  ;;  %27813 = vmatprep.mubr.msk.f32.mxu1 %vm57_vm0, %v24263_v63  ;;  %v23529_v59 = vsel %vm23497_vm11, 1.0, %v36705_v25  ;;  %v24234_v30 = vadd.f32 1.0, %v24202_v35  ;;  %v23433_v43 = vmul.f32 0.5, %v34781_v50 }
0x13c7   :  { %v34921_v39 = vpop.eup %28785  ;;  %v23948_v11 = vadd.f32 0.2548296, %v23916_v4  ;;  %28791 = vrcp.f32 %v23629_v42  ;;  %27814 = vmatmul.mubr.msk.f32.gmra.mrb[204].mxu1 %vm57_vm0, %v24264_v6  ;;  %v24201_v28 = vmul.f32 %v24169_v40, %v23529_v59  ;;  %v24046_v2 = vmul.f32 %v24014_v15, %v34874_v31 }
0x13c8   :  { %v23883_v44 = vadd.f32 -0.28449672, %v23851_v61  ;;  %v23726_v52 = vmul.f32 1.0614054, %v34921_v39  ;;  %v28788_v14 = vpop.eup %28787  ;;  %v23434_v51 = vmul.f32 0.5, %v34754_v32  ;;  %vm23500_vm12 = vcmp.ge.f32.partialorder %v34808_v41, 0.0 }
0x13c9   :  { %v23980_v37 = vmul.f32 %v34876_v26, %v23948_v11  ;;  %v24233_v45 = vadd.f32 1.0, %v24201_v28  ;;  %v24013_v57 = vsub.f32 0.0, %v23565_v7  ;;  %v24095_v49 = vmul.f32 1.442695, %v24046_v2 }
0x13ca   :  { %v23915_v23 = vmul.f32 %v34893_v8, %v23883_v44  ;;  %v23758_v38 = vadd.f32 -1.4531521, %v23726_v52  ;;  %v24266_v9 = vmul.f32 %v24234_v30, %v23434_v51  ;;  %v23532_v32 = vsel %vm23500_vm12, 1.0, %v36705_v25 }
0x13cb   :  { %v24140_v62 = vmul.f32 %v28788_v14, %v23980_v37  ;;  %v24265_v1 = vmul.f32 %v24233_v45, %v23433_v43  ;;  %vm23499_vm13 = vcmp.ge.f32.partialorder %v34828_v24, 0.0  ;;  %v24045_v48 = vmul.f32 %v24013_v57, %v23565_v7 }
0x13cc   :  { %v23947_v54 = vadd.f32 0.2548296, %v23915_v23  ;;  %v23790_v33 = vmul.f32 %v34921_v39, %v23758_v38  ;;  %28793 = vpow2.f32 %v24095_v49  ;;  %v23531_v6 = vsel %vm23499_vm13, 1.0, %v36705_v25 }
0x13cd   :  { %v24172_v50 = vsub.f32 1.0, %v24140_v62  ;;  %v28790_v36 = vpop.eup %28789  ;;  %27816 = vmatprep.mubr.msk.f32.mxu1 %vm57_vm0, %v24265_v1  ;;  %v24093_v15 = vmul.f32 1.442695, %v24045_v48  ;;  %v23435_v52 = vmul.f32 0.5, %v34819_v0  ;;  %v23436_v45 = vmul.f32 0.5, %v34795_v56 }
0x13ce   :  { %v23979_v26 = vmul.f32 %v34893_v8, %v23947_v54  ;;  %v23822_v60 = vadd.f32 1.4214138, %v23790_v33  ;;  %27817 = vmatmul.mubr.msk.f32.gmra.mrb[206].mxu1 %vm57_vm0, %v24266_v9  ;;  %vm23502_vm14 = vcmp.ge.f32.partialorder %v34865_v29, 0.0  ;;  %vm23501_vm15 = vcmp.ge.f32.partialorder %v34905_v58, 0.0 }
0x13cf   :  { %v24204_v18 = vmul.f32 %v24172_v50, %v23532_v32  ;;  %28795 = vpow2.f32 %v24093_v15  ;;  %v34992_v29 = vmul.f32 0.5, %v34855_v17  ;;  %v23533_v17 = vsel %vm23501_vm15, 1.0, %v36705_v25 }
0x13d0   :  { %v24139_v55 = vmul.f32 %v28790_v36, %v23979_v26  ;;  %v23854_v3 = vmul.f32 %v34921_v39, %v23822_v60 }
0x13d1   :  { %v34947_v10 = vpop.eup %28791  ;;  %v24236_v11 = vadd.f32 1.0, %v24204_v18  ;;  %v23437_v18 = vmul.f32 0.5, %v34888_v20 }
0x13d2   :  { %v27771_v31 = vpop.f32.mrb[208].mxu0  ;;  %v24171_v24 = vsub.f32 1.0, %v24139_v55  ;;  %v23886_v5 = vadd.f32 -0.28449672, %v23854_v3  ;;  %v23725_v34 = vmul.f32 1.0614054, %v34947_v10 }
0x13d3   :  { %v34941_v41 = vadd.f32 %v27771_v31, %v36704_v13  ;;  %v23352_v21 = vpop.f32.mrb[209].mxu0  ;;  %v24268_v54 = vmul.f32 %v24236_v11, %v23436_v45 }
0x13d4   :  { %v34945_v8 = vadd.f32 %v23352_v21, %v36704_v13  ;;  %v24203_v42 = vmul.f32 %v24171_v24, %v23531_v6  ;;  %v23918_v40 = vmul.f32 %v34921_v39, %v23886_v5  ;;  %v23757_v61 = vadd.f32 -1.4531521, %v23725_v34 }
0x13d5   :  { %v34950_v63 = vmul.f32 0.70710677, %v34941_v41  ;;  %v23534_v21 = vsel %vm23502_vm14, 1.0, %v36705_v25 }
0x13d6   :  { %v34956_v7 = vmul.f32 0.70710677, %v34945_v8  ;;  %v27774_v4 = vpop.f32.mrb[210].mxu0  ;;  %v24235_v14 = vadd.f32 1.0, %v24203_v42  ;;  %v23950_v30 = vadd.f32 0.2548296, %v23918_v40  ;;  %v23789_v43 = vmul.f32 %v34947_v10, %v23757_v61  ;;  %v28794_v60 = vpop.eup %28793 }
0x13d7   :  { %v23568_v35 = vand.u32 2147483647, %v34950_v63  ;;  %v23362_v59 = vpop.f32.mrb[211].mxu0  ;;  %v34967_v1 = vadd.f32 %v27774_v4, %v36704_v13  ;;  %v35012_v61 = vmul.f32 0.5, %v34941_v41  ;;  %v35015_v20 = vmul.f32 0.5, %v34945_v8 }
0x13d8   :  { %v34960_v44 = vand.u32 2147483647, %v34956_v7  ;;  %v24267_v51 = vmul.f32 %v24235_v14, %v23435_v52  ;;  %v23821_v62 = vadd.f32 1.4214138, %v23789_v43  ;;  %v23982_v0 = vmul.f32 %v34921_v39, %v23950_v30 }
0x13d9   :  { %v23600_v28 = vmul.f32 0.3275911, %v23568_v35  ;;  %v34973_v56 = vmul.f32 0.70710677, %v34967_v1  ;;  %v24016_v50 = vsub.f32 0.0, %v23568_v35  ;;  %v34980_v36 = vadd.f32 %v23362_v59, %v36704_v13  ;;  %v28796_v15 = vpop.eup %28795 }
0x13da   :  { %v27777_v37 = vpop.f32.mrb[212].mxu0  ;;  %v23599_v38 = vmul.f32 0.3275911, %v34960_v44  ;;  %v23853_v57 = vmul.f32 %v34947_v10, %v23821_v62  ;;  %27819 = vmatprep.mubr.msk.f32.mxu1 %vm57_vm0, %v24267_v51  ;;  %v24142_v31 = vmul.f32 %v28794_v60, %v23982_v0  ;;  %v24015_v4 = vsub.f32 0.0, %v34960_v44 }
0x13db   :  { %v23632_v23 = vadd.f32 1.0, %v23600_v28  ;;  %v23372_v2 = vpop.f32.mrb[213].mxu0  ;;  %27820 = vmatmul.mubr.msk.f32.gmra.mrb[208].mxu1 %vm57_vm0, %v24268_v54  ;;  %v34983_v39 = vadd.f32 %v27777_v37, %v36704_v13  ;;  %v34989_v32 = vand.u32 2147483647, %v34973_v56  ;;  %v34997_v3 = vmul.f32 0.70710677, %v34980_v36 }
0x13dc   :  { %v23631_v33 = vadd.f32 1.0, %v23599_v38  ;;  %v23885_v49 = vadd.f32 -0.28449672, %v23853_v57  ;;  %v24048_v24 = vmul.f32 %v24016_v50, %v23568_v35  ;;  %v24174_v40 = vsub.f32 1.0, %v24142_v31 }
0x13dd   :  { %28797 = vrcp.f32 %v23632_v23  ;;  %v23602_v58 = vmul.f32 0.3275911, %v34989_v32  ;;  %v35004_v5 = vmul.f32 0.70710677, %v34983_v39  ;;  %v23569_v42 = vand.u32 2147483647, %v34997_v3 }
0x13de   :  { %v34975_v9 = vpop.f32.mrb[214].mxu0  ;;  %28799 = vrcp.f32 %v23631_v33  ;;  %v23917_v55 = vmul.f32 %v34947_v10, %v23885_v49  ;;  %vm23504_vm1 = vcmp.ge.f32.partialorder %v34950_v63, 0.0  ;;  %vm23503_vm2 = vcmp.ge.f32.partialorder %v34956_v7, 0.0 }
0x13df   :  { %v34985_v26 = vpop.f32.mrb[215].mxu0  ;;  %v23634_v35 = vadd.f32 1.0, %v23602_v58  ;;  %v23601_v11 = vmul.f32 0.3275911, %v23569_v42  ;;  %v24099_v14 = vmul.f32 1.442695, %v24048_v24  ;;  %v35026_v8 = vadd.f32 %v23372_v2, %v36704_v13 }
0x13e0   :  { %v23949_v6 = vadd.f32 0.2548296, %v23917_v55  ;;  %v23572_v41 = vand.u32 2147483647, %v35004_v5  ;;  %v24047_v63 = vmul.f32 %v24015_v4, %v34960_v44  ;;  %v24206_v37 = vmul.f32 %v24174_v40, %v23534_v21 }
0x13e1   :  { %28801 = vrcp.f32 %v23634_v35  ;;  %v23633_v7 = vadd.f32 1.0, %v23601_v11  ;;  %v35033_v45 = vsel %vm23504_vm1, 1.0, %v36705_v25  ;;  %v35036_v23 = vsel %vm23503_vm2, 1.0, %v36705_v25 }
0x13e2   :  { %v34999_v48 = vpop.f32.mrb[216].mxu0  ;;  %v23981_v59 = vmul.f32 %v34947_v10, %v23949_v6  ;;  %v23604_v38 = vmul.f32 0.3275911, %v23572_v41  ;;  %v24018_v54 = vsub.f32 0.0, %v34989_v32  ;;  %v35045_v57 = vmul.f32 0.70710677, %v35026_v8 }
0x13e3   :  { %v35006_v34 = vpop.f32.mrb[217].mxu0  ;;  %28803 = vrcp.f32 %v23633_v7  ;;  %v24097_v31 = vmul.f32 1.442695, %v24047_v63  ;;  %v35052_v21 = vadd.f32 %v34975_v9, %v36704_v13  ;;  %v24238_v55 = vadd.f32 1.0, %v24206_v37 }
0x13e4   :  { %v24141_v43 = vmul.f32 %v28796_v15, %v23981_v59  ;;  %28805 = vpow2.f32 %v24099_v14  ;;  %v23636_v33 = vadd.f32 1.0, %v23604_v38  ;;  %v24017_v58 = vsub.f32 0.0, %v23569_v42 }
0x13e5   :  { %v24020_v40 = vsub.f32 0.0, %v23572_v41  ;;  %v35055_v35 = vand.u32 2147483647, %v35045_v57  ;;  %vm23506_vm3 = vcmp.ge.f32.partialorder %v34973_v56, 0.0  ;;  %v35061_v59 = vmul.f32 0.70710677, %v35052_v21 }
0x13e6   :  { %v35020_v28 = vpop.f32.mrb[218].mxu0  ;;  %v24173_v2 = vsub.f32 1.0, %v24141_v43  ;;  %28807 = vrcp.f32 %v23636_v33  ;;  %v24049_v7 = vmul.f32 %v24017_v58, %v23569_v42  ;;  %vm23505_vm4 = vcmp.ge.f32.partialorder %v34997_v3, 0.0 }
0x13e7   :  { %v35022_v52 = vpop.eup %28797  ;;  %v35028_v30 = vpop.f32.mrb[219].mxu0  ;;  %28809 = vpow2.f32 %v24097_v31  ;;  %v23603_v14 = vmul.f32 0.3275911, %v35055_v35  ;;  %v35069_v37 = vand.u32 2147483647, %v35061_v59  ;;  %vm23508_vm5 = vcmp.ge.f32.partialorder %v35004_v5, 0.0 }
0x13e8   :  { %v23728_v10 = vmul.f32 1.0614054, %v35022_v52  ;;  %v35038_v51 = vpop.eup %28799  ;;  %v24205_v60 = vmul.f32 %v24173_v2, %v23533_v17  ;;  %v24050_v17 = vmul.f32 %v24018_v54, %v34989_v32  ;;  %v35076_v54 = vmul.f32 0.5, %v34967_v1 }
0x13e9   :  { %v23727_v44 = vmul.f32 1.0614054, %v35038_v51  ;;  %v23635_v2 = vadd.f32 1.0, %v23603_v14  ;;  %v23606_v42 = vmul.f32 0.3275911, %v35069_v37  ;;  %v35089_v1 = vsel %vm23506_vm3, 1.0, %v36705_v25 }
0x13ea   :  { %v23760_v62 = vadd.f32 -1.4531521, %v23728_v10  ;;  %v35041_v0 = vpop.f32.mrb[220].mxu0  ;;  %v24237_v6 = vadd.f32 1.0, %v24205_v60  ;;  %v24270_v10 = vmul.f32 %v24238_v55, %v34992_v29  ;;  %v24103_v29 = vmul.f32 1.442695, %v24050_v17 }
0x13eb   :  { %v35047_v50 = vpop.f32.mrb[221].mxu0  ;;  %v23759_v24 = vadd.f32 -1.4531521, %v23727_v44  ;;  %v35065_v43 = vpop.eup %28801  ;;  %28811 = vrcp.f32 %v23635_v2  ;;  %vm23507_vm6 = vcmp.ge.f32.partialorder %v35045_v57, 0.0  ;;  %v35190_v57 = vadd.f32 %v35028_v30, %v36704_v13 }
0x13ec   :  { %v23792_v49 = vmul.f32 %v35022_v52, %v23760_v62  ;;  %v24269_v9 = vmul.f32 %v24237_v6, %v23437_v18  ;;  %v23730_v38 = vmul.f32 1.0614054, %v35065_v43  ;;  %v24052_v18 = vmul.f32 %v24020_v40, %v23572_v41 }
0x13ed   :  { %v23791_v15 = vmul.f32 %v35038_v51, %v23759_v24  ;;  %v35079_v44 = vpop.eup %28803  ;;  %v35084_v41 = vadd.f32 %v34985_v26, %v36704_v13  ;;  %v23638_v24 = vadd.f32 1.0, %v23606_v42  ;;  %vm23510_vm7 = vcmp.ge.f32.partialorder %v35061_v59, 0.0 }
0x13ee   :  { %v23824_v4 = vadd.f32 1.4214138, %v23792_v49  ;;  %27822 = vmatprep.mubr.msk.f32.mxu1 %vm57_vm0, %v24269_v9  ;;  %v23762_v60 = vadd.f32 -1.4531521, %v23730_v38  ;;  %v28806_v49 = vpop.eup %28805  ;;  %v23729_v55 = vmul.f32 1.0614054, %v35079_v44 }
0x13ef   :  { %v23823_v63 = vadd.f32 1.4214138, %v23791_v15  ;;  %27823 = vmatmul.mubr.msk.f32.gmra.mrb[210].mxu1 %vm57_vm0, %v24270_v10  ;;  %v24107_v40 = vmul.f32 1.442695, %v24052_v18  ;;  %v24019_v9 = vsub.f32 0.0, %v35055_v35  ;;  %28813 = vrcp.f32 %v23638_v24 }
0x13f0   :  { %v23856_v11 = vmul.f32 %v35022_v52, %v23824_v4  ;;  %v23794_v6 = vmul.f32 %v35065_v43, %v23762_v60  ;;  %v24101_v4 = vmul.f32 1.442695, %v24049_v7  ;;  %v35093_v15 = vpop.eup %28807  ;;  %v23761_v17 = vadd.f32 -1.4531521, %v23729_v55 }
0x13f1   :  { %v23855_v62 = vmul.f32 %v35038_v51, %v23823_v63  ;;  %v23732_v14 = vmul.f32 1.0614054, %v35093_v15  ;;  %v35100_v10 = vmul.f32 0.70710677, %v35084_v41  ;;  %28815 = vpow2.f32 %v24103_v29  ;;  %v28810_v38 = vpop.eup %28809 }
0x13f2   :  { %v23888_v32 = vadd.f32 -0.28449672, %v23856_v11  ;;  %v23826_v11 = vadd.f32 1.4214138, %v23794_v6  ;;  %v35103_v7 = vmul.f32 0.5, %v34980_v36  ;;  %28817 = vpow2.f32 %v24101_v4 }
0x13f3   :  { %v23887_v31 = vadd.f32 -0.28449672, %v23855_v62  ;;  %v23764_v62 = vadd.f32 -1.4531521, %v23732_v14  ;;  %28819 = vpow2.f32 %v24107_v40  ;;  %v24051_v36 = vmul.f32 %v24019_v9, %v35055_v35 }
0x13f4   :  { %v23920_v33 = vmul.f32 %v35022_v52, %v23888_v32  ;;  %v23793_v32 = vmul.f32 %v35079_v44, %v23761_v17  ;;  %v23858_v2 = vmul.f32 %v35065_v43, %v23826_v11  ;;  %vm23509_vm8 = vcmp.ge.f32.partialorder %v35100_v10, 0.0 }
0x13f5   :  { %v23919_v26 = vmul.f32 %v35038_v51, %v23887_v31  ;;  %v23796_v29 = vmul.f32 %v35093_v15, %v23764_v62  ;;  %v35113_v6 = vpop.eup %28811 }
0x13f6   :  { %v23952_v58 = vadd.f32 0.2548296, %v23920_v33  ;;  %v23825_v42 = vadd.f32 1.4214138, %v23793_v32  ;;  %v23573_v33 = vand.u32 2147483647, %v35100_v10 }
0x13f7   :  { %v23951_v63 = vadd.f32 0.2548296, %v23919_v26  ;;  %v23890_v31 = vadd.f32 -0.28449672, %v23858_v2  ;;  %v23828_v40 = vadd.f32 1.4214138, %v23796_v29  ;;  %v35120_v26 = vadd.f32 %v34999_v48, %v36704_v13 }
0x13f8   :  { %v23984_v56 = vmul.f32 %v35022_v52, %v23952_v58  ;;  %v23857_v24 = vmul.f32 %v35079_v44, %v23825_v42  ;;  %v23605_v58 = vmul.f32 0.3275911, %v23573_v33  ;;  %v23731_v9 = vmul.f32 1.0614054, %v35113_v6 }
0x13f9   :  { %v23983_v52 = vmul.f32 %v35038_v51, %v23951_v63  ;;  %v23922_v4 = vmul.f32 %v35065_v43, %v23890_v31  ;;  %v23860_v14 = vmul.f32 %v35093_v15, %v23828_v40  ;;  %v24105_v63 = vmul.f32 1.442695, %v24051_v36 }
0x13fa   :  { %v24144_v18 = vmul.f32 %v28806_v49, %v23984_v56  ;;  %v24022_v49 = vsub.f32 0.0, %v35069_v37  ;;  %v23889_v17 = vadd.f32 -0.28449672, %v23857_v24  ;;  %v23637_v56 = vadd.f32 1.0, %v23605_v58 }
0x13fb   :  { %v24143_v55 = vmul.f32 %v28810_v38, %v23983_v52  ;;  %v23954_v11 = vadd.f32 0.2548296, %v23922_v4  ;;  %v24021_v32 = vsub.f32 0.0, %v23573_v33  ;;  %v23763_v2 = vadd.f32 -1.4531521, %v23731_v9 }
0x13fc   :  { %v24176_v60 = vsub.f32 1.0, %v24144_v18  ;;  %v23921_v18 = vmul.f32 %v35079_v44, %v23889_v17  ;;  %28821 = vrcp.f32 %v23637_v56  ;;  %v23892_v52 = vadd.f32 -0.28449672, %v23860_v14 }
0x13fd   :  { %v24175_v35 = vsub.f32 1.0, %v24143_v55  ;;  %v23986_v62 = vmul.f32 %v35065_v43, %v23954_v11  ;;  %v23795_v36 = vmul.f32 %v35113_v6, %v23763_v2  ;;  %v35132_v55 = vmul.f32 0.70710677, %v35120_v26 }
0x13fe   :  { %v24208_v51 = vmul.f32 %v24176_v60, %v35033_v45  ;;  %v35124_v45 = vpop.eup %28813  ;;  %v23953_v29 = vadd.f32 0.2548296, %v23921_v18  ;;  %v23924_v58 = vmul.f32 %v35093_v15, %v23892_v52  ;;  %28823 = vpow2.f32 %v24105_v63 }
0x13ff   :  { %v24207_v38 = vmul.f32 %v24175_v35, %v35036_v23  ;;  %v23734_v42 = vmul.f32 1.0614054, %v35124_v45  ;;  %v28816_v60 = vpop.eup %28815  ;;  %v23827_v17 = vadd.f32 1.4214138, %v23795_v36  ;;  %v24053_v2 = vmul.f32 %v24021_v32, %v23573_v33 }
0x1400   :  { %v24240_v48 = vadd.f32 1.0, %v24208_v51  ;;  %v28818_v24 = vpop.eup %28817  ;;  %v24146_v23 = vmul.f32 %v28816_v60, %v23986_v62  ;;  %v24054_v51 = vmul.f32 %v24022_v49, %v35069_v37  ;;  %v23985_v35 = vmul.f32 %v35079_v44, %v23953_v29 }
0x1401   :  { %v24239_v31 = vadd.f32 1.0, %v24207_v38  ;;  %v23766_v4 = vadd.f32 -1.4531521, %v23734_v42  ;;  %v28820_v40 = vpop.eup %28819  ;;  %v23956_v11 = vadd.f32 0.2548296, %v23924_v58  ;;  %v23859_v18 = vmul.f32 %v35113_v6, %v23827_v17 }
0x1402   :  { %v24272_v9 = vmul.f32 %v24240_v48, %v35012_v61  ;;  %v24178_v56 = vsub.f32 1.0, %v24146_v23  ;;  %v24145_v38 = vmul.f32 %v28818_v24, %v23985_v35  ;;  %v35142_v62 = vand.u32 2147483647, %v35132_v55 }
0x1403   :  { %v24271_v43 = vmul.f32 %v24239_v31, %v35015_v20  ;;  %v23798_v14 = vmul.f32 %v35124_v45, %v23766_v4  ;;  %v23988_v37 = vmul.f32 %v35093_v15, %v23956_v11  ;;  %v24111_v49 = vmul.f32 1.442695, %v24054_v51 }
0x1404   :  { %v24210_v20 = vmul.f32 %v24178_v56, %v35089_v1  ;;  %v23537_v61 = vsel %vm23505_vm4, 1.0, %v36705_v25  ;;  %v24177_v63 = vsub.f32 1.0, %v24145_v38  ;;  %v23891_v48 = vadd.f32 -0.28449672, %v23859_v18 }
0x1405   :  { %27825 = vmatprep.mubr.msk.f32.mxu1 %vm57_vm0, %v24271_v43  ;;  %v23830_v44 = vadd.f32 1.4214138, %v23798_v14  ;;  %v23608_v33 = vmul.f32 0.3275911, %v35142_v62  ;;  %v24148_v32 = vmul.f32 %v28820_v40, %v23988_v37  ;;  %v35156_v1 = vadd.f32 %v35006_v34, %v36704_v13 }
0x1406   :  { %27826 = vmatmul.mubr.msk.f32.gmra.mrb[212].mxu1 %vm57_vm0, %v24272_v9  ;;  %v35158_v15 = vpop.eup %28821  ;;  %v24209_v42 = vmul.f32 %v24177_v63, %v23537_v61  ;;  %v23923_v60 = vmul.f32 %v35113_v6, %v23891_v48  ;;  %v24109_v3 = vmul.f32 1.442695, %v24053_v2  ;;  %v24242_v29 = vadd.f32 1.0, %v24210_v20 }
0x1407   :  { %v23862_v52 = vmul.f32 %v35124_v45, %v23830_v44  ;;  %v23640_v31 = vadd.f32 1.0, %v23608_v33  ;;  %28825 = vpow2.f32 %v24111_v49  ;;  %v23733_v24 = vmul.f32 1.0614054, %v35158_v15 }
0x1408   :  { %v24241_v23 = vadd.f32 1.0, %v24209_v42  ;;  %v23955_v58 = vadd.f32 0.2548296, %v23923_v60  ;;  %v35164_v4 = vadd.f32 %v35020_v28, %v36704_v13  ;;  %v24180_v34 = vsub.f32 1.0, %v24148_v32  ;;  %v28824_v35 = vpop.eup %28823 }
0x1409   :  { %v23894_v36 = vadd.f32 -0.28449672, %v23862_v52  ;;  %28827 = vrcp.f32 %v23640_v31  ;;  %v23765_v40 = vadd.f32 -1.4531521, %v23733_v24  ;;  %v35168_v43 = vmul.f32 0.70710677, %v35156_v1 }
0x140a   :  { %v24273_v17 = vmul.f32 %v24241_v23, %v35103_v7  ;;  %v23987_v9 = vmul.f32 %v35113_v6, %v23955_v58  ;;  %v24274_v56 = vmul.f32 %v24242_v29, %v35076_v54  ;;  %v23540_v11 = vsel %vm23508_vm5, 1.0, %v36705_v25 }
0x140b   :  { %v23926_v51 = vmul.f32 %v35124_v45, %v23894_v36  ;;  %v23797_v14 = vmul.f32 %v35158_v15, %v23765_v40  ;;  %v35179_v18 = vand.u32 2147483647, %v35168_v43  ;;  %v35182_v2 = vmul.f32 0.70710677, %v35164_v4 }
0x140c   :  { %v24147_v38 = vmul.f32 %v28824_v35, %v23987_v9  ;;  %27828 = vmatprep.mubr.msk.f32.mxu1 %vm57_vm0, %v24273_v17  ;;  %v24212_v7 = vmul.f32 %v24180_v34, %v23540_v11  ;;  %28829 = vpow2.f32 %v24109_v3  ;;  %v23539_v37 = vsel %vm23507_vm6, 1.0, %v36705_v25 }
0x140d   :  { %v23958_v28 = vadd.f32 0.2548296, %v23926_v51  ;;  %v23829_v54 = vadd.f32 1.4214138, %v23797_v14  ;;  %27829 = vmatmul.mubr.msk.f32.gmra.mrb[214].mxu1 %vm57_vm0, %v24274_v56  ;;  %v23607_v20 = vmul.f32 0.3275911, %v35179_v18  ;;  %v35212_v17 = vadd.f32 %v35041_v0, %v36704_v13 }
0x140e   :  { %v24179_v5 = vsub.f32 1.0, %v24147_v38  ;;  %v24024_v49 = vsub.f32 0.0, %v35142_v62  ;;  %v23578_v61 = vand.u32 2147483647, %v35182_v2  ;;  %v23444_v63 = vmul.f32 0.5, %v34983_v39 }
0x140f   :  { %v23990_v6 = vmul.f32 %v35124_v45, %v23958_v28  ;;  %v23861_v44 = vmul.f32 %v35158_v15, %v23829_v54  ;;  %v23639_v33 = vadd.f32 1.0, %v23607_v20  ;;  %v24244_v45 = vadd.f32 1.0, %v24212_v7 }
0x1410   :  { %v24211_v48 = vmul.f32 %v24179_v5, %v23539_v37  ;;  %v23443_v52 = vmul.f32 0.5, %v35026_v8  ;;  %v23610_v60 = vmul.f32 0.3275911, %v23578_v61  ;;  %v35201_v29 = vmul.f32 0.70710677, %v35190_v57 }
0x1411   :  { %v28826_v32 = vpop.eup %28825  ;;  %v23893_v42 = vadd.f32 -0.28449672, %v23861_v44  ;;  %28831 = vrcp.f32 %v23639_v33  ;;  %v24056_v24 = vmul.f32 %v24024_v49, %v35142_v62  ;;  %v24276_v8 = vmul.f32 %v24244_v45, %v23444_v63 }
0x1412   :  { %v24243_v3 = vadd.f32 1.0, %v24211_v48  ;;  %v24150_v31 = vmul.f32 %v28826_v32, %v23990_v6  ;;  %v23642_v23 = vadd.f32 1.0, %v23610_v60  ;;  %v35208_v35 = vand.u32 2147483647, %v35201_v29 }
0x1413   :  { %v35198_v30 = vpop.eup %28827  ;;  %v23925_v36 = vmul.f32 %v35158_v15, %v23893_v42  ;;  %v24115_v59 = vmul.f32 1.442695, %v24056_v24  ;;  %v35219_v11 = vadd.f32 %v35047_v50, %v36704_v13  ;;  %v23542_v28 = vsel %vm23510_vm7, 1.0, %v36705_v25 }
0x1414   :  { %v23736_v39 = vmul.f32 1.0614054, %v35198_v30  ;;  %v24275_v58 = vmul.f32 %v24243_v3, %v23443_v52  ;;  %28833 = vrcp.f32 %v23642_v23  ;;  %v24182_v40 = vsub.f32 1.0, %v24150_v31 }
0x1415   :  { %v23957_v34 = vadd.f32 0.2548296, %v23925_v36  ;;  %v24023_v14 = vsub.f32 0.0, %v35179_v18  ;;  %v23609_v0 = vmul.f32 0.3275911, %v35208_v35  ;;  %v24026_v5 = vsub.f32 0.0, %v23578_v61 }
0x1416   :  { %v23768_v51 = vadd.f32 -1.4531521, %v23736_v39  ;;  %27831 = vmatprep.mubr.msk.f32.mxu1 %vm57_vm0, %v24275_v58  ;;  %v28830_v9 = vpop.eup %28829  ;;  %v24214_v54 = vmul.f32 %v24182_v40, %v23542_v28  ;;  %v35230_v13 = vmul.f32 0.70710677, %v35219_v11  ;;  %28835 = vpow2.f32 %v24115_v59 }
0x1417   :  { %v23989_v62 = vmul.f32 %v35158_v15, %v23957_v34  ;;  %27832 = vmatmul.mubr.msk.f32.gmra.mrb[216].mxu1 %vm57_vm0, %v24276_v8  ;;  %v35227_v15 = vmul.f32 0.70710677, %v35212_v17  ;;  %v23641_v6 = vadd.f32 1.0, %v23609_v0  ;;  %v23446_v10 = vmul.f32 0.5, %v35052_v21 }
0x1418   :  { %v23800_v56 = vmul.f32 %v35198_v30, %v23768_v51  ;;  %v23541_v49 = vsel %vm23509_vm8, 1.0, %v36705_v25  ;;  %v24055_v63 = vmul.f32 %v24023_v14, %v35179_v18  ;;  %v24246_v52 = vadd.f32 1.0, %v24214_v54 }
0x1419   :  { %v24149_v38 = vmul.f32 %v28830_v9, %v23989_v62  ;;  %v23580_v37 = vand.u32 2147483647, %v35227_v15  ;;  %28837 = vrcp.f32 %v23641_v6  ;;  %v23445_v42 = vmul.f32 0.5, %v35084_v41 }
0x141a   :  { %v23832_v7 = vadd.f32 1.4214138, %v23800_v56  ;;  %v24058_v60 = vmul.f32 %v24026_v5, %v23578_v61  ;;  %v23579_v3 = vand.u32 2147483647, %v35230_v13  ;;  %v24113_v23 = vmul.f32 1.442695, %v24055_v63 }
0x141b   :  { %v24181_v50 = vsub.f32 1.0, %v24149_v38  ;;  %v28832_v44 = vpop.eup %28831  ;;  %v23612_v45 = vmul.f32 0.3275911, %v23580_v37  ;;  %v24278_v40 = vmul.f32 %v24246_v52, %v23446_v10  ;;  %v24025_v41 = vsub.f32 0.0, %v35208_v35 }
0x141c   :  { %v23864_v20 = vmul.f32 %v35198_v30, %v23832_v7  ;;  %v23735_v32 = vmul.f32 1.0614054, %v28832_v44  ;;  %v23611_v18 = vmul.f32 0.3275911, %v23579_v3  ;;  %v24119_v56 = vmul.f32 1.442695, %v24058_v60 }
0x141d   :  { %v24213_v48 = vmul.f32 %v24181_v50, %v23541_v49  ;;  %v23644_v24 = vadd.f32 1.0, %v23612_v45  ;;  %v24057_v54 = vmul.f32 %v24025_v41, %v35208_v35  ;;  %v24028_v50 = vsub.f32 0.0, %v23580_v37 }
0x141e   :  { %v23896_v33 = vadd.f32 -0.28449672, %v23864_v20  ;;  %v28834_v31 = vpop.eup %28833  ;;  %v23767_v21 = vadd.f32 -1.4531521, %v23735_v32  ;;  %v23643_v61 = vadd.f32 1.0, %v23611_v18  ;;  %vm23512_vm9 = vcmp.ge.f32.partialorder %v35132_v55, 0.0 }
0x141f   :  { %v24245_v36 = vadd.f32 1.0, %v24213_v48  ;;  %v23738_v58 = vmul.f32 1.0614054, %v28834_v31  ;;  %28839 = vrcp.f32 %v23644_v24  ;;  %v24117_v48 = vmul.f32 1.442695, %v24057_v54 }
0x1420   :  { %v23928_v39 = vmul.f32 %v35198_v30, %v23896_v33  ;;  %v23799_v51 = vmul.f32 %v28832_v44, %v23767_v21  ;;  %28841 = vpow2.f32 %v24113_v23  ;;  %v28836_v14 = vpop.eup %28835  ;;  %v24060_v52 = vmul.f32 %v24028_v50, %v23580_v37 }
0x1421   :  { %v24277_v8 = vmul.f32 %v24245_v36, %v23445_v42  ;;  %v23770_v9 = vadd.f32 -1.4531521, %v23738_v58  ;;  %28843 = vrcp.f32 %v23643_v61  ;;  %v24027_v42 = vsub.f32 0.0, %v23579_v3 }
0x1422   :  { %v23960_v34 = vadd.f32 0.2548296, %v23928_v39  ;;  %v23831_v62 = vadd.f32 1.4214138, %v23799_v51  ;;  %28845 = vpow2.f32 %v24119_v56  ;;  %v23544_v39 = vsel %vm23512_vm9, 1.0, %v36705_v25 }
0x1423   :  { %27834 = vmatprep.mubr.msk.f32.mxu1 %vm57_vm0, %v24277_v8  ;;  %v23802_v28 = vmul.f32 %v28834_v31, %v23770_v9  ;;  %v28838_v38 = vpop.eup %28837  ;;  %vm23511_vm10 = vcmp.ge.f32.partialorder %v35168_v43, 0.0  ;;  %28847 = vpow2.f32 %v24117_v48  ;;  %v24123_v51 = vmul.f32 1.442695, %v24060_v52 }
0x1424   :  { %v23992_v59 = vmul.f32 %v35198_v30, %v23960_v34  ;;  %27835 = vmatmul.mubr.msk.f32.gmra.mrb[218].mxu1 %vm57_vm0, %v24278_v40  ;;  %v23863_v0 = vmul.f32 %v28832_v44, %v23831_v62  ;;  %v23737_v6 = vmul.f32 1.0614054, %v28838_v38  ;;  %v24059_v37 = vmul.f32 %v24027_v42, %v23579_v3 }
0x1425   :  { %v23834_v7 = vadd.f32 1.4214138, %v23802_v28  ;;  %28849 = vpow2.f32 %v24123_v51  ;;  %v23448_v50 = vmul.f32 0.5, %v35120_v26  ;;  %vm23514_vm11 = vcmp.ge.f32.partialorder %v35182_v2, 0.0 }
0x1426   :  { %v23895_v5 = vadd.f32 -0.28449672, %v23863_v0  ;;  %v24152_v20 = vmul.f32 %v28836_v14, %v23992_v59  ;;  %v23769_v63 = vadd.f32 -1.4531521, %v23737_v6  ;;  %v23543_v59 = vsel %vm23511_vm10, 1.0, %v36705_v25 }
0x1427   :  { %v23866_v10 = vmul.f32 %v28834_v31, %v23834_v7  ;;  %vm23513_vm12 = vcmp.ge.f32.partialorder %v35201_v29, 0.0  ;;  %v23449_v29 = vmul.f32 0.5, %v35190_v57  ;;  %vm23516_vm13 = vcmp.ge.f32.partialorder %v35227_v15, 0.0 }
0x1428   :  { %v23927_v49 = vmul.f32 %v28832_v44, %v23895_v5  ;;  %v23801_v45 = vmul.f32 %v28838_v38, %v23769_v63  ;;  %v24184_v60 = vsub.f32 1.0, %v24152_v20  ;;  %v24121_v5 = vmul.f32 1.442695, %v24059_v37 }
0x1429   :  { %v23898_v30 = vadd.f32 -0.28449672, %v23866_v10  ;;  %v35246_v33 = vpop.eup %28839  ;;  %v23447_v20 = vmul.f32 0.5, %v35156_v1  ;;  %v23450_v37 = vmul.f32 0.5, %v35164_v4  ;;  %vm23515_vm14 = vcmp.ge.f32.partialorder %v35230_v13, 0.0 }
0x142a   :  { %v23959_v32 = vadd.f32 0.2548296, %v23927_v49  ;;  %v23740_v36 = vmul.f32 1.0614054, %v35246_v33  ;;  %v23833_v24 = vadd.f32 1.4214138, %v23801_v45  ;;  %v28842_v23 = vpop.eup %28841  ;;  %v24216_v40 = vmul.f32 %v24184_v60, %v23544_v39 }
0x142b   :  { %v23930_v35 = vmul.f32 %v28834_v31, %v23898_v30  ;;  %v28844_v18 = vpop.eup %28843  ;;  %28851 = vpow2.f32 %v24121_v5  ;;  %v23547_v57 = vsel %vm23515_vm14, 1.0, %v36705_v25 }
0x142c   :  { %v23991_v21 = vmul.f32 %v28832_v44, %v23959_v32  ;;  %v23772_v58 = vadd.f32 -1.4531521, %v23740_v36  ;;  %v23865_v34 = vmul.f32 %v28838_v38, %v23833_v24  ;;  %v23739_v61 = vmul.f32 1.0614054, %v28844_v18  ;;  %v28846_v62 = vpop.eup %28845 }
0x142d   :  { %v23962_v55 = vadd.f32 0.2548296, %v23930_v35  ;;  %v24248_v3 = vadd.f32 1.0, %v24216_v40  ;;  %v28848_v45 = vpop.eup %28847  ;;  %v23546_v35 = vsel %vm23514_vm11, 1.0, %v36705_v25 }
0x142e   :  { %v24151_v8 = vmul.f32 %v28842_v23, %v23991_v21  ;;  %v23804_v41 = vmul.f32 %v35246_v33, %v23772_v58  ;;  %v23897_v44 = vadd.f32 -0.28449672, %v23865_v34  ;;  %v23771_v0 = vadd.f32 -1.4531521, %v23739_v61 }
0x142f   :  { %v23994_v9 = vmul.f32 %v28834_v31, %v23962_v55  ;;  %v24280_v52 = vmul.f32 %v24248_v3, %v23448_v50  ;;  %v28850_v23 = vpop.eup %28849 }
0x1430   :  { %v24183_v56 = vsub.f32 1.0, %v24151_v8  ;;  %v23836_v14 = vadd.f32 1.4214138, %v23804_v41  ;;  %v23929_v54 = vmul.f32 %v28838_v38, %v23897_v44  ;;  %v23803_v6 = vmul.f32 %v28844_v18, %v23771_v0 }
0x1431   :  { %v24154_v28 = vmul.f32 %v28846_v62, %v23994_v9 }
0x1432   :  { %v24215_v7 = vmul.f32 %v24183_v56, %v23543_v59  ;;  %v23868_v31 = vmul.f32 %v35246_v33, %v23836_v14  ;;  %v23961_v49 = vadd.f32 0.2548296, %v23929_v54  ;;  %v23835_v30 = vadd.f32 1.4214138, %v23803_v6  ;;  %v36706_v54 = vld [vmem:[#allocation3_spill] sm:$0xff] }
0x1433   :  { %v24186_v43 = vsub.f32 1.0, %v24154_v28  ;;  %v23452_v14 = vmul.f32 0.5, %v35212_v17 }
0x1434   :  { %v24247_v10 = vadd.f32 1.0, %v24215_v7  ;;  %v23900_v63 = vadd.f32 -0.28449672, %v23868_v31  ;;  %v23993_v32 = vmul.f32 %v28838_v38, %v23961_v49  ;;  %v23867_v60 = vmul.f32 %v28844_v18, %v23835_v30 }
0x1435   :  { %v24218_v1 = vmul.f32 %v24186_v43, %v23546_v35  ;;  %v23545_v38 = vsel %vm23513_vm12, 1.0, %v36705_v25  ;;  %v28852_v41 = vpop.eup %28851 }
0x1436   :  { %v24279_v48 = vmul.f32 %v24247_v10, %v23447_v20  ;;  %v23932_v42 = vmul.f32 %v35246_v33, %v23900_v63  ;;  %v24153_v26 = vmul.f32 %v28848_v45, %v23993_v32  ;;  %v23899_v36 = vadd.f32 -0.28449672, %v23867_v60 }
0x1437   :  { %v24250_v58 = vadd.f32 1.0, %v24218_v1 }
0x1438   :  { %27837 = vmatprep.mubr.msk.f32.mxu1 %vm57_vm0, %v24279_v48  ;;  %v23964_v2 = vadd.f32 0.2548296, %v23932_v42  ;;  %v24185_v39 = vsub.f32 1.0, %v24153_v26  ;;  %v23931_v24 = vmul.f32 %v28844_v18, %v23899_v36 }
0x1439   :  { %27838 = vmatmul.mubr.msk.f32.gmra.mrb[220].mxu1 %vm57_vm0, %v24280_v52  ;;  %v24282_v62 = vmul.f32 %v24250_v58, %v23450_v37 }
0x143a   :  { %v23996_v21 = vmul.f32 %v35246_v33, %v23964_v2  ;;  %v24217_v55 = vmul.f32 %v24185_v39, %v23545_v38  ;;  %v23963_v34 = vadd.f32 0.2548296, %v23931_v24  ;;  %v23548_v33 = vsel %vm23516_vm13, 1.0, %v36705_v25 }
0x143c   :  { %v24156_v8 = vmul.f32 %v28850_v23, %v23996_v21  ;;  %v24249_v51 = vadd.f32 1.0, %v24217_v55  ;;  %v23995_v9 = vmul.f32 %v28844_v18, %v23963_v34  ;;  %v23451_v18 = vmul.f32 0.5, %v35219_v11  ;;  %v36707_v23 = vld [vmem:[#allocation90_spill] sm:$0xff]  ;;  %v36708_v55 = vld [vmem:[#allocation84_spill] sm:$0xff] }
0x143e   :  { %v24188_v40 = vsub.f32 1.0, %v24156_v8  ;;  %v24281_v61 = vmul.f32 %v24249_v51, %v23449_v29  ;;  %v24155_v56 = vmul.f32 %v28852_v41, %v23995_v9  ;;  %v36710_v41 = vld [vmem:[#allocation96_spill] sm:$0xff] }
0x1440   :  { %v24220_v44 = vmul.f32 %v24188_v40, %v23548_v33  ;;  %27840 = vmatprep.mubr.msk.f32.mxu1 %vm57_vm0, %v24281_v61  ;;  %v24187_v59 = vsub.f32 1.0, %v24155_v56  ;;  %v36709_v40 = vld [vmem:[#allocation102_spill] sm:$0xff] }
0x1441   :  { %27841 = vmatmul.mubr.msk.f32.gmra.mrb[222].mxu1 %vm57_vm0, %v24282_v62 }
0x1442   :  { %v24219_v15 = vmul.f32 %v24187_v59, %v23547_v57  ;;  %v24252_v4 = vadd.f32 1.0, %v24220_v44 }
0x1444   :  { %v24251_v28 = vadd.f32 1.0, %v24219_v15  ;;  %v24284_v7 = vmul.f32 %v24252_v4, %v23452_v14  ;;  %v36711_v15 = vld [vmem:[#allocation114_spill] sm:$0xff] }
0x1446   :  { %v24283_v0 = vmul.f32 %v24251_v28, %v23451_v18  ;;  %v36712_v18 = vld [vmem:[#allocation108_spill] sm:$0xff] }
0x1448   :  { %27843 = vmatprep.mubr.msk.f32.mxu1 %vm57_vm0, %v24283_v0 }
0x1449   :  { %27844 = vmatmul.mubr.msk.f32.gmra.mrb[224].mxu1 %vm57_vm0, %v24284_v7 }
0x1460   :  { %v27800_v13 = vpop.f32.mrb[194].mxu1 }
0x1461   :  { %v24461_v5 = vadd.f32 %v27800_v13, %v36706_v54  ;;  %v24455_v3 = vpop.f32.mrb[195].mxu1 }
0x1462   :  { %v24456_v31 = vadd.f32 %v24455_v3, %v36706_v54 }
0x1463   :  { %v35281_v25 = vadd.f32 %v24461_v5, %v33966_v53 }
0x1464   :  { %v35284_v11 = vadd.f32 %v24456_v31, %v33971_v12  ;;  %v36713_v31 = vld [vmem:[#allocation120_spill] sm:$0xff] }
0x1465   :  { %v24649_v17 = vsel %vm57_vm0, %v35281_v25, 0.0  ;;  %v27803_v50 = vpop.f32.mrb[196].mxu1 }
0x1466   :  { %24650 = vadd.xlane.f32.xlu0 %v24649_v17  ;;  %v24646_v6 = vsel %vm57_vm0, %v35284_v11, 0.0  ;;  %v24471_v20 = vadd.f32 %v27803_v50, %v36706_v54  ;;  %v24465_v10 = vpop.f32.mrb[197].mxu1 }
0x1467   :  { %24647 = vadd.xlane.f32.xlu1 %v24646_v6  ;;  %v24466_v49 = vadd.f32 %v24465_v10, %v36706_v54  ;;  %v36714_v6 = vld [vmem:[#allocation126_spill] sm:$0xff] }
0x1468   :  { %v35293_v53 = vadd.f32 %v24471_v20, %v33987_v46 }
0x1469   :  { %v35296_v12 = vadd.f32 %v24466_v49, %v33982_v19 }
0x146a   :  { %v27806_v43 = vpop.f32.mrb[198].mxu1  ;;  %v24655_v63 = vsel %vm57_vm0, %v35293_v53, 0.0 }
0x146b   :  { %v24481_v30 = vadd.f32 %v27806_v43, %v36706_v54  ;;  %v24475_v48 = vpop.f32.mrb[199].mxu1  ;;  %24656 = vadd.xlane.f32.xlu0 %v24655_v63  ;;  %v24652_v32 = vsel %vm57_vm0, %v35296_v12, 0.0 }
0x146c   :  { %v24476_v45 = vadd.f32 %v24475_v48, %v36706_v54  ;;  %24653 = vadd.xlane.f32.xlu1 %v24652_v32  ;;  %v36715_v48 = vld [vmem:[#allocation166_spill] sm:$0xff] }
0x146d   :  { %v35305_v46 = vadd.f32 %v24481_v30, %v34003_v27 }
0x146e   :  { %v35308_v19 = vadd.f32 %v24476_v45, %v33996_v47  ;;  %v36716_v45 = vld [vmem:[#allocation142_spill] sm:$0xff] }
0x146f   :  { %v24661_v52 = vsel %vm57_vm0, %v35305_v46, 0.0 }
0x1470   :  { %24662 = vadd.xlane.f32.xlu0 %v24661_v52  ;;  %v24658_v42 = vsel %vm57_vm0, %v35308_v19, 0.0 }
0x1471   :  { %24659 = vadd.xlane.f32.xlu1 %v24658_v42 }
0x1474   :  { %v27809_v60 = vpop.f32.mrb[200].mxu1 }
0x1475   :  { %v24491_v35 = vadd.f32 %v27809_v60, %v36706_v54  ;;  %v24485_v26 = vpop.f32.mrb[201].mxu1 }
0x1476   :  { %v24486_v1 = vadd.f32 %v24485_v26, %v36706_v54 }
0x1477   :  { %v35317_v27 = vadd.f32 %v24491_v35, %v34018_v16 }
0x1478   :  { %v35320_v47 = vadd.f32 %v24486_v1, %v34012_v22 }
0x1479   :  { %v24667_v2 = vsel %vm57_vm0, %v35317_v27, 0.0 }
0x147a   :  { %24668 = vadd.xlane.f32.xlu0 %v24667_v2  ;;  %v24664_v36 = vsel %vm57_vm0, %v35320_v47, 0.0 }
0x147b   :  { %24665 = vadd.xlane.f32.xlu1 %v24664_v36  ;;  %v36717_v36 = vld [vmem:[#allocation154_spill] sm:$0xff] }
0x1492   :  { %v27812_v39 = vpop.f32.mrb[202].mxu1 }
0x1493   :  { %v24501_v38 = vadd.f32 %v27812_v39, %v36706_v54  ;;  %v24495_v21 = vpop.f32.mrb[203].mxu1 }
0x1494   :  { %v24496_v24 = vadd.f32 %v24495_v21, %v36706_v54 }
0x1495   :  { %v35329_v16 = vadd.f32 %v24501_v38, %v36707_v23  ;;  %v36718_v38 = vld [vmem:[#allocation48_spill] sm:$0xff] }
0x1496   :  { %v35332_v22 = vadd.f32 %v24496_v24, %v36708_v55 }
0x1497   :  { %v24673_v58 = vsel %vm57_vm0, %v35329_v16, 0.0 }
0x1498   :  { %24674 = vadd.xlane.f32.xlu0 %v24673_v58  ;;  %v24670_v8 = vsel %vm57_vm0, %v35332_v22, 0.0 }
0x1499   :  { %24671 = vadd.xlane.f32.xlu1 %v24670_v8 }
0x149a   :  { %v27815_v34 = vpop.f32.mrb[204].mxu1 }
0x149b   :  { %v24511_v29 = vadd.f32 %v27815_v34, %v36706_v54  ;;  %v24505_v51 = vpop.f32.mrb[205].mxu1 }
0x149c   :  { %v24506_v37 = vadd.f32 %v24505_v51, %v36706_v54 }
0x149d   :  { %v35341_v9 = vadd.f32 %v24511_v29, %v36709_v40  ;;  %v36719_v29 = vld [vmem:[#allocation167_spill] sm:$0xff] }
0x149e   :  { %v35344_v61 = vadd.f32 %v24506_v37, %v36710_v41  ;;  %v36720_v37 = vld [vmem:[#allocation143_spill] sm:$0xff] }
0x149f   :  { %v24679_v62 = vsel %vm57_vm0, %v35341_v9, 0.0 }
0x14a0   :  { %24680 = vadd.xlane.f32.xlu0 %v24679_v62  ;;  %v24676_v33 = vsel %vm57_vm0, %v35344_v61, 0.0 }
0x14a1   :  { %24677 = vadd.xlane.f32.xlu1 %v24676_v33  ;;  %v27818_v56 = vpop.f32.mrb[206].mxu1 }
0x14a2   :  { %v24521_v44 = vadd.f32 %v27818_v56, %v36706_v54  ;;  %v24515_v59 = vpop.f32.mrb[207].mxu1 }
0x14a3   :  { %v24516_v57 = vadd.f32 %v24515_v59, %v36706_v54 }
0x14a4   :  { %v35353_v4 = vadd.f32 %v24521_v44, %v36711_v15 }
0x14a5   :  { %v35356_v28 = vadd.f32 %v24516_v57, %v36712_v18  ;;  %v36721_v57 = vld [vmem:[#allocation156_spill] sm:$0xff]  ;;  %v36722_v18 = vld [vmem:[#allocation49_spill] sm:$0xff] }
0x14a6   :  { %v24685_v14 = vsel %vm57_vm0, %v35353_v4, 0.0 }
0x14a7   :  { %24686 = vadd.xlane.f32.xlu0 %v24685_v14  ;;  %v24682_v0 = vsel %vm57_vm0, %v35356_v28, 0.0 }
0x14a8   :  { %24683 = vadd.xlane.f32.xlu1 %v24682_v0 }
0x14ae   :  { %v27821_v7 = vpop.f32.mrb[208].mxu1 }
0x14af   :  { %v24531_v13 = vadd.f32 %v27821_v7, %v36706_v54  ;;  %v24525_v5 = vpop.f32.mrb[209].mxu1 }
0x14b0   :  { %v24526_v3 = vadd.f32 %v24525_v5, %v36706_v54 }
0x14b1   :  { %v35365_v17 = vadd.f32 %v24531_v13, %v36713_v31 }
0x14b2   :  { %v35368_v50 = vadd.f32 %v24526_v3, %v36714_v6  ;;  %v36723_v6 = vld [vmem:[#allocation150_spill] sm:$0xff] }
0x14b3   :  { %v24691_v20 = vsel %vm57_vm0, %v35365_v17, 0.0 }
0x14b4   :  { %24692 = vadd.xlane.f32.xlu0 %v24691_v20  ;;  %v24688_v10 = vsel %vm57_vm0, %v35368_v50, 0.0 }
0x14b5   :  { %24689 = vadd.xlane.f32.xlu1 %v24688_v10  ;;  %v36724_v10 = vld [vmem:[#allocation155_spill] sm:$0xff] }
0x14c2   :  { %v27824_v49 = vpop.f32.mrb[210].mxu1 }
0x14c3   :  { %v24541_v43 = vadd.f32 %v27824_v49, %v36706_v54  ;;  %v24535_v63 = vpop.f32.mrb[211].mxu1 }
0x14c4   :  { %v24536_v30 = vadd.f32 %v24535_v63, %v36706_v54 }
0x14c5   :  { %v35377_v32 = vadd.f32 %v24541_v43, %v36715_v48 }
0x14c6   :  { %v35380_v52 = vadd.f32 %v24536_v30, %v36716_v45 }
0x14c7   :  { %v24697_v42 = vsel %vm57_vm0, %v35377_v32, 0.0 }
0x14c8   :  { %24698 = vadd.xlane.f32.xlu0 %v24697_v42  ;;  %v24694_v60 = vsel %vm57_vm0, %v35380_v52, 0.0 }
0x14c9   :  { %24695 = vadd.xlane.f32.xlu1 %v24694_v60 }
0x14d9   :  { %v27827_v35 = vpop.f32.mrb[212].mxu1 }
0x14da   :  { %v24551_v26 = vadd.f32 %v27827_v35, %v36706_v54  ;;  %v24545_v1 = vpop.f32.mrb[213].mxu1 }
0x14db   :  { %v24546_v2 = vadd.f32 %v24545_v1, %v36706_v54 }
0x14dc   :  { %v35389_v39 = vadd.f32 %v24551_v26, %v36717_v36  ;;  %v36725_v26 = vld [vmem:[#allocation20_spill] sm:$0xff] }
0x14dd   :  { %v35392_v21 = vadd.f32 %v24546_v2, %v36718_v38  ;;  %v36726_v2 = vld [vmem:[#allocation168_spill] sm:$0xff] }
0x14de   :  { %v24703_v24 = vsel %vm57_vm0, %v35389_v39, 0.0 }
0x14df   :  { %24704 = vadd.xlane.f32.xlu0 %v24703_v24  ;;  %v24700_v23 = vsel %vm57_vm0, %v35392_v21, 0.0 }
0x14e0   :  { %24701 = vadd.xlane.f32.xlu1 %v24700_v23  ;;  %v27830_v55 = vpop.f32.mrb[214].mxu1 }
0x14e1   :  { %v24561_v58 = vadd.f32 %v27830_v55, %v36706_v54  ;;  %v24555_v8 = vpop.f32.mrb[215].mxu1 }
0x14e2   :  { %v24556_v34 = vadd.f32 %v24555_v8, %v36706_v54 }
0x14e3   :  { %v35401_v51 = vadd.f32 %v24561_v58, %v36719_v29 }
0x14e4   :  { %v35404_v40 = vadd.f32 %v24556_v34, %v36720_v37  ;;  %v36727_v37 = vld [vmem:[#allocation144_spill] sm:$0xff] }
0x14e5   :  { %v24709_v41 = vsel %vm57_vm0, %v35401_v51, 0.0 }
0x14e6   :  { %24710 = vadd.xlane.f32.xlu0 %v24709_v41  ;;  %v24706_v62 = vsel %vm57_vm0, %v35404_v40, 0.0 }
0x14e7   :  { %24707 = vadd.xlane.f32.xlu1 %v24706_v62 }
0x14ea   :  { %v27833_v33 = vpop.f32.mrb[216].mxu1 }
0x14eb   :  { %v24571_v56 = vadd.f32 %v27833_v33, %v36706_v54  ;;  %v24565_v44 = vpop.f32.mrb[217].mxu1  ;;  %v36728_v33 = vld [vmem:[#allocation158_spill] sm:$0xff] }
0x14ec   :  { %v24566_v59 = vadd.f32 %v24565_v44, %v36706_v54 }
0x14ed   :  { %v35413_v15 = vadd.f32 %v24571_v56, %v36721_v57 }
0x14ee   :  { %v35416_v14 = vadd.f32 %v24566_v59, %v36722_v18 }
0x14ef   :  { %v24715_v0 = vsel %vm57_vm0, %v35413_v15, 0.0 }
0x14f0   :  { %24716 = vadd.xlane.f32.xlu0 %v24715_v0  ;;  %v24712_v7 = vsel %vm57_vm0, %v35416_v14, 0.0 }
0x14f1   :  { %24713 = vadd.xlane.f32.xlu1 %v24712_v7 }
0x14f3   :  { %v24651_v42 = vpop.xlane.xlu0 %24650 }
0x14f4   :  { %v24648_v35 = vpop.xlane.xlu1 %24647  ;;  %v24743_v44 = vmul.f32 0.03125, %v24651_v42 }
0x14f5   :  { %v24742_v18 = vmul.f32 0.03125, %v24648_v35 }
0x14f6   :  { %v35459_v7 = vsub.f32 %v35281_v25, %v24743_v44 }
0x14f7   :  { %v27836_v13 = vpop.f32.mrb[218].mxu1 }
0x14f8   :  { %v24581_v5 = vadd.f32 %v27836_v13, %v36706_v54  ;;  %v24575_v3 = vpop.f32.mrb[219].mxu1  ;;  %v24657_v23 = vpop.xlane.xlu0 %24656 }
0x14f9   :  { %v24576_v31 = vadd.f32 %v24575_v3, %v36706_v54  ;;  %v24654_v55 = vpop.xlane.xlu1 %24653  ;;  %v24745_v13 = vmul.f32 0.03125, %v24657_v23  ;;  %v35462_v3 = vsub.f32 %v35284_v11, %v24742_v18  ;;  %v36730_v11 = vld [vmem:[#allocation151_spill] sm:$0xff] }
0x14fa   :  { %v35425_v20 = vadd.f32 %v24581_v5, %v36723_v6 }
0x14fb   :  { %v35428_v49 = vadd.f32 %v24576_v31, %v36724_v10  ;;  %v24744_v31 = vmul.f32 0.03125, %v24654_v55  ;;  %v35470_v42 = vsub.f32 %v35293_v53, %v24745_v13 }
0x14fc   :  { %v24721_v43 = vsel %vm57_vm0, %v35425_v20, 0.0 }
0x14fd   :  { %24722 = vadd.xlane.f32.xlu0 %v24721_v43  ;;  %v24718_v63 = vsel %vm57_vm0, %v35428_v49, 0.0  ;;  %v24663_v62 = vpop.xlane.xlu0 %24662 }
0x14fe   :  { %24719 = vadd.xlane.f32.xlu1 %v24718_v63  ;;  %v24660_v59 = vpop.xlane.xlu1 %24659  ;;  %v24747_v25 = vmul.f32 0.03125, %v24663_v62 }
0x1500   :  { %v35487_v23 = vsub.f32 %v35305_v46, %v24747_v25 }
0x1507   :  { %v24669_v6 = vpop.xlane.xlu0 %24668 }
0x1508   :  { %v24666_v63 = vpop.xlane.xlu1 %24665 }
0x1509   :  { %v24748_v62 = vmul.f32 0.03125, %v24666_v63 }
0x150c   :  { %v27839_v30 = vpop.f32.mrb[220].mxu1 }
0x150d   :  { %v24591_v48 = vadd.f32 %v27839_v30, %v36706_v54  ;;  %v24585_v45 = vpop.f32.mrb[221].mxu1 }
0x150e   :  { %v24586_v60 = vadd.f32 %v24585_v45, %v36706_v54 }
0x150f   :  { %v35437_v1 = vadd.f32 %v24591_v48, %v36725_v26  ;;  %v36729_v48 = vld [vmem:[#allocation136_spill] sm:$0xff]  ;;  %v35478_v26 = vsub.f32 %v35296_v12, %v24744_v31  ;;  %v24749_v12 = vmul.f32 0.03125, %v24669_v6 }
0x1510   :  { %v35440_v36 = vadd.f32 %v24586_v60, %v36726_v2  ;;  %v24807_v60 = vmul.f32 %v35459_v7, %v35459_v7  ;;  %v24806_v2 = vmul.f32 %v35462_v3, %v35462_v3 }
0x1511   :  { %v24727_v38 = vsel %vm57_vm0, %v35437_v1, 0.0  ;;  %v35499_v46 = vsub.f32 %v35317_v27, %v24749_v12 }
0x1512   :  { %24728 = vadd.xlane.f32.xlu0 %v24727_v38  ;;  %v24724_v24 = vsel %vm57_vm0, %v35440_v36, 0.0  ;;  %v24841_v55 = vsel %vm57_vm0, %v24807_v60, 0.0 }
0x1513   :  { %24725 = vadd.xlane.f32.xlu1 %v24724_v24 }
0x1514   :  { %v27842_v58 = vpop.f32.mrb[222].mxu1 }
0x1515   :  { %v24601_v8 = vadd.f32 %v27842_v58, %v36706_v54  ;;  %v24595_v34 = vpop.f32.mrb[223].mxu1  ;;  %v24809_v58 = vmul.f32 %v35470_v42, %v35470_v42 }
0x1516   :  { %v24596_v29 = vadd.f32 %v24595_v34, %v36706_v54  ;;  %v24838_v34 = vsel %vm57_vm0, %v24806_v2, 0.0 }
0x1517   :  { %v35449_v41 = vadd.f32 %v24601_v8, %v36727_v37  ;;  %v24808_v37 = vmul.f32 %v35478_v26, %v35478_v26 }
0x1518   :  { %v35452_v56 = vadd.f32 %v24596_v29, %v36728_v33  ;;  %v24847_v33 = vsel %vm57_vm0, %v24809_v58, 0.0 }
0x1519   :  { %v24733_v57 = vsel %vm57_vm0, %v35449_v41, 0.0 }
0x151a   :  { %24734 = vadd.xlane.f32.xlu0 %v24733_v57  ;;  %v24730_v0 = vsel %vm57_vm0, %v35452_v56, 0.0  ;;  %v24844_v57 = vsel %vm57_vm0, %v24808_v37, 0.0 }
0x151b   :  { %24731 = vadd.xlane.f32.xlu1 %v24730_v0 }
0x151c   :  { %v27845_v5 = vpop.f32.mrb[224].mxu1 }
0x151d   :  { %v24611_v10 = vadd.f32 %v27845_v5, %v36706_v54  ;;  %v24605_v43 = vpop.f32.mrb[225].mxu1 }
0x151e   :  { %v24606_v30 = vadd.f32 %v24605_v43, %v36706_v54  ;;  %v24746_v54 = vmul.f32 0.03125, %v24660_v59  ;;  %v24811_v59 = vmul.f32 %v35487_v23, %v35487_v23 }
0x151f   :  { %v35467_v45 = vadd.f32 %v24611_v10, %v36729_v48  ;;  %v24813_v10 = vmul.f32 %v35499_v46, %v35499_v46 }
0x1520   :  { %v35475_v35 = vadd.f32 %v24606_v30, %v36730_v11  ;;  %v35494_v29 = vsub.f32 %v35308_v19, %v24746_v54  ;;  %v35506_v19 = vsub.f32 %v35320_v47, %v24748_v62  ;;  %v24853_v31 = vsel %vm57_vm0, %v24811_v59, 0.0 }
0x1521   :  { %v24739_v38 = vsel %vm57_vm0, %v35467_v45, 0.0  ;;  %v24859_v48 = vsel %vm57_vm0, %v24813_v10, 0.0 }
0x1522   :  { %24740 = vadd.xlane.f32.xlu0 %v24739_v38  ;;  %v24736_v53 = vsel %vm57_vm0, %v35475_v35, 0.0  ;;  %v24810_v18 = vmul.f32 %v35494_v29, %v35494_v29  ;;  %v24812_v63 = vmul.f32 %v35506_v19, %v35506_v19 }
0x1523   :  { %24737 = vadd.xlane.f32.xlu1 %v24736_v53 }
0x1524   :  { %v24850_v47 = vsel %vm57_vm0, %v24810_v18, 0.0  ;;  %v24856_v60 = vsel %vm57_vm0, %v24812_v63, 0.0 }
0x1525   :  { %v24675_v24 = vpop.xlane.xlu0 %24674 }
0x1526   :  { %v24672_v8 = vpop.xlane.xlu1 %24671  ;;  %24842 = vadd.xlane.f32.xlu0 %v24841_v55  ;;  %v24751_v44 = vmul.f32 0.03125, %v24675_v24 }
0x1527   :  { %24839 = vadd.xlane.f32.xlu1 %v24838_v34  ;;  %v24750_v0 = vmul.f32 0.03125, %v24672_v8 }
0x1528   :  { %v35511_v27 = vsub.f32 %v35329_v16, %v24751_v44 }
0x1529   :  { %v35518_v43 = vsub.f32 %v35332_v22, %v24750_v0 }
0x152a   :  { %24848 = vadd.xlane.f32.xlu0 %v24847_v33  ;;  %v24815_v25 = vmul.f32 %v35511_v27, %v35511_v27 }
0x152b   :  { %24845 = vadd.xlane.f32.xlu1 %v24844_v57  ;;  %v24814_v2 = vmul.f32 %v35518_v43, %v35518_v43 }
0x152c   :  { %v24865_v24 = vsel %vm57_vm0, %v24815_v25, 0.0 }
0x152d   :  { %v24681_v13 = vpop.xlane.xlu0 %24680 }
0x152e   :  { %v24678_v5 = vpop.xlane.xlu1 %24677  ;;  %v24753_v6 = vmul.f32 0.03125, %v24681_v13  ;;  %24854 = vadd.xlane.f32.xlu0 %v24853_v31 }
0x152f   :  { %v24752_v30 = vmul.f32 0.03125, %v24678_v5  ;;  %24851 = vadd.xlane.f32.xlu1 %v24850_v47 }
0x1530   :  { %v35523_v16 = vsub.f32 %v35341_v9, %v24753_v6 }
0x1531   :  { %v35530_v11 = vsub.f32 %v35344_v61, %v24752_v30  ;;  %v24862_v61 = vsel %vm57_vm0, %v24814_v2, 0.0 }
0x1532   :  { %24860 = vadd.xlane.f32.xlu0 %v24859_v48  ;;  %v24817_v55 = vmul.f32 %v35523_v16, %v35523_v16 }
0x1533   :  { %24857 = vadd.xlane.f32.xlu1 %v24856_v60  ;;  %v24816_v58 = vmul.f32 %v35530_v11, %v35530_v11 }
0x1534   :  { %v24687_v22 = vpop.xlane.xlu0 %24686  ;;  %v24871_v8 = vsel %vm57_vm0, %v24817_v55, 0.0 }
0x1535   :  { %v24755_v54 = vmul.f32 0.03125, %v24687_v22  ;;  %v24684_v38 = vpop.xlane.xlu1 %24683  ;;  %v24868_v34 = vsel %vm57_vm0, %v24816_v58, 0.0 }
0x1536   :  { %v24754_v53 = vmul.f32 0.03125, %v24684_v38  ;;  %24866 = vadd.xlane.f32.xlu0 %v24865_v24 }
0x1537   :  { %v35535_v9 = vsub.f32 %v35353_v4, %v24755_v54  ;;  %24863 = vadd.xlane.f32.xlu1 %v24862_v61 }
0x1538   :  { %v35542_v12 = vsub.f32 %v35356_v28, %v24754_v53 }
0x1539   :  { %v24819_v4 = vmul.f32 %v35535_v9, %v35535_v9 }
0x153a   :  { %v24818_v37 = vmul.f32 %v35542_v12, %v35542_v12  ;;  %24872 = vadd.xlane.f32.xlu0 %v24871_v8 }
0x153b   :  { %24869 = vadd.xlane.f32.xlu1 %v24868_v34  ;;  %v24877_v28 = vsel %vm57_vm0, %v24819_v4, 0.0 }
0x153c   :  { %v24874_v33 = vsel %vm57_vm0, %v24818_v37, 0.0 }
0x153e   :  { %24878 = vadd.xlane.f32.xlu0 %v24877_v28 }
0x153f   :  { %24875 = vadd.xlane.f32.xlu1 %v24874_v33 }
0x1541   :  { %v24693_v62 = vpop.xlane.xlu0 %24692 }
0x1542   :  { %v24757_v44 = vmul.f32 0.03125, %v24693_v62  ;;  %v24690_v59 = vpop.xlane.xlu1 %24689 }
0x1543   :  { %v24756_v57 = vmul.f32 0.03125, %v24690_v59 }
0x1544   :  { %v35555_v18 = vsub.f32 %v35365_v17, %v24757_v44 }
0x1545   :  { %v35558_v0 = vsub.f32 %v35368_v50, %v24756_v57 }
0x1546   :  { %v24821_v13 = vmul.f32 %v35555_v18, %v35555_v18 }
0x1547   :  { %v24820_v5 = vmul.f32 %v35558_v0, %v35558_v0 }
0x1548   :  { %v24883_v31 = vsel %vm57_vm0, %v24821_v13, 0.0 }
0x1549   :  { %24884 = vadd.xlane.f32.xlu0 %v24883_v31  ;;  %v24880_v6 = vsel %vm57_vm0, %v24820_v5, 0.0 }
0x154a   :  { %24881 = vadd.xlane.f32.xlu1 %v24880_v6 }
0x1555   :  { %v24699_v10 = vpop.xlane.xlu0 %24698 }
0x1556   :  { %v24759_v47 = vmul.f32 0.03125, %v24699_v10  ;;  %v24696_v17 = vpop.xlane.xlu1 %24695 }
0x1557   :  { %v24758_v63 = vmul.f32 0.03125, %v24696_v17 }
0x1558   :  { %v35567_v30 = vsub.f32 %v35377_v32, %v24759_v47 }
0x1559   :  { %v35570_v50 = vsub.f32 %v35380_v52, %v24758_v63 }
0x155a   :  { %v24823_v48 = vmul.f32 %v35567_v30, %v35567_v30 }
0x155b   :  { %v24822_v25 = vmul.f32 %v35570_v50, %v35570_v50 }
0x155c   :  { %v24889_v60 = vsel %vm57_vm0, %v24823_v48, 0.0 }
0x155d   :  { %24890 = vadd.xlane.f32.xlu0 %v24889_v60  ;;  %v24886_v22 = vsel %vm57_vm0, %v24822_v25, 0.0 }
0x155e   :  { %24887 = vadd.xlane.f32.xlu1 %v24886_v22 }
0x156c   :  { %v24705_v2 = vpop.xlane.xlu0 %24704 }
0x156d   :  { %v24761_v54 = vmul.f32 0.03125, %v24705_v2  ;;  %v24702_v38 = vpop.xlane.xlu1 %24701 }
0x156e   :  { %v24760_v32 = vmul.f32 0.03125, %v24702_v38 }
0x156f   :  { %v35579_v53 = vsub.f32 %v35389_v39, %v24761_v54 }
0x1570   :  { %v35582_v52 = vsub.f32 %v35392_v21, %v24760_v32 }
0x1571   :  { %v24825_v24 = vmul.f32 %v35579_v53, %v35579_v53 }
0x1572   :  { %v24824_v55 = vmul.f32 %v35582_v52, %v35582_v52 }
0x1573   :  { %v24895_v61 = vsel %vm57_vm0, %v24825_v24, 0.0  ;;  %v24711_v8 = vpop.xlane.xlu0 %24710 }
0x1574   :  { %24896 = vadd.xlane.f32.xlu0 %v24895_v61  ;;  %v24892_v58 = vsel %vm57_vm0, %v24824_v55, 0.0  ;;  %v24763_v4 = vmul.f32 0.03125, %v24711_v8  ;;  %v24708_v34 = vpop.xlane.xlu1 %24707 }
0x1575   :  { %24893 = vadd.xlane.f32.xlu1 %v24892_v58  ;;  %v24762_v39 = vmul.f32 0.03125, %v24708_v34 }
0x1576   :  { %v35591_v37 = vsub.f32 %v35401_v51, %v24763_v4 }
0x1577   :  { %v35594_v21 = vsub.f32 %v35404_v40, %v24762_v39 }
0x1578   :  { %v24827_v28 = vmul.f32 %v35591_v37, %v35591_v37 }
0x1579   :  { %v24826_v62 = vmul.f32 %v35594_v21, %v35594_v21 }
0x157a   :  { %v24901_v33 = vsel %vm57_vm0, %v24827_v28, 0.0 }
0x157b   :  { %24902 = vadd.xlane.f32.xlu0 %v24901_v33  ;;  %v24898_v44 = vsel %vm57_vm0, %v24826_v62, 0.0 }
0x157c   :  { %24899 = vadd.xlane.f32.xlu1 %v24898_v44 }
0x157d   :  { %v24717_v59 = vpop.xlane.xlu0 %24716 }
0x157e   :  { %v24765_v57 = vmul.f32 0.03125, %v24717_v59  ;;  %v24714_v13 = vpop.xlane.xlu1 %24713 }
0x157f   :  { %v24764_v51 = vmul.f32 0.03125, %v24714_v13 }
0x1580   :  { %v35603_v5 = vsub.f32 %v35413_v15, %v24765_v57 }
0x1581   :  { %v35606_v40 = vsub.f32 %v35416_v14, %v24764_v51 }
0x1582   :  { %v24829_v31 = vmul.f32 %v35603_v5, %v35603_v5 }
0x1583   :  { %v24828_v6 = vmul.f32 %v35606_v40, %v35606_v40 }
0x1584   :  { %v24907_v10 = vsel %vm57_vm0, %v24829_v31, 0.0 }
0x1585   :  { %24908 = vadd.xlane.f32.xlu0 %v24907_v10  ;;  %v24904_v47 = vsel %vm57_vm0, %v24828_v6, 0.0 }
0x1586   :  { %24905 = vadd.xlane.f32.xlu1 %v24904_v47 }
0x158a   :  { %v24723_v17 = vpop.xlane.xlu0 %24722 }
0x158b   :  { %v24767_v63 = vmul.f32 0.03125, %v24723_v17  ;;  %v24720_v48 = vpop.xlane.xlu1 %24719 }
0x158c   :  { %v24766_v15 = vmul.f32 0.03125, %v24720_v48 }
0x158d   :  { %v35615_v25 = vsub.f32 %v35425_v20, %v24767_v63 }
0x158e   :  { %v35618_v14 = vsub.f32 %v35428_v49, %v24766_v15 }
0x158f   :  { %v24831_v60 = vmul.f32 %v35615_v25, %v35615_v25 }
0x1590   :  { %v24830_v22 = vmul.f32 %v35618_v14, %v35618_v14 }
0x1591   :  { %v24913_v2 = vsel %vm57_vm0, %v24831_v60, 0.0 }
0x1592   :  { %24914 = vadd.xlane.f32.xlu0 %v24913_v2  ;;  %v24910_v54 = vsel %vm57_vm0, %v24830_v22, 0.0 }
0x1593   :  { %24911 = vadd.xlane.f32.xlu1 %v24910_v54 }
0x159f   :  { %v24729_v38 = vpop.xlane.xlu0 %24728 }
0x15a0   :  { %v24769_v32 = vmul.f32 0.03125, %v24729_v38  ;;  %v24726_v24 = vpop.xlane.xlu1 %24725 }
0x15a1   :  { %v24768_v20 = vmul.f32 0.03125, %v24726_v24 }
0x15a2   :  { %v35627_v55 = vsub.f32 %v35437_v1, %v24769_v32 }
0x15a3   :  { %v35630_v49 = vsub.f32 %v35440_v36, %v24768_v20 }
0x15a4   :  { %v24833_v61 = vmul.f32 %v35627_v55, %v35627_v55 }
0x15a5   :  { %v24832_v58 = vmul.f32 %v35630_v49, %v35630_v49 }
0x15a6   :  { %v24919_v8 = vsel %vm57_vm0, %v24833_v61, 0.0 }
0x15a7   :  { %24920 = vadd.xlane.f32.xlu0 %v24919_v8  ;;  %v24916_v4 = vsel %vm57_vm0, %v24832_v58, 0.0  ;;  %v24735_v34 = vpop.xlane.xlu0 %24734 }
0x15a8   :  { %24917 = vadd.xlane.f32.xlu1 %v24916_v4  ;;  %v24771_v39 = vmul.f32 0.03125, %v24735_v34  ;;  %v24732_v28 = vpop.xlane.xlu1 %24731 }
0x15a9   :  { %v24770_v1 = vmul.f32 0.03125, %v24732_v28 }
0x15aa   :  { %v35639_v62 = vsub.f32 %v35449_v41, %v24771_v39 }
0x15ab   :  { %v35642_v36 = vsub.f32 %v35452_v56, %v24770_v1 }
0x15ac   :  { %v24835_v33 = vmul.f32 %v35639_v62, %v35639_v62 }
0x15ad   :  { %v24834_v44 = vmul.f32 %v35642_v36, %v35642_v36 }
0x15ae   :  { %v24925_v59 = vsel %vm57_vm0, %v24835_v33, 0.0 }
0x15af   :  { %24926 = vadd.xlane.f32.xlu0 %v24925_v59  ;;  %v24922_v57 = vsel %vm57_vm0, %v24834_v44, 0.0  ;;  %v24741_v13 = vpop.xlane.xlu0 %24740 }
0x15b0   :  { %24923 = vadd.xlane.f32.xlu1 %v24922_v57  ;;  %v24773_v51 = vmul.f32 0.03125, %v24741_v13  ;;  %v24738_v31 = vpop.xlane.xlu1 %24737 }
0x15b1   :  { %v24772_v41 = vmul.f32 0.03125, %v24738_v31 }
0x15b2   :  { %v35651_v6 = vsub.f32 %v35467_v45, %v24773_v51 }
0x15b3   :  { %v35654_v56 = vsub.f32 %v35475_v35, %v24772_v41  ;;  %v24843_v10 = vpop.xlane.xlu0 %24842 }
0x15b4   :  { %v24935_v47 = vmul.f32 0.03125, %v24843_v10  ;;  %v24840_v17 = vpop.xlane.xlu1 %24839  ;;  %v24837_v63 = vmul.f32 %v35651_v6, %v35651_v6 }
0x15b5   :  { %v24934_v48 = vmul.f32 0.03125, %v24840_v17  ;;  %v24836_v15 = vmul.f32 %v35654_v56, %v35654_v56 }
0x15b6   :  { %v24967_v60 = vadd.f32 1e-06, %v24935_v47  ;;  %v24931_v22 = vsel %vm57_vm0, %v24837_v63, 0.0  ;;  %v36731_v63 = vld [vmem:[#allocation4_spill] sm:$0xff] }
0x15b7   :  { %v24966_v2 = vadd.f32 1e-06, %v24934_v48  ;;  %24932 = vadd.xlane.f32.xlu0 %v24931_v22  ;;  %v24849_v45 = vpop.xlane.xlu0 %24848  ;;  %v24928_v54 = vsel %vm57_vm0, %v24836_v15, 0.0 }
0x15b8   :  { %28853 = vrsqrt.f32 %v24967_v60  ;;  %v24937_v35 = vmul.f32 0.03125, %v24849_v45  ;;  %24929 = vadd.xlane.f32.xlu1 %v24928_v54  ;;  %v24846_v38 = vpop.xlane.xlu1 %24845  ;;  %v36732_v54 = vld [vmem:[#allocation8_spill] sm:$0xff] }
0x15b9   :  { %28855 = vrsqrt.f32 %v24966_v2  ;;  %v24936_v32 = vmul.f32 0.03125, %v24846_v38 }
0x15ba   :  { %v24969_v24 = vadd.f32 1e-06, %v24937_v35 }
0x15bb   :  { %v24968_v20 = vadd.f32 1e-06, %v24936_v32  ;;  %v24855_v61 = vpop.xlane.xlu0 %24854 }
0x15bc   :  { %28857 = vrsqrt.f32 %v24969_v24  ;;  %v24939_v58 = vmul.f32 0.03125, %v24855_v61  ;;  %v24852_v8 = vpop.xlane.xlu1 %24851 }
0x15bd   :  { %28859 = vrsqrt.f32 %v24968_v20  ;;  %v24938_v4 = vmul.f32 0.03125, %v24852_v8 }
0x15be   :  { %v24971_v34 = vadd.f32 1e-06, %v24939_v58 }
0x15bf   :  { %v24970_v39 = vadd.f32 1e-06, %v24938_v4  ;;  %v24861_v28 = vpop.xlane.xlu0 %24860 }
0x15c0   :  { %28861 = vrsqrt.f32 %v24971_v34  ;;  %v24941_v1 = vmul.f32 0.03125, %v24861_v28  ;;  %v24858_v33 = vpop.xlane.xlu1 %24857 }
0x15c1   :  { %28863 = vrsqrt.f32 %v24970_v39  ;;  %v24940_v44 = vmul.f32 0.03125, %v24858_v33 }
0x15c2   :  { %v28854_v59 = vpop.eup %28853  ;;  %v24973_v57 = vadd.f32 1e-06, %v24941_v1 }
0x15c3   :  { %v28856_v13 = vpop.eup %28855  ;;  %v25031_v51 = vmul.f32 %v28854_v59, %v35459_v7  ;;  %v24972_v31 = vadd.f32 1e-06, %v24940_v44  ;;  %v24867_v41 = vpop.xlane.xlu0 %24866 }
0x15c4   :  { %v25030_v10 = vmul.f32 %v28856_v13, %v35462_v3  ;;  %28865 = vrsqrt.f32 %v24973_v57  ;;  %v24943_v47 = vmul.f32 0.03125, %v24867_v41  ;;  %v24864_v17 = vpop.xlane.xlu1 %24863 }
0x15c5   :  { %v25067_v48 = vmul.f32 %v36731_v63, %v25031_v51  ;;  %28867 = vrsqrt.f32 %v24972_v31  ;;  %v24942_v15 = vmul.f32 0.03125, %v24864_v17 }
0x15c6   :  { %v28858_v60 = vpop.eup %28857  ;;  %v25066_v22 = vmul.f32 %v36731_v63, %v25030_v10  ;;  %v24975_v2 = vadd.f32 1e-06, %v24943_v47 }
0x15c7   :  { %v28860_v45 = vpop.eup %28859  ;;  %v25103_v35 = vadd.f32 %v36732_v54, %v25067_v48  ;;  %v25033_v7 = vmul.f32 %v28858_v60, %v35470_v42  ;;  %v24974_v38 = vadd.f32 1e-06, %v24942_v15  ;;  %v24873_v32 = vpop.xlane.xlu0 %24872 }
0x15c8   :  { %v25102_v3 = vadd.f32 %v36732_v54, %v25066_v22  ;;  %v25032_v24 = vmul.f32 %v28860_v45, %v35478_v26  ;;  %28869 = vrsqrt.f32 %v24975_v2  ;;  %v24945_v20 = vmul.f32 0.03125, %v24873_v32  ;;  %v24870_v61 = vpop.xlane.xlu1 %24869 }
0x15c9   :  { %25135 = vst.msk [vmem:[%s35892_s6 + $0x8] sm:$0xff] %vm57_vm0, %v25103_v35  ;;  %v25069_v58 = vmul.f32 %v36731_v63, %v25033_v7  ;;  %28871 = vrsqrt.f32 %v24974_v38  ;;  %v24944_v8 = vmul.f32 0.03125, %v24870_v61 }
0x15ca   :  { %v28862_v4 = vpop.eup %28861  ;;  %25134 = vst.msk [vmem:[%s35892_s6] sm:$0xff] %vm57_vm0, %v25102_v3  ;;  %v25068_v42 = vmul.f32 %v36731_v63, %v25032_v24  ;;  %v24977_v26 = vadd.f32 1e-06, %v24945_v20 }
0x15cb   :  { %v28864_v34 = vpop.eup %28863  ;;  %v25105_v39 = vadd.f32 %v36732_v54, %v25069_v58  ;;  %v25035_v28 = vmul.f32 %v28862_v4, %v35487_v23  ;;  %v24976_v1 = vadd.f32 1e-06, %v24944_v8  ;;  %v24879_v33 = vpop.xlane.xlu0 %24878 }
0x15cc   :  { %v25104_v44 = vadd.f32 %v36732_v54, %v25068_v42  ;;  %v25034_v59 = vmul.f32 %v28864_v34, %v35494_v29  ;;  %28873 = vrsqrt.f32 %v24977_v26  ;;  %v24947_v57 = vmul.f32 0.03125, %v24879_v33  ;;  %v24876_v13 = vpop.xlane.xlu1 %24875 }
0x15cd   :  { %25137 = vst.msk [vmem:[%s35892_s6 + $0x18] sm:$0xff] %vm57_vm0, %v25105_v39  ;;  %v25071_v51 = vmul.f32 %v36731_v63, %v25035_v28  ;;  %28875 = vrsqrt.f32 %v24976_v1  ;;  %v24946_v31 = vmul.f32 0.03125, %v24876_v13 }
0x15ce   :  { %v28866_v41 = vpop.eup %28865  ;;  %25136 = vst.msk [vmem:[%s35892_s6 + $0x10] sm:$0xff] %vm57_vm0, %v25104_v44  ;;  %v25070_v23 = vmul.f32 %v36731_v63, %v25034_v59  ;;  %v24979_v29 = vadd.f32 1e-06, %v24947_v57 }
0x15cf   :  { %v28868_v10 = vpop.eup %28867  ;;  %v25107_v47 = vadd.f32 %v36732_v54, %v25071_v51  ;;  %v25037_v17 = vmul.f32 %v28866_v41, %v35499_v46  ;;  %v24978_v48 = vadd.f32 1e-06, %v24946_v31 }
0x15d0   :  { %v25106_v15 = vadd.f32 %v36732_v54, %v25070_v23  ;;  %v25036_v60 = vmul.f32 %v28868_v10, %v35506_v19  ;;  %28877 = vrsqrt.f32 %v24979_v29 }
0x15d1   :  { %25139 = vst.msk [vmem:[%s35892_s6 + $0x28] sm:$0xff] %vm57_vm0, %v25107_v47  ;;  %v25073_v22 = vmul.f32 %v36731_v63, %v25037_v17  ;;  %28879 = vrsqrt.f32 %v24978_v48 }
0x15d2   :  { %v28870_v45 = vpop.eup %28869  ;;  %25138 = vst.msk [vmem:[%s35892_s6 + $0x20] sm:$0xff] %vm57_vm0, %v25106_v15  ;;  %v25072_v46 = vmul.f32 %v36731_v63, %v25036_v60 }
0x15d3   :  { %v28872_v7 = vpop.eup %28871  ;;  %v25109_v38 = vadd.f32 %v36732_v54, %v25073_v22  ;;  %v25039_v32 = vmul.f32 %v28870_v45, %v35511_v27 }
0x15d4   :  { %v25108_v24 = vadd.f32 %v36732_v54, %v25072_v46  ;;  %v25038_v20 = vmul.f32 %v28872_v7, %v35518_v43 }
0x15d5   :  { %25141 = vst.msk [vmem:[%s35892_s6 + $0x38] sm:$0xff] %vm57_vm0, %v25109_v38  ;;  %v25075_v58 = vmul.f32 %v36731_v63, %v25039_v32 }
0x15d6   :  { %v24885_v2 = vpop.xlane.xlu0 %24884  ;;  %v28874_v4 = vpop.eup %28873  ;;  %25140 = vst.msk [vmem:[%s35892_s6 + $0x30] sm:$0xff] %vm57_vm0, %v25108_v24  ;;  %v25074_v27 = vmul.f32 %v36731_v63, %v25038_v20 }
0x15d7   :  { %v24949_v35 = vmul.f32 0.03125, %v24885_v2  ;;  %v24882_v19 = vpop.xlane.xlu1 %24881  ;;  %v28876_v42 = vpop.eup %28875  ;;  %v25111_v43 = vadd.f32 %v36732_v54, %v25075_v58  ;;  %v25041_v26 = vmul.f32 %v28874_v4, %v35523_v16 }
0x15d8   :  { %v24948_v3 = vmul.f32 0.03125, %v24882_v19  ;;  %v25110_v34 = vadd.f32 %v36732_v54, %v25074_v27  ;;  %v25040_v39 = vmul.f32 %v28876_v42, %v35530_v11 }
0x15d9   :  { %v24981_v61 = vadd.f32 1e-06, %v24949_v35  ;;  %25143 = vst.msk [vmem:[%s35892_s6 + $0x48] sm:$0xff] %vm57_vm0, %v25111_v43  ;;  %v25077_v28 = vmul.f32 %v36731_v63, %v25041_v26 }
0x15da   :  { %v24980_v8 = vadd.f32 1e-06, %v24948_v3  ;;  %v28878_v1 = vpop.eup %28877  ;;  %25142 = vst.msk [vmem:[%s35892_s6 + $0x40] sm:$0xff] %vm57_vm0, %v25110_v34  ;;  %v25076_v16 = vmul.f32 %v36731_v63, %v25040_v39 }
0x15db   :  { %28881 = vrsqrt.f32 %v24981_v61  ;;  %v28880_v33 = vpop.eup %28879  ;;  %v25113_v44 = vadd.f32 %v36732_v54, %v25077_v28  ;;  %v25043_v11 = vmul.f32 %v28878_v1, %v35535_v9 }
0x15dc   :  { %28883 = vrsqrt.f32 %v24980_v8  ;;  %v25112_v59 = vadd.f32 %v36732_v54, %v25076_v16  ;;  %v25042_v57 = vmul.f32 %v28880_v33, %v35542_v12 }
0x15dd   :  { %25145 = vst.msk [vmem:[%s35892_s6 + $0x58] sm:$0xff] %vm57_vm0, %v25113_v44  ;;  %v25079_v13 = vmul.f32 %v36731_v63, %v25043_v11 }
0x15de   :  { %25144 = vst.msk [vmem:[%s35892_s6 + $0x50] sm:$0xff] %vm57_vm0, %v25112_v59  ;;  %v25078_v51 = vmul.f32 %v36731_v63, %v25042_v57 }
0x15df   :  { %v25115_v9 = vadd.f32 %v36732_v54, %v25079_v13 }
0x15e0   :  { %v25114_v41 = vadd.f32 %v36732_v54, %v25078_v51 }
0x15e1   :  { %25147 = vst.msk [vmem:[%s35892_s6 + $0x68] sm:$0xff] %vm57_vm0, %v25115_v9 }
0x15e2   :  { %25146 = vst.msk [vmem:[%s35892_s6 + $0x60] sm:$0xff] %vm57_vm0, %v25114_v41 }
0x15e5   :  { %v28882_v31 = vpop.eup %28881 }
0x15e6   :  { %v28884_v12 = vpop.eup %28883  ;;  %v25045_v23 = vmul.f32 %v28882_v31, %v35555_v18 }
0x15e7   :  { %v25044_v29 = vmul.f32 %v28884_v12, %v35558_v0 }
0x15e8   :  { %v25081_v10 = vmul.f32 %v36731_v63, %v25045_v23 }
0x15e9   :  { %v25080_v47 = vmul.f32 %v36731_v63, %v25044_v29 }
0x15ea   :  { %v25117_v17 = vadd.f32 %v36732_v54, %v25081_v10  ;;  %v24891_v48 = vpop.xlane.xlu0 %24890 }
0x15eb   :  { %v25116_v15 = vadd.f32 %v36732_v54, %v25080_v47  ;;  %v24951_v60 = vmul.f32 0.03125, %v24891_v48  ;;  %v24888_v22 = vpop.xlane.xlu1 %24887 }
0x15ec   :  { %25149 = vst.msk [vmem:[%s35892_s6 + $0x78] sm:$0xff] %vm57_vm0, %v25117_v17  ;;  %v24950_v18 = vmul.f32 0.03125, %v24888_v22 }
0x15ed   :  { %25148 = vst.msk [vmem:[%s35892_s6 + $0x70] sm:$0xff] %vm57_vm0, %v25116_v15  ;;  %v24983_v0 = vadd.f32 1e-06, %v24951_v60 }
0x15ee   :  { %v24982_v2 = vadd.f32 1e-06, %v24950_v18 }
0x15ef   :  { %28885 = vrsqrt.f32 %v24983_v0 }
0x15f0   :  { %28887 = vrsqrt.f32 %v24982_v2 }
0x15f9   :  { %v28886_v45 = vpop.eup %28885 }
0x15fa   :  { %v28888_v46 = vpop.eup %28887  ;;  %v25047_v35 = vmul.f32 %v28886_v45, %v35567_v30 }
0x15fb   :  { %v25046_v19 = vmul.f32 %v28888_v46, %v35570_v50 }
0x15fc   :  { %v25083_v7 = vmul.f32 %v36731_v63, %v25047_v35 }
0x15fd   :  { %v25082_v38 = vmul.f32 %v36731_v63, %v25046_v19 }
0x15fe   :  { %v25119_v32 = vadd.f32 %v36732_v54, %v25083_v7 }
0x15ff   :  { %v25118_v3 = vadd.f32 %v36732_v54, %v25082_v38 }
0x1600   :  { %25151 = vst.msk [vmem:[%s35892_s6 + $0x88] sm:$0xff] %vm57_vm0, %v25119_v32 }
0x1601   :  { %v24897_v24 = vpop.xlane.xlu0 %24896  ;;  %25150 = vst.msk [vmem:[%s35892_s6 + $0x80] sm:$0xff] %vm57_vm0, %v25118_v3 }
0x1602   :  { %v24953_v20 = vmul.f32 0.03125, %v24897_v24  ;;  %v24894_v61 = vpop.xlane.xlu1 %24893 }
0x1603   :  { %v24952_v30 = vmul.f32 0.03125, %v24894_v61 }
0x1604   :  { %v24985_v50 = vadd.f32 1e-06, %v24953_v20 }
0x1605   :  { %v24984_v58 = vadd.f32 1e-06, %v24952_v30 }
0x1606   :  { %28889 = vrsqrt.f32 %v24985_v50 }
0x1607   :  { %28891 = vrsqrt.f32 %v24984_v58 }
0x1608   :  { %v24903_v8 = vpop.xlane.xlu0 %24902 }
0x1609   :  { %v24955_v4 = vmul.f32 0.03125, %v24903_v8  ;;  %v24900_v27 = vpop.xlane.xlu1 %24899 }
0x160a   :  { %v24954_v42 = vmul.f32 0.03125, %v24900_v27 }
0x160b   :  { %v24987_v43 = vadd.f32 1e-06, %v24955_v4 }
0x160c   :  { %v24986_v26 = vadd.f32 1e-06, %v24954_v42 }
0x160d   :  { %28893 = vrsqrt.f32 %v24987_v43 }
0x160e   :  { %28895 = vrsqrt.f32 %v24986_v26 }
0x1610   :  { %v28890_v34 = vpop.eup %28889 }
0x1611   :  { %v28892_v39 = vpop.eup %28891  ;;  %v25049_v28 = vmul.f32 %v28890_v34, %v35579_v53 }
0x1612   :  { %v25048_v1 = vmul.f32 %v28892_v39, %v35582_v52  ;;  %v24909_v11 = vpop.xlane.xlu0 %24908 }
0x1613   :  { %v25085_v16 = vmul.f32 %v36731_v63, %v25049_v28  ;;  %v24957_v57 = vmul.f32 0.03125, %v24909_v11  ;;  %v24906_v13 = vpop.xlane.xlu1 %24905 }
0x1614   :  { %v25084_v33 = vmul.f32 %v36731_v63, %v25048_v1  ;;  %v24956_v53 = vmul.f32 0.03125, %v24906_v13 }
0x1615   :  { %v25121_v44 = vadd.f32 %v36732_v54, %v25085_v16  ;;  %v24989_v52 = vadd.f32 1e-06, %v24957_v57 }
0x1616   :  { %v25120_v59 = vadd.f32 %v36732_v54, %v25084_v33  ;;  %v24988_v51 = vadd.f32 1e-06, %v24956_v53 }
0x1617   :  { %25153 = vst.msk [vmem:[%s35892_s6 + $0x98] sm:$0xff] %vm57_vm0, %v25121_v44  ;;  %v28894_v9 = vpop.eup %28893  ;;  %28897 = vrsqrt.f32 %v24989_v52 }
0x1618   :  { %25152 = vst.msk [vmem:[%s35892_s6 + $0x90] sm:$0xff] %vm57_vm0, %v25120_v59  ;;  %v28896_v31 = vpop.eup %28895  ;;  %v25051_v41 = vmul.f32 %v28894_v9, %v35591_v37  ;;  %28899 = vrsqrt.f32 %v24988_v51 }
0x1619   :  { %v25050_v12 = vmul.f32 %v28896_v31, %v35594_v21 }
0x161a   :  { %v25087_v23 = vmul.f32 %v36731_v63, %v25051_v41 }
0x161b   :  { %v25086_v29 = vmul.f32 %v36731_v63, %v25050_v12 }
0x161c   :  { %v25123_v10 = vadd.f32 %v36732_v54, %v25087_v23 }
0x161d   :  { %v25122_v47 = vadd.f32 %v36732_v54, %v25086_v29 }
0x161e   :  { %25155 = vst.msk [vmem:[%s35892_s6 + $0xa8] sm:$0xff] %vm57_vm0, %v25123_v10 }
0x161f   :  { %25154 = vst.msk [vmem:[%s35892_s6 + $0xa0] sm:$0xff] %vm57_vm0, %v25122_v47  ;;  %v24915_v37 = vpop.xlane.xlu0 %24914 }
0x1620   :  { %v24959_v21 = vmul.f32 0.03125, %v24915_v37  ;;  %v24912_v17 = vpop.xlane.xlu1 %24911 }
0x1621   :  { %v28898_v48 = vpop.eup %28897  ;;  %v24958_v15 = vmul.f32 0.03125, %v24912_v17 }
0x1622   :  { %v28900_v60 = vpop.eup %28899  ;;  %v25053_v22 = vmul.f32 %v28898_v48, %v35603_v5  ;;  %v24991_v18 = vadd.f32 1e-06, %v24959_v21 }
0x1623   :  { %v25052_v0 = vmul.f32 %v28900_v60, %v35606_v40  ;;  %v24990_v2 = vadd.f32 1e-06, %v24958_v15 }
0x1624   :  { %v25089_v45 = vmul.f32 %v36731_v63, %v25053_v22  ;;  %28901 = vrsqrt.f32 %v24991_v18 }
0x1625   :  { %v25088_v46 = vmul.f32 %v36731_v63, %v25052_v0  ;;  %28903 = vrsqrt.f32 %v24990_v2 }
0x1626   :  { %v25125_v35 = vadd.f32 %v36732_v54, %v25089_v45 }
0x1627   :  { %v25124_v19 = vadd.f32 %v36732_v54, %v25088_v46 }
0x1628   :  { %25157 = vst.msk [vmem:[%s35892_s6 + $0xb8] sm:$0xff] %vm57_vm0, %v25125_v35 }
0x1629   :  { %25156 = vst.msk [vmem:[%s35892_s6 + $0xb0] sm:$0xff] %vm57_vm0, %v25124_v19 }
0x162e   :  { %v28902_v5 = vpop.eup %28901 }
0x162f   :  { %v28904_v40 = vpop.eup %28903  ;;  %v25055_v7 = vmul.f32 %v28902_v5, %v35615_v25 }
0x1630   :  { %v25054_v38 = vmul.f32 %v28904_v40, %v35618_v14 }
0x1631   :  { %v25091_v32 = vmul.f32 %v36731_v63, %v25055_v7 }
0x1632   :  { %v25090_v3 = vmul.f32 %v36731_v63, %v25054_v38 }
0x1633   :  { %v25127_v24 = vadd.f32 %v36732_v54, %v25091_v32 }
0x1634   :  { %v25126_v20 = vadd.f32 %v36732_v54, %v25090_v3  ;;  %v24921_v61 = vpop.xlane.xlu0 %24920 }
0x1635   :  { %25159 = vst.msk [vmem:[%s35892_s6 + $0xc8] sm:$0xff] %vm57_vm0, %v25127_v24  ;;  %v24961_v25 = vmul.f32 0.03125, %v24921_v61  ;;  %v24918_v14 = vpop.xlane.xlu1 %24917 }
0x1636   :  { %25158 = vst.msk [vmem:[%s35892_s6 + $0xc0] sm:$0xff] %vm57_vm0, %v25126_v20  ;;  %v24960_v30 = vmul.f32 0.03125, %v24918_v14 }
0x1637   :  { %v24993_v50 = vadd.f32 1e-06, %v24961_v25 }
0x1638   :  { %v24992_v58 = vadd.f32 1e-06, %v24960_v30 }
0x1639   :  { %28905 = vrsqrt.f32 %v24993_v50 }
0x163a   :  { %28907 = vrsqrt.f32 %v24992_v58 }
0x163c   :  { %v24927_v8 = vpop.xlane.xlu0 %24926 }
0x163d   :  { %v24963_v4 = vmul.f32 0.03125, %v24927_v8  ;;  %v24924_v27 = vpop.xlane.xlu1 %24923 }
0x163e   :  { %v24962_v42 = vmul.f32 0.03125, %v24924_v27 }
0x163f   :  { %v24995_v43 = vadd.f32 1e-06, %v24963_v4 }
0x1640   :  { %v24994_v26 = vadd.f32 1e-06, %v24962_v42 }
0x1641   :  { %28909 = vrsqrt.f32 %v24995_v43 }
0x1642   :  { %28911 = vrsqrt.f32 %v24994_v26 }
0x1643   :  { %v28906_v34 = vpop.eup %28905 }
0x1644   :  { %v28908_v39 = vpop.eup %28907  ;;  %v25057_v28 = vmul.f32 %v28906_v34, %v35627_v55  ;;  %v24933_v44 = vpop.xlane.xlu0 %24932 }
0x1645   :  { %v25056_v1 = vmul.f32 %v28908_v39, %v35630_v49  ;;  %v24965_v59 = vmul.f32 0.03125, %v24933_v44  ;;  %v24930_v57 = vpop.xlane.xlu1 %24929 }
0x1646   :  { %v25093_v16 = vmul.f32 %v36731_v63, %v25057_v28  ;;  %v24964_v53 = vmul.f32 0.03125, %v24930_v57 }
0x1647   :  { %v25092_v33 = vmul.f32 %v36731_v63, %v25056_v1  ;;  %v24997_v55 = vadd.f32 1e-06, %v24965_v59 }
0x1648   :  { %v25129_v11 = vadd.f32 %v36732_v54, %v25093_v16  ;;  %v24996_v49 = vadd.f32 1e-06, %v24964_v53 }
0x1649   :  { %v25128_v13 = vadd.f32 %v36732_v54, %v25092_v33  ;;  %28913 = vrsqrt.f32 %v24997_v55 }
0x164a   :  { %25161 = vst.msk [vmem:[%s35892_s6 + $0xd8] sm:$0xff] %vm57_vm0, %v25129_v11  ;;  %28915 = vrsqrt.f32 %v24996_v49 }
0x164b   :  { %25160 = vst.msk [vmem:[%s35892_s6 + $0xd0] sm:$0xff] %vm57_vm0, %v25128_v13  ;;  %v28910_v52 = vpop.eup %28909 }
0x164c   :  { %v28912_v51 = vpop.eup %28911  ;;  %v25059_v9 = vmul.f32 %v28910_v52, %v35639_v62 }
0x164d   :  { %v25058_v31 = vmul.f32 %v28912_v51, %v35642_v36 }
0x164e   :  { %v25095_v41 = vmul.f32 %v36731_v63, %v25059_v9 }
0x164f   :  { %v25094_v12 = vmul.f32 %v36731_v63, %v25058_v31 }
0x1650   :  { %v25131_v23 = vadd.f32 %v36732_v54, %v25095_v41 }
0x1651   :  { %v25130_v29 = vadd.f32 %v36732_v54, %v25094_v12 }
0x1652   :  { %25163 = vst.msk [vmem:[%s35892_s6 + $0xe8] sm:$0xff] %vm57_vm0, %v25131_v23 }
0x1653   :  { %25162 = vst.msk [vmem:[%s35892_s6 + $0xe0] sm:$0xff] %vm57_vm0, %v25130_v29  ;;  %v28914_v62 = vpop.eup %28913 }
0x1654   :  { %v28916_v36 = vpop.eup %28915  ;;  %v25061_v10 = vmul.f32 %v28914_v62, %v35651_v6 }
0x1655   :  { %v25060_v47 = vmul.f32 %v28916_v36, %v35654_v56 }
0x1656   :  { %v25097_v37 = vmul.f32 %v36731_v63, %v25061_v10 }
0x1657   :  { %v25096_v21 = vmul.f32 %v36731_v63, %v25060_v47 }
0x1658   :  { %v25133_v17 = vadd.f32 %v36732_v54, %v25097_v37 }
0x1659   :  { %v25132_v48 = vadd.f32 %v36732_v54, %v25096_v21 }
0x165a   :  { %25165 = vst.msk [vmem:[%s35892_s6 + $0xf8] sm:$0xff] %vm57_vm0, %v25133_v17 }
0x165b   :  { %25164 = vst.msk [vmem:[%s35892_s6 + $0xf0] sm:$0xff] %vm57_vm0, %v25132_v48 }

</bundles_post_ra>
